<compile_context>
chip_gen: v7x
topology: tpu7x:2x2x1
jax: 0.10.0
libtpu: 0.0.40
codegen_flags: <defaults>
</compile_context>

<pallas_src>
import functools

import numpy as np
import jax
import jax.numpy as jnp
from jax.experimental import pallas as pl
from jax.experimental.pallas import tpu as pltpu


def _round_up(x, m):
    return ((x + m - 1) // m) * m


_PALLAS_MIN_M = 256      # below this, per-call overhead dominates
_PALLAS_MIN_COUT = 64    # skinny heads (Cout=1) would waste 128x MXU columns
_PALLAS_MIN_K = 64       # first conv (Cin=3) / 1x1 fuse (K=6)
_TK = 256                # K tile: matches 256-deep MXU on v6e/v7x


# ----------------------------------------------------------------------------
# Pallas kernel: K-tiled matmul, weight VMEM-resident, bias-init accumulator
# ----------------------------------------------------------------------------
def _conv_matmul_kernel(x_ref, w_ref, b_ref, o_ref, acc_ref, *, relu, n_k, tk):
    k = pl.program_id(1)

    @pl.when(k == 0)
    def _():
        # Bias-initialized accumulator: saves a (TM, Coutp) VPU add in epilogue.
        acc_ref[...] = jnp.broadcast_to(b_ref[...], acc_ref.shape)

    ks = pl.multiple_of(k * tk, tk)
    acc_ref[...] += jnp.dot(x_ref[...], w_ref[pl.ds(ks, tk), :],
                            preferred_element_type=jnp.float32)

    @pl.when(k == n_k - 1)
    def _():
        y = acc_ref[...]
        if relu:
            y = jnp.maximum(y, 0.0)
        o_ref[...] = y.astype(o_ref.dtype)


def _pick_tm(M):
    # Prefer a TM that divides M exactly (no row padding) and gives >=2 M
    # tiles so the v7x megacore has something to split.
    for cand in (1024, 512):
        if M % cand == 0 and M // cand >= 2:
            return cand
    return 256


def _pallas_matmul(xc, wm, bias, relu, cout, out_dtype=jnp.bfloat16):
    """y[:M,:cout] = maybe_relu(xc @ wm + bias).
    xc: (M, Kp) bf16 (K already zero-padded to Kp), wm: (Kp, Coutp) bf16
    pre-padded at init time, bias: (1, cout) f32."""
    M, Kp = xc.shape
    Kp_w, Coutp = wm.shape
    assert Kp_w == Kp and Kp % _TK == 0
    n_k = Kp // _TK
    TM = _pick_tm(M)
    Mp = _round_up(M, TM)
    if Mp != M:
        xc = jnp.pad(xc, ((0, Mp - M), (0, 0)))
    bb = bias
    if Coutp != cout:
        bb = jnp.pad(bb, ((0, 0), (0, Coutp - cout)))

    out = pl.pallas_call(
        functools.partial(_conv_matmul_kernel, relu=relu, n_k=n_k, tk=_TK),
        out_shape=jax.ShapeDtypeStruct((Mp, Coutp), out_dtype),
        grid=(Mp // TM, n_k),
        in_specs=[
            pl.BlockSpec((TM, _TK), lambda i, k: (i, k)),
            # Whole weight VMEM-resident: constant block index -> one DMA.
            pl.BlockSpec((Kp, Coutp), lambda i, k: (0, 0)),
            pl.BlockSpec((1, Coutp), lambda i, k: (0, 0)),
        ],
        out_specs=pl.BlockSpec((TM, Coutp), lambda i, k: (i, 0)),
        scratch_shapes=[pltpu.VMEM((TM, Coutp), jnp.float32)],
        compiler_params=pltpu.CompilerParams(
            dimension_semantics=("parallel", "arbitrary"),
            # Largest resident working set (weight 2x~9.4MiB + TM=1024 tiles)
            # is ~24 MiB -> fits v7x's 64 MiB physical VMEM with headroom.
            vmem_limit_bytes=48 * 1024 * 1024,
        ),
    )(xc, wm, bb)
    return out[:M, :cout]


# ----------------------------------------------------------------------------
# Conv wrappers (im2col glue in plain JAX, matmul in Pallas)
# ----------------------------------------------------------------------------
def _im2col_3x3(x, d, k_pad=0):
    """x: (N,H,W,C) NHWC, 3x3 kernel, padding=dilation=d (static int).
    K padding is folded into the concat (no second full-matrix pad copy)."""
    N, H, W, C = x.shape
    xp = jnp.pad(x, ((0, 0), (d, d), (d, d), (0, 0)))
    cols = [xp[:, ki * d:ki * d + H, kj * d:kj * d + W, :]
            for ki in range(3) for kj in range(3)]
    if k_pad:
        cols.append(jnp.zeros((N, H, W, k_pad), x.dtype))
    return jnp.concatenate(cols, axis=-1).reshape(N * H * W, 9 * C + k_pad)


def conv3x3_affine(x, wm, bias, d, relu):
    """3x3 conv (padding=dilation=d) + bias + optional ReLU.  BN scale is
    pre-folded into wm; wm is pre-reshaped/padded/cast at init time."""
    N, H, W, Cin = x.shape
    K = 9 * Cin
    Cout = bias.shape[1]
    M = N * H * W
    use_pallas = (M >= _PALLAS_MIN_M and Cout >= _PALLAS_MIN_COUT
                  and K >= _PALLAS_MIN_K)
    if use_pallas:
        Kp = wm.shape[0]
        xc = _im2col_3x3(x, d, k_pad=Kp - K)
        y = _pallas_matmul(xc, wm, bias, relu, Cout)
    else:
        # Tiny/skinny GEMMs: XLA fuses these fine; Pallas padding would waste
        # MXU columns and HBM writeback.
        xc = _im2col_3x3(x, d)
        y = jnp.dot(xc, wm[:K, :Cout].astype(jnp.bfloat16),
                    preferred_element_type=jnp.float32) + bias
        if relu:
            y = jnp.maximum(y, 0.0)
        y = y.astype(jnp.bfloat16)
    return y.reshape(N, H, W, Cout)


def conv1x1(x, wm, bias):
    """1x1 conv (K=6, Cout=1): always the skinny jnp.dot path."""
    N, H, W, C = x.shape
    Cout = wm.shape[1]
    y = jnp.dot(x.reshape(N * H * W, C).astype(jnp.bfloat16),
                wm.astype(jnp.bfloat16),
                preferred_element_type=jnp.float32) + bias
    return y.astype(jnp.bfloat16).reshape(N, H, W, Cout)


# ----------------------------------------------------------------------------
# Glue ops: max-pool (ceil_mode), bilinear upsample (align_corners, bf16 lerp)
# ----------------------------------------------------------------------------
def maxpool2(x):
    """MaxPool2d(kernel=2, stride=2, ceil_mode=True) on NHWC."""
    N, H, W, C = x.shape
    Ho, Wo = -(-H // 2), -(-W // 2)
    xp = jnp.pad(x, ((0, 0), (0, 2 * Ho - H), (0, 2 * Wo - W), (0, 0)),
                 constant_values=-jnp.inf)
    return xp.reshape(N, Ho, 2, Wo, 2, C).max(axis=(2, 4))


def _interp_idx(n_in, n_out):
    """align_corners=True source indices/weights (numpy, static)."""
    if n_out == 1 or n_in == 1:
        lo = np.zeros((n_out,), np.int32)
        return lo, lo.copy(), np.zeros((n_out,), np.float32)
    src = np.arange(n_out) * (n_in - 1) / (n_out - 1)
    lo = np.minimum(np.floor(src).astype(np.int32), n_in - 1)
    hi = np.minimum(lo + 1, n_in - 1)
    frac = (src - lo).astype(np.float32)
    return lo, hi, frac


def upsample_to(src, tar):
    """F.interpolate(src, size=tar.shape[1:3], mode='bilinear',
    align_corners=True).  Lerp runs in the activation dtype (bf16)."""
    N, H, W, C = src.shape
    Ht, Wt = tar.shape[1], tar.shape[2]
    if (H, W) == (Ht, Wt):
        return src
    dt = src.dtype
    lo_h, hi_h, fh = _interp_idx(H, Ht)
    lo_w, hi_w, fw = _interp_idx(W, Wt)
    fh = jnp.asarray(fh).astype(dt)[None, :, None, None]
    fw = jnp.asarray(fw).astype(dt)[None, None, :, None]
    one = jnp.asarray(1.0, dt)
    xh = src[:, lo_h] * (one - fh) + src[:, hi_h] * fh
    xw = xh[:, :, lo_w] * (one - fw) + xh[:, :, hi_w] * fw
    return xw.astype(dt)


def cat(a, b):
    return jnp.concatenate([a, b], axis=-1)


# ----------------------------------------------------------------------------
# Parameter init (deterministic, synthetic).  Dilations are static Python ints
# passed explicitly in the forward code (NOT stored in the jitted pytree).
# Weights are folded / reshaped / padded / bf16-cast here, once.
# ----------------------------------------------------------------------------
def make_pg(seed=0):
    base = jax.random.PRNGKey(seed)
    counter = [0]

    def pg():
        counter[0] += 1
        return jax.random.fold_in(base, counter[0])
    return pg


def _pad2(a, rows, cols):
    r, c = a.shape
    if (rows, cols) != (r, c):
        a = jnp.pad(a, ((0, rows - r), (0, cols - c)))
    return a


def init_rebn(pg, cin, cout):
    """Conv2d(3x3) + BatchNorm (eval stats).  BN scale folded into the weight;
    weight stored kernel-ready: (Kp, Coutp) bf16.  Bias kept unpadded (1,Cout)
    f32 so its (static) shape carries the true Cout into the forward code."""
    K = 9 * cin
    w = jax.random.normal(pg(), (3, 3, cin, cout), jnp.float32) / np.sqrt(K)
    cb = jax.random.normal(pg(), (cout,), jnp.float32) * 0.01
    gamma = jnp.ones((cout,), jnp.float32)
    beta = jnp.zeros((cout,), jnp.float32)
    mean = jnp.zeros((cout,), jnp.float32)
    var = jnp.ones((cout,), jnp.float32)
    scale = gamma / jnp.sqrt(var + 1e-5)
    w_folded = (w * scale[None, None, None, :]).reshape(K, cout)
    bias = (beta + (cb - mean) * scale).reshape(1, cout)
    Kp, Coutp = _round_up(K, _TK), _round_up(cout, 128)
    wm = _pad2(w_folded, Kp, Coutp).astype(jnp.bfloat16)
    return {'w': wm, 'b': bias}


def init_plain3(pg, cin, cout):
    """Plain Conv2d(3x3, padding=1) with bias (side heads, Cout=1 -> jnp.dot)."""
    K = 9 * cin
    w = jax.random.normal(pg(), (3, 3, cin, cout), jnp.float32) / np.sqrt(K)
    b = jax.random.normal(pg(), (cout,), jnp.float32) * 0.01
    return {'w': w.reshape(K, cout).astype(jnp.bfloat16),
            'b': b.reshape(1, cout)}


def rebn(p, x, d=1):
    return conv3x3_affine(x, p['w'], p['b'], d, relu=True)


def side(p, x):
    return conv3x3_affine(x, p['w'], p['b'], 1, relu=False)


def init_rsu1(pg, i, m, o):
    return {'in': init_rebn(pg, i, o),
            'c1': init_rebn(pg, o, m), 'c2': init_rebn(pg, m, m),
            'c3': init_rebn(pg, m, m), 'c4': init_rebn(pg, m, m),
            'c5': init_rebn(pg, m, m), 'c6': init_rebn(pg, m, m),
            'c7': init_rebn(pg, m, m),
            'd6': init_rebn(pg, 2 * m, m), 'd5': init_rebn(pg, 2 * m, m),
            'd4': init_rebn(pg, 2 * m, m), 'd3': init_rebn(pg, 2 * m, m),
            'd2': init_rebn(pg, 2 * m, m), 'd1': init_rebn(pg, 2 * m, o)}


def init_rsu2(pg, i, m, o):
    return {'in': init_rebn(pg, i, o),
            'c1': init_rebn(pg, o, m), 'c2': init_rebn(pg, m, m),
            'c3': init_rebn(pg, m, m), 'c4': init_rebn(pg, m, m),
            'c5': init_rebn(pg, m, m), 'c6': init_rebn(pg, m, m),
            'd5': init_rebn(pg, 2 * m, m), 'd4': init_rebn(pg, 2 * m, m),
            'd3': init_rebn(pg, 2 * m, m), 'd2': init_rebn(pg, 2 * m, m),
            'd1': init_rebn(pg, 2 * m, o)}


def init_rsu3(pg, i, m, o):
    return {'in': init_rebn(pg, i, o),
            'c1': init_rebn(pg, o, m), 'c2': init_rebn(pg, m, m),
            'c3': init_rebn(pg, m, m), 'c4': init_rebn(pg, m, m),
            'c6': init_rebn(pg, m, m),
            'd4': init_rebn(pg, 2 * m, m), 'd3': init_rebn(pg, 2 * m, m),
            'd2': init_rebn(pg, 2 * m, m), 'd1': init_rebn(pg, 2 * m, o)}


def init_rsu4(pg, i, m, o):
    return {'in': init_rebn(pg, i, o),
            'c1': init_rebn(pg, o, m), 'c2': init_rebn(pg, m, m),
            'c3': init_rebn(pg, m, m), 'c6': init_rebn(pg, m, m),
            'd3': init_rebn(pg, 2 * m, m), 'd2': init_rebn(pg, 2 * m, m),
            'd1': init_rebn(pg, 2 * m, o)}


def init_rsu5f(pg, i, m, o):
    return {'in': init_rebn(pg, i, o),
            'c1': init_rebn(pg, o, m), 'c2': init_rebn(pg, m, m),
            'c3': init_rebn(pg, m, m), 'c4': init_rebn(pg, m, m),
            'd3': init_rebn(pg, 2 * m, m), 'd2': init_rebn(pg, 2 * m, m),
            'd1': init_rebn(pg, 2 * m, o)}


def init_u2net(pg, in_ch=3, out_ch=1):
    return {
        'enc1': init_rsu1(pg, in_ch, 32, 64),
        'enc2': init_rsu2(pg, 64, 32, 128),
        'enc3': init_rsu3(pg, 128, 64, 256),
        'enc4': init_rsu4(pg, 256, 128, 512),
        'enc5': init_rsu5f(pg, 512, 256, 512),
        'enc6': init_rsu5f(pg, 512, 256, 512),
        'dec5': init_rsu5f(pg, 1024, 256, 512),
        'dec4': init_rsu4(pg, 1024, 128, 256),
        'dec3': init_rsu3(pg, 512, 64, 128),
        'dec2': init_rsu2(pg, 256, 32, 64),
        'dec1': init_rsu1(pg, 128, 16, 64),
        'side1': init_plain3(pg, 64, out_ch),
        'side2': init_plain3(pg, 64, out_ch),
        'side3': init_plain3(pg, 128, out_ch),
        'side4': init_plain3(pg, 256, out_ch),
        'side5': init_plain3(pg, 512, out_ch),
        'side6': init_plain3(pg, 512, out_ch),
        'outc_w': jax.random.normal(pg(), (6, out_ch), jnp.float32) / np.sqrt(6.0),
        'outc_b': (jax.random.normal(pg(), (out_ch,), jnp.float32) * 0.01
                   ).reshape(1, out_ch),
    }


# ----------------------------------------------------------------------------
# RSU forward blocks (dilations are static ints matching the PyTorch modules)
# ----------------------------------------------------------------------------
def rsu1(p, x):
    hxin = rebn(p['in'], x)
    hx1 = rebn(p['c1'], hxin)
    hx2 = rebn(p['c2'], maxpool2(hx1))
    hx3 = rebn(p['c3'], maxpool2(hx2))
    hx4 = rebn(p['c4'], maxpool2(hx3))
    hx5 = rebn(p['c5'], maxpool2(hx4))
    hx6 = rebn(p['c6'], maxpool2(hx5))
    hx7 = rebn(p['c7'], hx6, d=2)
    hx6d = rebn(p['d6'], cat(hx7, hx6))
    hx5d = rebn(p['d5'], cat(upsample_to(hx6d, hx5), hx5))
    hx4d = rebn(p['d4'], cat(upsample_to(hx5d, hx4), hx4))
    hx3d = rebn(p['d3'], cat(upsample_to(hx4d, hx3), hx3))
    hx2d = rebn(p['d2'], cat(upsample_to(hx3d, hx2), hx2))
    hx1d = rebn(p['d1'], cat(upsample_to(hx2d, hx1), hx1))
    return hx1d + hxin


def rsu2(p, x):
    hxin = rebn(p['in'], x)
    hx1 = rebn(p['c1'], hxin)
    hx2 = rebn(p['c2'], maxpool2(hx1))
    hx3 = rebn(p['c3'], maxpool2(hx2))
    hx4 = rebn(p['c4'], maxpool2(hx3))
    hx5 = rebn(p['c5'], maxpool2(hx4))
    hx6 = rebn(p['c6'], hx5, d=2)
    hx5d = rebn(p['d5'], cat(hx6, hx5))
    hx4d = rebn(p['d4'], cat(upsample_to(hx5d, hx4), hx4))
    hx3d = rebn(p['d3'], cat(upsample_to(hx4d, hx3), hx3))
    hx2d = rebn(p['d2'], cat(upsample_to(hx3d, hx2), hx2))
    hx1d = rebn(p['d1'], cat(upsample_to(hx2d, hx1), hx1))
    return hx1d + hxin


def rsu3(p, x):
    hxin = rebn(p['in'], x)
    hx1 = rebn(p['c1'], hxin)
    hx2 = rebn(p['c2'], maxpool2(hx1))
    hx3 = rebn(p['c3'], maxpool2(hx2))
    hx4 = rebn(p['c4'], maxpool2(hx3))
    hx5 = rebn(p['c6'], hx4, d=2)
    hx4d = rebn(p['d4'], cat(hx5, hx4))
    hx3d = rebn(p['d3'], cat(upsample_to(hx4d, hx3), hx3))
    hx2d = rebn(p['d2'], cat(upsample_to(hx3d, hx2), hx2))
    hx1d = rebn(p['d1'], cat(upsample_to(hx2d, hx1), hx1))
    return hx1d + hxin


def rsu4(p, x):
    hxin = rebn(p['in'], x)
    hx1 = rebn(p['c1'], hxin)
    hx2 = rebn(p['c2'], maxpool2(hx1))
    hx3 = rebn(p['c3'], maxpool2(hx2))
    hx4 = rebn(p['c6'], hx3, d=2)
    hx3d = rebn(p['d3'], cat(hx4, hx3))
    hx2d = rebn(p['d2'], cat(upsample_to(hx3d, hx2), hx2))
    hx1d = rebn(p['d1'], cat(upsample_to(hx2d, hx1), hx1))
    return hx1d + hxin


def rsu5f(p, x):
    hxin = rebn(p['in'], x)
    hx1 = rebn(p['c1'], hxin)
    hx2 = rebn(p['c2'], hx1, d=2)
    hx3 = rebn(p['c3'], hx2, d=4)
    hx4 = rebn(p['c4'], hx3, d=8)
    hx3d = rebn(p['d3'], cat(hx4, hx3), d=4)
    hx2d = rebn(p['d2'], cat(hx3d, hx2), d=2)
    hx1d = rebn(p['d1'], cat(hx2d, hx1), d=1)
    return hx1d + hxin


# ----------------------------------------------------------------------------
# U2NET forward
# ----------------------------------------------------------------------------
def u2net_forward(params, x_nchw):
    # NCHW -> NHWC; inter-layer activations in bf16 (HBM glue traffic).
    x = jnp.transpose(x_nchw, (0, 2, 3, 1)).astype(jnp.bfloat16)

    hx1 = rsu1(params['enc1'], x)
    hx2 = rsu2(params['enc2'], maxpool2(hx1))
    hx3 = rsu3(params['enc3'], maxpool2(hx2))
    hx4 = rsu4(params['enc4'], maxpool2(hx3))
    hx5 = rsu5f(params['enc5'], maxpool2(hx4))
    hx6 = rsu5f(params['enc6'], maxpool2(hx5))

    hx6up = upsample_to(hx6, hx5)
    hx5d = rsu5f(params['dec5'], cat(hx6up, hx5))
    hx4d = rsu4(params['dec4'], cat(upsample_to(hx5d, hx4), hx4))
    hx3d = rsu3(params['dec3'], cat(upsample_to(hx4d, hx3), hx3))
    hx2d = rsu2(params['dec2'], cat(upsample_to(hx3d, hx2), hx2))
    hx1d = rsu1(params['dec1'], cat(upsample_to(hx2d, hx1), hx1))

    d1 = side(params['side1'], hx1d)
    d2 = upsample_to(side(params['side2'], hx2d), d1)
    d3 = upsample_to(side(params['side3'], hx3d), d1)
    d4 = upsample_to(side(params['side4'], hx4d), d1)
    d5 = upsample_to(side(params['side5'], hx5d), d1)
    d6 = upsample_to(side(params['side6'], hx6), d1)
    d0 = conv1x1(jnp.concatenate([d1, d2, d3, d4, d5, d6], axis=-1),
                 params['outc_w'], params['outc_b'])

    outs = tuple(jax.nn.sigmoid(d.astype(jnp.float32))
                 for d in (d0, d1, d2, d3, d4, d5, d6))
    # NHWC -> NCHW to match the PyTorch return convention
    return tuple(jnp.transpose(o, (0, 3, 1, 2)) for o in outs)


if __name__ == "__main__":
    key = jax.random.PRNGKey(0)
    params = init_u2net(make_pg(0), in_ch=3, out_ch=1)
    x = jax.random.normal(jax.random.fold_in(key, 123), (1, 3, 32, 32), jnp.float32)

    fwd = jax.jit(u2net_forward)
    outs = jax.block_until_ready(fwd(params, x))

    assert len(outs) == 7
    for o in outs:
        assert o.shape == (1, 1, 32, 32), o.shape
        assert bool(jnp.all(jnp.isfinite(o)))
        assert bool(jnp.all((o >= 0.0) & (o <= 1.0)))
    print("KERNEL_OK")
</pallas_src>

<mosaic_0001>
module attributes {stable_mosaic.version = 11 : i64} {
  func.func @_conv_matmul_kernel(%arg0: i32, %arg1: i32, %arg2: memref<512x256xbf16, #tpu.memory_space<vmem>>, %arg3: memref<768x128xbf16, #tpu.memory_space<vmem>>, %arg4: memref<1x128xf32, #tpu.memory_space<vmem>>, %arg5: memref<512x128xbf16, #tpu.memory_space<vmem>>, %arg6: memref<512x128xf32, #tpu.memory_space<vmem>>) attributes {dimension_semantics = [#tpu.dimension_semantics<parallel>, #tpu.dimension_semantics<arbitrary>], iteration_bounds = array<i64: 2, 3>, scalar_prefetch = 0 : i64, scratch_operands = 1 : i64, tpu.core_type = #tpu.core_type<tc>, window_params = [{transform_indices = @transform_0, window_bounds = array<i64: 512, 256>}, {pipeline_mode = #tpu.pipeline_mode<synchronous>, transform_indices = @transform_1, window_bounds = array<i64: 768, 128>}, {pipeline_mode = #tpu.pipeline_mode<synchronous>, transform_indices = @transform_2, window_bounds = array<i64: 1, 128>}, {transform_indices = @transform_3, window_bounds = array<i64: 512, 128>}]} {
    %c0_i32 = arith.constant 0 : i32
    %0 = arith.cmpi eq, %arg1, %c0_i32 : i32
    %1 = arith.extui %0 : i1 to i32
    %c0_i32_0 = arith.constant 0 : i32
    %2 = arith.cmpi ne, %1, %c0_i32_0 : i32
    scf.if %2 {
      %c0_8 = arith.constant 0 : index
      %c0_9 = arith.constant 0 : index
      %15 = vector.load %arg4[%c0_8, %c0_9] : memref<1x128xf32, #tpu.memory_space<vmem>>, vector<1x128xf32>
      %16 = vector.shape_cast %15 : vector<1x128xf32> to vector<1x128xf32>
      %17 = vector.broadcast %16 : vector<1x128xf32> to vector<512x128xf32>
      %c0_10 = arith.constant 0 : index
      %c0_11 = arith.constant 0 : index
      %18 = vector.load %arg6[%c0_10, %c0_11] : memref<512x128xf32, #tpu.memory_space<vmem>>, vector<512x128xf32>
      tpu.vector_store %arg6[%c0_10, %c0_11], %17 {strides = array<i32>} : memref<512x128xf32, #tpu.memory_space<vmem>>, vector<512x128xf32>,
    } else {
    }
    %c256_i32 = arith.constant 256 : i32
    %3 = arith.muli %arg1, %c256_i32 : i32
    %4 = tpu.assume_multiple %3, 256 : i32
    %c0 = arith.constant 0 : index
    %c0_1 = arith.constant 0 : index
    %5 = vector.load %arg6[%c0, %c0_1] : memref<512x128xf32, #tpu.memory_space<vmem>>, vector<512x128xf32>
    %c0_2 = arith.constant 0 : index
    %c0_3 = arith.constant 0 : index
    %6 = vector.load %arg2[%c0_2, %c0_3] : memref<512x256xbf16, #tpu.memory_space<vmem>>, vector<512x256xbf16>
    %7 = arith.index_cast %4 : i32 to index
    %c0_4 = arith.constant 0 : index
    %8 = vector.load %arg3[%7, %c0_4] : memref<768x128xbf16, #tpu.memory_space<vmem>>, vector<256x128xbf16>
    %cst = arith.constant dense<0.000000e+00> : vector<512x128xf32>
    %9 = tpu.matmul %6, %8, %cst {dimension_numbers = #tpu.dot_dimension_numbers<[1], [0], [0], [1], [0, 0, 1, 1], [], []>} : vector<512x256xbf16>, vector<256x128xbf16>, vector<512x128xf32> -> vector<512x128xf32>
    %10 = arith.addf %5, %9 : vector<512x128xf32>
    %c0_5 = arith.constant 0 : index
    %c0_6 = arith.constant 0 : index
    %11 = vector.load %arg6[%c0_5, %c0_6] : memref<512x128xf32, #tpu.memory_space<vmem>>, vector<512x128xf32>
    tpu.vector_store %arg6[%c0_5, %c0_6], %10 {strides = array<i32>} : memref<512x128xf32, #tpu.memory_space<vmem>>, vector<512x128xf32>,
    %c2_i32 = arith.constant 2 : i32
    %12 = arith.cmpi eq, %arg1, %c2_i32 : i32
    %13 = arith.extui %12 : i1 to i32
    %c0_i32_7 = arith.constant 0 : i32
    %14 = arith.cmpi ne, %13, %c0_i32_7 : i32
    scf.if %14 {
      %c0_8 = arith.constant 0 : index
      %c0_9 = arith.constant 0 : index
      %15 = vector.load %arg6[%c0_8, %c0_9] : memref<512x128xf32, #tpu.memory_space<vmem>>, vector<512x128xf32>
      %cst_10 = arith.constant 0.000000e+00 : f32
      %16 = vector.broadcast %cst_10 : f32 to vector<512x128xf32>
      %17 = arith.maximumf %15, %16 : vector<512x128xf32>
      %18 = arith.truncf %17 : vector<512x128xf32> to vector<512x128xbf16>
      %c0_11 = arith.constant 0 : index
      %c0_12 = arith.constant 0 : index
      %19 = vector.load %arg5[%c0_11, %c0_12] : memref<512x128xbf16, #tpu.memory_space<vmem>>, vector<512x128xbf16>
      tpu.vector_store %arg5[%c0_11, %c0_12], %18 {strides = array<i32>} : memref<512x128xbf16, #tpu.memory_space<vmem>>, vector<512x128xbf16>,
    } else {
    }
    return
  }
  func.func @transform_0(%arg0: i32, %arg1: i32) -> (i32, i32) {
    %c0_i32 = arith.constant 0 : i32
    return %arg0, %arg1 : i32, i32
  }
  func.func @transform_1(%arg0: i32, %arg1: i32) -> (i32, i32) {
    %c0_i32 = arith.constant 0 : i32
    %c0_i32_0 = arith.constant 0 : i32
    %c0_i32_1 = arith.constant 0 : i32
    return %c0_i32, %c0_i32_0 : i32, i32
  }
  func.func @transform_2(%arg0: i32, %arg1: i32) -> (i32, i32) {
    %c0_i32 = arith.constant 0 : i32
    %c0_i32_0 = arith.constant 0 : i32
    %c0_i32_1 = arith.constant 0 : i32
    return %c0_i32, %c0_i32_0 : i32, i32
  }
  func.func @transform_3(%arg0: i32, %arg1: i32) -> (i32, i32) {
    %c0_i32 = arith.constant 0 : i32
    %c0_i32_0 = arith.constant 0 : i32
    return %arg0, %c0_i32 : i32, i32
  }
}

module attributes {stable_mosaic.version = 11 : i64} {
  func.func @_conv_matmul_kernel(%arg0: i32, %arg1: i32, %arg2: memref<256x256xbf16, #tpu.memory_space<vmem>>, %arg3: memref<768x128xbf16, #tpu.memory_space<vmem>>, %arg4: memref<1x128xf32, #tpu.memory_space<vmem>>, %arg5: memref<256x128xbf16, #tpu.memory_space<vmem>>, %arg6: memref<256x128xf32, #tpu.memory_space<vmem>>) attributes {dimension_semantics = [#tpu.dimension_semantics<parallel>, #tpu.dimension_semantics<arbitrary>], iteration_bounds = array<i64: 1, 3>, scalar_prefetch = 0 : i64, scratch_operands = 1 : i64, tpu.core_type = #tpu.core_type<tc>, window_params = [{transform_indices = @transform_0, window_bounds = array<i64: 256, 256>}, {pipeline_mode = #tpu.pipeline_mode<synchronous>, transform_indices = @transform_1, window_bounds = array<i64: 768, 128>}, {pipeline_mode = #tpu.pipeline_mode<synchronous>, transform_indices = @transform_2, window_bounds = array<i64: 1, 128>}, {transform_indices = @transform_3, window_bounds = array<i64: 256, 128>}]} {
    %c0_i32 = arith.constant 0 : i32
    %0 = arith.cmpi eq, %arg1, %c0_i32 : i32
    %1 = arith.extui %0 : i1 to i32
    %c0_i32_0 = arith.constant 0 : i32
    %2 = arith.cmpi ne, %1, %c0_i32_0 : i32
    scf.if %2 {
      %c0_8 = arith.constant 0 : index
      %c0_9 = arith.constant 0 : index
      %15 = vector.load %arg4[%c0_8, %c0_9] : memref<1x128xf32, #tpu.memory_space<vmem>>, vector<1x128xf32>
      %16 = vector.shape_cast %15 : vector<1x128xf32> to vector<1x128xf32>
      %17 = vector.broadcast %16 : vector<1x128xf32> to vector<256x128xf32>
      %c0_10 = arith.constant 0 : index
      %c0_11 = arith.constant 0 : index
      %18 = vector.load %arg6[%c0_10, %c0_11] : memref<256x128xf32, #tpu.memory_space<vmem>>, vector<256x128xf32>
      tpu.vector_store %arg6[%c0_10, %c0_11], %17 {strides = array<i32>} : memref<256x128xf32, #tpu.memory_space<vmem>>, vector<256x128xf32>,
    } else {
    }
    %c256_i32 = arith.constant 256 : i32
    %3 = arith.muli %arg1, %c256_i32 : i32
    %4 = tpu.assume_multiple %3, 256 : i32
    %c0 = arith.constant 0 : index
    %c0_1 = arith.constant 0 : index
    %5 = vector.load %arg6[%c0, %c0_1] : memref<256x128xf32, #tpu.memory_space<vmem>>, vector<256x128xf32>
    %c0_2 = arith.constant 0 : index
    %c0_3 = arith.constant 0 : index
    %6 = vector.load %arg2[%c0_2, %c0_3] : memref<256x256xbf16, #tpu.memory_space<vmem>>, vector<256x256xbf16>
    %7 = arith.index_cast %4 : i32 to index
    %c0_4 = arith.constant 0 : index
    %8 = vector.load %arg3[%7, %c0_4] : memref<768x128xbf16, #tpu.memory_space<vmem>>, vector<256x128xbf16>
    %cst = arith.constant dense<0.000000e+00> : vector<256x128xf32>
    %9 = tpu.matmul %6, %8, %cst {dimension_numbers = #tpu.dot_dimension_numbers<[1], [0], [0], [1], [0, 0, 1, 1], [], []>} : vector<256x256xbf16>, vector<256x128xbf16>, vector<256x128xf32> -> vector<256x128xf32>
    %10 = arith.addf %5, %9 : vector<256x128xf32>
    %c0_5 = arith.constant 0 : index
    %c0_6 = arith.constant 0 : index
    %11 = vector.load %arg6[%c0_5, %c0_6] : memref<256x128xf32, #tpu.memory_space<vmem>>, vector<256x128xf32>
    tpu.vector_store %arg6[%c0_5, %c0_6], %10 {strides = array<i32>} : memref<256x128xf32, #tpu.memory_space<vmem>>, vector<256x128xf32>,
    %c2_i32 = arith.constant 2 : i32
    %12 = arith.cmpi eq, %arg1, %c2_i32 : i32
    %13 = arith.extui %12 : i1 to i32
    %c0_i32_7 = arith.constant 0 : i32
    %14 = arith.cmpi ne, %13, %c0_i32_7 : i32
    scf.if %14 {
      %c0_8 = arith.constant 0 : index
      %c0_9 = arith.constant 0 : index
      %15 = vector.load %arg6[%c0_8, %c0_9] : memref<256x128xf32, #tpu.memory_space<vmem>>, vector<256x128xf32>
      %cst_10 = arith.constant 0.000000e+00 : f32
      %16 = vector.broadcast %cst_10 : f32 to vector<256x128xf32>
      %17 = arith.maximumf %15, %16 : vector<256x128xf32>
      %18 = arith.truncf %17 : vector<256x128xf32> to vector<256x128xbf16>
      %c0_11 = arith.constant 0 : index
      %c0_12 = arith.constant 0 : index
      %19 = vector.load %arg5[%c0_11, %c0_12] : memref<256x128xbf16, #tpu.memory_space<vmem>>, vector<256x128xbf16>
      tpu.vector_store %arg5[%c0_11, %c0_12], %18 {strides = array<i32>} : memref<256x128xbf16, #tpu.memory_space<vmem>>, vector<256x128xbf16>,
    } else {
    }
    return
  }
  func.func @transform_0(%arg0: i32, %arg1: i32) -> (i32, i32) {
    %c0_i32 = arith.constant 0 : i32
    return %arg0, %arg1 : i32, i32
  }
  func.func @transform_1(%arg0: i32, %arg1: i32) -> (i32, i32) {
    %c0_i32 = arith.constant 0 : i32
    %c0_i32_0 = arith.constant 0 : i32
    %c0_i32_1 = arith.constant 0 : i32
    return %c0_i32, %c0_i32_0 : i32, i32
  }
  func.func @transform_2(%arg0: i32, %arg1: i32) -> (i32, i32) {
    %c0_i32 = arith.constant 0 : i32
    %c0_i32_0 = arith.constant 0 : i32
    %c0_i32_1 = arith.constant 0 : i32
    return %c0_i32, %c0_i32_0 : i32, i32
  }
  func.func @transform_3(%arg0: i32, %arg1: i32) -> (i32, i32) {
    %c0_i32 = arith.constant 0 : i32
    %c0_i32_0 = arith.constant 0 : i32
    return %arg0, %c0_i32 : i32, i32
  }
}

module attributes {stable_mosaic.version = 11 : i64} {
  func.func @_conv_matmul_kernel(%arg0: i32, %arg1: i32, %arg2: memref<256x256xbf16, #tpu.memory_space<vmem>>, %arg3: memref<768x128xbf16, #tpu.memory_space<vmem>>, %arg4: memref<1x128xf32, #tpu.memory_space<vmem>>, %arg5: memref<256x128xbf16, #tpu.memory_space<vmem>>, %arg6: memref<256x128xf32, #tpu.memory_space<vmem>>) attributes {dimension_semantics = [#tpu.dimension_semantics<parallel>, #tpu.dimension_semantics<arbitrary>], iteration_bounds = array<i64: 1, 3>, scalar_prefetch = 0 : i64, scratch_operands = 1 : i64, tpu.core_type = #tpu.core_type<tc>, window_params = [{transform_indices = @transform_0, window_bounds = array<i64: 256, 256>}, {pipeline_mode = #tpu.pipeline_mode<synchronous>, transform_indices = @transform_1, window_bounds = array<i64: 768, 128>}, {pipeline_mode = #tpu.pipeline_mode<synchronous>, transform_indices = @transform_2, window_bounds = array<i64: 1, 128>}, {transform_indices = @transform_3, window_bounds = array<i64: 256, 128>}]} {
    %c0_i32 = arith.constant 0 : i32
    %0 = arith.cmpi eq, %arg1, %c0_i32 : i32
    %1 = arith.extui %0 : i1 to i32
    %c0_i32_0 = arith.constant 0 : i32
    %2 = arith.cmpi ne, %1, %c0_i32_0 : i32
    scf.if %2 {
      %c0_8 = arith.constant 0 : index
      %c0_9 = arith.constant 0 : index
      %15 = vector.load %arg4[%c0_8, %c0_9] : memref<1x128xf32, #tpu.memory_space<vmem>>, vector<1x128xf32>
      %16 = vector.shape_cast %15 : vector<1x128xf32> to vector<1x128xf32>
      %17 = vector.broadcast %16 : vector<1x128xf32> to vector<256x128xf32>
      %c0_10 = arith.constant 0 : index
      %c0_11 = arith.constant 0 : index
      %18 = vector.load %arg6[%c0_10, %c0_11] : memref<256x128xf32, #tpu.memory_space<vmem>>, vector<256x128xf32>
      tpu.vector_store %arg6[%c0_10, %c0_11], %17 {strides = array<i32>} : memref<256x128xf32, #tpu.memory_space<vmem>>, vector<256x128xf32>,
    } else {
    }
    %c256_i32 = arith.constant 256 : i32
    %3 = arith.muli %arg1, %c256_i32 : i32
    %4 = tpu.assume_multiple %3, 256 : i32
    %c0 = arith.constant 0 : index
    %c0_1 = arith.constant 0 : index
    %5 = vector.load %arg6[%c0, %c0_1] : memref<256x128xf32, #tpu.memory_space<vmem>>, vector<256x128xf32>
    %c0_2 = arith.constant 0 : index
    %c0_3 = arith.constant 0 : index
    %6 = vector.load %arg2[%c0_2, %c0_3] : memref<256x256xbf16, #tpu.memory_space<vmem>>, vector<256x256xbf16>
    %7 = arith.index_cast %4 : i32 to index
    %c0_4 = arith.constant 0 : index
    %8 = vector.load %arg3[%7, %c0_4] : memref<768x128xbf16, #tpu.memory_space<vmem>>, vector<256x128xbf16>
    %cst = arith.constant dense<0.000000e+00> : vector<256x128xf32>
    %9 = tpu.matmul %6, %8, %cst {dimension_numbers = #tpu.dot_dimension_numbers<[1], [0], [0], [1], [0, 0, 1, 1], [], []>} : vector<256x256xbf16>, vector<256x128xbf16>, vector<256x128xf32> -> vector<256x128xf32>
    %10 = arith.addf %5, %9 : vector<256x128xf32>
    %c0_5 = arith.constant 0 : index
    %c0_6 = arith.constant 0 : index
    %11 = vector.load %arg6[%c0_5, %c0_6] : memref<256x128xf32, #tpu.memory_space<vmem>>, vector<256x128xf32>
    tpu.vector_store %arg6[%c0_5, %c0_6], %10 {strides = array<i32>} : memref<256x128xf32, #tpu.memory_space<vmem>>, vector<256x128xf32>,
    %c2_i32 = arith.constant 2 : i32
    %12 = arith.cmpi eq, %arg1, %c2_i32 : i32
    %13 = arith.extui %12 : i1 to i32
    %c0_i32_7 = arith.constant 0 : i32
    %14 = arith.cmpi ne, %13, %c0_i32_7 : i32
    scf.if %14 {
      %c0_8 = arith.constant 0 : index
      %c0_9 = arith.constant 0 : index
      %15 = vector.load %arg6[%c0_8, %c0_9] : memref<256x128xf32, #tpu.memory_space<vmem>>, vector<256x128xf32>
      %cst_10 = arith.constant 0.000000e+00 : f32
      %16 = vector.broadcast %cst_10 : f32 to vector<256x128xf32>
      %17 = arith.maximumf %15, %16 : vector<256x128xf32>
      %18 = arith.truncf %17 : vector<256x128xf32> to vector<256x128xbf16>
      %c0_11 = arith.constant 0 : index
      %c0_12 = arith.constant 0 : index
      %19 = vector.load %arg5[%c0_11, %c0_12] : memref<256x128xbf16, #tpu.memory_space<vmem>>, vector<256x128xbf16>
      tpu.vector_store %arg5[%c0_11, %c0_12], %18 {strides = array<i32>} : memref<256x128xbf16, #tpu.memory_space<vmem>>, vector<256x128xbf16>,
    } else {
    }
    return
  }
  func.func @transform_0(%arg0: i32, %arg1: i32) -> (i32, i32) {
    %c0_i32 = arith.constant 0 : i32
    return %arg0, %arg1 : i32, i32
  }
  func.func @transform_1(%arg0: i32, %arg1: i32) -> (i32, i32) {
    %c0_i32 = arith.constant 0 : i32
    %c0_i32_0 = arith.constant 0 : i32
    %c0_i32_1 = arith.constant 0 : i32
    return %c0_i32, %c0_i32_0 : i32, i32
  }
  func.func @transform_2(%arg0: i32, %arg1: i32) -> (i32, i32) {
    %c0_i32 = arith.constant 0 : i32
    %c0_i32_0 = arith.constant 0 : i32
    %c0_i32_1 = arith.constant 0 : i32
    return %c0_i32, %c0_i32_0 : i32, i32
  }
  func.func @transform_3(%arg0: i32, %arg1: i32) -> (i32, i32) {
    %c0_i32 = arith.constant 0 : i32
    %c0_i32_0 = arith.constant 0 : i32
    return %arg0, %c0_i32 : i32, i32
  }
}

module attributes {stable_mosaic.version = 11 : i64} {
  func.func @_conv_matmul_kernel(%arg0: i32, %arg1: i32, %arg2: memref<256x256xbf16, #tpu.memory_space<vmem>>, %arg3: memref<2304x128xbf16, #tpu.memory_space<vmem>>, %arg4: memref<1x128xf32, #tpu.memory_space<vmem>>, %arg5: memref<256x128xbf16, #tpu.memory_space<vmem>>, %arg6: memref<256x128xf32, #tpu.memory_space<vmem>>) attributes {dimension_semantics = [#tpu.dimension_semantics<parallel>, #tpu.dimension_semantics<arbitrary>], iteration_bounds = array<i64: 1, 9>, scalar_prefetch = 0 : i64, scratch_operands = 1 : i64, tpu.core_type = #tpu.core_type<tc>, window_params = [{transform_indices = @transform_0, window_bounds = array<i64: 256, 256>}, {pipeline_mode = #tpu.pipeline_mode<synchronous>, transform_indices = @transform_1, window_bounds = array<i64: 2304, 128>}, {pipeline_mode = #tpu.pipeline_mode<synchronous>, transform_indices = @transform_2, window_bounds = array<i64: 1, 128>}, {transform_indices = @transform_3, window_bounds = array<i64: 256, 128>}]} {
    %c0_i32 = arith.constant 0 : i32
    %0 = arith.cmpi eq, %arg1, %c0_i32 : i32
    %1 = arith.extui %0 : i1 to i32
    %c0_i32_0 = arith.constant 0 : i32
    %2 = arith.cmpi ne, %1, %c0_i32_0 : i32
    scf.if %2 {
      %c0_8 = arith.constant 0 : index
      %c0_9 = arith.constant 0 : index
      %15 = vector.load %arg4[%c0_8, %c0_9] : memref<1x128xf32, #tpu.memory_space<vmem>>, vector<1x128xf32>
      %16 = vector.shape_cast %15 : vector<1x128xf32> to vector<1x128xf32>
      %17 = vector.broadcast %16 : vector<1x128xf32> to vector<256x128xf32>
      %c0_10 = arith.constant 0 : index
      %c0_11 = arith.constant 0 : index
      %18 = vector.load %arg6[%c0_10, %c0_11] : memref<256x128xf32, #tpu.memory_space<vmem>>, vector<256x128xf32>
      tpu.vector_store %arg6[%c0_10, %c0_11], %17 {strides = array<i32>} : memref<256x128xf32, #tpu.memory_space<vmem>>, vector<256x128xf32>,
    } else {
    }
    %c256_i32 = arith.constant 256 : i32
    %3 = arith.muli %arg1, %c256_i32 : i32
    %4 = tpu.assume_multiple %3, 256 : i32
    %c0 = arith.constant 0 : index
    %c0_1 = arith.constant 0 : index
    %5 = vector.load %arg6[%c0, %c0_1] : memref<256x128xf32, #tpu.memory_space<vmem>>, vector<256x128xf32>
    %c0_2 = arith.constant 0 : index
    %c0_3 = arith.constant 0 : index
    %6 = vector.load %arg2[%c0_2, %c0_3] : memref<256x256xbf16, #tpu.memory_space<vmem>>, vector<256x256xbf16>
    %7 = arith.index_cast %4 : i32 to index
    %c0_4 = arith.constant 0 : index
    %8 = vector.load %arg3[%7, %c0_4] : memref<2304x128xbf16, #tpu.memory_space<vmem>>, vector<256x128xbf16>
    %cst = arith.constant dense<0.000000e+00> : vector<256x128xf32>
    %9 = tpu.matmul %6, %8, %cst {dimension_numbers = #tpu.dot_dimension_numbers<[1], [0], [0], [1], [0, 0, 1, 1], [], []>} : vector<256x256xbf16>, vector<256x128xbf16>, vector<256x128xf32> -> vector<256x128xf32>
    %10 = arith.addf %5, %9 : vector<256x128xf32>
    %c0_5 = arith.constant 0 : index
    %c0_6 = arith.constant 0 : index
    %11 = vector.load %arg6[%c0_5, %c0_6] : memref<256x128xf32, #tpu.memory_space<vmem>>, vector<256x128xf32>
    tpu.vector_store %arg6[%c0_5, %c0_6], %10 {strides = array<i32>} : memref<256x128xf32, #tpu.memory_space<vmem>>, vector<256x128xf32>,
    %c8_i32 = arith.constant 8 : i32
    %12 = arith.cmpi eq, %arg1, %c8_i32 : i32
    %13 = arith.extui %12 : i1 to i32
    %c0_i32_7 = arith.constant 0 : i32
    %14 = arith.cmpi ne, %13, %c0_i32_7 : i32
    scf.if %14 {
      %c0_8 = arith.constant 0 : index
      %c0_9 = arith.constant 0 : index
      %15 = vector.load %arg6[%c0_8, %c0_9] : memref<256x128xf32, #tpu.memory_space<vmem>>, vector<256x128xf32>
      %cst_10 = arith.constant 0.000000e+00 : f32
      %16 = vector.broadcast %cst_10 : f32 to vector<256x128xf32>
      %17 = arith.maximumf %15, %16 : vector<256x128xf32>
      %18 = arith.truncf %17 : vector<256x128xf32> to vector<256x128xbf16>
      %c0_11 = arith.constant 0 : index
      %c0_12 = arith.constant 0 : index
      %19 = vector.load %arg5[%c0_11, %c0_12] : memref<256x128xbf16, #tpu.memory_space<vmem>>, vector<256x128xbf16>
      tpu.vector_store %arg5[%c0_11, %c0_12], %18 {strides = array<i32>} : memref<256x128xbf16, #tpu.memory_space<vmem>>, vector<256x128xbf16>,
    } else {
    }
    return
  }
  func.func @transform_0(%arg0: i32, %arg1: i32) -> (i32, i32) {
    %c0_i32 = arith.constant 0 : i32
    return %arg0, %arg1 : i32, i32
  }
  func.func @transform_1(%arg0: i32, %arg1: i32) -> (i32, i32) {
    %c0_i32 = arith.constant 0 : i32
    %c0_i32_0 = arith.constant 0 : i32
    %c0_i32_1 = arith.constant 0 : i32
    return %c0_i32, %c0_i32_0 : i32, i32
  }
  func.func @transform_2(%arg0: i32, %arg1: i32) -> (i32, i32) {
    %c0_i32 = arith.constant 0 : i32
    %c0_i32_0 = arith.constant 0 : i32
    %c0_i32_1 = arith.constant 0 : i32
    return %c0_i32, %c0_i32_0 : i32, i32
  }
  func.func @transform_3(%arg0: i32, %arg1: i32) -> (i32, i32) {
    %c0_i32 = arith.constant 0 : i32
    %c0_i32_0 = arith.constant 0 : i32
    return %arg0, %c0_i32 : i32, i32
  }
}

module attributes {stable_mosaic.version = 11 : i64} {
  func.func @_conv_matmul_kernel(%arg0: i32, %arg1: i32, %arg2: memref<512x256xbf16, #tpu.memory_space<vmem>>, %arg3: memref<1280x128xbf16, #tpu.memory_space<vmem>>, %arg4: memref<1x128xf32, #tpu.memory_space<vmem>>, %arg5: memref<512x128xbf16, #tpu.memory_space<vmem>>, %arg6: memref<512x128xf32, #tpu.memory_space<vmem>>) attributes {dimension_semantics = [#tpu.dimension_semantics<parallel>, #tpu.dimension_semantics<arbitrary>], iteration_bounds = array<i64: 2, 5>, scalar_prefetch = 0 : i64, scratch_operands = 1 : i64, tpu.core_type = #tpu.core_type<tc>, window_params = [{transform_indices = @transform_0, window_bounds = array<i64: 512, 256>}, {pipeline_mode = #tpu.pipeline_mode<synchronous>, transform_indices = @transform_1, window_bounds = array<i64: 1280, 128>}, {pipeline_mode = #tpu.pipeline_mode<synchronous>, transform_indices = @transform_2, window_bounds = array<i64: 1, 128>}, {transform_indices = @transform_3, window_bounds = array<i64: 512, 128>}]} {
    %c0_i32 = arith.constant 0 : i32
    %0 = arith.cmpi eq, %arg1, %c0_i32 : i32
    %1 = arith.extui %0 : i1 to i32
    %c0_i32_0 = arith.constant 0 : i32
    %2 = arith.cmpi ne, %1, %c0_i32_0 : i32
    scf.if %2 {
      %c0_8 = arith.constant 0 : index
      %c0_9 = arith.constant 0 : index
      %15 = vector.load %arg4[%c0_8, %c0_9] : memref<1x128xf32, #tpu.memory_space<vmem>>, vector<1x128xf32>
      %16 = vector.shape_cast %15 : vector<1x128xf32> to vector<1x128xf32>
      %17 = vector.broadcast %16 : vector<1x128xf32> to vector<512x128xf32>
      %c0_10 = arith.constant 0 : index
      %c0_11 = arith.constant 0 : index
      %18 = vector.load %arg6[%c0_10, %c0_11] : memref<512x128xf32, #tpu.memory_space<vmem>>, vector<512x128xf32>
      tpu.vector_store %arg6[%c0_10, %c0_11], %17 {strides = array<i32>} : memref<512x128xf32, #tpu.memory_space<vmem>>, vector<512x128xf32>,
    } else {
    }
    %c256_i32 = arith.constant 256 : i32
    %3 = arith.muli %arg1, %c256_i32 : i32
    %4 = tpu.assume_multiple %3, 256 : i32
    %c0 = arith.constant 0 : index
    %c0_1 = arith.constant 0 : index
    %5 = vector.load %arg6[%c0, %c0_1] : memref<512x128xf32, #tpu.memory_space<vmem>>, vector<512x128xf32>
    %c0_2 = arith.constant 0 : index
    %c0_3 = arith.constant 0 : index
    %6 = vector.load %arg2[%c0_2, %c0_3] : memref<512x256xbf16, #tpu.memory_space<vmem>>, vector<512x256xbf16>
    %7 = arith.index_cast %4 : i32 to index
    %c0_4 = arith.constant 0 : index
    %8 = vector.load %arg3[%7, %c0_4] : memref<1280x128xbf16, #tpu.memory_space<vmem>>, vector<256x128xbf16>
    %cst = arith.constant dense<0.000000e+00> : vector<512x128xf32>
    %9 = tpu.matmul %6, %8, %cst {dimension_numbers = #tpu.dot_dimension_numbers<[1], [0], [0], [1], [0, 0, 1, 1], [], []>} : vector<512x256xbf16>, vector<256x128xbf16>, vector<512x128xf32> -> vector<512x128xf32>
    %10 = arith.addf %5, %9 : vector<512x128xf32>
    %c0_5 = arith.constant 0 : index
    %c0_6 = arith.constant 0 : index
    %11 = vector.load %arg6[%c0_5, %c0_6] : memref<512x128xf32, #tpu.memory_space<vmem>>, vector<512x128xf32>
    tpu.vector_store %arg6[%c0_5, %c0_6], %10 {strides = array<i32>} : memref<512x128xf32, #tpu.memory_space<vmem>>, vector<512x128xf32>,
    %c4_i32 = arith.constant 4 : i32
    %12 = arith.cmpi eq, %arg1, %c4_i32 : i32
    %13 = arith.extui %12 : i1 to i32
    %c0_i32_7 = arith.constant 0 : i32
    %14 = arith.cmpi ne, %13, %c0_i32_7 : i32
    scf.if %14 {
      %c0_8 = arith.constant 0 : index
      %c0_9 = arith.constant 0 : index
      %15 = vector.load %arg6[%c0_8, %c0_9] : memref<512x128xf32, #tpu.memory_space<vmem>>, vector<512x128xf32>
      %cst_10 = arith.constant 0.000000e+00 : f32
      %16 = vector.broadcast %cst_10 : f32 to vector<512x128xf32>
      %17 = arith.maximumf %15, %16 : vector<512x128xf32>
      %18 = arith.truncf %17 : vector<512x128xf32> to vector<512x128xbf16>
      %c0_11 = arith.constant 0 : index
      %c0_12 = arith.constant 0 : index
      %19 = vector.load %arg5[%c0_11, %c0_12] : memref<512x128xbf16, #tpu.memory_space<vmem>>, vector<512x128xbf16>
      tpu.vector_store %arg5[%c0_11, %c0_12], %18 {strides = array<i32>} : memref<512x128xbf16, #tpu.memory_space<vmem>>, vector<512x128xbf16>,
    } else {
    }
    return
  }
  func.func @transform_0(%arg0: i32, %arg1: i32) -> (i32, i32) {
    %c0_i32 = arith.constant 0 : i32
    return %arg0, %arg1 : i32, i32
  }
  func.func @transform_1(%arg0: i32, %arg1: i32) -> (i32, i32) {
    %c0_i32 = arith.constant 0 : i32
    %c0_i32_0 = arith.constant 0 : i32
    %c0_i32_1 = arith.constant 0 : i32
    return %c0_i32, %c0_i32_0 : i32, i32
  }
  func.func @transform_2(%arg0: i32, %arg1: i32) -> (i32, i32) {
    %c0_i32 = arith.constant 0 : i32
    %c0_i32_0 = arith.constant 0 : i32
    %c0_i32_1 = arith.constant 0 : i32
    return %c0_i32, %c0_i32_0 : i32, i32
  }
  func.func @transform_3(%arg0: i32, %arg1: i32) -> (i32, i32) {
    %c0_i32 = arith.constant 0 : i32
    %c0_i32_0 = arith.constant 0 : i32
    return %arg0, %c0_i32 : i32, i32
  }
}

module attributes {stable_mosaic.version = 11 : i64} {
  func.func @_conv_matmul_kernel(%arg0: i32, %arg1: i32, %arg2: memref<512x256xbf16, #tpu.memory_space<vmem>>, %arg3: memref<512x128xbf16, #tpu.memory_space<vmem>>, %arg4: memref<1x128xf32, #tpu.memory_space<vmem>>, %arg5: memref<512x128xbf16, #tpu.memory_space<vmem>>, %arg6: memref<512x128xf32, #tpu.memory_space<vmem>>) attributes {dimension_semantics = [#tpu.dimension_semantics<parallel>, #tpu.dimension_semantics<arbitrary>], iteration_bounds = array<i64: 2, 2>, scalar_prefetch = 0 : i64, scratch_operands = 1 : i64, tpu.core_type = #tpu.core_type<tc>, window_params = [{transform_indices = @transform_0, window_bounds = array<i64: 512, 256>}, {pipeline_mode = #tpu.pipeline_mode<synchronous>, transform_indices = @transform_1, window_bounds = array<i64: 512, 128>}, {pipeline_mode = #tpu.pipeline_mode<synchronous>, transform_indices = @transform_2, window_bounds = array<i64: 1, 128>}, {transform_indices = @transform_3, window_bounds = array<i64: 512, 128>}]} {
    %c0_i32 = arith.constant 0 : i32
    %0 = arith.cmpi eq, %arg1, %c0_i32 : i32
    %1 = arith.extui %0 : i1 to i32
    %c0_i32_0 = arith.constant 0 : i32
    %2 = arith.cmpi ne, %1, %c0_i32_0 : i32
    scf.if %2 {
      %c0_8 = arith.constant 0 : index
      %c0_9 = arith.constant 0 : index
      %15 = vector.load %arg4[%c0_8, %c0_9] : memref<1x128xf32, #tpu.memory_space<vmem>>, vector<1x128xf32>
      %16 = vector.shape_cast %15 : vector<1x128xf32> to vector<1x128xf32>
      %17 = vector.broadcast %16 : vector<1x128xf32> to vector<512x128xf32>
      %c0_10 = arith.constant 0 : index
      %c0_11 = arith.constant 0 : index
      %18 = vector.load %arg6[%c0_10, %c0_11] : memref<512x128xf32, #tpu.memory_space<vmem>>, vector<512x128xf32>
      tpu.vector_store %arg6[%c0_10, %c0_11], %17 {strides = array<i32>} : memref<512x128xf32, #tpu.memory_space<vmem>>, vector<512x128xf32>,
    } else {
    }
    %c256_i32 = arith.constant 256 : i32
    %3 = arith.muli %arg1, %c256_i32 : i32
    %4 = tpu.assume_multiple %3, 256 : i32
    %c0 = arith.constant 0 : index
    %c0_1 = arith.constant 0 : index
    %5 = vector.load %arg6[%c0, %c0_1] : memref<512x128xf32, #tpu.memory_space<vmem>>, vector<512x128xf32>
    %c0_2 = arith.constant 0 : index
    %c0_3 = arith.constant 0 : index
    %6 = vector.load %arg2[%c0_2, %c0_3] : memref<512x256xbf16, #tpu.memory_space<vmem>>, vector<512x256xbf16>
    %7 = arith.index_cast %4 : i32 to index
    %c0_4 = arith.constant 0 : index
    %8 = vector.load %arg3[%7, %c0_4] : memref<512x128xbf16, #tpu.memory_space<vmem>>, vector<256x128xbf16>
    %cst = arith.constant dense<0.000000e+00> : vector<512x128xf32>
    %9 = tpu.matmul %6, %8, %cst {dimension_numbers = #tpu.dot_dimension_numbers<[1], [0], [0], [1], [0, 0, 1, 1], [], []>} : vector<512x256xbf16>, vector<256x128xbf16>, vector<512x128xf32> -> vector<512x128xf32>
    %10 = arith.addf %5, %9 : vector<512x128xf32>
    %c0_5 = arith.constant 0 : index
    %c0_6 = arith.constant 0 : index
    %11 = vector.load %arg6[%c0_5, %c0_6] : memref<512x128xf32, #tpu.memory_space<vmem>>, vector<512x128xf32>
    tpu.vector_store %arg6[%c0_5, %c0_6], %10 {strides = array<i32>} : memref<512x128xf32, #tpu.memory_space<vmem>>, vector<512x128xf32>,
    %c1_i32 = arith.constant 1 : i32
    %12 = arith.cmpi eq, %arg1, %c1_i32 : i32
    %13 = arith.extui %12 : i1 to i32
    %c0_i32_7 = arith.constant 0 : i32
    %14 = arith.cmpi ne, %13, %c0_i32_7 : i32
    scf.if %14 {
      %c0_8 = arith.constant 0 : index
      %c0_9 = arith.constant 0 : index
      %15 = vector.load %arg6[%c0_8, %c0_9] : memref<512x128xf32, #tpu.memory_space<vmem>>, vector<512x128xf32>
      %cst_10 = arith.constant 0.000000e+00 : f32
      %16 = vector.broadcast %cst_10 : f32 to vector<512x128xf32>
      %17 = arith.maximumf %15, %16 : vector<512x128xf32>
      %18 = arith.truncf %17 : vector<512x128xf32> to vector<512x128xbf16>
      %c0_11 = arith.constant 0 : index
      %c0_12 = arith.constant 0 : index
      %19 = vector.load %arg5[%c0_11, %c0_12] : memref<512x128xbf16, #tpu.memory_space<vmem>>, vector<512x128xbf16>
      tpu.vector_store %arg5[%c0_11, %c0_12], %18 {strides = array<i32>} : memref<512x128xbf16, #tpu.memory_space<vmem>>, vector<512x128xbf16>,
    } else {
    }
    return
  }
  func.func @transform_0(%arg0: i32, %arg1: i32) -> (i32, i32) {
    %c0_i32 = arith.constant 0 : i32
    return %arg0, %arg1 : i32, i32
  }
  func.func @transform_1(%arg0: i32, %arg1: i32) -> (i32, i32) {
    %c0_i32 = arith.constant 0 : i32
    %c0_i32_0 = arith.constant 0 : i32
    %c0_i32_1 = arith.constant 0 : i32
    return %c0_i32, %c0_i32_0 : i32, i32
  }
  func.func @transform_2(%arg0: i32, %arg1: i32) -> (i32, i32) {
    %c0_i32 = arith.constant 0 : i32
    %c0_i32_0 = arith.constant 0 : i32
    %c0_i32_1 = arith.constant 0 : i32
    return %c0_i32, %c0_i32_0 : i32, i32
  }
  func.func @transform_3(%arg0: i32, %arg1: i32) -> (i32, i32) {
    %c0_i32 = arith.constant 0 : i32
    %c0_i32_0 = arith.constant 0 : i32
    return %arg0, %c0_i32 : i32, i32
  }
}

</mosaic_0001>

<bundles_post_ra>
// kernel: u2net_forward.7
= control target key start
LH: loop header
LB: loop body
LE: loop exit
PB: predicated region body
PF: predicated region fallthrough
CT: control target
= control target key end

     0   :  { %s2781_s12 = smov 0   ;;  %s2783_s13 = smov 0   ;;  %s3226_s0 = inlined_call_operand.vmem [shape: bf16[1024,768], index: 0, kind: input, shape index: {}]   ;;  %s3227_s1 = inlined_call_operand.vmem [shape: bf16[768,128], index: 1, kind: input, shape index: {}]   ;;  %s3228_s2 = inlined_call_operand.vmem [shape: f32[1,128], index: 2, kind: input, shape index: {}]   ;;  %s3229_s3 = inlined_call_operand.vmem [shape: bf16[1024,128], index: 3, kind: output, shape index: {}]  }
   0x1   :  { %s2785_s14 = smov 0   ;;  %s2787_s15 = smov 0  }
   0x2   :  { %s2789_s16 = smov 0   ;;  %s2791_s17 = smov 0  }
   0x3   :  { %s2793_s18 = smov 0  }
   0x4 LB: > { %s22_s19 = sadd.s32 1, %s2750_s16  ;;  %s25_s20 = sadd.s32 1, %s2754_s17  ;;  %s2758_s18 = sphi %s2793_s18, %s13_s18   ;;  %s2754_s17 = sphi %s2791_s17, %s3235_s17   ;;  %s2750_s16 = sphi %s2789_s16, %s3234_s16   ;;  %s2746_s15 = sphi %s2787_s15, %s3233_s15   ;;  %s2742_s14 = sphi %s2785_s14, %s3232_s14   ;;  %s2738_s13 = sphi %s2783_s13, %s3231_s13   ;;  %s2734_s12 = sphi %s2781_s12, %s3230_s12  }
   0x5   : > { %p23_p0 = scmp.ge.s32.totalorder %s22_s19, 3  ;;  %p41_p1 = scmp.ne.s32.totalorder %s2738_s13, %s2734_s12 }
   0x6   : > { %p42_p2 = scmp.eq.s32.totalorder %s2758_s18, 0  ;;  %s34_s24 = sadd.s32 1, %s2738_s13 }
   0x7   : > { %s3237_s19 = smov (%p23_p0, %s22_s19), 0  ;;  %s3239_s20 = smov (!%p23_p0, %s25_s20), %s2754_s17 }
   0x8   : > { %p43_p3 = por %p42_p2, %p41_p1  ;;  %p27_p4 = scmp.ge.s32.totalorder %s3239_s20, 2 }
   0x9   : > { %s30_s21 = ssub.s32 %s2750_s16, %s3237_s19  ;;  %p2086_p6 = scmp.ge.s32.totalorder %s2758_s18, 6 }
   0xa   : > { %s3241_s20 = smov (%p27_p4, %s3239_s20), 0 }
   0xb   : > { %s29_s22 = ssub.s32 %s2754_s17, %s3241_s20  ;;  %141 = sbr.rel (%p2086_p6) target bundleno = 58 (0x3a), region = 24 }
   0xc   : > { %s31_s23 = sor.u32 %s30_s21, %s29_s22 }
   0xd   : > { %p32_p5 = scmp.eq.s32.totalorder %s31_s23, 0 }
   0xf   : > { %s2832_s25 = scalar_select %p32_p5, %s2738_s13, %s34_s24  }
  0x12   : > { %144 = sbr.rel (!%p43_p3) target bundleno = 58 (0x3a), region = 28  ;;  %s146_s26 = sand.u32 (%p43_p3), 1, %s2738_s13  }
  0x13   : > { %s2089_s27 = sshll.u32 (%p43_p3), %s2750_s16, 1  ;;  %s2087_s28 = sshll.u32 (%p43_p3), %s146_s26, 9 }
  0x14   : > { %s2534_s29 = smul.u32 (%p43_p3), 384, %s2754_s17  ;;  %s2846_s8 = scalar_lea.vmem (%p43_p3), [#allocation3], %s2087_s28 }
  0x16   : > { %s152_s30 = sadd.s32 (%p43_p3), %s2534_s29, %s2089_s27 }
  0x17   : > { %s2091_s4 = sshll.u32 (%p43_p3), %s152_s30, 2 }
  0x18   : > { %s2841_s7 = scalar_lea.vmem (%p43_p3), %s3226_s0, %s2091_s4 }
  0x19   : > { %v308_v0 = vld [vmem:[%s2841_s7] sm:$0xff]  ;;  %v310_v1 = vld [vmem:[%s2841_s7 + $0x18] sm:$0xff]  ;;  %v312_v2 = vld [vmem:[%s2841_s7 + $0x30] sm:$0xff] }
  0x1a   : > { %309 = vst [vmem:[%s2846_s8] sm:$0xff] %v308_v0  ;;  %311 = vst [vmem:[%s2846_s8 + $0x8] sm:$0xff] %v310_v1  ;;  %v314_v3 = vld [vmem:[%s2841_s7 + $0x48] sm:$0xff]  ;;  %v316_v4 = vld [vmem:[%s2841_s7 + $0x60] sm:$0xff] }
  0x1b   : > { %313 = vst [vmem:[%s2846_s8 + $0x10] sm:$0xff] %v312_v2  ;;  %v318_v5 = vld [vmem:[%s2841_s7 + $0x78] sm:$0xff]  ;;  %315 = vst [vmem:[%s2846_s8 + $0x18] sm:$0xff] %v314_v3  ;;  %v320_v6 = vld [vmem:[%s2841_s7 + $0x90] sm:$0xff] }
  0x1c   : > { %317 = vst [vmem:[%s2846_s8 + $0x20] sm:$0xff] %v316_v4  ;;  %319 = vst [vmem:[%s2846_s8 + $0x28] sm:$0xff] %v318_v5  ;;  %v322_v7 = vld [vmem:[%s2841_s7 + $0xa8] sm:$0xff]  ;;  %v324_v8 = vld [vmem:[%s2841_s7 + $0xc0] sm:$0xff] }
  0x1d   : > { %321 = vst [vmem:[%s2846_s8 + $0x30] sm:$0xff] %v320_v6  ;;  %323 = vst [vmem:[%s2846_s8 + $0x38] sm:$0xff] %v322_v7  ;;  %v326_v9 = vld [vmem:[%s2841_s7 + $0xd8] sm:$0xff]  ;;  %v328_v10 = vld [vmem:[%s2841_s7 + $0xf0] sm:$0xff] }
  0x1e   : > { %325 = vst [vmem:[%s2846_s8 + $0x40] sm:$0xff] %v324_v8  ;;  %v330_v11 = vld [vmem:[%s2841_s7 + $0x108] sm:$0xff]  ;;  %327 = vst [vmem:[%s2846_s8 + $0x48] sm:$0xff] %v326_v9  ;;  %v332_v12 = vld [vmem:[%s2841_s7 + $0x120] sm:$0xff] }
  0x1f   : > { %329 = vst [vmem:[%s2846_s8 + $0x50] sm:$0xff] %v328_v10  ;;  %331 = vst [vmem:[%s2846_s8 + $0x58] sm:$0xff] %v330_v11  ;;  %v334_v13 = vld [vmem:[%s2841_s7 + $0x138] sm:$0xff]  ;;  %v336_v14 = vld [vmem:[%s2841_s7 + $0x150] sm:$0xff] }
  0x20   : > { %333 = vst [vmem:[%s2846_s8 + $0x60] sm:$0xff] %v332_v12  ;;  %335 = vst [vmem:[%s2846_s8 + $0x68] sm:$0xff] %v334_v13  ;;  %v338_v15 = vld [vmem:[%s2841_s7 + $0x168] sm:$0xff]  ;;  %v340_v16 = vld [vmem:[%s2841_s7 + $0x180] sm:$0xff] }
  0x21   : > { %337 = vst [vmem:[%s2846_s8 + $0x70] sm:$0xff] %v336_v14  ;;  %v342_v17 = vld [vmem:[%s2841_s7 + $0x198] sm:$0xff]  ;;  %339 = vst [vmem:[%s2846_s8 + $0x78] sm:$0xff] %v338_v15  ;;  %v344_v18 = vld [vmem:[%s2841_s7 + $0x1b0] sm:$0xff] }
  0x22   : > { %341 = vst [vmem:[%s2846_s8 + $0x80] sm:$0xff] %v340_v16  ;;  %343 = vst [vmem:[%s2846_s8 + $0x88] sm:$0xff] %v342_v17  ;;  %v346_v19 = vld [vmem:[%s2841_s7 + $0x1c8] sm:$0xff]  ;;  %v348_v20 = vld [vmem:[%s2841_s7 + $0x1e0] sm:$0xff] }
  0x23   : > { %345 = vst [vmem:[%s2846_s8 + $0x90] sm:$0xff] %v344_v18  ;;  %347 = vst [vmem:[%s2846_s8 + $0x98] sm:$0xff] %v346_v19  ;;  %v350_v21 = vld [vmem:[%s2841_s7 + $0x1f8] sm:$0xff]  ;;  %v352_v22 = vld [vmem:[%s2841_s7 + $0x210] sm:$0xff] }
  0x24   : > { %349 = vst [vmem:[%s2846_s8 + $0xa0] sm:$0xff] %v348_v20  ;;  %v354_v23 = vld [vmem:[%s2841_s7 + $0x228] sm:$0xff]  ;;  %351 = vst [vmem:[%s2846_s8 + $0xa8] sm:$0xff] %v350_v21  ;;  %v356_v24 = vld [vmem:[%s2841_s7 + $0x240] sm:$0xff] }
  0x25   : > { %353 = vst [vmem:[%s2846_s8 + $0xb0] sm:$0xff] %v352_v22  ;;  %355 = vst [vmem:[%s2846_s8 + $0xb8] sm:$0xff] %v354_v23  ;;  %v358_v25 = vld [vmem:[%s2841_s7 + $0x258] sm:$0xff]  ;;  %v360_v26 = vld [vmem:[%s2841_s7 + $0x270] sm:$0xff] }
  0x26   : > { %357 = vst [vmem:[%s2846_s8 + $0xc0] sm:$0xff] %v356_v24  ;;  %359 = vst [vmem:[%s2846_s8 + $0xc8] sm:$0xff] %v358_v25  ;;  %v362_v27 = vld [vmem:[%s2841_s7 + $0x288] sm:$0xff]  ;;  %v364_v28 = vld [vmem:[%s2841_s7 + $0x2a0] sm:$0xff] }
  0x27   : > { %361 = vst [vmem:[%s2846_s8 + $0xd0] sm:$0xff] %v360_v26  ;;  %v366_v29 = vld [vmem:[%s2841_s7 + $0x2b8] sm:$0xff]  ;;  %363 = vst [vmem:[%s2846_s8 + $0xd8] sm:$0xff] %v362_v27  ;;  %v368_v30 = vld [vmem:[%s2841_s7 + $0x2d0] sm:$0xff] }
  0x28   : > { %365 = vst [vmem:[%s2846_s8 + $0xe0] sm:$0xff] %v364_v28  ;;  %367 = vst [vmem:[%s2846_s8 + $0xe8] sm:$0xff] %v366_v29  ;;  %v370_v31 = vld [vmem:[%s2841_s7 + $0x2e8] sm:$0xff]  ;;  %v372_v32 = vld [vmem:[%s2841_s7 + $0x300] sm:$0xff] }
  0x29   : > { %369 = vst [vmem:[%s2846_s8 + $0xf0] sm:$0xff] %v368_v30  ;;  %371 = vst [vmem:[%s2846_s8 + $0xf8] sm:$0xff] %v370_v31  ;;  %v374_v33 = vld [vmem:[%s2841_s7 + $0x318] sm:$0xff]  ;;  %v376_v34 = vld [vmem:[%s2841_s7 + $0x330] sm:$0xff] }
  0x2a   : > { %373 = vst [vmem:[%s2846_s8 + $0x100] sm:$0xff] %v372_v32  ;;  %v378_v35 = vld [vmem:[%s2841_s7 + $0x348] sm:$0xff]  ;;  %375 = vst [vmem:[%s2846_s8 + $0x108] sm:$0xff] %v374_v33  ;;  %v380_v36 = vld [vmem:[%s2841_s7 + $0x360] sm:$0xff] }
  0x2b   : > { %377 = vst [vmem:[%s2846_s8 + $0x110] sm:$0xff] %v376_v34  ;;  %379 = vst [vmem:[%s2846_s8 + $0x118] sm:$0xff] %v378_v35  ;;  %v382_v37 = vld [vmem:[%s2841_s7 + $0x378] sm:$0xff]  ;;  %v384_v38 = vld [vmem:[%s2841_s7 + $0x390] sm:$0xff] }
  0x2c   : > { %381 = vst [vmem:[%s2846_s8 + $0x120] sm:$0xff] %v380_v36  ;;  %383 = vst [vmem:[%s2846_s8 + $0x128] sm:$0xff] %v382_v37  ;;  %v386_v39 = vld [vmem:[%s2841_s7 + $0x3a8] sm:$0xff]  ;;  %v388_v40 = vld [vmem:[%s2841_s7 + $0x3c0] sm:$0xff] }
  0x2d   : > { %385 = vst [vmem:[%s2846_s8 + $0x130] sm:$0xff] %v384_v38  ;;  %v390_v41 = vld [vmem:[%s2841_s7 + $0x3d8] sm:$0xff]  ;;  %387 = vst [vmem:[%s2846_s8 + $0x138] sm:$0xff] %v386_v39  ;;  %v392_v42 = vld [vmem:[%s2841_s7 + $0x3f0] sm:$0xff] }
  0x2e   : > { %389 = vst [vmem:[%s2846_s8 + $0x140] sm:$0xff] %v388_v40  ;;  %391 = vst [vmem:[%s2846_s8 + $0x148] sm:$0xff] %v390_v41  ;;  %v394_v43 = vld [vmem:[%s2841_s7 + $0x408] sm:$0xff]  ;;  %v396_v44 = vld [vmem:[%s2841_s7 + $0x420] sm:$0xff] }
  0x2f   : > { %393 = vst [vmem:[%s2846_s8 + $0x150] sm:$0xff] %v392_v42  ;;  %395 = vst [vmem:[%s2846_s8 + $0x158] sm:$0xff] %v394_v43  ;;  %v398_v45 = vld [vmem:[%s2841_s7 + $0x438] sm:$0xff]  ;;  %v400_v46 = vld [vmem:[%s2841_s7 + $0x450] sm:$0xff] }
  0x30   : > { %397 = vst [vmem:[%s2846_s8 + $0x160] sm:$0xff] %v396_v44  ;;  %v402_v47 = vld [vmem:[%s2841_s7 + $0x468] sm:$0xff]  ;;  %399 = vst [vmem:[%s2846_s8 + $0x168] sm:$0xff] %v398_v45  ;;  %v404_v48 = vld [vmem:[%s2841_s7 + $0x480] sm:$0xff] }
  0x31   : > { %401 = vst [vmem:[%s2846_s8 + $0x170] sm:$0xff] %v400_v46  ;;  %403 = vst [vmem:[%s2846_s8 + $0x178] sm:$0xff] %v402_v47  ;;  %v406_v49 = vld [vmem:[%s2841_s7 + $0x498] sm:$0xff]  ;;  %v408_v50 = vld [vmem:[%s2841_s7 + $0x4b0] sm:$0xff] }
  0x32   : > { %405 = vst [vmem:[%s2846_s8 + $0x180] sm:$0xff] %v404_v48  ;;  %407 = vst [vmem:[%s2846_s8 + $0x188] sm:$0xff] %v406_v49  ;;  %v410_v51 = vld [vmem:[%s2841_s7 + $0x4c8] sm:$0xff]  ;;  %v412_v52 = vld [vmem:[%s2841_s7 + $0x4e0] sm:$0xff] }
  0x33   : > { %409 = vst [vmem:[%s2846_s8 + $0x190] sm:$0xff] %v408_v50  ;;  %v414_v53 = vld [vmem:[%s2841_s7 + $0x4f8] sm:$0xff]  ;;  %411 = vst [vmem:[%s2846_s8 + $0x198] sm:$0xff] %v410_v51  ;;  %v416_v54 = vld [vmem:[%s2841_s7 + $0x510] sm:$0xff] }
  0x34   : > { %413 = vst [vmem:[%s2846_s8 + $0x1a0] sm:$0xff] %v412_v52  ;;  %415 = vst [vmem:[%s2846_s8 + $0x1a8] sm:$0xff] %v414_v53  ;;  %v418_v55 = vld [vmem:[%s2841_s7 + $0x528] sm:$0xff]  ;;  %v420_v56 = vld [vmem:[%s2841_s7 + $0x540] sm:$0xff] }
  0x35   : > { %417 = vst [vmem:[%s2846_s8 + $0x1b0] sm:$0xff] %v416_v54  ;;  %419 = vst [vmem:[%s2846_s8 + $0x1b8] sm:$0xff] %v418_v55  ;;  %v422_v57 = vld [vmem:[%s2841_s7 + $0x558] sm:$0xff]  ;;  %v424_v58 = vld [vmem:[%s2841_s7 + $0x570] sm:$0xff] }
  0x36   : > { %421 = vst [vmem:[%s2846_s8 + $0x1c0] sm:$0xff] %v420_v56  ;;  %v426_v59 = vld [vmem:[%s2841_s7 + $0x588] sm:$0xff]  ;;  %423 = vst [vmem:[%s2846_s8 + $0x1c8] sm:$0xff] %v422_v57  ;;  %v428_v60 = vld [vmem:[%s2841_s7 + $0x5a0] sm:$0xff] }
  0x37   : > { %425 = vst [vmem:[%s2846_s8 + $0x1d0] sm:$0xff] %v424_v58  ;;  %427 = vst [vmem:[%s2846_s8 + $0x1d8] sm:$0xff] %v426_v59  ;;  %v430_v61 = vld [vmem:[%s2841_s7 + $0x5b8] sm:$0xff]  ;;  %v432_v62 = vld [vmem:[%s2841_s7 + $0x5d0] sm:$0xff] }
  0x38   : > { %429 = vst [vmem:[%s2846_s8 + $0x1e0] sm:$0xff] %v428_v60  ;;  %431 = vst [vmem:[%s2846_s8 + $0x1e8] sm:$0xff] %v430_v61  ;;  %v434_v63 = vld [vmem:[%s2841_s7 + $0x5e8] sm:$0xff] }
  0x39   : > { %433 = vst [vmem:[%s2846_s8 + $0x1f0] sm:$0xff] %v432_v62  ;;  %435 = vst [vmem:[%s2846_s8 + $0x1f8] sm:$0xff] %v434_v63 }
  0x3a PF: > { %p2092_p7 = scmp.ge.s32.totalorder %s2758_s18, 1  ;;  %p440_p8 = scmp.lt.s32.totalorder %s2758_s18, 7 }
  0x3c   : > { %p441_p9 = pnand %p2092_p7, %p440_p8 }
  0x3d   : > { %s447_s9 = sand.u32 (!%p441_p9), 1, %s2734_s12   ;;  %s2094_s10 = sshll.u32 (!%p441_p9), %s2746_s15, 6 }
  0x3e   : > { %444 = sbr.rel (%p441_p9) target bundleno = 524 (0x20c), region = 66  ;;  %s2093_s11 = sshll.u32 (!%p441_p9), %s447_s9, 9 }
  0x3f   : > { %p473_p10 = scmp.lt.s32.totalorder (!%p441_p9), %s2094_s10, 127  ;;  %s2982_s26 = scalar_lea.vmem (!%p441_p9), [#allocation3], %s2093_s11 }
  0x40   : > { %p2096_p11 = scmp.ne.s32.totalorder (!%p441_p9), %s2742_s14, 0 }
  0x45   : > { %s3243_s10 = smov (!%p473_p10, %s2094_s10), 127  ;;  %482 = sbr.rel (%p2096_p11) target bundleno = 103 (0x67), region = 74 }
  0x46   : > { %s2095_s21 = sshll.u32 %s3243_s10, 2  ;;  %v2988_v0 = vld [vmem:[%s3228_s2] ss:$0 sm:$0xff] (!%p2096_p11) }
  0x47   : > { %s2980_s24 = scalar_lea.vmem %s3229_s3, %s2095_s21  ;;  %490 = vst [vmem:[#allocation2] sm:$0xff] (!%p2096_p11), %v2988_v0  ;;  %491 = vst [vmem:[#allocation2 + $0x8] sm:$0xff] (!%p2096_p11), %v2988_v0 }
  0x48   : > { %492 = vst [vmem:[#allocation2 + $0x10] sm:$0xff] (!%p2096_p11), %v2988_v0  ;;  %493 = vst [vmem:[#allocation2 + $0x18] sm:$0xff] (!%p2096_p11), %v2988_v0 }
  0x49   : > { %494 = vst [vmem:[#allocation2 + $0x20] sm:$0xff] (!%p2096_p11), %v2988_v0  ;;  %495 = vst [vmem:[#allocation2 + $0x28] sm:$0xff] (!%p2096_p11), %v2988_v0 }
  0x4a   : > { %496 = vst [vmem:[#allocation2 + $0x30] sm:$0xff] (!%p2096_p11), %v2988_v0  ;;  %497 = vst [vmem:[#allocation2 + $0x38] sm:$0xff] (!%p2096_p11), %v2988_v0 }
  0x4b   : > { %498 = vst [vmem:[#allocation2 + $0x40] sm:$0xff] (!%p2096_p11), %v2988_v0  ;;  %499 = vst [vmem:[#allocation2 + $0x48] sm:$0xff] (!%p2096_p11), %v2988_v0 }
  0x4c   : > { %500 = vst [vmem:[#allocation2 + $0x50] sm:$0xff] %v2988_v0  ;;  %501 = vst [vmem:[#allocation2 + $0x58] sm:$0xff] %v2988_v0 }
  0x4d   : > { %502 = vst [vmem:[#allocation2 + $0x60] sm:$0xff] %v2988_v0  ;;  %503 = vst [vmem:[#allocation2 + $0x68] sm:$0xff] %v2988_v0 }
  0x4e   : > { %504 = vst [vmem:[#allocation2 + $0x70] sm:$0xff] %v2988_v0  ;;  %505 = vst [vmem:[#allocation2 + $0x78] sm:$0xff] %v2988_v0 }
  0x4f   : > { %506 = vst [vmem:[#allocation2 + $0x80] sm:$0xff] %v2988_v0  ;;  %507 = vst [vmem:[#allocation2 + $0x88] sm:$0xff] %v2988_v0 }
  0x50   : > { %508 = vst [vmem:[#allocation2 + $0x90] sm:$0xff] %v2988_v0  ;;  %509 = vst [vmem:[#allocation2 + $0x98] sm:$0xff] %v2988_v0 }
  0x51   : > { %510 = vst [vmem:[#allocation2 + $0xa0] sm:$0xff] %v2988_v0  ;;  %511 = vst [vmem:[#allocation2 + $0xa8] sm:$0xff] %v2988_v0 }
  0x52   : > { %512 = vst [vmem:[#allocation2 + $0xb0] sm:$0xff] %v2988_v0  ;;  %513 = vst [vmem:[#allocation2 + $0xb8] sm:$0xff] %v2988_v0 }
  0x53   : > { %514 = vst [vmem:[#allocation2 + $0xc0] sm:$0xff] %v2988_v0  ;;  %515 = vst [vmem:[#allocation2 + $0xc8] sm:$0xff] %v2988_v0 }
  0x54   : > { %516 = vst [vmem:[#allocation2 + $0xd0] sm:$0xff] %v2988_v0  ;;  %517 = vst [vmem:[#allocation2 + $0xd8] sm:$0xff] %v2988_v0 }
  0x55   : > { %518 = vst [vmem:[#allocation2 + $0xe0] sm:$0xff] %v2988_v0  ;;  %519 = vst [vmem:[#allocation2 + $0xe8] sm:$0xff] %v2988_v0 }
  0x56   : > { %520 = vst [vmem:[#allocation2 + $0xf0] sm:$0xff] %v2988_v0  ;;  %521 = vst [vmem:[#allocation2 + $0xf8] sm:$0xff] %v2988_v0 }
  0x57   : > { %522 = vst [vmem:[#allocation2 + $0x100] sm:$0xff] %v2988_v0  ;;  %523 = vst [vmem:[#allocation2 + $0x108] sm:$0xff] %v2988_v0 }
  0x58   : > { %524 = vst [vmem:[#allocation2 + $0x110] sm:$0xff] %v2988_v0  ;;  %525 = vst [vmem:[#allocation2 + $0x118] sm:$0xff] %v2988_v0 }
  0x59   : > { %526 = vst [vmem:[#allocation2 + $0x120] sm:$0xff] %v2988_v0  ;;  %527 = vst [vmem:[#allocation2 + $0x128] sm:$0xff] %v2988_v0 }
  0x5a   : > { %528 = vst [vmem:[#allocation2 + $0x130] sm:$0xff] %v2988_v0  ;;  %529 = vst [vmem:[#allocation2 + $0x138] sm:$0xff] %v2988_v0 }
  0x5b   : > { %530 = vst [vmem:[#allocation2 + $0x140] sm:$0xff] %v2988_v0  ;;  %531 = vst [vmem:[#allocation2 + $0x148] sm:$0xff] %v2988_v0 }
  0x5c   : > { %532 = vst [vmem:[#allocation2 + $0x150] sm:$0xff] %v2988_v0  ;;  %533 = vst [vmem:[#allocation2 + $0x158] sm:$0xff] %v2988_v0 }
  0x5d   : > { %534 = vst [vmem:[#allocation2 + $0x160] sm:$0xff] %v2988_v0  ;;  %535 = vst [vmem:[#allocation2 + $0x168] sm:$0xff] %v2988_v0 }
  0x5e   : > { %536 = vst [vmem:[#allocation2 + $0x170] sm:$0xff] %v2988_v0  ;;  %537 = vst [vmem:[#allocation2 + $0x178] sm:$0xff] %v2988_v0 }
  0x5f   : > { %538 = vst [vmem:[#allocation2 + $0x180] sm:$0xff] %v2988_v0  ;;  %539 = vst [vmem:[#allocation2 + $0x188] sm:$0xff] %v2988_v0 }
  0x60   : > { %540 = vst [vmem:[#allocation2 + $0x190] sm:$0xff] %v2988_v0  ;;  %541 = vst [vmem:[#allocation2 + $0x198] sm:$0xff] %v2988_v0 }
  0x61   : > { %542 = vst [vmem:[#allocation2 + $0x1a0] sm:$0xff] %v2988_v0  ;;  %543 = vst [vmem:[#allocation2 + $0x1a8] sm:$0xff] %v2988_v0 }
  0x62   : > { %544 = vst [vmem:[#allocation2 + $0x1b0] sm:$0xff] %v2988_v0  ;;  %545 = vst [vmem:[#allocation2 + $0x1b8] sm:$0xff] %v2988_v0 }
  0x63   : > { %546 = vst [vmem:[#allocation2 + $0x1c0] sm:$0xff] %v2988_v0  ;;  %547 = vst [vmem:[#allocation2 + $0x1c8] sm:$0xff] %v2988_v0 }
  0x64   : > { %548 = vst [vmem:[#allocation2 + $0x1d0] sm:$0xff] %v2988_v0  ;;  %549 = vst [vmem:[#allocation2 + $0x1d8] sm:$0xff] %v2988_v0 }
  0x65   : > { %550 = vst [vmem:[#allocation2 + $0x1e0] sm:$0xff] %v2988_v0  ;;  %551 = vst [vmem:[#allocation2 + $0x1e8] sm:$0xff] %v2988_v0 }
  0x66   : > { %552 = vst [vmem:[#allocation2 + $0x1f0] sm:$0xff] %v2988_v0  ;;  %553 = vst [vmem:[#allocation2 + $0x1f8] sm:$0xff] %v2988_v0 }
  0x67 PF: > { %s2098_s12 = sshll.u32 %s2742_s14, 8  ;;  %v2760_v1 = vmov 0   ;;  %v2610_v2 = vld [vmem:[%s2982_s26 + $0x4] ss:$8 sps:$4 sm:$0xff]   ;;  %v2608_v20 = vld [vmem:[%s2982_s26] ss:$8 sps:$4 sm:$0xff]  }
  0x68   : > { %1135 = vmatprep.subr.bf16.mxu0 %v2760_v1  ;;  %2502 = vmatprep.subr.bf16.mxu1 %v2760_v1  ;;  %s683_s15 = sshra.s32 %s2098_s12, 3  ;;  %v2613_v3 = vld [vmem:[%s2982_s26 + $0x104] ss:$8 sps:$4 sm:$0xff]   ;;  %v2611_v21 = vld [vmem:[%s2982_s26 + $0x100] ss:$8 sps:$4 sm:$0xff]   ;;  %p2180_p12 = scmp.ne.s32.totalorder %s2742_s14, 2 }
  0x69   : > { %s2099_s29 = sshll.u32 %s683_s15, 2  ;;  %1167 = vmatprep.mubr.bf16.mxu0 %v2610_v2  ;;  %1295 = vmatprep.mubr.bf16.mxu1 %v2613_v3  ;;  %v2614_v22 = vld [vmem:[%s2982_s26 + $0x14] ss:$8 sps:$4 sm:$0xff]   ;;  %v2618_v24 = vld [vmem:[%s2982_s26 + $0x10] ss:$8 sps:$4 sm:$0xff]  }
  0x6a   : > { %s3062_s5 = scalar_lea.vmem %s3227_s1, %s2099_s29  ;;  %v2616_v23 = vld [vmem:[%s2982_s26 + $0x114] ss:$8 sps:$4 sm:$0xff]   ;;  %v2619_v25 = vld [vmem:[%s2982_s26 + $0x110] ss:$8 sps:$4 sm:$0xff]   ;;  %v2620_v26 = vld [vmem:[%s2982_s26 + $0x24] ss:$8 sps:$4 sm:$0xff]  }
  0x6b   : > { %v2592_v4 = vld [vmem:[%s3062_s5] sm:$0xff]   ;;  %v2593_v5 = vld [vmem:[%s3062_s5 + $0x8] sm:$0xff]   ;;  %v2594_v6 = vld [vmem:[%s3062_s5 + $0x10] sm:$0xff]  }
  0x6c   : > { %1136 = vmatpush1.bf16.msra.mxu0 %v2592_v4  ;;  %2518 = vmatpush1.bf16.msra.mxu1 %v2592_v4  ;;  %v2595_v7 = vld [vmem:[%s3062_s5 + $0x18] sm:$0xff]   ;;  %v2596_v8 = vld [vmem:[%s3062_s5 + $0x20] sm:$0xff]   ;;  %v2597_v9 = vld [vmem:[%s3062_s5 + $0x28] sm:$0xff]  }
  0x6d   : > { %1137 = vmatprep.subr.bf16.mxu0 %v2760_v1  ;;  %2503 = vmatprep.subr.bf16.mxu1 %v2760_v1  ;;  %v2598_v10 = vld [vmem:[%s3062_s5 + $0x30] sm:$0xff]   ;;  %v2599_v11 = vld [vmem:[%s3062_s5 + $0x38] sm:$0xff]   ;;  %v2600_v12 = vld [vmem:[%s3062_s5 + $0x40] sm:$0xff]  }
  0x6e   : > { %v2601_v13 = vld [vmem:[%s3062_s5 + $0x48] sm:$0xff]   ;;  %v2602_v14 = vld [vmem:[%s3062_s5 + $0x50] sm:$0xff]   ;;  %v2603_v15 = vld [vmem:[%s3062_s5 + $0x58] sm:$0xff]  }
  0x6f   : > { %v2604_v16 = vld [vmem:[%s3062_s5 + $0x60] sm:$0xff]   ;;  %v2605_v17 = vld [vmem:[%s3062_s5 + $0x68] sm:$0xff]   ;;  %v2606_v18 = vld [vmem:[%s3062_s5 + $0x70] sm:$0xff]  }
  0x70   : > { %1138 = vmatpush1.bf16.msra.mxu0 %v2593_v5  ;;  %2519 = vmatpush1.bf16.msra.mxu1 %v2593_v5  ;;  %v2607_v19 = vld [vmem:[%s3062_s5 + $0x78] sm:$0xff]   ;;  %v2622_v27 = vld [vmem:[%s2982_s26 + $0x124] ss:$8 sps:$4 sm:$0xff]   ;;  %v2624_v28 = vld [vmem:[%s2982_s26 + $0x20] ss:$8 sps:$4 sm:$0xff]  }
  0x71   : > { %1139 = vmatprep.subr.bf16.mxu0 %v2760_v1  ;;  %2504 = vmatprep.subr.bf16.mxu1 %v2760_v1  ;;  %v2625_v29 = vld [vmem:[%s2982_s26 + $0x120] ss:$8 sps:$4 sm:$0xff]   ;;  %v2626_v30 = vld [vmem:[%s2982_s26 + $0x34] ss:$8 sps:$4 sm:$0xff]   ;;  %v2630_v32 = vld [vmem:[%s2982_s26 + $0x30] ss:$8 sps:$4 sm:$0xff]  }
  0x72   : > { %v2628_v31 = vld [vmem:[%s2982_s26 + $0x134] ss:$8 sps:$4 sm:$0xff]   ;;  %v2631_v33 = vld [vmem:[%s2982_s26 + $0x130] ss:$8 sps:$4 sm:$0xff]   ;;  %v2632_v34 = vld [vmem:[%s2982_s26 + $0x44] ss:$8 sps:$4 sm:$0xff]  }
  0x73   : > { %v2634_v35 = vld [vmem:[%s2982_s26 + $0x144] ss:$8 sps:$4 sm:$0xff]   ;;  %v2636_v36 = vld [vmem:[%s2982_s26 + $0x40] ss:$8 sps:$4 sm:$0xff]   ;;  %v2638_v38 = vld [vmem:[%s2982_s26 + $0x54] ss:$8 sps:$4 sm:$0xff]  }
  0x74   : > { %1140 = vmatpush1.bf16.msra.mxu0 %v2594_v6  ;;  %2520 = vmatpush1.bf16.msra.mxu1 %v2594_v6  ;;  %v2637_v37 = vld [vmem:[%s2982_s26 + $0x140] ss:$8 sps:$4 sm:$0xff]   ;;  %v2640_v39 = vld [vmem:[%s2982_s26 + $0x154] ss:$8 sps:$4 sm:$0xff]   ;;  %v2642_v40 = vld [vmem:[%s2982_s26 + $0x50] ss:$8 sps:$4 sm:$0xff]  }
  0x75   : > { %1141 = vmatprep.subr.bf16.mxu0 %v2760_v1  ;;  %2505 = vmatprep.subr.bf16.mxu1 %v2760_v1  ;;  %v2643_v41 = vld [vmem:[%s2982_s26 + $0x150] ss:$8 sps:$4 sm:$0xff]   ;;  %v2644_v42 = vld [vmem:[%s2982_s26 + $0x64] ss:$8 sps:$4 sm:$0xff]   ;;  %v2648_v44 = vld [vmem:[%s2982_s26 + $0x60] ss:$8 sps:$4 sm:$0xff]  }
  0x76   : > { %v2646_v43 = vld [vmem:[%s2982_s26 + $0x164] ss:$8 sps:$4 sm:$0xff]   ;;  %v2649_v45 = vld [vmem:[%s2982_s26 + $0x160] ss:$8 sps:$4 sm:$0xff]   ;;  %v2650_v46 = vld [vmem:[%s2982_s26 + $0x74] ss:$8 sps:$4 sm:$0xff]  }
  0x77   : > { %v2652_v47 = vld [vmem:[%s2982_s26 + $0x174] ss:$8 sps:$4 sm:$0xff]   ;;  %v2654_v48 = vld [vmem:[%s2982_s26 + $0x70] ss:$8 sps:$4 sm:$0xff]   ;;  %v2656_v50 = vld [vmem:[%s2982_s26 + $0x84] ss:$8 sps:$4 sm:$0xff]  }
  0x78   : > { %1142 = vmatpush1.bf16.msra.mxu0 %v2595_v7  ;;  %2521 = vmatpush1.bf16.msra.mxu1 %v2595_v7  ;;  %v2655_v49 = vld [vmem:[%s2982_s26 + $0x170] ss:$8 sps:$4 sm:$0xff]   ;;  %v2658_v51 = vld [vmem:[%s2982_s26 + $0x184] ss:$8 sps:$4 sm:$0xff]   ;;  %v2660_v52 = vld [vmem:[%s2982_s26 + $0x80] ss:$8 sps:$4 sm:$0xff]  }
  0x79   : > { %1143 = vmatprep.subr.bf16.mxu0 %v2760_v1  ;;  %2506 = vmatprep.subr.bf16.mxu1 %v2760_v1  ;;  %v2661_v53 = vld [vmem:[%s2982_s26 + $0x180] ss:$8 sps:$4 sm:$0xff]   ;;  %v2662_v54 = vld [vmem:[%s2982_s26 + $0x94] ss:$8 sps:$4 sm:$0xff]   ;;  %v2666_v56 = vld [vmem:[%s2982_s26 + $0x90] ss:$8 sps:$4 sm:$0xff]  }
  0x7a   : > { %v2664_v55 = vld [vmem:[%s2982_s26 + $0x194] ss:$8 sps:$4 sm:$0xff]   ;;  %v2667_v57 = vld [vmem:[%s2982_s26 + $0x190] ss:$8 sps:$4 sm:$0xff]   ;;  %v2668_v58 = vld [vmem:[%s2982_s26 + $0xa4] ss:$8 sps:$4 sm:$0xff]  }
  0x7b   : > { %v2670_v59 = vld [vmem:[%s2982_s26 + $0x1a4] ss:$8 sps:$4 sm:$0xff]   ;;  %v2672_v60 = vld [vmem:[%s2982_s26 + $0xa0] ss:$8 sps:$4 sm:$0xff]   ;;  %v2674_v62 = vld [vmem:[%s2982_s26 + $0xb4] ss:$8 sps:$4 sm:$0xff]  }
  0x7c   : > { %1144 = vmatpush1.bf16.msra.mxu0 %v2596_v8  ;;  %2522 = vmatpush1.bf16.msra.mxu1 %v2596_v8  ;;  %v2673_v61 = vld [vmem:[%s2982_s26 + $0x1a0] ss:$8 sps:$4 sm:$0xff]   ;;  %v2676_v63 = vld [vmem:[%s2982_s26 + $0x1b4] ss:$8 sps:$4 sm:$0xff]   ;;  %v2678_v0 = vld [vmem:[%s2982_s26 + $0xb0] ss:$8 sps:$4 sm:$0xff]  }
  0x7d   : > { %1145 = vmatprep.subr.bf16.mxu0 %v2760_v1  ;;  %2507 = vmatprep.subr.bf16.mxu1 %v2760_v1  ;;  %v2680_v2 = vld [vmem:[%s2982_s26 + $0xc4] ss:$8 sps:$4 sm:$0xff]   ;;  %v2684_v4 = vld [vmem:[%s2982_s26 + $0xc0] ss:$8 sps:$4 sm:$0xff]   ;;  %v2686_v6 = vld [vmem:[%s2982_s26 + $0xd4] ss:$8 sps:$4 sm:$0xff]  }
  0x7e   : > { %v2682_v3 = vld [vmem:[%s2982_s26 + $0x1c4] ss:$8 sps:$4 sm:$0xff]   ;;  %v2685_v5 = vld [vmem:[%s2982_s26 + $0x1c0] ss:$8 sps:$4 sm:$0xff]   ;;  %v2688_v7 = vld [vmem:[%s2982_s26 + $0x1d4] ss:$8 sps:$4 sm:$0xff]  }
  0x7f   : > { %v2690_v8 = vld [vmem:[%s2982_s26 + $0xd0] ss:$8 sps:$4 sm:$0xff]  }
  0x80   : > { %1146 = vmatpush1.bf16.msra.mxu0 %v2597_v9  ;;  %2523 = vmatpush1.bf16.msra.mxu1 %v2597_v9  ;;  %v2691_v9 = vld [vmem:[%s2982_s26 + $0x1d0] ss:$8 sps:$4 sm:$0xff]  }
  0x81   : > { %1147 = vmatprep.subr.bf16.mxu0 %v2760_v1  ;;  %2508 = vmatprep.subr.bf16.mxu1 %v2760_v1 }
  0x84   : > { %1148 = vmatpush1.bf16.msra.mxu0 %v2598_v10  ;;  %2524 = vmatpush1.bf16.msra.mxu1 %v2598_v10  ;;  %v2692_v10 = vld [vmem:[%s2982_s26 + $0xe4] ss:$8 sps:$4 sm:$0xff]  }
  0x85   : > { %1149 = vmatprep.subr.bf16.mxu0 %v2760_v1  ;;  %2509 = vmatprep.subr.bf16.mxu1 %v2760_v1 }
  0x88   : > { %1150 = vmatpush1.bf16.msra.mxu0 %v2599_v11  ;;  %2525 = vmatpush1.bf16.msra.mxu1 %v2599_v11  ;;  %v2694_v11 = vld [vmem:[%s2982_s26 + $0x1e4] ss:$8 sps:$4 sm:$0xff]  }
  0x89   : > { %1151 = vmatprep.subr.bf16.mxu0 %v2760_v1  ;;  %2510 = vmatprep.subr.bf16.mxu1 %v2760_v1 }
  0x8c   : > { %1152 = vmatpush1.bf16.msra.mxu0 %v2600_v12  ;;  %2526 = vmatpush1.bf16.msra.mxu1 %v2600_v12  ;;  %v2696_v12 = vld [vmem:[%s2982_s26 + $0xe0] ss:$8 sps:$4 sm:$0xff]  }
  0x8d   : > { %1153 = vmatprep.subr.bf16.mxu0 %v2760_v1  ;;  %2511 = vmatprep.subr.bf16.mxu1 %v2760_v1 }
  0x90   : > { %1154 = vmatpush1.bf16.msra.mxu0 %v2601_v13  ;;  %2527 = vmatpush1.bf16.msra.mxu1 %v2601_v13  ;;  %v2697_v13 = vld [vmem:[%s2982_s26 + $0x1e0] ss:$8 sps:$4 sm:$0xff]  }
  0x91   : > { %1155 = vmatprep.subr.bf16.mxu0 %v2760_v1  ;;  %2512 = vmatprep.subr.bf16.mxu1 %v2760_v1 }
  0x94   : > { %1156 = vmatpush1.bf16.msra.mxu0 %v2602_v14  ;;  %2528 = vmatpush1.bf16.msra.mxu1 %v2602_v14  ;;  %v2698_v14 = vld [vmem:[%s2982_s26 + $0xf4] ss:$8 sps:$4 sm:$0xff]  }
  0x95   : > { %1157 = vmatprep.subr.bf16.mxu0 %v2760_v1  ;;  %2513 = vmatprep.subr.bf16.mxu1 %v2760_v1 }
  0x98   : > { %1158 = vmatpush1.bf16.msra.mxu0 %v2603_v15  ;;  %2529 = vmatpush1.bf16.msra.mxu1 %v2603_v15  ;;  %v2700_v15 = vld [vmem:[%s2982_s26 + $0x1f4] ss:$8 sps:$4 sm:$0xff]  }
  0x99   : > { %1159 = vmatprep.subr.bf16.mxu0 %v2760_v1  ;;  %2514 = vmatprep.subr.bf16.mxu1 %v2760_v1 }
  0x9c   : > { %1160 = vmatpush1.bf16.msra.mxu0 %v2604_v16  ;;  %2530 = vmatpush1.bf16.msra.mxu1 %v2604_v16  ;;  %v2702_v16 = vld [vmem:[%s2982_s26 + $0xf0] ss:$8 sps:$4 sm:$0xff]  }
  0x9d   : > { %1161 = vmatprep.subr.bf16.mxu0 %v2760_v1  ;;  %2515 = vmatprep.subr.bf16.mxu1 %v2760_v1 }
  0xa0   : > { %1162 = vmatpush1.bf16.msra.mxu0 %v2605_v17  ;;  %2531 = vmatpush1.bf16.msra.mxu1 %v2605_v17  ;;  %v2703_v17 = vld [vmem:[%s2982_s26 + $0x1f0] ss:$8 sps:$4 sm:$0xff]  }
  0xa1   : > { %1163 = vmatprep.subr.bf16.mxu0 %v2760_v1  ;;  %2516 = vmatprep.subr.bf16.mxu1 %v2760_v1 }
  0xa4   : > { %1164 = vmatpush1.bf16.msra.mxu0 %v2606_v18  ;;  %2532 = vmatpush1.bf16.msra.mxu1 %v2606_v18  ;;  %v555_v18 = vld [vmem:[#allocation2] sm:$0xff] }
  0xa5   : > { %1165 = vmatprep.subr.bf16.mxu0 %v2760_v1  ;;  %2517 = vmatprep.subr.bf16.mxu1 %v2760_v1  ;;  %v2679_v1 = vld [vmem:[%s2982_s26 + $0x1b0] ss:$8 sps:$4 sm:$0xff]  }
  0xa8   : > { %1166 = vmatpush1.bf16.msra.mxu0 %v2607_v19  ;;  %2533 = vmatpush1.bf16.msra.mxu1 %v2607_v19  ;;  %v587_v19 = vld [vmem:[#allocation2 + $0x100] sm:$0xff] }
  0xab   : > { %1168 = vmatmul.mubr.bf16.vlgmr.msra.gmra.mrb[0].mxu0 %v2608_v20  ;;  %1296 = vmatmul.mubr.bf16.vlgmr.msra.gmra.mrb[0].mxu1 %v2611_v21 }
  0xac   : > { %1175 = vmatprep.mubr.bf16.mxu0 %v2614_v22  ;;  %1303 = vmatprep.mubr.bf16.mxu1 %v2616_v23  ;;  %v556_v22 = vld [vmem:[#allocation2 + $0x8] sm:$0xff] }
  0xad   : > { %v588_v23 = vld [vmem:[#allocation2 + $0x108] sm:$0xff] }
  0xb3   : > { %1176 = vmatmul.mubr.bf16.gmra.mrb[4].mxu0 %v2618_v24  ;;  %1304 = vmatmul.mubr.bf16.gmra.mrb[4].mxu1 %v2619_v25 }
  0xb4   : > { %1183 = vmatprep.mubr.bf16.mxu0 %v2620_v26  ;;  %1311 = vmatprep.mubr.bf16.mxu1 %v2622_v27 }
  0xbb   : > { %1184 = vmatmul.mubr.bf16.gmra.mrb[8].mxu0 %v2624_v28  ;;  %1312 = vmatmul.mubr.bf16.gmra.mrb[8].mxu1 %v2625_v29 }
  0xbc   : > { %1191 = vmatprep.mubr.bf16.mxu0 %v2626_v30  ;;  %1319 = vmatprep.mubr.bf16.mxu1 %v2628_v31 }
  0xc3   : > { %1192 = vmatmul.mubr.bf16.gmra.mrb[12].mxu0 %v2630_v32  ;;  %1320 = vmatmul.mubr.bf16.gmra.mrb[12].mxu1 %v2631_v33 }
  0xc4   : > { %1199 = vmatprep.mubr.bf16.mxu0 %v2632_v34  ;;  %1327 = vmatprep.mubr.bf16.mxu1 %v2634_v35  ;;  %v557_v34 = vld [vmem:[#allocation2 + $0x10] sm:$0xff] }
  0xc5   : > { %v589_v35 = vld [vmem:[#allocation2 + $0x110] sm:$0xff] }
  0xcb   : > { %1200 = vmatmul.mubr.bf16.gmra.mrb[16].mxu0 %v2636_v36  ;;  %1328 = vmatmul.mubr.bf16.gmra.mrb[16].mxu1 %v2637_v37 }
  0xcc   : > { %1207 = vmatprep.mubr.bf16.mxu0 %v2638_v38  ;;  %1335 = vmatprep.mubr.bf16.mxu1 %v2640_v39  ;;  %v558_v38 = vld [vmem:[#allocation2 + $0x18] sm:$0xff] }
  0xcd   : > { %v590_v39 = vld [vmem:[#allocation2 + $0x118] sm:$0xff] }
  0xd3   : > { %1208 = vmatmul.mubr.bf16.gmra.mrb[20].mxu0 %v2642_v40  ;;  %1336 = vmatmul.mubr.bf16.gmra.mrb[20].mxu1 %v2643_v41 }
  0xd4   : > { %1215 = vmatprep.mubr.bf16.mxu0 %v2644_v42  ;;  %1343 = vmatprep.mubr.bf16.mxu1 %v2646_v43 }
  0xdb   : > { %1216 = vmatmul.mubr.bf16.gmra.mrb[24].mxu0 %v2648_v44  ;;  %1344 = vmatmul.mubr.bf16.gmra.mrb[24].mxu1 %v2649_v45 }
  0xdc   : > { %1223 = vmatprep.mubr.bf16.mxu0 %v2650_v46  ;;  %1351 = vmatprep.mubr.bf16.mxu1 %v2652_v47 }
  0xe3   : > { %1224 = vmatmul.mubr.bf16.gmra.mrb[28].mxu0 %v2654_v48  ;;  %1352 = vmatmul.mubr.bf16.gmra.mrb[28].mxu1 %v2655_v49 }
  0xe4   : > { %1231 = vmatprep.mubr.bf16.mxu0 %v2656_v50  ;;  %1359 = vmatprep.mubr.bf16.mxu1 %v2658_v51  ;;  %v559_v50 = vld [vmem:[#allocation2 + $0x20] sm:$0xff] }
  0xe5   : > { %v591_v51 = vld [vmem:[#allocation2 + $0x120] sm:$0xff] }
  0xeb   : > { %1232 = vmatmul.mubr.bf16.gmra.mrb[32].mxu0 %v2660_v52  ;;  %1360 = vmatmul.mubr.bf16.gmra.mrb[32].mxu1 %v2661_v53 }
  0xec   : > { %1239 = vmatprep.mubr.bf16.mxu0 %v2662_v54  ;;  %1367 = vmatprep.mubr.bf16.mxu1 %v2664_v55  ;;  %v560_v54 = vld [vmem:[#allocation2 + $0x28] sm:$0xff] }
  0xed   : > { %v592_v55 = vld [vmem:[#allocation2 + $0x128] sm:$0xff] }
  0xf3   : > { %1240 = vmatmul.mubr.bf16.gmra.mrb[36].mxu0 %v2666_v56  ;;  %1368 = vmatmul.mubr.bf16.gmra.mrb[36].mxu1 %v2667_v57 }
  0xf4   : > { %1247 = vmatprep.mubr.bf16.mxu0 %v2668_v58  ;;  %1375 = vmatprep.mubr.bf16.mxu1 %v2670_v59 }
  0xfb   : > { %1248 = vmatmul.mubr.bf16.gmra.mrb[40].mxu0 %v2672_v60  ;;  %1376 = vmatmul.mubr.bf16.gmra.mrb[40].mxu1 %v2673_v61 }
  0xfc   : > { %1255 = vmatprep.mubr.bf16.mxu0 %v2674_v62  ;;  %1383 = vmatprep.mubr.bf16.mxu1 %v2676_v63 }
 0x103   : > { %1256 = vmatmul.mubr.bf16.gmra.mrb[44].mxu0 %v2678_v0  ;;  %1384 = vmatmul.mubr.bf16.gmra.mrb[44].mxu1 %v2679_v1 }
 0x104   : > { %1263 = vmatprep.mubr.bf16.mxu0 %v2680_v2  ;;  %1391 = vmatprep.mubr.bf16.mxu1 %v2682_v3  ;;  %v561_v2 = vld [vmem:[#allocation2 + $0x30] sm:$0xff] }
 0x105   : > { %v593_v3 = vld [vmem:[#allocation2 + $0x130] sm:$0xff] }
 0x10b   : > { %1264 = vmatmul.mubr.bf16.gmra.mrb[48].mxu0 %v2684_v4  ;;  %1392 = vmatmul.mubr.bf16.gmra.mrb[48].mxu1 %v2685_v5 }
 0x10c   : > { %1271 = vmatprep.mubr.bf16.mxu0 %v2686_v6  ;;  %1399 = vmatprep.mubr.bf16.mxu1 %v2688_v7  ;;  %v562_v6 = vld [vmem:[#allocation2 + $0x38] sm:$0xff] }
 0x10d   : > { %v594_v7 = vld [vmem:[#allocation2 + $0x138] sm:$0xff] }
 0x113   : > { %1272 = vmatmul.mubr.bf16.gmra.mrb[52].mxu0 %v2690_v8  ;;  %1400 = vmatmul.mubr.bf16.gmra.mrb[52].mxu1 %v2691_v9 }
 0x114   : > { %1279 = vmatprep.mubr.bf16.mxu0 %v2692_v10  ;;  %1407 = vmatprep.mubr.bf16.mxu1 %v2694_v11 }
 0x11b   : > { %1280 = vmatmul.mubr.bf16.gmra.mrb[56].mxu0 %v2696_v12  ;;  %1408 = vmatmul.mubr.bf16.gmra.mrb[56].mxu1 %v2697_v13 }
 0x11c   : > { %1287 = vmatprep.mubr.bf16.mxu0 %v2698_v14  ;;  %1415 = vmatprep.mubr.bf16.mxu1 %v2700_v15 }
 0x123   : > { %1288 = vmatmul.mubr.bf16.gmra.mrb[60].mxu0 %v2702_v16  ;;  %1416 = vmatmul.mubr.bf16.gmra.mrb[60].mxu1 %v2703_v17 }
 0x17e   : > { %v1169_v20 = vpop.f32.mrb[0].mxu0  ;;  %v1297_v21 = vpop.f32.mrb[0].mxu1 }
 0x17f   : > { %v1424_v24 = vadd.f32 %v1169_v20, %v555_v18  ;;  %v1456_v25 = vadd.f32 %v1297_v21, %v587_v19  ;;  %v1171_v26 = vpop.f32.mrb[1].mxu0  ;;  %v1299_v27 = vpop.f32.mrb[1].mxu1  ;;  %v563_v18 = vld [vmem:[#allocation2 + $0x40] sm:$0xff] }
 0x180   : > { %v1172_v28 = vpop.f32.mrb[2].mxu0  ;;  %v1300_v29 = vpop.f32.mrb[2].mxu1  ;;  %v595_v19 = vld [vmem:[#allocation2 + $0x140] sm:$0xff] }
 0x181   : > { %1488 = vst [vmem:[#allocation2] sm:$0xff] %v1424_v24  ;;  %1520 = vst [vmem:[#allocation2 + $0x100] sm:$0xff] %v1456_v25  ;;  %v1425_v30 = vadd.f32 %v1172_v28, %v556_v22  ;;  %v1457_v31 = vadd.f32 %v1300_v29, %v588_v23  ;;  %v1174_v32 = vpop.f32.mrb[3].mxu0  ;;  %v1302_v33 = vpop.f32.mrb[3].mxu1  ;;  %v564_v22 = vld [vmem:[#allocation2 + $0x48] sm:$0xff] }
 0x182   : > { %v596_v23 = vld [vmem:[#allocation2 + $0x148] sm:$0xff] }
 0x183   : > { %1489 = vst [vmem:[#allocation2 + $0x8] sm:$0xff] %v1425_v30  ;;  %1521 = vst [vmem:[#allocation2 + $0x108] sm:$0xff] %v1457_v31 }
 0x186   : > { %v1177_v36 = vpop.f32.mrb[4].mxu0  ;;  %v1305_v37 = vpop.f32.mrb[4].mxu1 }
 0x187   : > { %v1426_v40 = vadd.f32 %v1177_v36, %v557_v34  ;;  %v1458_v41 = vadd.f32 %v1305_v37, %v589_v35  ;;  %v1179_v42 = vpop.f32.mrb[5].mxu0  ;;  %v1307_v43 = vpop.f32.mrb[5].mxu1  ;;  %v565_v34 = vld [vmem:[#allocation2 + $0x50] sm:$0xff] }
 0x188   : > { %v1180_v44 = vpop.f32.mrb[6].mxu0  ;;  %v1308_v45 = vpop.f32.mrb[6].mxu1  ;;  %v597_v35 = vld [vmem:[#allocation2 + $0x150] sm:$0xff] }
 0x189   : > { %1490 = vst [vmem:[#allocation2 + $0x10] sm:$0xff] %v1426_v40  ;;  %1522 = vst [vmem:[#allocation2 + $0x110] sm:$0xff] %v1458_v41  ;;  %v1427_v46 = vadd.f32 %v1180_v44, %v558_v38  ;;  %v1459_v47 = vadd.f32 %v1308_v45, %v590_v39  ;;  %v1182_v48 = vpop.f32.mrb[7].mxu0  ;;  %v1310_v49 = vpop.f32.mrb[7].mxu1  ;;  %v566_v38 = vld [vmem:[#allocation2 + $0x58] sm:$0xff] }
 0x18a   : > { %v598_v39 = vld [vmem:[#allocation2 + $0x158] sm:$0xff] }
 0x18b   : > { %1491 = vst [vmem:[#allocation2 + $0x18] sm:$0xff] %v1427_v46  ;;  %1523 = vst [vmem:[#allocation2 + $0x118] sm:$0xff] %v1459_v47 }
 0x18e   : > { %v1185_v52 = vpop.f32.mrb[8].mxu0  ;;  %v1313_v53 = vpop.f32.mrb[8].mxu1 }
 0x18f   : > { %v1428_v56 = vadd.f32 %v1185_v52, %v559_v50  ;;  %v1460_v57 = vadd.f32 %v1313_v53, %v591_v51  ;;  %v1187_v58 = vpop.f32.mrb[9].mxu0  ;;  %v1315_v59 = vpop.f32.mrb[9].mxu1  ;;  %v567_v50 = vld [vmem:[#allocation2 + $0x60] sm:$0xff] }
 0x190   : > { %v1188_v60 = vpop.f32.mrb[10].mxu0  ;;  %v1316_v61 = vpop.f32.mrb[10].mxu1  ;;  %v599_v51 = vld [vmem:[#allocation2 + $0x160] sm:$0xff] }
 0x191   : > { %1492 = vst [vmem:[#allocation2 + $0x20] sm:$0xff] %v1428_v56  ;;  %1524 = vst [vmem:[#allocation2 + $0x120] sm:$0xff] %v1460_v57  ;;  %v1429_v62 = vadd.f32 %v1188_v60, %v560_v54  ;;  %v1461_v63 = vadd.f32 %v1316_v61, %v592_v55  ;;  %v1190_v0 = vpop.f32.mrb[11].mxu0  ;;  %v1318_v1 = vpop.f32.mrb[11].mxu1  ;;  %v568_v54 = vld [vmem:[#allocation2 + $0x68] sm:$0xff] }
 0x192   : > { %v600_v55 = vld [vmem:[#allocation2 + $0x168] sm:$0xff] }
 0x193   : > { %1493 = vst [vmem:[#allocation2 + $0x28] sm:$0xff] %v1429_v62  ;;  %1525 = vst [vmem:[#allocation2 + $0x128] sm:$0xff] %v1461_v63 }
 0x196   : > { %v1193_v4 = vpop.f32.mrb[12].mxu0  ;;  %v1321_v5 = vpop.f32.mrb[12].mxu1 }
 0x197   : > { %v1430_v8 = vadd.f32 %v1193_v4, %v561_v2  ;;  %v1462_v9 = vadd.f32 %v1321_v5, %v593_v3  ;;  %v1195_v10 = vpop.f32.mrb[13].mxu0  ;;  %v1323_v11 = vpop.f32.mrb[13].mxu1  ;;  %v569_v2 = vld [vmem:[#allocation2 + $0x70] sm:$0xff] }
 0x198   : > { %v1196_v12 = vpop.f32.mrb[14].mxu0  ;;  %v1324_v13 = vpop.f32.mrb[14].mxu1  ;;  %v601_v3 = vld [vmem:[#allocation2 + $0x170] sm:$0xff] }
 0x199   : > { %1494 = vst [vmem:[#allocation2 + $0x30] sm:$0xff] %v1430_v8  ;;  %1526 = vst [vmem:[#allocation2 + $0x130] sm:$0xff] %v1462_v9  ;;  %v1431_v14 = vadd.f32 %v1196_v12, %v562_v6  ;;  %v1463_v15 = vadd.f32 %v1324_v13, %v594_v7  ;;  %v1198_v16 = vpop.f32.mrb[15].mxu0  ;;  %v1326_v17 = vpop.f32.mrb[15].mxu1  ;;  %v570_v6 = vld [vmem:[#allocation2 + $0x78] sm:$0xff] }
 0x19a   : > { %v602_v7 = vld [vmem:[#allocation2 + $0x178] sm:$0xff] }
 0x19b   : > { %1495 = vst [vmem:[#allocation2 + $0x38] sm:$0xff] %v1431_v14  ;;  %1527 = vst [vmem:[#allocation2 + $0x138] sm:$0xff] %v1463_v15 }
 0x19e   : > { %v1201_v20 = vpop.f32.mrb[16].mxu0  ;;  %v1329_v21 = vpop.f32.mrb[16].mxu1 }
 0x19f   : > { %v1432_v24 = vadd.f32 %v1201_v20, %v563_v18  ;;  %v1464_v25 = vadd.f32 %v1329_v21, %v595_v19  ;;  %v1203_v26 = vpop.f32.mrb[17].mxu0  ;;  %v1331_v27 = vpop.f32.mrb[17].mxu1  ;;  %v571_v18 = vld [vmem:[#allocation2 + $0x80] sm:$0xff] }
 0x1a0   : > { %v1204_v28 = vpop.f32.mrb[18].mxu0  ;;  %v1332_v29 = vpop.f32.mrb[18].mxu1  ;;  %v603_v19 = vld [vmem:[#allocation2 + $0x180] sm:$0xff] }
 0x1a1   : > { %1496 = vst [vmem:[#allocation2 + $0x40] sm:$0xff] %v1432_v24  ;;  %1528 = vst [vmem:[#allocation2 + $0x140] sm:$0xff] %v1464_v25  ;;  %v1433_v30 = vadd.f32 %v1204_v28, %v564_v22  ;;  %v1465_v31 = vadd.f32 %v1332_v29, %v596_v23  ;;  %v1206_v32 = vpop.f32.mrb[19].mxu0  ;;  %v1334_v33 = vpop.f32.mrb[19].mxu1  ;;  %v572_v22 = vld [vmem:[#allocation2 + $0x88] sm:$0xff] }
 0x1a2   : > { %v604_v23 = vld [vmem:[#allocation2 + $0x188] sm:$0xff] }
 0x1a3   : > { %1497 = vst [vmem:[#allocation2 + $0x48] sm:$0xff] %v1433_v30  ;;  %1529 = vst [vmem:[#allocation2 + $0x148] sm:$0xff] %v1465_v31 }
 0x1a6   : > { %v1209_v36 = vpop.f32.mrb[20].mxu0  ;;  %v1337_v37 = vpop.f32.mrb[20].mxu1 }
 0x1a7   : > { %v1434_v40 = vadd.f32 %v1209_v36, %v565_v34  ;;  %v1466_v41 = vadd.f32 %v1337_v37, %v597_v35  ;;  %v1211_v42 = vpop.f32.mrb[21].mxu0  ;;  %v1339_v43 = vpop.f32.mrb[21].mxu1  ;;  %v573_v34 = vld [vmem:[#allocation2 + $0x90] sm:$0xff] }
 0x1a8   : > { %v1212_v44 = vpop.f32.mrb[22].mxu0  ;;  %v1340_v45 = vpop.f32.mrb[22].mxu1  ;;  %v605_v35 = vld [vmem:[#allocation2 + $0x190] sm:$0xff] }
 0x1a9   : > { %1498 = vst [vmem:[#allocation2 + $0x50] sm:$0xff] %v1434_v40  ;;  %1530 = vst [vmem:[#allocation2 + $0x150] sm:$0xff] %v1466_v41  ;;  %v1435_v46 = vadd.f32 %v1212_v44, %v566_v38  ;;  %v1467_v47 = vadd.f32 %v1340_v45, %v598_v39  ;;  %v1214_v48 = vpop.f32.mrb[23].mxu0  ;;  %v1342_v49 = vpop.f32.mrb[23].mxu1  ;;  %v574_v38 = vld [vmem:[#allocation2 + $0x98] sm:$0xff] }
 0x1aa   : > { %v606_v39 = vld [vmem:[#allocation2 + $0x198] sm:$0xff] }
 0x1ab   : > { %1499 = vst [vmem:[#allocation2 + $0x58] sm:$0xff] %v1435_v46  ;;  %1531 = vst [vmem:[#allocation2 + $0x158] sm:$0xff] %v1467_v47 }
 0x1ae   : > { %v1217_v52 = vpop.f32.mrb[24].mxu0  ;;  %v1345_v53 = vpop.f32.mrb[24].mxu1 }
 0x1af   : > { %v1436_v56 = vadd.f32 %v1217_v52, %v567_v50  ;;  %v1468_v57 = vadd.f32 %v1345_v53, %v599_v51  ;;  %v1219_v58 = vpop.f32.mrb[25].mxu0  ;;  %v1347_v59 = vpop.f32.mrb[25].mxu1  ;;  %v575_v50 = vld [vmem:[#allocation2 + $0xa0] sm:$0xff] }
 0x1b0   : > { %v1220_v60 = vpop.f32.mrb[26].mxu0  ;;  %v1348_v61 = vpop.f32.mrb[26].mxu1  ;;  %v607_v51 = vld [vmem:[#allocation2 + $0x1a0] sm:$0xff] }
 0x1b1   : > { %1500 = vst [vmem:[#allocation2 + $0x60] sm:$0xff] %v1436_v56  ;;  %1532 = vst [vmem:[#allocation2 + $0x160] sm:$0xff] %v1468_v57  ;;  %v1437_v62 = vadd.f32 %v1220_v60, %v568_v54  ;;  %v1469_v63 = vadd.f32 %v1348_v61, %v600_v55  ;;  %v1222_v0 = vpop.f32.mrb[27].mxu0  ;;  %v1350_v1 = vpop.f32.mrb[27].mxu1  ;;  %v576_v54 = vld [vmem:[#allocation2 + $0xa8] sm:$0xff] }
 0x1b2   : > { %v608_v55 = vld [vmem:[#allocation2 + $0x1a8] sm:$0xff] }
 0x1b3   : > { %1501 = vst [vmem:[#allocation2 + $0x68] sm:$0xff] %v1437_v62  ;;  %1533 = vst [vmem:[#allocation2 + $0x168] sm:$0xff] %v1469_v63 }
 0x1b6   : > { %v1225_v4 = vpop.f32.mrb[28].mxu0  ;;  %v1353_v5 = vpop.f32.mrb[28].mxu1 }
 0x1b7   : > { %v1438_v8 = vadd.f32 %v1225_v4, %v569_v2  ;;  %v1470_v9 = vadd.f32 %v1353_v5, %v601_v3  ;;  %v1227_v10 = vpop.f32.mrb[29].mxu0  ;;  %v1355_v11 = vpop.f32.mrb[29].mxu1  ;;  %v577_v2 = vld [vmem:[#allocation2 + $0xb0] sm:$0xff] }
 0x1b8   : > { %v1228_v12 = vpop.f32.mrb[30].mxu0  ;;  %v1356_v13 = vpop.f32.mrb[30].mxu1  ;;  %v609_v3 = vld [vmem:[#allocation2 + $0x1b0] sm:$0xff] }
 0x1b9   : > { %1502 = vst [vmem:[#allocation2 + $0x70] sm:$0xff] %v1438_v8  ;;  %1534 = vst [vmem:[#allocation2 + $0x170] sm:$0xff] %v1470_v9  ;;  %v1439_v14 = vadd.f32 %v1228_v12, %v570_v6  ;;  %v1471_v15 = vadd.f32 %v1356_v13, %v602_v7  ;;  %v1230_v16 = vpop.f32.mrb[31].mxu0  ;;  %v1358_v17 = vpop.f32.mrb[31].mxu1  ;;  %v578_v6 = vld [vmem:[#allocation2 + $0xb8] sm:$0xff] }
 0x1ba   : > { %v610_v7 = vld [vmem:[#allocation2 + $0x1b8] sm:$0xff] }
 0x1bb   : > { %1503 = vst [vmem:[#allocation2 + $0x78] sm:$0xff] %v1439_v14  ;;  %1535 = vst [vmem:[#allocation2 + $0x178] sm:$0xff] %v1471_v15 }
 0x1be   : > { %v1233_v20 = vpop.f32.mrb[32].mxu0  ;;  %v1361_v21 = vpop.f32.mrb[32].mxu1 }
 0x1bf   : > { %v1440_v24 = vadd.f32 %v1233_v20, %v571_v18  ;;  %v1472_v25 = vadd.f32 %v1361_v21, %v603_v19  ;;  %v1235_v26 = vpop.f32.mrb[33].mxu0  ;;  %v1363_v27 = vpop.f32.mrb[33].mxu1  ;;  %v579_v18 = vld [vmem:[#allocation2 + $0xc0] sm:$0xff] }
 0x1c0   : > { %v1236_v28 = vpop.f32.mrb[34].mxu0  ;;  %v1364_v29 = vpop.f32.mrb[34].mxu1  ;;  %v611_v19 = vld [vmem:[#allocation2 + $0x1c0] sm:$0xff] }
 0x1c1   : > { %1504 = vst [vmem:[#allocation2 + $0x80] sm:$0xff] %v1440_v24  ;;  %1536 = vst [vmem:[#allocation2 + $0x180] sm:$0xff] %v1472_v25  ;;  %v1441_v30 = vadd.f32 %v1236_v28, %v572_v22  ;;  %v1473_v31 = vadd.f32 %v1364_v29, %v604_v23  ;;  %v1238_v32 = vpop.f32.mrb[35].mxu0  ;;  %v1366_v33 = vpop.f32.mrb[35].mxu1  ;;  %v580_v22 = vld [vmem:[#allocation2 + $0xc8] sm:$0xff] }
 0x1c2   : > { %v612_v23 = vld [vmem:[#allocation2 + $0x1c8] sm:$0xff] }
 0x1c3   : > { %1505 = vst [vmem:[#allocation2 + $0x88] sm:$0xff] %v1441_v30  ;;  %1537 = vst [vmem:[#allocation2 + $0x188] sm:$0xff] %v1473_v31 }
 0x1c6   : > { %v1241_v36 = vpop.f32.mrb[36].mxu0  ;;  %v1369_v37 = vpop.f32.mrb[36].mxu1 }
 0x1c7   : > { %v1442_v40 = vadd.f32 %v1241_v36, %v573_v34  ;;  %v1474_v41 = vadd.f32 %v1369_v37, %v605_v35  ;;  %v1243_v42 = vpop.f32.mrb[37].mxu0  ;;  %v1371_v43 = vpop.f32.mrb[37].mxu1  ;;  %v581_v34 = vld [vmem:[#allocation2 + $0xd0] sm:$0xff] }
 0x1c8   : > { %v1244_v44 = vpop.f32.mrb[38].mxu0  ;;  %v1372_v45 = vpop.f32.mrb[38].mxu1  ;;  %v613_v35 = vld [vmem:[#allocation2 + $0x1d0] sm:$0xff] }
 0x1c9   : > { %1506 = vst [vmem:[#allocation2 + $0x90] sm:$0xff] %v1442_v40  ;;  %1538 = vst [vmem:[#allocation2 + $0x190] sm:$0xff] %v1474_v41  ;;  %v1443_v46 = vadd.f32 %v1244_v44, %v574_v38  ;;  %v1475_v47 = vadd.f32 %v1372_v45, %v606_v39  ;;  %v1246_v48 = vpop.f32.mrb[39].mxu0  ;;  %v1374_v49 = vpop.f32.mrb[39].mxu1  ;;  %v582_v38 = vld [vmem:[#allocation2 + $0xd8] sm:$0xff] }
 0x1ca   : > { %v614_v39 = vld [vmem:[#allocation2 + $0x1d8] sm:$0xff] }
 0x1cb   : > { %1507 = vst [vmem:[#allocation2 + $0x98] sm:$0xff] %v1443_v46  ;;  %1539 = vst [vmem:[#allocation2 + $0x198] sm:$0xff] %v1475_v47 }
 0x1ce   : > { %v1249_v52 = vpop.f32.mrb[40].mxu0  ;;  %v1377_v53 = vpop.f32.mrb[40].mxu1 }
 0x1cf   : > { %v1444_v56 = vadd.f32 %v1249_v52, %v575_v50  ;;  %v1476_v57 = vadd.f32 %v1377_v53, %v607_v51  ;;  %v1251_v58 = vpop.f32.mrb[41].mxu0  ;;  %v1379_v59 = vpop.f32.mrb[41].mxu1  ;;  %v583_v50 = vld [vmem:[#allocation2 + $0xe0] sm:$0xff] }
 0x1d0   : > { %v1252_v60 = vpop.f32.mrb[42].mxu0  ;;  %v1380_v61 = vpop.f32.mrb[42].mxu1  ;;  %v615_v51 = vld [vmem:[#allocation2 + $0x1e0] sm:$0xff] }
 0x1d1   : > { %1508 = vst [vmem:[#allocation2 + $0xa0] sm:$0xff] %v1444_v56  ;;  %1540 = vst [vmem:[#allocation2 + $0x1a0] sm:$0xff] %v1476_v57  ;;  %v1445_v62 = vadd.f32 %v1252_v60, %v576_v54  ;;  %v1477_v63 = vadd.f32 %v1380_v61, %v608_v55  ;;  %v1254_v0 = vpop.f32.mrb[43].mxu0  ;;  %v1382_v1 = vpop.f32.mrb[43].mxu1  ;;  %v584_v54 = vld [vmem:[#allocation2 + $0xe8] sm:$0xff] }
 0x1d2   : > { %v616_v55 = vld [vmem:[#allocation2 + $0x1e8] sm:$0xff] }
 0x1d3   : > { %1509 = vst [vmem:[#allocation2 + $0xa8] sm:$0xff] %v1445_v62  ;;  %1541 = vst [vmem:[#allocation2 + $0x1a8] sm:$0xff] %v1477_v63 }
 0x1d6   : > { %v1257_v4 = vpop.f32.mrb[44].mxu0  ;;  %v1385_v5 = vpop.f32.mrb[44].mxu1 }
 0x1d7   : > { %v1446_v8 = vadd.f32 %v1257_v4, %v577_v2  ;;  %v1478_v9 = vadd.f32 %v1385_v5, %v609_v3  ;;  %v1259_v10 = vpop.f32.mrb[45].mxu0  ;;  %v1387_v11 = vpop.f32.mrb[45].mxu1  ;;  %v585_v2 = vld [vmem:[#allocation2 + $0xf0] sm:$0xff] }
 0x1d8   : > { %v1260_v12 = vpop.f32.mrb[46].mxu0  ;;  %v1388_v13 = vpop.f32.mrb[46].mxu1  ;;  %v617_v3 = vld [vmem:[#allocation2 + $0x1f0] sm:$0xff] }
 0x1d9   : > { %1510 = vst [vmem:[#allocation2 + $0xb0] sm:$0xff] %v1446_v8  ;;  %1542 = vst [vmem:[#allocation2 + $0x1b0] sm:$0xff] %v1478_v9  ;;  %v1447_v14 = vadd.f32 %v1260_v12, %v578_v6  ;;  %v1479_v15 = vadd.f32 %v1388_v13, %v610_v7  ;;  %v1262_v16 = vpop.f32.mrb[47].mxu0  ;;  %v1390_v17 = vpop.f32.mrb[47].mxu1  ;;  %v586_v6 = vld [vmem:[#allocation2 + $0xf8] sm:$0xff] }
 0x1da   : > { %v618_v7 = vld [vmem:[#allocation2 + $0x1f8] sm:$0xff] }
 0x1db   : > { %1511 = vst [vmem:[#allocation2 + $0xb8] sm:$0xff] %v1447_v14  ;;  %1543 = vst [vmem:[#allocation2 + $0x1b8] sm:$0xff] %v1479_v15 }
 0x1de   : > { %v1265_v20 = vpop.f32.mrb[48].mxu0  ;;  %v1393_v21 = vpop.f32.mrb[48].mxu1 }
 0x1df   : > { %v1448_v24 = vadd.f32 %v1265_v20, %v579_v18  ;;  %v1480_v25 = vadd.f32 %v1393_v21, %v611_v19  ;;  %v1267_v26 = vpop.f32.mrb[49].mxu0  ;;  %v1395_v27 = vpop.f32.mrb[49].mxu1  ;;  %v1556_v18 = vld [vmem:[#allocation2] sm:$0xff] (!%p2180_p12)  ;;  %v1557_v19 = vld [vmem:[#allocation2 + $0x8] sm:$0xff] (!%p2180_p12)  ;;  %v1558_v20 = vld [vmem:[#allocation2 + $0x10] sm:$0xff] (!%p2180_p12) }
 0x1e0   : > { %v1268_v28 = vpop.f32.mrb[50].mxu0  ;;  %v1396_v29 = vpop.f32.mrb[50].mxu1  ;;  %v1620_v21 = vmax.f32 (!%p2180_p12), %v1556_v18, 0.0  ;;  %v1561_v26 = vld [vmem:[#allocation2 + $0x28] sm:$0xff] (!%p2180_p12) }
 0x1e1   : > { %1512 = vst [vmem:[#allocation2 + $0xc0] sm:$0xff] %v1448_v24  ;;  %1544 = vst [vmem:[#allocation2 + $0x1c0] sm:$0xff] %v1480_v25  ;;  %v1449_v30 = vadd.f32 %v1268_v28, %v580_v22  ;;  %v1481_v31 = vadd.f32 %v1396_v29, %v612_v23  ;;  %v1270_v32 = vpop.f32.mrb[51].mxu0  ;;  %v1398_v33 = vpop.f32.mrb[51].mxu1  ;;  %v1621_v22 = vmax.f32 (!%p2180_p12), %v1557_v19, 0.0  ;;  %v1559_v23 = vld [vmem:[#allocation2 + $0x18] sm:$0xff] (!%p2180_p12) }
 0x1e2   : > { %v1622_v24 = vmax.f32 (!%p2180_p12), %v1558_v20, 0.0  ;;  %v1560_v25 = vld [vmem:[#allocation2 + $0x20] sm:$0xff] (!%p2180_p12)  ;;  %v1623_v27 = vmax.f32 (!%p2180_p12), %v1559_v23, 0.0  ;;  %v1625_v29 = vmax.f32 (!%p2180_p12), %v1561_v26, 0.0 }
 0x1e3   : > { %1513 = vst [vmem:[#allocation2 + $0xc8] sm:$0xff] %v1449_v30  ;;  %1545 = vst [vmem:[#allocation2 + $0x1c8] sm:$0xff] %v1481_v31  ;;  %v1624_v28 = vmax.f32 (!%p2180_p12), %v1560_v25, 0.0  ;;  %v1562_v30 = vld [vmem:[#allocation2 + $0x30] sm:$0xff] (!%p2180_p12)  ;;  %v1563_v31 = vld [vmem:[#allocation2 + $0x38] sm:$0xff] (!%p2180_p12)  ;;  %v2314_v33 = vpack.c.bf16 (!%p2180_p12), %v1621_v22, %v1620_v21 }
 0x1e4   : > { %v1564_v32 = vld [vmem:[#allocation2 + $0x40] sm:$0xff] (!%p2180_p12) }
 0x1e5   : > { %2315 = vst [vmem:[%s2980_s24] sm:$0xff] (!%p2180_p12), %v2314_v33  }
 0x1e6   : > { %v1273_v36 = vpop.f32.mrb[52].mxu0  ;;  %v1401_v37 = vpop.f32.mrb[52].mxu1 }
 0x1e7   : > { %v1450_v40 = vadd.f32 %v1273_v36, %v581_v34  ;;  %v1482_v41 = vadd.f32 %v1401_v37, %v613_v35  ;;  %v1275_v42 = vpop.f32.mrb[53].mxu0  ;;  %v1403_v43 = vpop.f32.mrb[53].mxu1  ;;  %v1626_v34 = vmax.f32 (!%p2180_p12), %v1562_v30, 0.0  ;;  %v1627_v35 = vmax.f32 (!%p2180_p12), %v1563_v31, 0.0  ;;  %v1565_v36 = vld [vmem:[#allocation2 + $0x48] sm:$0xff] (!%p2180_p12)  ;;  %v1590_v30 = vld [vmem:[#allocation2 + $0x110] sm:$0xff] (!%p2180_p12) }
 0x1e8   : > { %v1276_v44 = vpop.f32.mrb[54].mxu0  ;;  %v1404_v45 = vpop.f32.mrb[54].mxu1  ;;  %v1628_v37 = vmax.f32 (!%p2180_p12), %v1564_v32, 0.0  ;;  %v1629_v42 = vmax.f32 (!%p2180_p12), %v1565_v36, 0.0  ;;  %v1591_v31 = vld [vmem:[#allocation2 + $0x118] sm:$0xff] (!%p2180_p12)  ;;  %v1592_v36 = vld [vmem:[#allocation2 + $0x120] sm:$0xff] (!%p2180_p12) }
 0x1e9   : > { %1514 = vst [vmem:[#allocation2 + $0xd0] sm:$0xff] %v1450_v40  ;;  %1546 = vst [vmem:[#allocation2 + $0x1d0] sm:$0xff] %v1482_v41  ;;  %v1451_v46 = vadd.f32 %v1276_v44, %v582_v38  ;;  %v1483_v47 = vadd.f32 %v1404_v45, %v614_v39  ;;  %v1278_v48 = vpop.f32.mrb[55].mxu0  ;;  %v1406_v49 = vpop.f32.mrb[55].mxu1  ;;  %v1566_v38 = vld [vmem:[#allocation2 + $0x50] sm:$0xff] (!%p2180_p12)  ;;  %v1567_v39 = vld [vmem:[#allocation2 + $0x58] sm:$0xff] (!%p2180_p12)  ;;  %v2319_v40 = vpack.c.bf16 (!%p2180_p12), %v1623_v27, %v1622_v24 }
 0x1ea   : > { %v2324_v41 = vpack.c.bf16 (!%p2180_p12), %v1625_v29, %v1624_v28  ;;  %v1630_v43 = vmax.f32 (!%p2180_p12), %v1566_v38, 0.0  ;;  %v1568_v44 = vld [vmem:[#allocation2 + $0x60] sm:$0xff] (!%p2180_p12)  ;;  %v1569_v45 = vld [vmem:[#allocation2 + $0x68] sm:$0xff] (!%p2180_p12)  ;;  %v1631_v48 = vmax.f32 (!%p2180_p12), %v1567_v39, 0.0  ;;  %v1594_v38 = vld [vmem:[#allocation2 + $0x130] sm:$0xff] (!%p2180_p12) }
 0x1eb   : > { %1515 = vst [vmem:[#allocation2 + $0xd8] sm:$0xff] %v1451_v46  ;;  %1547 = vst [vmem:[#allocation2 + $0x1d8] sm:$0xff] %v1483_v47  ;;  %v1570_v46 = vld [vmem:[#allocation2 + $0x70] sm:$0xff] (!%p2180_p12)  ;;  %v2329_v47 = vpack.c.bf16 (!%p2180_p12), %v1627_v35, %v1626_v34  ;;  %v1632_v49 = vmax.f32 (!%p2180_p12), %v1568_v44, 0.0  ;;  %v1588_v24 = vld [vmem:[#allocation2 + $0x100] sm:$0xff] (!%p2180_p12) }
 0x1ec   : > { %2471 = vst [vmem:[%s2980_s24 + $0x8] sm:$0xff] (!%p2180_p12), %v2319_v40   ;;  %2472 = vst [vmem:[%s2980_s24 + $0x10] sm:$0xff] (!%p2180_p12), %v2324_v41   ;;  %v1589_v29 = vld [vmem:[#allocation2 + $0x108] sm:$0xff] (!%p2180_p12)  ;;  %v1652_v35 = vmax.f32 (!%p2180_p12), %v1588_v24, 0.0  ;;  %v1596_v44 = vld [vmem:[#allocation2 + $0x140] sm:$0xff] (!%p2180_p12) }
 0x1ed   : > { %2473 = vst [vmem:[%s2980_s24 + $0x18] sm:$0xff] (!%p2180_p12), %v2329_v47   ;;  %v1653_v41 = vmax.f32 (!%p2180_p12), %v1589_v29, 0.0  ;;  %v1655_v47 = vmax.f32 (!%p2180_p12), %v1591_v31, 0.0 }
 0x1ee   : > { %v1281_v52 = vpop.f32.mrb[56].mxu0  ;;  %v1409_v53 = vpop.f32.mrb[56].mxu1 }
 0x1ef   : > { %v1452_v56 = vadd.f32 %v1281_v52, %v583_v50  ;;  %v1484_v57 = vadd.f32 %v1409_v53, %v615_v51  ;;  %v1283_v58 = vpop.f32.mrb[57].mxu0  ;;  %v1411_v59 = vpop.f32.mrb[57].mxu1  ;;  %v1633_v50 = vmax.f32 (!%p2180_p12), %v1569_v45, 0.0  ;;  %v1571_v51 = vld [vmem:[#allocation2 + $0x78] sm:$0xff] (!%p2180_p12)  ;;  %v1572_v52 = vld [vmem:[#allocation2 + $0x80] sm:$0xff] (!%p2180_p12)  ;;  %v1573_v53 = vld [vmem:[#allocation2 + $0x88] sm:$0xff] (!%p2180_p12) }
 0x1f0   : > { %v1284_v60 = vpop.f32.mrb[58].mxu0  ;;  %v1412_v61 = vpop.f32.mrb[58].mxu1  ;;  %v1574_v58 = vld [vmem:[#allocation2 + $0x90] sm:$0xff] (!%p2180_p12)  ;;  %v1575_v59 = vld [vmem:[#allocation2 + $0x98] sm:$0xff] (!%p2180_p12)  ;;  %v1597_v45 = vld [vmem:[#allocation2 + $0x148] sm:$0xff] (!%p2180_p12) }
 0x1f1   : > { %1516 = vst [vmem:[#allocation2 + $0xe0] sm:$0xff] %v1452_v56  ;;  %1548 = vst [vmem:[#allocation2 + $0x1e0] sm:$0xff] %v1484_v57  ;;  %v1453_v62 = vadd.f32 %v1284_v60, %v584_v54  ;;  %v1485_v63 = vadd.f32 %v1412_v61, %v616_v55  ;;  %v1286_v0 = vpop.f32.mrb[59].mxu0  ;;  %v1414_v1 = vpop.f32.mrb[59].mxu1  ;;  %v2334_v54 = vpack.c.bf16 (!%p2180_p12), %v1629_v42, %v1628_v37  ;;  %v1634_v55 = vmax.f32 (!%p2180_p12), %v1570_v46, 0.0  ;;  %v1576_v60 = vld [vmem:[#allocation2 + $0xa0] sm:$0xff] (!%p2180_p12) }
 0x1f2   : > { %v1635_v56 = vmax.f32 (!%p2180_p12), %v1571_v51, 0.0  ;;  %v1636_v57 = vmax.f32 (!%p2180_p12), %v1572_v52, 0.0  ;;  %v2339_v61 = vpack.c.bf16 (!%p2180_p12), %v1631_v48, %v1630_v43  ;;  %v1638_v0 = vmax.f32 (!%p2180_p12), %v1574_v58, 0.0  ;;  %v1577_v1 = vld [vmem:[#allocation2 + $0xa8] sm:$0xff] (!%p2180_p12)  ;;  %v1595_v43 = vld [vmem:[#allocation2 + $0x138] sm:$0xff] (!%p2180_p12)  ;;  %v1600_v52 = vld [vmem:[#allocation2 + $0x160] sm:$0xff] (!%p2180_p12) }
 0x1f3   : > { %1517 = vst [vmem:[#allocation2 + $0xe8] sm:$0xff] %v1453_v62  ;;  %1549 = vst [vmem:[#allocation2 + $0x1e8] sm:$0xff] %v1485_v63  ;;  %v2344_v62 = vpack.c.bf16 (!%p2180_p12), %v1633_v50, %v1632_v49  ;;  %v1637_v63 = vmax.f32 (!%p2180_p12), %v1573_v53, 0.0  ;;  %v1593_v37 = vld [vmem:[#allocation2 + $0x128] sm:$0xff] (!%p2180_p12)  ;;  %v1654_v42 = vmax.f32 (!%p2180_p12), %v1590_v30, 0.0  ;;  %v1656_v48 = vmax.f32 (!%p2180_p12), %v1592_v36, 0.0 }
 0x1f4   : > { %2474 = vst [vmem:[%s2980_s24 + $0x20] sm:$0xff] (!%p2180_p12), %v2334_v54   ;;  %2475 = vst [vmem:[%s2980_s24 + $0x28] sm:$0xff] (!%p2180_p12), %v2339_v61   ;;  %v1657_v49 = vmax.f32 (!%p2180_p12), %v1593_v37, 0.0  ;;  %v1598_v50 = vld [vmem:[#allocation2 + $0x150] sm:$0xff] (!%p2180_p12)  ;;  %v1599_v51 = vld [vmem:[#allocation2 + $0x158] sm:$0xff] (!%p2180_p12)  ;;  %v2394_v53 = vpack.c.bf16 (!%p2180_p12), %v1653_v41, %v1652_v35  ;;  %v1658_v54 = vmax.f32 (!%p2180_p12), %v1594_v38, 0.0 }
 0x1f5   : > { %1555 = sbr.rel (%p2180_p12) target bundleno = 524 (0x20c), region = 78  ;;  %2476 = vst [vmem:[%s2980_s24 + $0x30] sm:$0xff] (!%p2180_p12), %v2344_v62   ;;  %v1602_v58 = vld [vmem:[#allocation2 + $0x170] sm:$0xff] (!%p2180_p12)  ;;  %v1661_v62 = vmax.f32 (!%p2180_p12), %v1597_v45, 0.0 }
 0x1f6   : > { %v1289_v4 = vpop.f32.mrb[60].mxu0  ;;  %v1417_v5 = vpop.f32.mrb[60].mxu1  ;;  %v2404_v61 = vpack.c.bf16 (!%p2180_p12), %v1657_v49, %v1656_v48  ;;  %2486 = vst [vmem:[%s2980_s24 + $0x80] sm:$0xff] (!%p2180_p12), %v2394_v53  }
 0x1f7   : > { %v1454_v8 = vadd.f32 %v1289_v4, %v585_v2  ;;  %v1486_v9 = vadd.f32 %v1417_v5, %v617_v3  ;;  %v1291_v10 = vpop.f32.mrb[61].mxu0  ;;  %v1419_v11 = vpop.f32.mrb[61].mxu1  ;;  %v1578_v2 = vld [vmem:[#allocation2 + $0xb0] sm:$0xff] (!%p2180_p12)  ;;  %v1579_v3 = vld [vmem:[#allocation2 + $0xb8] sm:$0xff] (!%p2180_p12)  ;;  %v2349_v4 = vpack.c.bf16 (!%p2180_p12), %v1635_v56, %v1634_v55  ;;  %v1639_v5 = vmax.f32 (!%p2180_p12), %v1575_v59, 0.0 }
 0x1f8   : > { %v1292_v12 = vpop.f32.mrb[62].mxu0  ;;  %v1420_v13 = vpop.f32.mrb[62].mxu1  ;;  %v1582_v10 = vld [vmem:[#allocation2 + $0xd0] sm:$0xff] (!%p2180_p12)  ;;  %v2354_v11 = vpack.c.bf16 (!%p2180_p12), %v1637_v63, %v1636_v57  ;;  %v1659_v55 = vmax.f32 (!%p2180_p12), %v1595_v43, 0.0  ;;  %v1660_v56 = vmax.f32 (!%p2180_p12), %v1596_v44, 0.0  ;;  %v1601_v57 = vld [vmem:[#allocation2 + $0x168] sm:$0xff] (!%p2180_p12) }
 0x1f9   : > { %1518 = vst [vmem:[#allocation2 + $0xf0] sm:$0xff] %v1454_v8  ;;  %1550 = vst [vmem:[#allocation2 + $0x1f0] sm:$0xff] %v1486_v9  ;;  %v1455_v14 = vadd.f32 %v1292_v12, %v586_v6  ;;  %v1487_v15 = vadd.f32 %v1420_v13, %v618_v7  ;;  %v1294_v16 = vpop.f32.mrb[63].mxu0  ;;  %v1422_v17 = vpop.f32.mrb[63].mxu1  ;;  %v1640_v6 = vmax.f32 (!%p2180_p12), %v1576_v60, 0.0  ;;  %v1641_v7 = vmax.f32 (!%p2180_p12), %v1577_v1, 0.0 }
 0x1fa   : > { %v1580_v8 = vld [vmem:[#allocation2 + $0xc0] sm:$0xff] (!%p2180_p12)  ;;  %v1581_v9 = vld [vmem:[#allocation2 + $0xc8] sm:$0xff] (!%p2180_p12)  ;;  %v1642_v12 = vmax.f32 (!%p2180_p12), %v1578_v2, 0.0  ;;  %v1643_v13 = vmax.f32 (!%p2180_p12), %v1579_v3, 0.0  ;;  %2477 = vst [vmem:[%s2980_s24 + $0x38] sm:$0xff] (!%p2180_p12), %v2349_v4   ;;  %v2359_v18 = vpack.c.bf16 (!%p2180_p12), %v1639_v5, %v1638_v0  ;;  %v1646_v21 = vmax.f32 (!%p2180_p12), %v1582_v10, 0.0 }
 0x1fb   : > { %1519 = vst [vmem:[#allocation2 + $0xf8] sm:$0xff] %v1455_v14  ;;  %1551 = vst [vmem:[#allocation2 + $0x1f8] sm:$0xff] %v1487_v15  ;;  %v1644_v14 = vmax.f32 (!%p2180_p12), %v1580_v8, 0.0  ;;  %v1583_v15 = vld [vmem:[#allocation2 + $0xd8] sm:$0xff] (!%p2180_p12)  ;;  %v1584_v16 = vld [vmem:[#allocation2 + $0xe0] sm:$0xff] (!%p2180_p12)  ;;  %v2364_v19 = vpack.c.bf16 (!%p2180_p12), %v1641_v7, %v1640_v6  ;;  %v1645_v20 = vmax.f32 (!%p2180_p12), %v1581_v9, 0.0  ;;  %v2399_v60 = vpack.c.bf16 (!%p2180_p12), %v1655_v47, %v1654_v42 }
 0x1fc   : > { %v1585_v17 = vld [vmem:[#allocation2 + $0xe8] sm:$0xff]  ;;  %2478 = vst [vmem:[%s2980_s24 + $0x40] sm:$0xff] %v2354_v11   ;;  %v2369_v25 = vpack.c.bf16 %v1643_v13, %v1642_v12  ;;  %v1647_v26 = vmax.f32 %v1583_v15, 0.0  ;;  %v1648_v27 = vmax.f32 %v1584_v16, 0.0  ;;  %2479 = vst [vmem:[%s2980_s24 + $0x48] sm:$0xff] %v2359_v18   ;;  %v1603_v59 = vld [vmem:[#allocation2 + $0x178] sm:$0xff]  ;;  %v2409_v3 = vpack.c.bf16 %v1659_v55, %v1658_v54 }
 0x1fd   : > { %v1649_v28 = vmax.f32 %v1585_v17, 0.0  ;;  %2480 = vst [vmem:[%s2980_s24 + $0x50] sm:$0xff] %v2364_v19   ;;  %v2374_v32 = vpack.c.bf16 %v1645_v20, %v1644_v14  ;;  %v1662_v63 = vmax.f32 %v1598_v50, 0.0  ;;  %v1604_v0 = vld [vmem:[#allocation2 + $0x180] sm:$0xff]  ;;  %v1605_v1 = vld [vmem:[#allocation2 + $0x188] sm:$0xff]  ;;  %v1606_v2 = vld [vmem:[#allocation2 + $0x190] sm:$0xff]  ;;  %v2414_v10 = vpack.c.bf16 %v1661_v62, %v1660_v56 }
 0x1fe   : > { %2481 = vst [vmem:[%s2980_s24 + $0x58] sm:$0xff] %v2369_v25   ;;  %v2379_v39 = vpack.c.bf16 %v1647_v26, %v1646_v21  ;;  %v1663_v4 = vmax.f32 %v1599_v51, 0.0  ;;  %v1664_v5 = vmax.f32 %v1600_v52, 0.0  ;;  %v1665_v6 = vmax.f32 %v1601_v57, 0.0  ;;  %v1607_v7 = vld [vmem:[#allocation2 + $0x198] sm:$0xff]  ;;  %v1608_v8 = vld [vmem:[#allocation2 + $0x1a0] sm:$0xff] }
 0x1ff   : > { %v2384_v40 = vpack.c.bf16 %v1649_v28, %v1648_v27  ;;  %2482 = vst [vmem:[%s2980_s24 + $0x60] sm:$0xff] %v2374_v32   ;;  %v1609_v9 = vld [vmem:[#allocation2 + $0x1a8] sm:$0xff]  ;;  %2487 = vst [vmem:[%s2980_s24 + $0x88] sm:$0xff] %v2399_v60   ;;  %v1666_v11 = vmax.f32 %v1602_v58, 0.0  ;;  %v1667_v12 = vmax.f32 %v1603_v59, 0.0  ;;  %v1668_v13 = vmax.f32 %v1604_v0, 0.0 }
 0x200   : > { %v1586_v22 = vld [vmem:[#allocation2 + $0xf0] sm:$0xff]  ;;  %2483 = vst [vmem:[%s2980_s24 + $0x68] sm:$0xff] %v2379_v39   ;;  %2488 = vst [vmem:[%s2980_s24 + $0x90] sm:$0xff] %v2404_v61   ;;  %v1611_v15 = vld [vmem:[#allocation2 + $0x1b8] sm:$0xff]  ;;  %v2419_v17 = vpack.c.bf16 %v1663_v4, %v1662_v63  ;;  %v2424_v18 = vpack.c.bf16 %v1665_v6, %v1664_v5  ;;  %v1669_v19 = vmax.f32 %v1605_v1, 0.0  ;;  %v1670_v20 = vmax.f32 %v1606_v2, 0.0 }
 0x201   : > { %v1650_v33 = vmax.f32 %v1586_v22, 0.0  ;;  %2484 = vst [vmem:[%s2980_s24 + $0x70] sm:$0xff] %v2384_v40   ;;  %v1610_v14 = vld [vmem:[#allocation2 + $0x1b0] sm:$0xff]  ;;  %v1612_v16 = vld [vmem:[#allocation2 + $0x1c0] sm:$0xff]  ;;  %2489 = vst [vmem:[%s2980_s24 + $0x98] sm:$0xff] %v2409_v3   ;;  %v1671_v24 = vmax.f32 %v1607_v7, 0.0 }
 0x202   : > { %v1587_v23 = vld [vmem:[#allocation2 + $0xf8] sm:$0xff]  ;;  %v1613_v21 = vld [vmem:[#allocation2 + $0x1c8] sm:$0xff]  ;;  %v1614_v22 = vld [vmem:[#allocation2 + $0x1d0] sm:$0xff]  ;;  %2490 = vst [vmem:[%s2980_s24 + $0xa0] sm:$0xff] %v2414_v10   ;;  %v1672_v25 = vmax.f32 %v1608_v8, 0.0  ;;  %v1673_v26 = vmax.f32 %v1609_v9, 0.0  ;;  %v2434_v30 = vpack.c.bf16 %v1669_v19, %v1668_v13 }
 0x203   : > { %v1651_v34 = vmax.f32 %v1587_v23, 0.0  ;;  %v2429_v23 = vpack.c.bf16 %v1667_v12, %v1666_v11  ;;  %v1615_v27 = vld [vmem:[#allocation2 + $0x1d8] sm:$0xff]  ;;  %v1616_v28 = vld [vmem:[#allocation2 + $0x1e0] sm:$0xff]  ;;  %v1617_v29 = vld [vmem:[#allocation2 + $0x1e8] sm:$0xff]  ;;  %2491 = vst [vmem:[%s2980_s24 + $0xa8] sm:$0xff] %v2419_v17   ;;  %v1674_v31 = vmax.f32 %v1610_v14, 0.0  ;;  %v2439_v36 = vpack.c.bf16 %v1671_v24, %v1670_v20 }
 0x204   : > { %2492 = vst [vmem:[%s2980_s24 + $0xb0] sm:$0xff] %v2424_v18   ;;  %v1675_v32 = vmax.f32 %v1611_v15, 0.0  ;;  %v1619_v35 = vld [vmem:[#allocation2 + $0x1f8] sm:$0xff]  ;;  %v2444_v37 = vpack.c.bf16 %v1673_v26, %v1672_v25  ;;  %v1677_v38 = vmax.f32 %v1613_v21, 0.0  ;;  %v1678_v39 = vmax.f32 %v1614_v22, 0.0  ;;  %2494 = vst [vmem:[%s2980_s24 + $0xc0] sm:$0xff] %v2434_v30  }
 0x205   : > { %v2389_v46 = vpack.c.bf16 %v1651_v34, %v1650_v33  ;;  %v1676_v33 = vmax.f32 %v1612_v16, 0.0  ;;  %v1618_v34 = vld [vmem:[#allocation2 + $0x1f0] sm:$0xff]  ;;  %2493 = vst [vmem:[%s2980_s24 + $0xb8] sm:$0xff] %v2429_v23   ;;  %v1679_v41 = vmax.f32 %v1615_v27, 0.0  ;;  %v1680_v42 = vmax.f32 %v1616_v28, 0.0  ;;  %2495 = vst [vmem:[%s2980_s24 + $0xc8] sm:$0xff] %v2439_v36  }
 0x206   : > { %v2449_v40 = vpack.c.bf16 %v1675_v32, %v1674_v31  ;;  %v1681_v43 = vmax.f32 %v1617_v29, 0.0  ;;  %2496 = vst [vmem:[%s2980_s24 + $0xd0] sm:$0xff] %v2444_v37   ;;  %v1682_v45 = vmax.f32 %v1618_v34, 0.0 }
 0x207   : > { %2485 = vst [vmem:[%s2980_s24 + $0x78] sm:$0xff] %v2389_v46   ;;  %v2454_v44 = vpack.c.bf16 %v1677_v38, %v1676_v33  ;;  %v1683_v46 = vmax.f32 %v1619_v35, 0.0  ;;  %v2459_v47 = vpack.c.bf16 %v1679_v41, %v1678_v39 }
 0x208   : > { %2497 = vst [vmem:[%s2980_s24 + $0xd8] sm:$0xff] %v2449_v40   ;;  %v2464_v48 = vpack.c.bf16 %v1681_v43, %v1680_v42 }
 0x209   : > { %2498 = vst [vmem:[%s2980_s24 + $0xe0] sm:$0xff] %v2454_v44   ;;  %v2469_v49 = vpack.c.bf16 %v1683_v46, %v1682_v45  ;;  %2499 = vst [vmem:[%s2980_s24 + $0xe8] sm:$0xff] %v2459_v47  }
 0x20a   : > { %2500 = vst [vmem:[%s2980_s24 + $0xf0] sm:$0xff] %v2464_v48  }
 0x20b   : > { %2501 = vst [vmem:[%s2980_s24 + $0xf8] sm:$0xff] %v2469_v49  }
 0x20c PF: > { %s13_s18 = sadd.s32 1, %s2758_s18   ;;  %s3230_s12 = smov %s2738_s13 }
 0x20d   : > { %p10_p13 = scmp.ge.s32.totalorder %s13_s18, 8   ;;  %s3231_s13 = smov %s2832_s25 }
 0x20e   : > { %s3232_s14 = smov %s2750_s16  ;;  %s3233_s15 = smov %s2754_s17 }
 0x20f   : > { %s3234_s16 = smov %s3237_s19  ;;  %s3235_s17 = smov %s3241_s20 }
 0x210   :  { %12 = sbr.rel (!%p10_p13) target bundleno = 4 (0x4), region = 114 }

// kernel: u2net_forward.8
= control target key start
LH: loop header
LB: loop body
LE: loop exit
PB: predicated region body
PF: predicated region fallthrough
CT: control target
= control target key end

     0   :  { %s1507_s12 = smov 0   ;;  %s1509_s13 = smov 0   ;;  %s1745_s0 = inlined_call_operand.vmem [shape: bf16[256,768], index: 0, kind: input, shape index: {}]   ;;  %s1746_s1 = inlined_call_operand.vmem [shape: bf16[768,128], index: 1, kind: input, shape index: {}]   ;;  %s1747_s2 = inlined_call_operand.vmem [shape: f32[1,128], index: 2, kind: input, shape index: {}]   ;;  %s1748_s3 = inlined_call_operand.vmem [shape: bf16[256,128], index: 3, kind: output, shape index: {}]  }
   0x1   :  { %s1511_s14 = smov 0   ;;  %s1513_s15 = smov 0  }
   0x2   :  { %s1515_s16 = smov 0  }
   0x3 LB: > { %s22_s17 = sadd.s32 1, %s1481_s15  ;;  %p41_p1 = scmp.ne.s32.totalorder %s1473_s13, %s1469_s12  ;;  %s1485_s16 = sphi %s1515_s16, %s13_s16   ;;  %s1481_s15 = sphi %s1513_s15, %s1752_s15   ;;  %s1477_s14 = sphi %s1511_s14, %s1751_s14   ;;  %s1473_s13 = sphi %s1509_s13, %s1750_s13   ;;  %s1469_s12 = sphi %s1507_s12, %s1749_s12  }
   0x4   : > { %p23_p0 = scmp.ge.s32.totalorder %s22_s17, 3  ;;  %p42_p2 = scmp.eq.s32.totalorder %s1485_s16, 0 }
   0x5   : > { %s34_s19 = sadd.s32 1, %s1473_s13  ;;  %p1151_p5 = scmp.ge.s32.totalorder %s1485_s16, 3 }
   0x6   : > { %s1754_s17 = smov (%p23_p0, %s22_s17), 0  ;;  %p43_p3 = por %p42_p2, %p41_p1 }
   0x7   : > { %s30_s18 = ssub.s32 %s1481_s15, %s1754_s17  ;;  %141 = sbr.rel (%p1151_p5) target bundleno = 34 (0x22), region = 24 }
   0x8   : > { %p32_p4 = scmp.eq.s32.totalorder %s30_s18, 0 }
   0xa   : > { %s1542_s20 = scalar_select %p32_p4, %s1473_s13, %s34_s19  }
   0xe   : > { %144 = sbr.rel (!%p43_p3) target bundleno = 34 (0x22), region = 28  ;;  %s146_s21 = sand.u32 (%p43_p3), 1, %s1473_s13  }
   0xf   : > { %s1214_s22 = sshll.u32 (%p43_p3), %s1481_s15, 3  ;;  %s1152_s23 = sshll.u32 (%p43_p3), %s146_s21, 8 }
  0x10   : > { %s1550_s26 = scalar_lea.vmem (%p43_p3), %s1745_s0, %s1214_s22  ;;  %s1555_s27 = scalar_lea.vmem (%p43_p3), [#allocation3], %s1152_s23 }
  0x11   : > { %v244_v0 = vld [vmem:[%s1550_s26] sm:$0xff] (%p43_p3)  ;;  %v246_v1 = vld [vmem:[%s1550_s26 + $0x18] sm:$0xff] (%p43_p3)  ;;  %v248_v2 = vld [vmem:[%s1550_s26 + $0x30] sm:$0xff] (%p43_p3) }
  0x12   : > { %245 = vst [vmem:[%s1555_s27] sm:$0xff] (%p43_p3), %v244_v0  ;;  %247 = vst [vmem:[%s1555_s27 + $0x8] sm:$0xff] (%p43_p3), %v246_v1  ;;  %v250_v3 = vld [vmem:[%s1550_s26 + $0x48] sm:$0xff] (%p43_p3)  ;;  %v252_v4 = vld [vmem:[%s1550_s26 + $0x60] sm:$0xff] (%p43_p3) }
  0x13   : > { %249 = vst [vmem:[%s1555_s27 + $0x10] sm:$0xff] (%p43_p3), %v248_v2  ;;  %v254_v5 = vld [vmem:[%s1550_s26 + $0x78] sm:$0xff] (%p43_p3)  ;;  %251 = vst [vmem:[%s1555_s27 + $0x18] sm:$0xff] (%p43_p3), %v250_v3  ;;  %v256_v6 = vld [vmem:[%s1550_s26 + $0x90] sm:$0xff] (%p43_p3) }
  0x14   : > { %253 = vst [vmem:[%s1555_s27 + $0x20] sm:$0xff] (%p43_p3), %v252_v4  ;;  %255 = vst [vmem:[%s1555_s27 + $0x28] sm:$0xff] (%p43_p3), %v254_v5  ;;  %v258_v7 = vld [vmem:[%s1550_s26 + $0xa8] sm:$0xff] (%p43_p3)  ;;  %v260_v8 = vld [vmem:[%s1550_s26 + $0xc0] sm:$0xff] (%p43_p3) }
  0x15   : > { %257 = vst [vmem:[%s1555_s27 + $0x30] sm:$0xff] %v256_v6  ;;  %259 = vst [vmem:[%s1555_s27 + $0x38] sm:$0xff] %v258_v7  ;;  %v262_v9 = vld [vmem:[%s1550_s26 + $0xd8] sm:$0xff]  ;;  %v264_v10 = vld [vmem:[%s1550_s26 + $0xf0] sm:$0xff] }
  0x16   : > { %261 = vst [vmem:[%s1555_s27 + $0x40] sm:$0xff] %v260_v8  ;;  %v266_v11 = vld [vmem:[%s1550_s26 + $0x108] sm:$0xff]  ;;  %263 = vst [vmem:[%s1555_s27 + $0x48] sm:$0xff] %v262_v9  ;;  %v268_v12 = vld [vmem:[%s1550_s26 + $0x120] sm:$0xff] }
  0x17   : > { %265 = vst [vmem:[%s1555_s27 + $0x50] sm:$0xff] %v264_v10  ;;  %267 = vst [vmem:[%s1555_s27 + $0x58] sm:$0xff] %v266_v11  ;;  %v270_v13 = vld [vmem:[%s1550_s26 + $0x138] sm:$0xff]  ;;  %v272_v14 = vld [vmem:[%s1550_s26 + $0x150] sm:$0xff] }
  0x18   : > { %269 = vst [vmem:[%s1555_s27 + $0x60] sm:$0xff] %v268_v12  ;;  %271 = vst [vmem:[%s1555_s27 + $0x68] sm:$0xff] %v270_v13  ;;  %v274_v15 = vld [vmem:[%s1550_s26 + $0x168] sm:$0xff]  ;;  %v276_v16 = vld [vmem:[%s1550_s26 + $0x180] sm:$0xff] }
  0x19   : > { %273 = vst [vmem:[%s1555_s27 + $0x70] sm:$0xff] %v272_v14  ;;  %v278_v17 = vld [vmem:[%s1550_s26 + $0x198] sm:$0xff]  ;;  %275 = vst [vmem:[%s1555_s27 + $0x78] sm:$0xff] %v274_v15  ;;  %v280_v18 = vld [vmem:[%s1550_s26 + $0x1b0] sm:$0xff] }
  0x1a   : > { %277 = vst [vmem:[%s1555_s27 + $0x80] sm:$0xff] %v276_v16  ;;  %279 = vst [vmem:[%s1555_s27 + $0x88] sm:$0xff] %v278_v17  ;;  %v282_v19 = vld [vmem:[%s1550_s26 + $0x1c8] sm:$0xff]  ;;  %v284_v20 = vld [vmem:[%s1550_s26 + $0x1e0] sm:$0xff] }
  0x1b   : > { %281 = vst [vmem:[%s1555_s27 + $0x90] sm:$0xff] %v280_v18  ;;  %283 = vst [vmem:[%s1555_s27 + $0x98] sm:$0xff] %v282_v19  ;;  %v286_v21 = vld [vmem:[%s1550_s26 + $0x1f8] sm:$0xff]  ;;  %v288_v22 = vld [vmem:[%s1550_s26 + $0x210] sm:$0xff] }
  0x1c   : > { %285 = vst [vmem:[%s1555_s27 + $0xa0] sm:$0xff] %v284_v20  ;;  %v290_v23 = vld [vmem:[%s1550_s26 + $0x228] sm:$0xff]  ;;  %287 = vst [vmem:[%s1555_s27 + $0xa8] sm:$0xff] %v286_v21  ;;  %v292_v24 = vld [vmem:[%s1550_s26 + $0x240] sm:$0xff] }
  0x1d   : > { %289 = vst [vmem:[%s1555_s27 + $0xb0] sm:$0xff] %v288_v22  ;;  %291 = vst [vmem:[%s1555_s27 + $0xb8] sm:$0xff] %v290_v23  ;;  %v294_v25 = vld [vmem:[%s1550_s26 + $0x258] sm:$0xff]  ;;  %v296_v26 = vld [vmem:[%s1550_s26 + $0x270] sm:$0xff] }
  0x1e   : > { %293 = vst [vmem:[%s1555_s27 + $0xc0] sm:$0xff] %v292_v24  ;;  %295 = vst [vmem:[%s1555_s27 + $0xc8] sm:$0xff] %v294_v25  ;;  %v298_v27 = vld [vmem:[%s1550_s26 + $0x288] sm:$0xff]  ;;  %v300_v28 = vld [vmem:[%s1550_s26 + $0x2a0] sm:$0xff] }
  0x1f   : > { %297 = vst [vmem:[%s1555_s27 + $0xd0] sm:$0xff] %v296_v26  ;;  %v302_v29 = vld [vmem:[%s1550_s26 + $0x2b8] sm:$0xff]  ;;  %299 = vst [vmem:[%s1555_s27 + $0xd8] sm:$0xff] %v298_v27  ;;  %v304_v30 = vld [vmem:[%s1550_s26 + $0x2d0] sm:$0xff] }
  0x20   : > { %301 = vst [vmem:[%s1555_s27 + $0xe0] sm:$0xff] %v300_v28  ;;  %303 = vst [vmem:[%s1555_s27 + $0xe8] sm:$0xff] %v302_v29  ;;  %v306_v31 = vld [vmem:[%s1550_s26 + $0x2e8] sm:$0xff] }
  0x21   : > { %305 = vst [vmem:[%s1555_s27 + $0xf0] sm:$0xff] %v304_v30  ;;  %307 = vst [vmem:[%s1555_s27 + $0xf8] sm:$0xff] %v306_v31 }
  0x22 PF: > { %p1155_p6 = scmp.ge.s32.totalorder %s1485_s16, 1  ;;  %p312_p7 = scmp.lt.s32.totalorder %s1485_s16, 4 }
  0x24   : > { %p313_p8 = pnand %p1155_p6, %p312_p7 }
  0x25   : > { %s319_s28 = sand.u32 (!%p313_p8), 1, %s1469_s12   ;;  %p1157_p9 = scmp.ne.s32.totalorder (!%p313_p8), %s1477_s14, 0 }
  0x26   : > { %316 = sbr.rel (%p313_p8) target bundleno = 388 (0x184), region = 66  ;;  %s1156_s29 = sshll.u32 (!%p313_p8), %s319_s28, 8 }
  0x27   : > { %s1621_s30 = scalar_lea.vmem (!%p313_p8), [#allocation3], %s1156_s29 }
  0x2d   : > { %354 = sbr.rel (%p1157_p9) target bundleno = 62 (0x3e), region = 74  ;;  %v1158_v32 = vld [vmem:[%s1747_s2] ss:$0 sm:$0xff] (!%p1157_p9) }
  0x2e   : > { %362 = vst [vmem:[#allocation2] sm:$0xff] (!%p1157_p9), %v1158_v32  ;;  %363 = vst [vmem:[#allocation2 + $0x8] sm:$0xff] (!%p1157_p9), %v1158_v32 }
  0x2f   : > { %364 = vst [vmem:[#allocation2 + $0x10] sm:$0xff] (!%p1157_p9), %v1158_v32  ;;  %365 = vst [vmem:[#allocation2 + $0x18] sm:$0xff] (!%p1157_p9), %v1158_v32 }
  0x30   : > { %366 = vst [vmem:[#allocation2 + $0x20] sm:$0xff] (!%p1157_p9), %v1158_v32  ;;  %367 = vst [vmem:[#allocation2 + $0x28] sm:$0xff] (!%p1157_p9), %v1158_v32 }
  0x31   : > { %368 = vst [vmem:[#allocation2 + $0x30] sm:$0xff] (!%p1157_p9), %v1158_v32  ;;  %369 = vst [vmem:[#allocation2 + $0x38] sm:$0xff] (!%p1157_p9), %v1158_v32 }
  0x32   : > { %370 = vst [vmem:[#allocation2 + $0x40] sm:$0xff] (!%p1157_p9), %v1158_v32  ;;  %371 = vst [vmem:[#allocation2 + $0x48] sm:$0xff] (!%p1157_p9), %v1158_v32 }
  0x33   : > { %372 = vst [vmem:[#allocation2 + $0x50] sm:$0xff] (!%p1157_p9), %v1158_v32  ;;  %373 = vst [vmem:[#allocation2 + $0x58] sm:$0xff] (!%p1157_p9), %v1158_v32 }
  0x34   : > { %374 = vst [vmem:[#allocation2 + $0x60] sm:$0xff] %v1158_v32  ;;  %375 = vst [vmem:[#allocation2 + $0x68] sm:$0xff] %v1158_v32 }
  0x35   : > { %376 = vst [vmem:[#allocation2 + $0x70] sm:$0xff] %v1158_v32  ;;  %377 = vst [vmem:[#allocation2 + $0x78] sm:$0xff] %v1158_v32 }
  0x36   : > { %378 = vst [vmem:[#allocation2 + $0x80] sm:$0xff] %v1158_v32  ;;  %379 = vst [vmem:[#allocation2 + $0x88] sm:$0xff] %v1158_v32 }
  0x37   : > { %380 = vst [vmem:[#allocation2 + $0x90] sm:$0xff] %v1158_v32  ;;  %381 = vst [vmem:[#allocation2 + $0x98] sm:$0xff] %v1158_v32 }
  0x38   : > { %382 = vst [vmem:[#allocation2 + $0xa0] sm:$0xff] %v1158_v32  ;;  %383 = vst [vmem:[#allocation2 + $0xa8] sm:$0xff] %v1158_v32 }
  0x39   : > { %384 = vst [vmem:[#allocation2 + $0xb0] sm:$0xff] %v1158_v32  ;;  %385 = vst [vmem:[#allocation2 + $0xb8] sm:$0xff] %v1158_v32 }
  0x3a   : > { %386 = vst [vmem:[#allocation2 + $0xc0] sm:$0xff] %v1158_v32  ;;  %387 = vst [vmem:[#allocation2 + $0xc8] sm:$0xff] %v1158_v32 }
  0x3b   : > { %388 = vst [vmem:[#allocation2 + $0xd0] sm:$0xff] %v1158_v32  ;;  %389 = vst [vmem:[#allocation2 + $0xd8] sm:$0xff] %v1158_v32 }
  0x3c   : > { %390 = vst [vmem:[#allocation2 + $0xe0] sm:$0xff] %v1158_v32  ;;  %391 = vst [vmem:[#allocation2 + $0xe8] sm:$0xff] %v1158_v32 }
  0x3d   : > { %392 = vst [vmem:[#allocation2 + $0xf0] sm:$0xff] %v1158_v32  ;;  %393 = vst [vmem:[#allocation2 + $0xf8] sm:$0xff] %v1158_v32 }
  0x3e PF: > { %s1159_s6 = sshll.u32 %s1477_s14, 8  ;;  %v1401_v33 = vld [vmem:[%s1621_s30 + $0x4] ss:$8 sps:$4 sm:$0xff]   ;;  %v1399_v51 = vld [vmem:[%s1621_s30] ss:$8 sps:$4 sm:$0xff]   ;;  %p1209_p10 = scmp.ne.s32.totalorder %s1477_s14, 2 }
  0x3f   : > { %s459_s7 = sshra.s32 %s1159_s6, 3  ;;  %v1404_v34 = vld [vmem:[%s1621_s30 + $0x84] ss:$8 sps:$4 sm:$0xff]   ;;  %783 = vmatprep.mubr.bf16.mxu0 %v1401_v33  ;;  %v1402_v52 = vld [vmem:[%s1621_s30 + $0x80] ss:$8 sps:$4 sm:$0xff]  }
  0x40   : > { %s1160_s8 = sshll.u32 %s459_s7, 2  ;;  %847 = vmatprep.mubr.bf16.mxu1 %v1404_v34  ;;  %v1405_v53 = vld [vmem:[%s1621_s30 + $0x14] ss:$8 sps:$4 sm:$0xff]   ;;  %v1409_v55 = vld [vmem:[%s1621_s30 + $0x10] ss:$8 sps:$4 sm:$0xff]   ;;  %v395_v19 = vld [vmem:[#allocation2] sm:$0xff] }
  0x41   : > { %s1633_s11 = scalar_lea.vmem %s1746_s1, %s1160_s8  ;;  %v1407_v54 = vld [vmem:[%s1621_s30 + $0x94] ss:$8 sps:$4 sm:$0xff]   ;;  %v1410_v56 = vld [vmem:[%s1621_s30 + $0x90] ss:$8 sps:$4 sm:$0xff]   ;;  %v1411_v57 = vld [vmem:[%s1621_s30 + $0x24] ss:$8 sps:$4 sm:$0xff]  }
  0x42   : > { %v1383_v35 = vld [vmem:[%s1633_s11 + $0x40] sm:$0xff]   ;;  %v1385_v37 = vld [vmem:[%s1633_s11 + $0x48] sm:$0xff]   ;;  %v1387_v39 = vld [vmem:[%s1633_s11 + $0x50] sm:$0xff]  }
  0x43   : > { %v1384_v36 = vld [vmem:[%s1633_s11] sm:$0xff]   ;;  %1215 = vmatprep.subr.bf16.mxu0 %v1383_v35  ;;  %1327 = vmatprep.subr.bf16.mxu1 %v1383_v35  ;;  %v1386_v38 = vld [vmem:[%s1633_s11 + $0x8] sm:$0xff]   ;;  %v1388_v40 = vld [vmem:[%s1633_s11 + $0x10] sm:$0xff]  }
  0x44   : > { %1216 = vmatpush3.bf16.msra.mxu0 %v1384_v36  ;;  %1335 = vmatpush3.bf16.msra.mxu1 %v1384_v36  ;;  %v1389_v41 = vld [vmem:[%s1633_s11 + $0x58] sm:$0xff]   ;;  %v1391_v43 = vld [vmem:[%s1633_s11 + $0x60] sm:$0xff]   ;;  %v1393_v45 = vld [vmem:[%s1633_s11 + $0x68] sm:$0xff]  }
  0x45   : > { %1217 = vmatprep.subr.bf16.mxu0 %v1385_v37  ;;  %1328 = vmatprep.subr.bf16.mxu1 %v1385_v37  ;;  %v1390_v42 = vld [vmem:[%s1633_s11 + $0x18] sm:$0xff]   ;;  %v1392_v44 = vld [vmem:[%s1633_s11 + $0x20] sm:$0xff]   ;;  %v1394_v46 = vld [vmem:[%s1633_s11 + $0x28] sm:$0xff]  }
  0x46   : > { %v1395_v47 = vld [vmem:[%s1633_s11 + $0x70] sm:$0xff]   ;;  %v1397_v49 = vld [vmem:[%s1633_s11 + $0x78] sm:$0xff]   ;;  %v1413_v58 = vld [vmem:[%s1621_s30 + $0xa4] ss:$8 sps:$4 sm:$0xff]  }
  0x47   : > { %v1396_v48 = vld [vmem:[%s1633_s11 + $0x30] sm:$0xff]   ;;  %v1398_v50 = vld [vmem:[%s1633_s11 + $0x38] sm:$0xff]   ;;  %v1415_v59 = vld [vmem:[%s1621_s30 + $0x20] ss:$8 sps:$4 sm:$0xff]  }
  0x48   : > { %1218 = vmatpush3.bf16.msra.mxu0 %v1386_v38  ;;  %1336 = vmatpush3.bf16.msra.mxu1 %v1386_v38  ;;  %v1416_v60 = vld [vmem:[%s1621_s30 + $0xa0] ss:$8 sps:$4 sm:$0xff]   ;;  %v1417_v61 = vld [vmem:[%s1621_s30 + $0x34] ss:$8 sps:$4 sm:$0xff]   ;;  %v1421_v63 = vld [vmem:[%s1621_s30 + $0x30] ss:$8 sps:$4 sm:$0xff]  }
  0x49   : > { %1219 = vmatprep.subr.bf16.mxu0 %v1387_v39  ;;  %1329 = vmatprep.subr.bf16.mxu1 %v1387_v39  ;;  %v1419_v62 = vld [vmem:[%s1621_s30 + $0xb4] ss:$8 sps:$4 sm:$0xff]   ;;  %v1422_v0 = vld [vmem:[%s1621_s30 + $0xb0] ss:$8 sps:$4 sm:$0xff]   ;;  %v1423_v1 = vld [vmem:[%s1621_s30 + $0x44] ss:$8 sps:$4 sm:$0xff]  }
  0x4a   : > { %v1425_v2 = vld [vmem:[%s1621_s30 + $0xc4] ss:$8 sps:$4 sm:$0xff]   ;;  %v1427_v3 = vld [vmem:[%s1621_s30 + $0x40] ss:$8 sps:$4 sm:$0xff]   ;;  %v1429_v5 = vld [vmem:[%s1621_s30 + $0x54] ss:$8 sps:$4 sm:$0xff]  }
  0x4b   : > { %v1428_v4 = vld [vmem:[%s1621_s30 + $0xc0] ss:$8 sps:$4 sm:$0xff]   ;;  %v1431_v6 = vld [vmem:[%s1621_s30 + $0xd4] ss:$8 sps:$4 sm:$0xff]   ;;  %v1433_v7 = vld [vmem:[%s1621_s30 + $0x50] ss:$8 sps:$4 sm:$0xff]  }
  0x4c   : > { %1220 = vmatpush3.bf16.msra.mxu0 %v1388_v40  ;;  %1337 = vmatpush3.bf16.msra.mxu1 %v1388_v40  ;;  %v1434_v8 = vld [vmem:[%s1621_s30 + $0xd0] ss:$8 sps:$4 sm:$0xff]   ;;  %v1435_v9 = vld [vmem:[%s1621_s30 + $0x64] ss:$8 sps:$4 sm:$0xff]   ;;  %v1439_v11 = vld [vmem:[%s1621_s30 + $0x60] ss:$8 sps:$4 sm:$0xff]  }
  0x4d   : > { %1221 = vmatprep.subr.bf16.mxu0 %v1389_v41  ;;  %1330 = vmatprep.subr.bf16.mxu1 %v1389_v41  ;;  %v1437_v10 = vld [vmem:[%s1621_s30 + $0xe4] ss:$8 sps:$4 sm:$0xff]   ;;  %v1440_v12 = vld [vmem:[%s1621_s30 + $0xe0] ss:$8 sps:$4 sm:$0xff]   ;;  %v1441_v13 = vld [vmem:[%s1621_s30 + $0x74] ss:$8 sps:$4 sm:$0xff]  }
  0x4e   : > { %v1443_v14 = vld [vmem:[%s1621_s30 + $0xf4] ss:$8 sps:$4 sm:$0xff]   ;;  %v1445_v15 = vld [vmem:[%s1621_s30 + $0x70] ss:$8 sps:$4 sm:$0xff]   ;;  %v411_v21 = vld [vmem:[#allocation2 + $0x80] sm:$0xff] }
  0x4f   : > { %v1446_v16 = vld [vmem:[%s1621_s30 + $0xf0] ss:$8 sps:$4 sm:$0xff]   ;;  %v396_v27 = vld [vmem:[#allocation2 + $0x8] sm:$0xff] }
  0x50   : > { %1222 = vmatpush3.bf16.msra.mxu0 %v1390_v42  ;;  %1338 = vmatpush3.bf16.msra.mxu1 %v1390_v42  ;;  %v412_v29 = vld [vmem:[#allocation2 + $0x88] sm:$0xff]  ;;  %v397_v39 = vld [vmem:[#allocation2 + $0x10] sm:$0xff] }
  0x51   : > { %1223 = vmatprep.subr.bf16.mxu0 %v1391_v43  ;;  %1331 = vmatprep.subr.bf16.mxu1 %v1391_v43  ;;  %v413_v41 = vld [vmem:[#allocation2 + $0x90] sm:$0xff] }
  0x54   : > { %1224 = vmatpush3.bf16.msra.mxu0 %v1392_v44  ;;  %1339 = vmatpush3.bf16.msra.mxu1 %v1392_v44 }
  0x55   : > { %1225 = vmatprep.subr.bf16.mxu0 %v1393_v45  ;;  %1332 = vmatprep.subr.bf16.mxu1 %v1393_v45 }
  0x58   : > { %1226 = vmatpush3.bf16.msra.mxu0 %v1394_v46  ;;  %1340 = vmatpush3.bf16.msra.mxu1 %v1394_v46 }
  0x59   : > { %1227 = vmatprep.subr.bf16.mxu0 %v1395_v47  ;;  %1333 = vmatprep.subr.bf16.mxu1 %v1395_v47  ;;  %v398_v47 = vld [vmem:[#allocation2 + $0x18] sm:$0xff] }
  0x5c   : > { %1228 = vmatpush3.bf16.msra.mxu0 %v1396_v48  ;;  %1341 = vmatpush3.bf16.msra.mxu1 %v1396_v48 }
  0x5d   : > { %1229 = vmatprep.subr.bf16.mxu0 %v1397_v49  ;;  %1334 = vmatprep.subr.bf16.mxu1 %v1397_v49  ;;  %v414_v49 = vld [vmem:[#allocation2 + $0x98] sm:$0xff] }
  0x60   : > { %1230 = vmatpush3.bf16.msra.mxu0 %v1398_v50  ;;  %1342 = vmatpush3.bf16.msra.mxu1 %v1398_v50 }
  0x63   : > { %784 = vmatmul.mubr.bf16.vlgmr.msra.gmra.mrb[0].mxu0 %v1399_v51  ;;  %848 = vmatmul.mubr.bf16.vlgmr.msra.gmra.mrb[0].mxu1 %v1402_v52 }
  0x64   : > { %791 = vmatprep.mubr.bf16.mxu0 %v1405_v53  ;;  %855 = vmatprep.mubr.bf16.mxu1 %v1407_v54 }
  0x6b   : > { %792 = vmatmul.mubr.bf16.gmra.mrb[4].mxu0 %v1409_v55  ;;  %856 = vmatmul.mubr.bf16.gmra.mrb[4].mxu1 %v1410_v56 }
  0x6c   : > { %799 = vmatprep.mubr.bf16.mxu0 %v1411_v57  ;;  %863 = vmatprep.mubr.bf16.mxu1 %v1413_v58 }
  0x73   : > { %800 = vmatmul.mubr.bf16.gmra.mrb[8].mxu0 %v1415_v59  ;;  %864 = vmatmul.mubr.bf16.gmra.mrb[8].mxu1 %v1416_v60  ;;  %v399_v59 = vld [vmem:[#allocation2 + $0x20] sm:$0xff] }
  0x74   : > { %807 = vmatprep.mubr.bf16.mxu0 %v1417_v61  ;;  %871 = vmatprep.mubr.bf16.mxu1 %v1419_v62  ;;  %v415_v61 = vld [vmem:[#allocation2 + $0xa0] sm:$0xff] }
  0x7b   : > { %808 = vmatmul.mubr.bf16.gmra.mrb[12].mxu0 %v1421_v63  ;;  %872 = vmatmul.mubr.bf16.gmra.mrb[12].mxu1 %v1422_v0 }
  0x7c   : > { %815 = vmatprep.mubr.bf16.mxu0 %v1423_v1  ;;  %879 = vmatprep.mubr.bf16.mxu1 %v1425_v2 }
  0x83   : > { %816 = vmatmul.mubr.bf16.gmra.mrb[16].mxu0 %v1427_v3  ;;  %880 = vmatmul.mubr.bf16.gmra.mrb[16].mxu1 %v1428_v4  ;;  %v400_v3 = vld [vmem:[#allocation2 + $0x28] sm:$0xff] }
  0x84   : > { %823 = vmatprep.mubr.bf16.mxu0 %v1429_v5  ;;  %887 = vmatprep.mubr.bf16.mxu1 %v1431_v6  ;;  %v416_v5 = vld [vmem:[#allocation2 + $0xa8] sm:$0xff] }
  0x8b   : > { %824 = vmatmul.mubr.bf16.gmra.mrb[20].mxu0 %v1433_v7  ;;  %888 = vmatmul.mubr.bf16.gmra.mrb[20].mxu1 %v1434_v8 }
  0x8c   : > { %831 = vmatprep.mubr.bf16.mxu0 %v1435_v9  ;;  %895 = vmatprep.mubr.bf16.mxu1 %v1437_v10 }
  0x93   : > { %832 = vmatmul.mubr.bf16.gmra.mrb[24].mxu0 %v1439_v11  ;;  %896 = vmatmul.mubr.bf16.gmra.mrb[24].mxu1 %v1440_v12 }
  0x94   : > { %839 = vmatprep.mubr.bf16.mxu0 %v1441_v13  ;;  %903 = vmatprep.mubr.bf16.mxu1 %v1443_v14 }
  0x9b   : > { %840 = vmatmul.mubr.bf16.gmra.mrb[28].mxu0 %v1445_v15  ;;  %904 = vmatmul.mubr.bf16.gmra.mrb[28].mxu1 %v1446_v16  ;;  %v401_v15 = vld [vmem:[#allocation2 + $0x30] sm:$0xff] }
 0x136   : > { %v1231_v17 = vpop.f32.mrb[0].mxu0  ;;  %v1279_v18 = vpop.f32.mrb[0].mxu1 }
 0x137   : > { %v1232_v20 = vpop.f32.mrb[1].mxu0  ;;  %v1280_v22 = vpop.f32.mrb[1].mxu1 }
 0x138   : > { %v1233_v23 = vadd.f32 %v1232_v20, %v1231_v17  ;;  %v1281_v24 = vadd.f32 %v1280_v22, %v1279_v18  ;;  %v1234_v25 = vpop.f32.mrb[2].mxu0  ;;  %v1282_v26 = vpop.f32.mrb[2].mxu1  ;;  %v417_v17 = vld [vmem:[#allocation2 + $0xb0] sm:$0xff] }
 0x139   : > { %v1235_v28 = vpop.f32.mrb[3].mxu0  ;;  %v1283_v30 = vpop.f32.mrb[3].mxu1 }
 0x13a   : > { %v912_v31 = vadd.f32 %v1233_v23, %v395_v19  ;;  %v928_v32 = vadd.f32 %v1281_v24, %v411_v21  ;;  %v1236_v33 = vadd.f32 %v1235_v28, %v1234_v25  ;;  %v1284_v34 = vadd.f32 %v1283_v30, %v1282_v26  ;;  %v402_v23 = vld [vmem:[#allocation2 + $0x38] sm:$0xff] }
 0x13b   : > { %v418_v25 = vld [vmem:[#allocation2 + $0xb8] sm:$0xff] }
 0x13c   : > { %944 = vst [vmem:[#allocation2] sm:$0xff] %v912_v31  ;;  %960 = vst [vmem:[#allocation2 + $0x80] sm:$0xff] %v928_v32  ;;  %v913_v35 = vadd.f32 %v1236_v33, %v396_v27  ;;  %v929_v36 = vadd.f32 %v1284_v34, %v412_v29 }
 0x13e   : > { %945 = vst [vmem:[#allocation2 + $0x8] sm:$0xff] %v913_v35  ;;  %961 = vst [vmem:[#allocation2 + $0x88] sm:$0xff] %v929_v36  ;;  %v1237_v37 = vpop.f32.mrb[4].mxu0  ;;  %v1285_v38 = vpop.f32.mrb[4].mxu1  ;;  %v403_v35 = vld [vmem:[#allocation2 + $0x40] sm:$0xff] }
 0x13f   : > { %v1238_v40 = vpop.f32.mrb[5].mxu0  ;;  %v1286_v42 = vpop.f32.mrb[5].mxu1 }
 0x140   : > { %v1239_v43 = vadd.f32 %v1238_v40, %v1237_v37  ;;  %v1287_v44 = vadd.f32 %v1286_v42, %v1285_v38  ;;  %v1240_v45 = vpop.f32.mrb[6].mxu0  ;;  %v1288_v46 = vpop.f32.mrb[6].mxu1  ;;  %v419_v37 = vld [vmem:[#allocation2 + $0xc0] sm:$0xff] }
 0x141   : > { %v1241_v48 = vpop.f32.mrb[7].mxu0  ;;  %v1289_v50 = vpop.f32.mrb[7].mxu1 }
 0x142   : > { %v914_v51 = vadd.f32 %v1239_v43, %v397_v39  ;;  %v930_v52 = vadd.f32 %v1287_v44, %v413_v41  ;;  %v1242_v53 = vadd.f32 %v1241_v48, %v1240_v45  ;;  %v1290_v54 = vadd.f32 %v1289_v50, %v1288_v46  ;;  %v404_v43 = vld [vmem:[#allocation2 + $0x48] sm:$0xff] }
 0x143   : > { %v420_v45 = vld [vmem:[#allocation2 + $0xc8] sm:$0xff] }
 0x144   : > { %946 = vst [vmem:[#allocation2 + $0x10] sm:$0xff] %v914_v51  ;;  %962 = vst [vmem:[#allocation2 + $0x90] sm:$0xff] %v930_v52  ;;  %v915_v55 = vadd.f32 %v1242_v53, %v398_v47  ;;  %v931_v56 = vadd.f32 %v1290_v54, %v414_v49 }
 0x146   : > { %947 = vst [vmem:[#allocation2 + $0x18] sm:$0xff] %v915_v55  ;;  %963 = vst [vmem:[#allocation2 + $0x98] sm:$0xff] %v931_v56  ;;  %v1243_v57 = vpop.f32.mrb[8].mxu0  ;;  %v1291_v58 = vpop.f32.mrb[8].mxu1  ;;  %v405_v55 = vld [vmem:[#allocation2 + $0x50] sm:$0xff] }
 0x147   : > { %v1244_v60 = vpop.f32.mrb[9].mxu0  ;;  %v1292_v62 = vpop.f32.mrb[9].mxu1 }
 0x148   : > { %v1245_v63 = vadd.f32 %v1244_v60, %v1243_v57  ;;  %v1293_v0 = vadd.f32 %v1292_v62, %v1291_v58  ;;  %v1246_v1 = vpop.f32.mrb[10].mxu0  ;;  %v1294_v2 = vpop.f32.mrb[10].mxu1  ;;  %v421_v57 = vld [vmem:[#allocation2 + $0xd0] sm:$0xff] }
 0x149   : > { %v1247_v4 = vpop.f32.mrb[11].mxu0  ;;  %v1295_v6 = vpop.f32.mrb[11].mxu1 }
 0x14a   : > { %v916_v7 = vadd.f32 %v1245_v63, %v399_v59  ;;  %v932_v8 = vadd.f32 %v1293_v0, %v415_v61  ;;  %v1248_v9 = vadd.f32 %v1247_v4, %v1246_v1  ;;  %v1296_v10 = vadd.f32 %v1295_v6, %v1294_v2  ;;  %v406_v63 = vld [vmem:[#allocation2 + $0x58] sm:$0xff] }
 0x14b   : > { %v422_v1 = vld [vmem:[#allocation2 + $0xd8] sm:$0xff] }
 0x14c   : > { %948 = vst [vmem:[#allocation2 + $0x20] sm:$0xff] %v916_v7  ;;  %964 = vst [vmem:[#allocation2 + $0xa0] sm:$0xff] %v932_v8  ;;  %v917_v11 = vadd.f32 %v1248_v9, %v400_v3  ;;  %v933_v12 = vadd.f32 %v1296_v10, %v416_v5 }
 0x14e   : > { %949 = vst [vmem:[#allocation2 + $0x28] sm:$0xff] %v917_v11  ;;  %965 = vst [vmem:[#allocation2 + $0xa8] sm:$0xff] %v933_v12  ;;  %v1249_v13 = vpop.f32.mrb[12].mxu0  ;;  %v1297_v14 = vpop.f32.mrb[12].mxu1  ;;  %v407_v11 = vld [vmem:[#allocation2 + $0x60] sm:$0xff] }
 0x14f   : > { %v1250_v16 = vpop.f32.mrb[13].mxu0  ;;  %v1298_v18 = vpop.f32.mrb[13].mxu1 }
 0x150   : > { %v1251_v19 = vadd.f32 %v1250_v16, %v1249_v13  ;;  %v1299_v20 = vadd.f32 %v1298_v18, %v1297_v14  ;;  %v1252_v21 = vpop.f32.mrb[14].mxu0  ;;  %v1300_v22 = vpop.f32.mrb[14].mxu1  ;;  %v423_v13 = vld [vmem:[#allocation2 + $0xe0] sm:$0xff] }
 0x151   : > { %v1253_v24 = vpop.f32.mrb[15].mxu0  ;;  %v1301_v26 = vpop.f32.mrb[15].mxu1 }
 0x152   : > { %v918_v27 = vadd.f32 %v1251_v19, %v401_v15  ;;  %v934_v28 = vadd.f32 %v1299_v20, %v417_v17  ;;  %v1254_v29 = vadd.f32 %v1253_v24, %v1252_v21  ;;  %v1302_v30 = vadd.f32 %v1301_v26, %v1300_v22  ;;  %v408_v19 = vld [vmem:[#allocation2 + $0x68] sm:$0xff] }
 0x153   : > { %v424_v21 = vld [vmem:[#allocation2 + $0xe8] sm:$0xff] }
 0x154   : > { %950 = vst [vmem:[#allocation2 + $0x30] sm:$0xff] %v918_v27  ;;  %966 = vst [vmem:[#allocation2 + $0xb0] sm:$0xff] %v934_v28  ;;  %v919_v31 = vadd.f32 %v1254_v29, %v402_v23  ;;  %v935_v32 = vadd.f32 %v1302_v30, %v418_v25 }
 0x156   : > { %951 = vst [vmem:[#allocation2 + $0x38] sm:$0xff] %v919_v31  ;;  %967 = vst [vmem:[#allocation2 + $0xb8] sm:$0xff] %v935_v32  ;;  %v1255_v33 = vpop.f32.mrb[16].mxu0  ;;  %v1303_v34 = vpop.f32.mrb[16].mxu1  ;;  %v409_v31 = vld [vmem:[#allocation2 + $0x70] sm:$0xff] }
 0x157   : > { %v1256_v36 = vpop.f32.mrb[17].mxu0  ;;  %v1304_v38 = vpop.f32.mrb[17].mxu1 }
 0x158   : > { %v1257_v39 = vadd.f32 %v1256_v36, %v1255_v33  ;;  %v1305_v40 = vadd.f32 %v1304_v38, %v1303_v34  ;;  %v1258_v41 = vpop.f32.mrb[18].mxu0  ;;  %v1306_v42 = vpop.f32.mrb[18].mxu1  ;;  %v425_v33 = vld [vmem:[#allocation2 + $0xf0] sm:$0xff] }
 0x159   : > { %v1259_v44 = vpop.f32.mrb[19].mxu0  ;;  %v1307_v46 = vpop.f32.mrb[19].mxu1 }
 0x15a   : > { %v920_v47 = vadd.f32 %v1257_v39, %v403_v35  ;;  %v936_v48 = vadd.f32 %v1305_v40, %v419_v37  ;;  %v1260_v49 = vadd.f32 %v1259_v44, %v1258_v41  ;;  %v1308_v50 = vadd.f32 %v1307_v46, %v1306_v42  ;;  %v410_v39 = vld [vmem:[#allocation2 + $0x78] sm:$0xff] }
 0x15b   : > { %v426_v41 = vld [vmem:[#allocation2 + $0xf8] sm:$0xff] }
 0x15c   : > { %952 = vst [vmem:[#allocation2 + $0x40] sm:$0xff] %v920_v47  ;;  %968 = vst [vmem:[#allocation2 + $0xc0] sm:$0xff] %v936_v48  ;;  %v921_v51 = vadd.f32 %v1260_v49, %v404_v43  ;;  %v937_v52 = vadd.f32 %v1308_v50, %v420_v45  ;;  %v980_v49 = vld [vmem:[#allocation2] sm:$0xff] (!%p1209_p10)  ;;  %v981_v50 = vld [vmem:[#allocation2 + $0x8] sm:$0xff] (!%p1209_p10) }
 0x15e   : > { %953 = vst [vmem:[#allocation2 + $0x48] sm:$0xff] %v921_v51  ;;  %969 = vst [vmem:[#allocation2 + $0xc8] sm:$0xff] %v937_v52  ;;  %v1261_v53 = vpop.f32.mrb[20].mxu0  ;;  %v1309_v54 = vpop.f32.mrb[20].mxu1  ;;  %v982_v51 = vld [vmem:[#allocation2 + $0x10] sm:$0xff] (!%p1209_p10)  ;;  %v1012_v52 = vmax.f32 (!%p1209_p10), %v980_v49, 0.0 }
 0x15f   : > { %v1262_v56 = vpop.f32.mrb[21].mxu0  ;;  %v1310_v58 = vpop.f32.mrb[21].mxu1 }
 0x160   : > { %v1263_v59 = vadd.f32 %v1262_v56, %v1261_v53  ;;  %v1311_v60 = vadd.f32 %v1310_v58, %v1309_v54  ;;  %v1264_v61 = vpop.f32.mrb[22].mxu0  ;;  %v1312_v62 = vpop.f32.mrb[22].mxu1  ;;  %v1013_v53 = vmax.f32 (!%p1209_p10), %v981_v50, 0.0  ;;  %v983_v54 = vld [vmem:[#allocation2 + $0x18] sm:$0xff] (!%p1209_p10)  ;;  %v984_v56 = vld [vmem:[#allocation2 + $0x20] sm:$0xff] (!%p1209_p10) }
 0x161   : > { %v1265_v0 = vpop.f32.mrb[23].mxu0  ;;  %v1313_v2 = vpop.f32.mrb[23].mxu1  ;;  %v1015_v58 = vmax.f32 (!%p1209_p10), %v983_v54, 0.0 }
 0x162   : > { %v922_v3 = vadd.f32 %v1263_v59, %v405_v55  ;;  %v938_v4 = vadd.f32 %v1311_v60, %v421_v57  ;;  %v1266_v5 = vadd.f32 %v1265_v0, %v1264_v61  ;;  %v1314_v6 = vadd.f32 %v1313_v2, %v1312_v62  ;;  %v985_v57 = vld [vmem:[#allocation2 + $0x28] sm:$0xff] (!%p1209_p10)  ;;  %v986_v61 = vld [vmem:[#allocation2 + $0x30] sm:$0xff] (!%p1209_p10)  ;;  %v987_v62 = vld [vmem:[#allocation2 + $0x38] sm:$0xff] (!%p1209_p10) }
 0x163   : > { %v1014_v55 = vmax.f32 (!%p1209_p10), %v982_v51, 0.0  ;;  %v1016_v59 = vmax.f32 (!%p1209_p10), %v984_v56, 0.0  ;;  %v1017_v60 = vmax.f32 (!%p1209_p10), %v985_v57, 0.0  ;;  %v1044_v0 = vpack.c.bf16 (!%p1209_p10), %v1013_v53, %v1012_v52 }
 0x164   : > { %954 = vst [vmem:[#allocation2 + $0x50] sm:$0xff] %v922_v3  ;;  %970 = vst [vmem:[#allocation2 + $0xd0] sm:$0xff] %v938_v4  ;;  %v923_v7 = vadd.f32 %v1266_v5, %v406_v63  ;;  %v939_v8 = vadd.f32 %v1314_v6, %v422_v1  ;;  %v988_v63 = vld [vmem:[#allocation2 + $0x40] sm:$0xff] (!%p1209_p10)  ;;  %v1018_v1 = vmax.f32 (!%p1209_p10), %v986_v61, 0.0  ;;  %v1019_v2 = vmax.f32 (!%p1209_p10), %v987_v62, 0.0 }
 0x165   : > { %v989_v3 = vld [vmem:[#allocation2 + $0x48] sm:$0xff] (!%p1209_p10)  ;;  %v1020_v4 = vmax.f32 (!%p1209_p10), %v988_v63, 0.0  ;;  %1060 = vst [vmem:[%s1748_s3] sm:$0xff] (!%p1209_p10), %v1044_v0 }
 0x166   : > { %955 = vst [vmem:[#allocation2 + $0x58] sm:$0xff] %v923_v7  ;;  %971 = vst [vmem:[#allocation2 + $0xd8] sm:$0xff] %v939_v8  ;;  %v1267_v9 = vpop.f32.mrb[24].mxu0  ;;  %v1315_v10 = vpop.f32.mrb[24].mxu1  ;;  %v1045_v7 = vpack.c.bf16 (!%p1209_p10), %v1015_v58, %v1014_v55  ;;  %v1046_v8 = vpack.c.bf16 (!%p1209_p10), %v1017_v60, %v1016_v59 }
 0x167   : > { %v1268_v12 = vpop.f32.mrb[25].mxu0  ;;  %v1316_v14 = vpop.f32.mrb[25].mxu1 }
 0x168   : > { %v1269_v15 = vadd.f32 %v1268_v12, %v1267_v9  ;;  %v1317_v16 = vadd.f32 %v1316_v14, %v1315_v10  ;;  %v1270_v17 = vpop.f32.mrb[26].mxu0  ;;  %v1318_v18 = vpop.f32.mrb[26].mxu1  ;;  %v1021_v9 = vmax.f32 (!%p1209_p10), %v989_v3, 0.0  ;;  %v1047_v14 = vpack.c.bf16 (!%p1209_p10), %v1019_v2, %v1018_v1  ;;  %1061 = vst [vmem:[%s1748_s3 + $0x8] sm:$0xff] (!%p1209_p10), %v1045_v7  ;;  %1062 = vst [vmem:[%s1748_s3 + $0x10] sm:$0xff] (!%p1209_p10), %v1046_v8 }
 0x169   : > { %v1271_v20 = vpop.f32.mrb[27].mxu0  ;;  %v1319_v22 = vpop.f32.mrb[27].mxu1 }
 0x16a   : > { %v924_v23 = vadd.f32 %v1269_v15, %v407_v11  ;;  %v940_v24 = vadd.f32 %v1317_v16, %v423_v13  ;;  %v1272_v25 = vadd.f32 %v1271_v20, %v1270_v17  ;;  %v1320_v26 = vadd.f32 %v1319_v22, %v1318_v18  ;;  %v997_v20 = vld [vmem:[#allocation2 + $0x88] sm:$0xff] (!%p1209_p10)  ;;  %1063 = vst [vmem:[%s1748_s3 + $0x18] sm:$0xff] (!%p1209_p10), %v1047_v14 }
 0x16b   : > { %v990_v5 = vld [vmem:[#allocation2 + $0x50] sm:$0xff] (!%p1209_p10) }
 0x16c   : > { %956 = vst [vmem:[#allocation2 + $0x60] sm:$0xff] %v924_v23  ;;  %972 = vst [vmem:[#allocation2 + $0xe0] sm:$0xff] %v940_v24  ;;  %v925_v27 = vadd.f32 %v1272_v25, %v408_v19  ;;  %v941_v28 = vadd.f32 %v1320_v26, %v424_v21  ;;  %v1022_v10 = vmax.f32 (!%p1209_p10), %v990_v5, 0.0  ;;  %v996_v19 = vld [vmem:[#allocation2 + $0x80] sm:$0xff] (!%p1209_p10)  ;;  %v1048_v21 = vpack.c.bf16 (!%p1209_p10), %v1021_v9, %v1020_v4  ;;  %v998_v25 = vld [vmem:[#allocation2 + $0x90] sm:$0xff] (!%p1209_p10) }
 0x16d   : > { %v991_v6 = vld [vmem:[#allocation2 + $0x58] sm:$0xff] (!%p1209_p10)  ;;  %v1028_v24 = vmax.f32 (!%p1209_p10), %v996_v19, 0.0 }
 0x16e   : > { %957 = vst [vmem:[#allocation2 + $0x68] sm:$0xff] %v925_v27  ;;  %973 = vst [vmem:[#allocation2 + $0xe8] sm:$0xff] %v941_v28  ;;  %v1273_v29 = vpop.f32.mrb[28].mxu0  ;;  %v1321_v30 = vpop.f32.mrb[28].mxu1  ;;  %v1023_v15 = vmax.f32 (!%p1209_p10), %v991_v6, 0.0  ;;  %v999_v26 = vld [vmem:[#allocation2 + $0x98] sm:$0xff] (!%p1209_p10) }
 0x16f   : > { %v1274_v32 = vpop.f32.mrb[29].mxu0  ;;  %v1322_v34 = vpop.f32.mrb[29].mxu1  ;;  %v1000_v27 = vld [vmem:[#allocation2 + $0xa0] sm:$0xff] (!%p1209_p10)  ;;  %1064 = vst [vmem:[%s1748_s3 + $0x20] sm:$0xff] (!%p1209_p10), %v1048_v21 }
 0x170   : > { %v1275_v35 = vadd.f32 %v1274_v32, %v1273_v29  ;;  %v1323_v36 = vadd.f32 %v1322_v34, %v1321_v30  ;;  %v1276_v37 = vpop.f32.mrb[30].mxu0  ;;  %v1324_v38 = vpop.f32.mrb[30].mxu1  ;;  %979 = sbr.rel (%p1209_p10) target bundleno = 388 (0x184), region = 78  ;;  %v1049_v28 = vpack.c.bf16 (!%p1209_p10), %v1023_v15, %v1022_v10  ;;  %v1029_v30 = vmax.f32 (!%p1209_p10), %v997_v20, 0.0  ;;  %v1001_v32 = vld [vmem:[#allocation2 + $0xa8] sm:$0xff] (!%p1209_p10)  ;;  %v1003_v34 = vld [vmem:[#allocation2 + $0xb8] sm:$0xff] (!%p1209_p10) }
 0x171   : > { %v1277_v40 = vpop.f32.mrb[31].mxu0  ;;  %v1325_v42 = vpop.f32.mrb[31].mxu1 }
 0x172   : > { %v926_v43 = vadd.f32 %v1275_v35, %v409_v31  ;;  %v942_v44 = vadd.f32 %v1323_v36, %v425_v33  ;;  %v1278_v45 = vadd.f32 %v1277_v40, %v1276_v37  ;;  %v1326_v46 = vadd.f32 %v1325_v42, %v1324_v38  ;;  %v1002_v33 = vld [vmem:[#allocation2 + $0xb0] sm:$0xff] (!%p1209_p10)  ;;  %v1005_v40 = vld [vmem:[#allocation2 + $0xc8] sm:$0xff] (!%p1209_p10)  ;;  %1065 = vst [vmem:[%s1748_s3 + $0x28] sm:$0xff] (!%p1209_p10), %v1049_v28 }
 0x173   : > { %v992_v11 = vld [vmem:[#allocation2 + $0x60] sm:$0xff] (!%p1209_p10)  ;;  %v1030_v31 = vmax.f32 (!%p1209_p10), %v998_v25, 0.0  ;;  %v1031_v36 = vmax.f32 (!%p1209_p10), %v999_v26, 0.0  ;;  %v1032_v37 = vmax.f32 (!%p1209_p10), %v1000_v27, 0.0  ;;  %v1033_v38 = vmax.f32 (!%p1209_p10), %v1001_v32, 0.0 }
 0x174   : > { %958 = vst [vmem:[#allocation2 + $0x70] sm:$0xff] %v926_v43  ;;  %974 = vst [vmem:[#allocation2 + $0xf0] sm:$0xff] %v942_v44  ;;  %v927_v47 = vadd.f32 %v1278_v45, %v410_v39  ;;  %v943_v48 = vadd.f32 %v1326_v46, %v426_v41  ;;  %v1024_v16 = vmax.f32 (!%p1209_p10), %v992_v11, 0.0  ;;  %v1004_v39 = vld [vmem:[#allocation2 + $0xc0] sm:$0xff] (!%p1209_p10)  ;;  %v1006_v41 = vld [vmem:[#allocation2 + $0xd0] sm:$0xff] (!%p1209_p10)  ;;  %v1052_v42 = vpack.c.bf16 (!%p1209_p10), %v1029_v30, %v1028_v24 }
 0x175   : > { %v993_v12 = vld [vmem:[#allocation2 + $0x68] sm:$0xff] (!%p1209_p10)  ;;  %v1034_v43 = vmax.f32 (!%p1209_p10), %v1002_v33, 0.0  ;;  %v1035_v44 = vmax.f32 (!%p1209_p10), %v1003_v34, 0.0  ;;  %v1036_v45 = vmax.f32 (!%p1209_p10), %v1004_v39, 0.0  ;;  %v1007_v46 = vld [vmem:[#allocation2 + $0xd8] sm:$0xff] (!%p1209_p10)  ;;  %v1053_v49 = vpack.c.bf16 (!%p1209_p10), %v1031_v36, %v1030_v31 }
 0x176   : > { %959 = vst [vmem:[#allocation2 + $0x78] sm:$0xff] %v927_v47  ;;  %975 = vst [vmem:[#allocation2 + $0xf8] sm:$0xff] %v943_v48  ;;  %v1025_v17 = vmax.f32 (!%p1209_p10), %v993_v12, 0.0  ;;  %v1008_v47 = vld [vmem:[#allocation2 + $0xe0] sm:$0xff] (!%p1209_p10)  ;;  %v1009_v48 = vld [vmem:[#allocation2 + $0xe8] sm:$0xff] (!%p1209_p10)  ;;  %v1054_v50 = vpack.c.bf16 (!%p1209_p10), %v1033_v38, %v1032_v37  ;;  %v1037_v51 = vmax.f32 (!%p1209_p10), %v1005_v40, 0.0 }
 0x177   : > { %v1038_v52 = vmax.f32 %v1006_v41, 0.0  ;;  %1068 = vst [vmem:[%s1748_s3 + $0x40] sm:$0xff] %v1052_v42  ;;  %v1055_v55 = vpack.c.bf16 %v1035_v44, %v1034_v43  ;;  %v1039_v56 = vmax.f32 %v1007_v46, 0.0  ;;  %v1040_v57 = vmax.f32 %v1008_v47, 0.0  ;;  %1069 = vst [vmem:[%s1748_s3 + $0x48] sm:$0xff] %v1053_v49 }
 0x178   : > { %v1050_v29 = vpack.c.bf16 %v1025_v17, %v1024_v16  ;;  %v1041_v58 = vmax.f32 %v1009_v48, 0.0  ;;  %1070 = vst [vmem:[%s1748_s3 + $0x50] sm:$0xff] %v1054_v50  ;;  %v1056_v59 = vpack.c.bf16 %v1037_v51, %v1036_v45 }
 0x179   : > { %1071 = vst [vmem:[%s1748_s3 + $0x58] sm:$0xff] %v1055_v55  ;;  %v1057_v62 = vpack.c.bf16 %v1039_v56, %v1038_v52 }
 0x17a   : > { %1066 = vst [vmem:[%s1748_s3 + $0x30] sm:$0xff] %v1050_v29  ;;  %v1058_v63 = vpack.c.bf16 %v1041_v58, %v1040_v57  ;;  %1072 = vst [vmem:[%s1748_s3 + $0x60] sm:$0xff] %v1056_v59 }
 0x17b   : > { %v994_v13 = vld [vmem:[#allocation2 + $0x70] sm:$0xff]  ;;  %1073 = vst [vmem:[%s1748_s3 + $0x68] sm:$0xff] %v1057_v62 }
 0x17c   : > { %v1026_v22 = vmax.f32 %v994_v13, 0.0  ;;  %v1010_v53 = vld [vmem:[#allocation2 + $0xf0] sm:$0xff]  ;;  %1074 = vst [vmem:[%s1748_s3 + $0x70] sm:$0xff] %v1058_v63 }
 0x17d   : > { %v995_v18 = vld [vmem:[#allocation2 + $0x78] sm:$0xff]  ;;  %v1042_v60 = vmax.f32 %v1010_v53, 0.0 }
 0x17e   : > { %v1027_v23 = vmax.f32 %v995_v18, 0.0  ;;  %v1011_v54 = vld [vmem:[#allocation2 + $0xf8] sm:$0xff] }
 0x17f   : > { %v1043_v61 = vmax.f32 %v1011_v54, 0.0 }
 0x180   : > { %v1051_v35 = vpack.c.bf16 %v1027_v23, %v1026_v22 }
 0x181   : > { %v1059_v0 = vpack.c.bf16 %v1043_v61, %v1042_v60 }
 0x182   : > { %1067 = vst [vmem:[%s1748_s3 + $0x38] sm:$0xff] %v1051_v35 }
 0x183   : > { %1075 = vst [vmem:[%s1748_s3 + $0x78] sm:$0xff] %v1059_v0 }
 0x184 PF: > { %s13_s16 = sadd.s32 1, %s1485_s16   ;;  %s1749_s12 = smov %s1473_s13 }
 0x185   : > { %p10_p11 = scmp.ge.s32.totalorder %s13_s16, 5   ;;  %s1750_s13 = smov %s1542_s20 }
 0x186   : > { %s1751_s14 = smov %s1481_s15  ;;  %s1752_s15 = smov %s1754_s17 }
 0x187   :  { %12 = sbr.rel (!%p10_p11) target bundleno = 3 (0x3), region = 114 }

// kernel: u2net_forward.9
= control target key start
LH: loop header
LB: loop body
LE: loop exit
PB: predicated region body
PF: predicated region fallthrough
CT: control target
= control target key end

     0   :  { %s1794_s12 = smov 0   ;;  %s1796_s13 = smov 0   ;;  %s2032_s0 = inlined_call_operand.vmem [shape: bf16[256,768], index: 0, kind: input, shape index: {}]   ;;  %s2033_s1 = inlined_call_operand.vmem [shape: bf16[768,128], index: 1, kind: input, shape index: {}]   ;;  %s2034_s2 = inlined_call_operand.vmem [shape: f32[1,128], index: 2, kind: input, shape index: {}]   ;;  %s2035_s3 = inlined_call_operand.vmem [shape: bf16[256,128], index: 3, kind: output, shape index: {}]  }
   0x1   :  { %s1798_s14 = smov 0   ;;  %s1800_s15 = smov 0  }
   0x2   :  { %s1802_s16 = smov 0  }
   0x3 LB: > { %s22_s17 = sadd.s32 1, %s1768_s15  ;;  %p41_p1 = scmp.ne.s32.totalorder %s1760_s13, %s1756_s12  ;;  %s1772_s16 = sphi %s1802_s16, %s13_s16   ;;  %s1768_s15 = sphi %s1800_s15, %s2039_s15   ;;  %s1764_s14 = sphi %s1798_s14, %s2038_s14   ;;  %s1760_s13 = sphi %s1796_s13, %s2037_s13   ;;  %s1756_s12 = sphi %s1794_s12, %s2036_s12  }
   0x4   : > { %p23_p0 = scmp.ge.s32.totalorder %s22_s17, 3  ;;  %p42_p2 = scmp.eq.s32.totalorder %s1772_s16, 0 }
   0x5   : > { %s34_s19 = sadd.s32 1, %s1760_s13  ;;  %p1279_p5 = scmp.ge.s32.totalorder %s1772_s16, 3 }
   0x6   : > { %s2041_s17 = smov (%p23_p0, %s22_s17), 0  ;;  %p43_p3 = por %p42_p2, %p41_p1 }
   0x7   : > { %s30_s18 = ssub.s32 %s1768_s15, %s2041_s17  ;;  %141 = sbr.rel (%p1279_p5) target bundleno = 34 (0x22), region = 24 }
   0x8   : > { %p32_p4 = scmp.eq.s32.totalorder %s30_s18, 0 }
   0xa   : > { %s1829_s20 = scalar_select %p32_p4, %s1760_s13, %s34_s19  }
   0xe   : > { %144 = sbr.rel (!%p43_p3) target bundleno = 34 (0x22), region = 28  ;;  %s146_s21 = sand.u32 (%p43_p3), 1, %s1760_s13  }
   0xf   : > { %s1374_s22 = sshll.u32 (%p43_p3), %s1768_s15, 3  ;;  %s1280_s23 = sshll.u32 (%p43_p3), %s146_s21, 8 }
  0x10   : > { %s1837_s26 = scalar_lea.vmem (%p43_p3), %s2032_s0, %s1374_s22  ;;  %s1842_s27 = scalar_lea.vmem (%p43_p3), [#allocation3], %s1280_s23 }
  0x11   : > { %v244_v0 = vld [vmem:[%s1837_s26] sm:$0xff] (%p43_p3)  ;;  %v246_v1 = vld [vmem:[%s1837_s26 + $0x18] sm:$0xff] (%p43_p3)  ;;  %v248_v2 = vld [vmem:[%s1837_s26 + $0x30] sm:$0xff] (%p43_p3) }
  0x12   : > { %245 = vst [vmem:[%s1842_s27] sm:$0xff] (%p43_p3), %v244_v0  ;;  %247 = vst [vmem:[%s1842_s27 + $0x8] sm:$0xff] (%p43_p3), %v246_v1  ;;  %v250_v3 = vld [vmem:[%s1837_s26 + $0x48] sm:$0xff] (%p43_p3)  ;;  %v252_v4 = vld [vmem:[%s1837_s26 + $0x60] sm:$0xff] (%p43_p3) }
  0x13   : > { %249 = vst [vmem:[%s1842_s27 + $0x10] sm:$0xff] (%p43_p3), %v248_v2  ;;  %v254_v5 = vld [vmem:[%s1837_s26 + $0x78] sm:$0xff] (%p43_p3)  ;;  %251 = vst [vmem:[%s1842_s27 + $0x18] sm:$0xff] (%p43_p3), %v250_v3  ;;  %v256_v6 = vld [vmem:[%s1837_s26 + $0x90] sm:$0xff] (%p43_p3) }
  0x14   : > { %253 = vst [vmem:[%s1842_s27 + $0x20] sm:$0xff] (%p43_p3), %v252_v4  ;;  %255 = vst [vmem:[%s1842_s27 + $0x28] sm:$0xff] (%p43_p3), %v254_v5  ;;  %v258_v7 = vld [vmem:[%s1837_s26 + $0xa8] sm:$0xff] (%p43_p3)  ;;  %v260_v8 = vld [vmem:[%s1837_s26 + $0xc0] sm:$0xff] (%p43_p3) }
  0x15   : > { %257 = vst [vmem:[%s1842_s27 + $0x30] sm:$0xff] %v256_v6  ;;  %259 = vst [vmem:[%s1842_s27 + $0x38] sm:$0xff] %v258_v7  ;;  %v262_v9 = vld [vmem:[%s1837_s26 + $0xd8] sm:$0xff]  ;;  %v264_v10 = vld [vmem:[%s1837_s26 + $0xf0] sm:$0xff] }
  0x16   : > { %261 = vst [vmem:[%s1842_s27 + $0x40] sm:$0xff] %v260_v8  ;;  %v266_v11 = vld [vmem:[%s1837_s26 + $0x108] sm:$0xff]  ;;  %263 = vst [vmem:[%s1842_s27 + $0x48] sm:$0xff] %v262_v9  ;;  %v268_v12 = vld [vmem:[%s1837_s26 + $0x120] sm:$0xff] }
  0x17   : > { %265 = vst [vmem:[%s1842_s27 + $0x50] sm:$0xff] %v264_v10  ;;  %267 = vst [vmem:[%s1842_s27 + $0x58] sm:$0xff] %v266_v11  ;;  %v270_v13 = vld [vmem:[%s1837_s26 + $0x138] sm:$0xff]  ;;  %v272_v14 = vld [vmem:[%s1837_s26 + $0x150] sm:$0xff] }
  0x18   : > { %269 = vst [vmem:[%s1842_s27 + $0x60] sm:$0xff] %v268_v12  ;;  %271 = vst [vmem:[%s1842_s27 + $0x68] sm:$0xff] %v270_v13  ;;  %v274_v15 = vld [vmem:[%s1837_s26 + $0x168] sm:$0xff]  ;;  %v276_v16 = vld [vmem:[%s1837_s26 + $0x180] sm:$0xff] }
  0x19   : > { %273 = vst [vmem:[%s1842_s27 + $0x70] sm:$0xff] %v272_v14  ;;  %v278_v17 = vld [vmem:[%s1837_s26 + $0x198] sm:$0xff]  ;;  %275 = vst [vmem:[%s1842_s27 + $0x78] sm:$0xff] %v274_v15  ;;  %v280_v18 = vld [vmem:[%s1837_s26 + $0x1b0] sm:$0xff] }
  0x1a   : > { %277 = vst [vmem:[%s1842_s27 + $0x80] sm:$0xff] %v276_v16  ;;  %279 = vst [vmem:[%s1842_s27 + $0x88] sm:$0xff] %v278_v17  ;;  %v282_v19 = vld [vmem:[%s1837_s26 + $0x1c8] sm:$0xff]  ;;  %v284_v20 = vld [vmem:[%s1837_s26 + $0x1e0] sm:$0xff] }
  0x1b   : > { %281 = vst [vmem:[%s1842_s27 + $0x90] sm:$0xff] %v280_v18  ;;  %283 = vst [vmem:[%s1842_s27 + $0x98] sm:$0xff] %v282_v19  ;;  %v286_v21 = vld [vmem:[%s1837_s26 + $0x1f8] sm:$0xff]  ;;  %v288_v22 = vld [vmem:[%s1837_s26 + $0x210] sm:$0xff] }
  0x1c   : > { %285 = vst [vmem:[%s1842_s27 + $0xa0] sm:$0xff] %v284_v20  ;;  %v290_v23 = vld [vmem:[%s1837_s26 + $0x228] sm:$0xff]  ;;  %287 = vst [vmem:[%s1842_s27 + $0xa8] sm:$0xff] %v286_v21  ;;  %v292_v24 = vld [vmem:[%s1837_s26 + $0x240] sm:$0xff] }
  0x1d   : > { %289 = vst [vmem:[%s1842_s27 + $0xb0] sm:$0xff] %v288_v22  ;;  %291 = vst [vmem:[%s1842_s27 + $0xb8] sm:$0xff] %v290_v23  ;;  %v294_v25 = vld [vmem:[%s1837_s26 + $0x258] sm:$0xff]  ;;  %v296_v26 = vld [vmem:[%s1837_s26 + $0x270] sm:$0xff] }
  0x1e   : > { %293 = vst [vmem:[%s1842_s27 + $0xc0] sm:$0xff] %v292_v24  ;;  %295 = vst [vmem:[%s1842_s27 + $0xc8] sm:$0xff] %v294_v25  ;;  %v298_v27 = vld [vmem:[%s1837_s26 + $0x288] sm:$0xff]  ;;  %v300_v28 = vld [vmem:[%s1837_s26 + $0x2a0] sm:$0xff] }
  0x1f   : > { %297 = vst [vmem:[%s1842_s27 + $0xd0] sm:$0xff] %v296_v26  ;;  %v302_v29 = vld [vmem:[%s1837_s26 + $0x2b8] sm:$0xff]  ;;  %299 = vst [vmem:[%s1842_s27 + $0xd8] sm:$0xff] %v298_v27  ;;  %v304_v30 = vld [vmem:[%s1837_s26 + $0x2d0] sm:$0xff] }
  0x20   : > { %301 = vst [vmem:[%s1842_s27 + $0xe0] sm:$0xff] %v300_v28  ;;  %303 = vst [vmem:[%s1842_s27 + $0xe8] sm:$0xff] %v302_v29  ;;  %v306_v31 = vld [vmem:[%s1837_s26 + $0x2e8] sm:$0xff] }
  0x21   : > { %305 = vst [vmem:[%s1842_s27 + $0xf0] sm:$0xff] %v304_v30  ;;  %307 = vst [vmem:[%s1842_s27 + $0xf8] sm:$0xff] %v306_v31 }
  0x22 PF: > { %p1283_p6 = scmp.ge.s32.totalorder %s1772_s16, 1  ;;  %p312_p7 = scmp.lt.s32.totalorder %s1772_s16, 4 }
  0x24   : > { %p313_p8 = pnand %p1283_p6, %p312_p7 }
  0x25   : > { %s319_s28 = sand.u32 (!%p313_p8), 1, %s1756_s12   ;;  %p1285_p9 = scmp.ne.s32.totalorder (!%p313_p8), %s1764_s14, 0 }
  0x26   : > { %316 = sbr.rel (%p313_p8) target bundleno = 388 (0x184), region = 66  ;;  %s1284_s29 = sshll.u32 (!%p313_p8), %s319_s28, 8 }
  0x27   : > { %s1908_s30 = scalar_lea.vmem (!%p313_p8), [#allocation3], %s1284_s29 }
  0x2d   : > { %354 = sbr.rel (%p1285_p9) target bundleno = 62 (0x3e), region = 74  ;;  %v1286_v32 = vld [vmem:[%s2034_s2] ss:$0 sm:$0xff] (!%p1285_p9) }
  0x2e   : > { %362 = vst [vmem:[#allocation2] sm:$0xff] (!%p1285_p9), %v1286_v32  ;;  %363 = vst [vmem:[#allocation2 + $0x8] sm:$0xff] (!%p1285_p9), %v1286_v32 }
  0x2f   : > { %364 = vst [vmem:[#allocation2 + $0x10] sm:$0xff] (!%p1285_p9), %v1286_v32  ;;  %365 = vst [vmem:[#allocation2 + $0x18] sm:$0xff] (!%p1285_p9), %v1286_v32 }
  0x30   : > { %366 = vst [vmem:[#allocation2 + $0x20] sm:$0xff] (!%p1285_p9), %v1286_v32  ;;  %367 = vst [vmem:[#allocation2 + $0x28] sm:$0xff] (!%p1285_p9), %v1286_v32 }
  0x31   : > { %368 = vst [vmem:[#allocation2 + $0x30] sm:$0xff] (!%p1285_p9), %v1286_v32  ;;  %369 = vst [vmem:[#allocation2 + $0x38] sm:$0xff] (!%p1285_p9), %v1286_v32 }
  0x32   : > { %370 = vst [vmem:[#allocation2 + $0x40] sm:$0xff] (!%p1285_p9), %v1286_v32  ;;  %371 = vst [vmem:[#allocation2 + $0x48] sm:$0xff] (!%p1285_p9), %v1286_v32 }
  0x33   : > { %372 = vst [vmem:[#allocation2 + $0x50] sm:$0xff] (!%p1285_p9), %v1286_v32  ;;  %373 = vst [vmem:[#allocation2 + $0x58] sm:$0xff] (!%p1285_p9), %v1286_v32 }
  0x34   : > { %374 = vst [vmem:[#allocation2 + $0x60] sm:$0xff] %v1286_v32  ;;  %375 = vst [vmem:[#allocation2 + $0x68] sm:$0xff] %v1286_v32 }
  0x35   : > { %376 = vst [vmem:[#allocation2 + $0x70] sm:$0xff] %v1286_v32  ;;  %377 = vst [vmem:[#allocation2 + $0x78] sm:$0xff] %v1286_v32 }
  0x36   : > { %378 = vst [vmem:[#allocation2 + $0x80] sm:$0xff] %v1286_v32  ;;  %379 = vst [vmem:[#allocation2 + $0x88] sm:$0xff] %v1286_v32 }
  0x37   : > { %380 = vst [vmem:[#allocation2 + $0x90] sm:$0xff] %v1286_v32  ;;  %381 = vst [vmem:[#allocation2 + $0x98] sm:$0xff] %v1286_v32 }
  0x38   : > { %382 = vst [vmem:[#allocation2 + $0xa0] sm:$0xff] %v1286_v32  ;;  %383 = vst [vmem:[#allocation2 + $0xa8] sm:$0xff] %v1286_v32 }
  0x39   : > { %384 = vst [vmem:[#allocation2 + $0xb0] sm:$0xff] %v1286_v32  ;;  %385 = vst [vmem:[#allocation2 + $0xb8] sm:$0xff] %v1286_v32 }
  0x3a   : > { %386 = vst [vmem:[#allocation2 + $0xc0] sm:$0xff] %v1286_v32  ;;  %387 = vst [vmem:[#allocation2 + $0xc8] sm:$0xff] %v1286_v32 }
  0x3b   : > { %388 = vst [vmem:[#allocation2 + $0xd0] sm:$0xff] %v1286_v32  ;;  %389 = vst [vmem:[#allocation2 + $0xd8] sm:$0xff] %v1286_v32 }
  0x3c   : > { %390 = vst [vmem:[#allocation2 + $0xe0] sm:$0xff] %v1286_v32  ;;  %391 = vst [vmem:[#allocation2 + $0xe8] sm:$0xff] %v1286_v32 }
  0x3d   : > { %392 = vst [vmem:[#allocation2 + $0xf0] sm:$0xff] %v1286_v32  ;;  %393 = vst [vmem:[#allocation2 + $0xf8] sm:$0xff] %v1286_v32 }
  0x3e PF: > { %s1287_s6 = sshll.u32 %s1764_s14, 8  ;;  %v1688_v33 = vld [vmem:[%s1908_s30 + $0x4] ss:$8 sps:$4 sm:$0xff]   ;;  %v1686_v51 = vld [vmem:[%s1908_s30] ss:$8 sps:$4 sm:$0xff]   ;;  %p1337_p10 = scmp.ne.s32.totalorder %s1764_s14, 2 }
  0x3f   : > { %s459_s7 = sshra.s32 %s1287_s6, 3  ;;  %v1691_v34 = vld [vmem:[%s1908_s30 + $0x84] ss:$8 sps:$4 sm:$0xff]   ;;  %783 = vmatprep.mubr.bf16.mxu0 %v1688_v33  ;;  %v1689_v52 = vld [vmem:[%s1908_s30 + $0x80] ss:$8 sps:$4 sm:$0xff]  }
  0x40   : > { %s1288_s8 = sshll.u32 %s459_s7, 2  ;;  %847 = vmatprep.mubr.bf16.mxu1 %v1691_v34  ;;  %v1692_v53 = vld [vmem:[%s1908_s30 + $0x14] ss:$8 sps:$4 sm:$0xff]   ;;  %v1696_v55 = vld [vmem:[%s1908_s30 + $0x10] ss:$8 sps:$4 sm:$0xff]   ;;  %v395_v19 = vld [vmem:[#allocation2] sm:$0xff] }
  0x41   : > { %s1920_s11 = scalar_lea.vmem %s2033_s1, %s1288_s8  ;;  %v1694_v54 = vld [vmem:[%s1908_s30 + $0x94] ss:$8 sps:$4 sm:$0xff]   ;;  %v1697_v56 = vld [vmem:[%s1908_s30 + $0x90] ss:$8 sps:$4 sm:$0xff]   ;;  %v1698_v57 = vld [vmem:[%s1908_s30 + $0x24] ss:$8 sps:$4 sm:$0xff]  }
  0x42   : > { %v1670_v35 = vld [vmem:[%s1920_s11 + $0x40] sm:$0xff]   ;;  %v1672_v37 = vld [vmem:[%s1920_s11 + $0x48] sm:$0xff]   ;;  %v1674_v39 = vld [vmem:[%s1920_s11 + $0x50] sm:$0xff]  }
  0x43   : > { %v1671_v36 = vld [vmem:[%s1920_s11] sm:$0xff]   ;;  %1502 = vmatprep.subr.bf16.mxu0 %v1670_v35  ;;  %1614 = vmatprep.subr.bf16.mxu1 %v1670_v35  ;;  %v1673_v38 = vld [vmem:[%s1920_s11 + $0x8] sm:$0xff]   ;;  %v1675_v40 = vld [vmem:[%s1920_s11 + $0x10] sm:$0xff]  }
  0x44   : > { %1503 = vmatpush3.bf16.msra.mxu0 %v1671_v36  ;;  %1622 = vmatpush3.bf16.msra.mxu1 %v1671_v36  ;;  %v1676_v41 = vld [vmem:[%s1920_s11 + $0x58] sm:$0xff]   ;;  %v1678_v43 = vld [vmem:[%s1920_s11 + $0x60] sm:$0xff]   ;;  %v1680_v45 = vld [vmem:[%s1920_s11 + $0x68] sm:$0xff]  }
  0x45   : > { %1504 = vmatprep.subr.bf16.mxu0 %v1672_v37  ;;  %1615 = vmatprep.subr.bf16.mxu1 %v1672_v37  ;;  %v1677_v42 = vld [vmem:[%s1920_s11 + $0x18] sm:$0xff]   ;;  %v1679_v44 = vld [vmem:[%s1920_s11 + $0x20] sm:$0xff]   ;;  %v1681_v46 = vld [vmem:[%s1920_s11 + $0x28] sm:$0xff]  }
  0x46   : > { %v1682_v47 = vld [vmem:[%s1920_s11 + $0x70] sm:$0xff]   ;;  %v1684_v49 = vld [vmem:[%s1920_s11 + $0x78] sm:$0xff]   ;;  %v1700_v58 = vld [vmem:[%s1908_s30 + $0xa4] ss:$8 sps:$4 sm:$0xff]  }
  0x47   : > { %v1683_v48 = vld [vmem:[%s1920_s11 + $0x30] sm:$0xff]   ;;  %v1685_v50 = vld [vmem:[%s1920_s11 + $0x38] sm:$0xff]   ;;  %v1702_v59 = vld [vmem:[%s1908_s30 + $0x20] ss:$8 sps:$4 sm:$0xff]  }
  0x48   : > { %1505 = vmatpush3.bf16.msra.mxu0 %v1673_v38  ;;  %1623 = vmatpush3.bf16.msra.mxu1 %v1673_v38  ;;  %v1703_v60 = vld [vmem:[%s1908_s30 + $0xa0] ss:$8 sps:$4 sm:$0xff]   ;;  %v1704_v61 = vld [vmem:[%s1908_s30 + $0x34] ss:$8 sps:$4 sm:$0xff]   ;;  %v1708_v63 = vld [vmem:[%s1908_s30 + $0x30] ss:$8 sps:$4 sm:$0xff]  }
  0x49   : > { %1506 = vmatprep.subr.bf16.mxu0 %v1674_v39  ;;  %1616 = vmatprep.subr.bf16.mxu1 %v1674_v39  ;;  %v1706_v62 = vld [vmem:[%s1908_s30 + $0xb4] ss:$8 sps:$4 sm:$0xff]   ;;  %v1709_v0 = vld [vmem:[%s1908_s30 + $0xb0] ss:$8 sps:$4 sm:$0xff]   ;;  %v1710_v1 = vld [vmem:[%s1908_s30 + $0x44] ss:$8 sps:$4 sm:$0xff]  }
  0x4a   : > { %v1712_v2 = vld [vmem:[%s1908_s30 + $0xc4] ss:$8 sps:$4 sm:$0xff]   ;;  %v1714_v3 = vld [vmem:[%s1908_s30 + $0x40] ss:$8 sps:$4 sm:$0xff]   ;;  %v1716_v5 = vld [vmem:[%s1908_s30 + $0x54] ss:$8 sps:$4 sm:$0xff]  }
  0x4b   : > { %v1715_v4 = vld [vmem:[%s1908_s30 + $0xc0] ss:$8 sps:$4 sm:$0xff]   ;;  %v1718_v6 = vld [vmem:[%s1908_s30 + $0xd4] ss:$8 sps:$4 sm:$0xff]   ;;  %v1720_v7 = vld [vmem:[%s1908_s30 + $0x50] ss:$8 sps:$4 sm:$0xff]  }
  0x4c   : > { %1507 = vmatpush3.bf16.msra.mxu0 %v1675_v40  ;;  %1624 = vmatpush3.bf16.msra.mxu1 %v1675_v40  ;;  %v1721_v8 = vld [vmem:[%s1908_s30 + $0xd0] ss:$8 sps:$4 sm:$0xff]   ;;  %v1722_v9 = vld [vmem:[%s1908_s30 + $0x64] ss:$8 sps:$4 sm:$0xff]   ;;  %v1726_v11 = vld [vmem:[%s1908_s30 + $0x60] ss:$8 sps:$4 sm:$0xff]  }
  0x4d   : > { %1508 = vmatprep.subr.bf16.mxu0 %v1676_v41  ;;  %1617 = vmatprep.subr.bf16.mxu1 %v1676_v41  ;;  %v1724_v10 = vld [vmem:[%s1908_s30 + $0xe4] ss:$8 sps:$4 sm:$0xff]   ;;  %v1727_v12 = vld [vmem:[%s1908_s30 + $0xe0] ss:$8 sps:$4 sm:$0xff]   ;;  %v1728_v13 = vld [vmem:[%s1908_s30 + $0x74] ss:$8 sps:$4 sm:$0xff]  }
  0x4e   : > { %v1730_v14 = vld [vmem:[%s1908_s30 + $0xf4] ss:$8 sps:$4 sm:$0xff]   ;;  %v1732_v15 = vld [vmem:[%s1908_s30 + $0x70] ss:$8 sps:$4 sm:$0xff]   ;;  %v411_v21 = vld [vmem:[#allocation2 + $0x80] sm:$0xff] }
  0x4f   : > { %v1733_v16 = vld [vmem:[%s1908_s30 + $0xf0] ss:$8 sps:$4 sm:$0xff]   ;;  %v396_v27 = vld [vmem:[#allocation2 + $0x8] sm:$0xff] }
  0x50   : > { %1509 = vmatpush3.bf16.msra.mxu0 %v1677_v42  ;;  %1625 = vmatpush3.bf16.msra.mxu1 %v1677_v42  ;;  %v412_v29 = vld [vmem:[#allocation2 + $0x88] sm:$0xff]  ;;  %v397_v39 = vld [vmem:[#allocation2 + $0x10] sm:$0xff] }
  0x51   : > { %1510 = vmatprep.subr.bf16.mxu0 %v1678_v43  ;;  %1618 = vmatprep.subr.bf16.mxu1 %v1678_v43  ;;  %v413_v41 = vld [vmem:[#allocation2 + $0x90] sm:$0xff] }
  0x54   : > { %1511 = vmatpush3.bf16.msra.mxu0 %v1679_v44  ;;  %1626 = vmatpush3.bf16.msra.mxu1 %v1679_v44 }
  0x55   : > { %1512 = vmatprep.subr.bf16.mxu0 %v1680_v45  ;;  %1619 = vmatprep.subr.bf16.mxu1 %v1680_v45 }
  0x58   : > { %1513 = vmatpush3.bf16.msra.mxu0 %v1681_v46  ;;  %1627 = vmatpush3.bf16.msra.mxu1 %v1681_v46 }
  0x59   : > { %1514 = vmatprep.subr.bf16.mxu0 %v1682_v47  ;;  %1620 = vmatprep.subr.bf16.mxu1 %v1682_v47  ;;  %v398_v47 = vld [vmem:[#allocation2 + $0x18] sm:$0xff] }
  0x5c   : > { %1515 = vmatpush3.bf16.msra.mxu0 %v1683_v48  ;;  %1628 = vmatpush3.bf16.msra.mxu1 %v1683_v48 }
  0x5d   : > { %1516 = vmatprep.subr.bf16.mxu0 %v1684_v49  ;;  %1621 = vmatprep.subr.bf16.mxu1 %v1684_v49  ;;  %v414_v49 = vld [vmem:[#allocation2 + $0x98] sm:$0xff] }
  0x60   : > { %1517 = vmatpush3.bf16.msra.mxu0 %v1685_v50  ;;  %1629 = vmatpush3.bf16.msra.mxu1 %v1685_v50 }
  0x63   : > { %784 = vmatmul.mubr.bf16.vlgmr.msra.gmra.mrb[0].mxu0 %v1686_v51  ;;  %848 = vmatmul.mubr.bf16.vlgmr.msra.gmra.mrb[0].mxu1 %v1689_v52 }
  0x64   : > { %791 = vmatprep.mubr.bf16.mxu0 %v1692_v53  ;;  %855 = vmatprep.mubr.bf16.mxu1 %v1694_v54 }
  0x6b   : > { %792 = vmatmul.mubr.bf16.gmra.mrb[4].mxu0 %v1696_v55  ;;  %856 = vmatmul.mubr.bf16.gmra.mrb[4].mxu1 %v1697_v56 }
  0x6c   : > { %799 = vmatprep.mubr.bf16.mxu0 %v1698_v57  ;;  %863 = vmatprep.mubr.bf16.mxu1 %v1700_v58 }
  0x73   : > { %800 = vmatmul.mubr.bf16.gmra.mrb[8].mxu0 %v1702_v59  ;;  %864 = vmatmul.mubr.bf16.gmra.mrb[8].mxu1 %v1703_v60  ;;  %v399_v59 = vld [vmem:[#allocation2 + $0x20] sm:$0xff] }
  0x74   : > { %807 = vmatprep.mubr.bf16.mxu0 %v1704_v61  ;;  %871 = vmatprep.mubr.bf16.mxu1 %v1706_v62  ;;  %v415_v61 = vld [vmem:[#allocation2 + $0xa0] sm:$0xff] }
  0x7b   : > { %808 = vmatmul.mubr.bf16.gmra.mrb[12].mxu0 %v1708_v63  ;;  %872 = vmatmul.mubr.bf16.gmra.mrb[12].mxu1 %v1709_v0 }
  0x7c   : > { %815 = vmatprep.mubr.bf16.mxu0 %v1710_v1  ;;  %879 = vmatprep.mubr.bf16.mxu1 %v1712_v2 }
  0x83   : > { %816 = vmatmul.mubr.bf16.gmra.mrb[16].mxu0 %v1714_v3  ;;  %880 = vmatmul.mubr.bf16.gmra.mrb[16].mxu1 %v1715_v4  ;;  %v400_v3 = vld [vmem:[#allocation2 + $0x28] sm:$0xff] }
  0x84   : > { %823 = vmatprep.mubr.bf16.mxu0 %v1716_v5  ;;  %887 = vmatprep.mubr.bf16.mxu1 %v1718_v6  ;;  %v416_v5 = vld [vmem:[#allocation2 + $0xa8] sm:$0xff] }
  0x8b   : > { %824 = vmatmul.mubr.bf16.gmra.mrb[20].mxu0 %v1720_v7  ;;  %888 = vmatmul.mubr.bf16.gmra.mrb[20].mxu1 %v1721_v8 }
  0x8c   : > { %831 = vmatprep.mubr.bf16.mxu0 %v1722_v9  ;;  %895 = vmatprep.mubr.bf16.mxu1 %v1724_v10 }
  0x93   : > { %832 = vmatmul.mubr.bf16.gmra.mrb[24].mxu0 %v1726_v11  ;;  %896 = vmatmul.mubr.bf16.gmra.mrb[24].mxu1 %v1727_v12 }
  0x94   : > { %839 = vmatprep.mubr.bf16.mxu0 %v1728_v13  ;;  %903 = vmatprep.mubr.bf16.mxu1 %v1730_v14 }
  0x9b   : > { %840 = vmatmul.mubr.bf16.gmra.mrb[28].mxu0 %v1732_v15  ;;  %904 = vmatmul.mubr.bf16.gmra.mrb[28].mxu1 %v1733_v16  ;;  %v401_v15 = vld [vmem:[#allocation2 + $0x30] sm:$0xff] }
 0x136   : > { %v1518_v17 = vpop.f32.mrb[0].mxu0  ;;  %v1566_v18 = vpop.f32.mrb[0].mxu1 }
 0x137   : > { %v1519_v20 = vpop.f32.mrb[1].mxu0  ;;  %v1567_v22 = vpop.f32.mrb[1].mxu1 }
 0x138   : > { %v1520_v23 = vadd.f32 %v1519_v20, %v1518_v17  ;;  %v1568_v24 = vadd.f32 %v1567_v22, %v1566_v18  ;;  %v1521_v25 = vpop.f32.mrb[2].mxu0  ;;  %v1569_v26 = vpop.f32.mrb[2].mxu1  ;;  %v417_v17 = vld [vmem:[#allocation2 + $0xb0] sm:$0xff] }
 0x139   : > { %v1522_v28 = vpop.f32.mrb[3].mxu0  ;;  %v1570_v30 = vpop.f32.mrb[3].mxu1 }
 0x13a   : > { %v912_v31 = vadd.f32 %v1520_v23, %v395_v19  ;;  %v928_v32 = vadd.f32 %v1568_v24, %v411_v21  ;;  %v1523_v33 = vadd.f32 %v1522_v28, %v1521_v25  ;;  %v1571_v34 = vadd.f32 %v1570_v30, %v1569_v26  ;;  %v402_v23 = vld [vmem:[#allocation2 + $0x38] sm:$0xff] }
 0x13b   : > { %v418_v25 = vld [vmem:[#allocation2 + $0xb8] sm:$0xff] }
 0x13c   : > { %944 = vst [vmem:[#allocation2] sm:$0xff] %v912_v31  ;;  %960 = vst [vmem:[#allocation2 + $0x80] sm:$0xff] %v928_v32  ;;  %v913_v35 = vadd.f32 %v1523_v33, %v396_v27  ;;  %v929_v36 = vadd.f32 %v1571_v34, %v412_v29 }
 0x13e   : > { %945 = vst [vmem:[#allocation2 + $0x8] sm:$0xff] %v913_v35  ;;  %961 = vst [vmem:[#allocation2 + $0x88] sm:$0xff] %v929_v36  ;;  %v1524_v37 = vpop.f32.mrb[4].mxu0  ;;  %v1572_v38 = vpop.f32.mrb[4].mxu1  ;;  %v403_v35 = vld [vmem:[#allocation2 + $0x40] sm:$0xff] }
 0x13f   : > { %v1525_v40 = vpop.f32.mrb[5].mxu0  ;;  %v1573_v42 = vpop.f32.mrb[5].mxu1 }
 0x140   : > { %v1526_v43 = vadd.f32 %v1525_v40, %v1524_v37  ;;  %v1574_v44 = vadd.f32 %v1573_v42, %v1572_v38  ;;  %v1527_v45 = vpop.f32.mrb[6].mxu0  ;;  %v1575_v46 = vpop.f32.mrb[6].mxu1  ;;  %v419_v37 = vld [vmem:[#allocation2 + $0xc0] sm:$0xff] }
 0x141   : > { %v1528_v48 = vpop.f32.mrb[7].mxu0  ;;  %v1576_v50 = vpop.f32.mrb[7].mxu1 }
 0x142   : > { %v914_v51 = vadd.f32 %v1526_v43, %v397_v39  ;;  %v930_v52 = vadd.f32 %v1574_v44, %v413_v41  ;;  %v1529_v53 = vadd.f32 %v1528_v48, %v1527_v45  ;;  %v1577_v54 = vadd.f32 %v1576_v50, %v1575_v46  ;;  %v404_v43 = vld [vmem:[#allocation2 + $0x48] sm:$0xff] }
 0x143   : > { %v420_v45 = vld [vmem:[#allocation2 + $0xc8] sm:$0xff] }
 0x144   : > { %946 = vst [vmem:[#allocation2 + $0x10] sm:$0xff] %v914_v51  ;;  %962 = vst [vmem:[#allocation2 + $0x90] sm:$0xff] %v930_v52  ;;  %v915_v55 = vadd.f32 %v1529_v53, %v398_v47  ;;  %v931_v56 = vadd.f32 %v1577_v54, %v414_v49 }
 0x146   : > { %947 = vst [vmem:[#allocation2 + $0x18] sm:$0xff] %v915_v55  ;;  %963 = vst [vmem:[#allocation2 + $0x98] sm:$0xff] %v931_v56  ;;  %v1530_v57 = vpop.f32.mrb[8].mxu0  ;;  %v1578_v58 = vpop.f32.mrb[8].mxu1  ;;  %v405_v55 = vld [vmem:[#allocation2 + $0x50] sm:$0xff] }
 0x147   : > { %v1531_v60 = vpop.f32.mrb[9].mxu0  ;;  %v1579_v62 = vpop.f32.mrb[9].mxu1 }
 0x148   : > { %v1532_v63 = vadd.f32 %v1531_v60, %v1530_v57  ;;  %v1580_v0 = vadd.f32 %v1579_v62, %v1578_v58  ;;  %v1533_v1 = vpop.f32.mrb[10].mxu0  ;;  %v1581_v2 = vpop.f32.mrb[10].mxu1  ;;  %v421_v57 = vld [vmem:[#allocation2 + $0xd0] sm:$0xff] }
 0x149   : > { %v1534_v4 = vpop.f32.mrb[11].mxu0  ;;  %v1582_v6 = vpop.f32.mrb[11].mxu1 }
 0x14a   : > { %v916_v7 = vadd.f32 %v1532_v63, %v399_v59  ;;  %v932_v8 = vadd.f32 %v1580_v0, %v415_v61  ;;  %v1535_v9 = vadd.f32 %v1534_v4, %v1533_v1  ;;  %v1583_v10 = vadd.f32 %v1582_v6, %v1581_v2  ;;  %v406_v63 = vld [vmem:[#allocation2 + $0x58] sm:$0xff] }
 0x14b   : > { %v422_v1 = vld [vmem:[#allocation2 + $0xd8] sm:$0xff] }
 0x14c   : > { %948 = vst [vmem:[#allocation2 + $0x20] sm:$0xff] %v916_v7  ;;  %964 = vst [vmem:[#allocation2 + $0xa0] sm:$0xff] %v932_v8  ;;  %v917_v11 = vadd.f32 %v1535_v9, %v400_v3  ;;  %v933_v12 = vadd.f32 %v1583_v10, %v416_v5 }
 0x14e   : > { %949 = vst [vmem:[#allocation2 + $0x28] sm:$0xff] %v917_v11  ;;  %965 = vst [vmem:[#allocation2 + $0xa8] sm:$0xff] %v933_v12  ;;  %v1536_v13 = vpop.f32.mrb[12].mxu0  ;;  %v1584_v14 = vpop.f32.mrb[12].mxu1  ;;  %v407_v11 = vld [vmem:[#allocation2 + $0x60] sm:$0xff] }
 0x14f   : > { %v1537_v16 = vpop.f32.mrb[13].mxu0  ;;  %v1585_v18 = vpop.f32.mrb[13].mxu1 }
 0x150   : > { %v1538_v19 = vadd.f32 %v1537_v16, %v1536_v13  ;;  %v1586_v20 = vadd.f32 %v1585_v18, %v1584_v14  ;;  %v1539_v21 = vpop.f32.mrb[14].mxu0  ;;  %v1587_v22 = vpop.f32.mrb[14].mxu1  ;;  %v423_v13 = vld [vmem:[#allocation2 + $0xe0] sm:$0xff] }
 0x151   : > { %v1540_v24 = vpop.f32.mrb[15].mxu0  ;;  %v1588_v26 = vpop.f32.mrb[15].mxu1 }
 0x152   : > { %v918_v27 = vadd.f32 %v1538_v19, %v401_v15  ;;  %v934_v28 = vadd.f32 %v1586_v20, %v417_v17  ;;  %v1541_v29 = vadd.f32 %v1540_v24, %v1539_v21  ;;  %v1589_v30 = vadd.f32 %v1588_v26, %v1587_v22  ;;  %v408_v19 = vld [vmem:[#allocation2 + $0x68] sm:$0xff] }
 0x153   : > { %v424_v21 = vld [vmem:[#allocation2 + $0xe8] sm:$0xff] }
 0x154   : > { %950 = vst [vmem:[#allocation2 + $0x30] sm:$0xff] %v918_v27  ;;  %966 = vst [vmem:[#allocation2 + $0xb0] sm:$0xff] %v934_v28  ;;  %v919_v31 = vadd.f32 %v1541_v29, %v402_v23  ;;  %v935_v32 = vadd.f32 %v1589_v30, %v418_v25 }
 0x156   : > { %951 = vst [vmem:[#allocation2 + $0x38] sm:$0xff] %v919_v31  ;;  %967 = vst [vmem:[#allocation2 + $0xb8] sm:$0xff] %v935_v32  ;;  %v1542_v33 = vpop.f32.mrb[16].mxu0  ;;  %v1590_v34 = vpop.f32.mrb[16].mxu1  ;;  %v409_v31 = vld [vmem:[#allocation2 + $0x70] sm:$0xff] }
 0x157   : > { %v1543_v36 = vpop.f32.mrb[17].mxu0  ;;  %v1591_v38 = vpop.f32.mrb[17].mxu1 }
 0x158   : > { %v1544_v39 = vadd.f32 %v1543_v36, %v1542_v33  ;;  %v1592_v40 = vadd.f32 %v1591_v38, %v1590_v34  ;;  %v1545_v41 = vpop.f32.mrb[18].mxu0  ;;  %v1593_v42 = vpop.f32.mrb[18].mxu1  ;;  %v425_v33 = vld [vmem:[#allocation2 + $0xf0] sm:$0xff] }
 0x159   : > { %v1546_v44 = vpop.f32.mrb[19].mxu0  ;;  %v1594_v46 = vpop.f32.mrb[19].mxu1 }
 0x15a   : > { %v920_v47 = vadd.f32 %v1544_v39, %v403_v35  ;;  %v936_v48 = vadd.f32 %v1592_v40, %v419_v37  ;;  %v1547_v49 = vadd.f32 %v1546_v44, %v1545_v41  ;;  %v1595_v50 = vadd.f32 %v1594_v46, %v1593_v42  ;;  %v410_v39 = vld [vmem:[#allocation2 + $0x78] sm:$0xff] }
 0x15b   : > { %v426_v41 = vld [vmem:[#allocation2 + $0xf8] sm:$0xff] }
 0x15c   : > { %952 = vst [vmem:[#allocation2 + $0x40] sm:$0xff] %v920_v47  ;;  %968 = vst [vmem:[#allocation2 + $0xc0] sm:$0xff] %v936_v48  ;;  %v921_v51 = vadd.f32 %v1547_v49, %v404_v43  ;;  %v937_v52 = vadd.f32 %v1595_v50, %v420_v45  ;;  %v980_v49 = vld [vmem:[#allocation2] sm:$0xff] (!%p1337_p10)  ;;  %v981_v50 = vld [vmem:[#allocation2 + $0x8] sm:$0xff] (!%p1337_p10) }
 0x15e   : > { %953 = vst [vmem:[#allocation2 + $0x48] sm:$0xff] %v921_v51  ;;  %969 = vst [vmem:[#allocation2 + $0xc8] sm:$0xff] %v937_v52  ;;  %v1548_v53 = vpop.f32.mrb[20].mxu0  ;;  %v1596_v54 = vpop.f32.mrb[20].mxu1  ;;  %v982_v51 = vld [vmem:[#allocation2 + $0x10] sm:$0xff] (!%p1337_p10)  ;;  %v1012_v52 = vmax.f32 (!%p1337_p10), %v980_v49, 0.0 }
 0x15f   : > { %v1549_v56 = vpop.f32.mrb[21].mxu0  ;;  %v1597_v58 = vpop.f32.mrb[21].mxu1 }
 0x160   : > { %v1550_v59 = vadd.f32 %v1549_v56, %v1548_v53  ;;  %v1598_v60 = vadd.f32 %v1597_v58, %v1596_v54  ;;  %v1551_v61 = vpop.f32.mrb[22].mxu0  ;;  %v1599_v62 = vpop.f32.mrb[22].mxu1  ;;  %v1013_v53 = vmax.f32 (!%p1337_p10), %v981_v50, 0.0  ;;  %v983_v54 = vld [vmem:[#allocation2 + $0x18] sm:$0xff] (!%p1337_p10)  ;;  %v984_v56 = vld [vmem:[#allocation2 + $0x20] sm:$0xff] (!%p1337_p10) }
 0x161   : > { %v1552_v0 = vpop.f32.mrb[23].mxu0  ;;  %v1600_v2 = vpop.f32.mrb[23].mxu1  ;;  %v1015_v58 = vmax.f32 (!%p1337_p10), %v983_v54, 0.0 }
 0x162   : > { %v922_v3 = vadd.f32 %v1550_v59, %v405_v55  ;;  %v938_v4 = vadd.f32 %v1598_v60, %v421_v57  ;;  %v1553_v5 = vadd.f32 %v1552_v0, %v1551_v61  ;;  %v1601_v6 = vadd.f32 %v1600_v2, %v1599_v62  ;;  %v985_v57 = vld [vmem:[#allocation2 + $0x28] sm:$0xff] (!%p1337_p10)  ;;  %v986_v61 = vld [vmem:[#allocation2 + $0x30] sm:$0xff] (!%p1337_p10)  ;;  %v987_v62 = vld [vmem:[#allocation2 + $0x38] sm:$0xff] (!%p1337_p10) }
 0x163   : > { %v1014_v55 = vmax.f32 (!%p1337_p10), %v982_v51, 0.0  ;;  %v1016_v59 = vmax.f32 (!%p1337_p10), %v984_v56, 0.0  ;;  %v1017_v60 = vmax.f32 (!%p1337_p10), %v985_v57, 0.0  ;;  %v1410_v0 = vpack.c.bf16 (!%p1337_p10), %v1013_v53, %v1012_v52 }
 0x164   : > { %954 = vst [vmem:[#allocation2 + $0x50] sm:$0xff] %v922_v3  ;;  %970 = vst [vmem:[#allocation2 + $0xd0] sm:$0xff] %v938_v4  ;;  %v923_v7 = vadd.f32 %v1553_v5, %v406_v63  ;;  %v939_v8 = vadd.f32 %v1601_v6, %v422_v1  ;;  %v988_v63 = vld [vmem:[#allocation2 + $0x40] sm:$0xff] (!%p1337_p10)  ;;  %v1018_v1 = vmax.f32 (!%p1337_p10), %v986_v61, 0.0  ;;  %v1019_v2 = vmax.f32 (!%p1337_p10), %v987_v62, 0.0 }
 0x165   : > { %v989_v3 = vld [vmem:[#allocation2 + $0x48] sm:$0xff] (!%p1337_p10)  ;;  %v1020_v4 = vmax.f32 (!%p1337_p10), %v988_v63, 0.0  ;;  %1411 = vst [vmem:[%s2035_s3] sm:$0xff] (!%p1337_p10), %v1410_v0  }
 0x166   : > { %955 = vst [vmem:[#allocation2 + $0x58] sm:$0xff] %v923_v7  ;;  %971 = vst [vmem:[#allocation2 + $0xd8] sm:$0xff] %v939_v8  ;;  %v1554_v9 = vpop.f32.mrb[24].mxu0  ;;  %v1602_v10 = vpop.f32.mrb[24].mxu1  ;;  %v1415_v7 = vpack.c.bf16 (!%p1337_p10), %v1015_v58, %v1014_v55  ;;  %v1420_v8 = vpack.c.bf16 (!%p1337_p10), %v1017_v60, %v1016_v59 }
 0x167   : > { %v1555_v12 = vpop.f32.mrb[25].mxu0  ;;  %v1603_v14 = vpop.f32.mrb[25].mxu1 }
 0x168   : > { %v1556_v15 = vadd.f32 %v1555_v12, %v1554_v9  ;;  %v1604_v16 = vadd.f32 %v1603_v14, %v1602_v10  ;;  %v1557_v17 = vpop.f32.mrb[26].mxu0  ;;  %v1605_v18 = vpop.f32.mrb[26].mxu1  ;;  %v1021_v9 = vmax.f32 (!%p1337_p10), %v989_v3, 0.0  ;;  %v1425_v14 = vpack.c.bf16 (!%p1337_p10), %v1019_v2, %v1018_v1  ;;  %1487 = vst [vmem:[%s2035_s3 + $0x8] sm:$0xff] (!%p1337_p10), %v1415_v7   ;;  %1488 = vst [vmem:[%s2035_s3 + $0x10] sm:$0xff] (!%p1337_p10), %v1420_v8  }
 0x169   : > { %v1558_v20 = vpop.f32.mrb[27].mxu0  ;;  %v1606_v22 = vpop.f32.mrb[27].mxu1 }
 0x16a   : > { %v924_v23 = vadd.f32 %v1556_v15, %v407_v11  ;;  %v940_v24 = vadd.f32 %v1604_v16, %v423_v13  ;;  %v1559_v25 = vadd.f32 %v1558_v20, %v1557_v17  ;;  %v1607_v26 = vadd.f32 %v1606_v22, %v1605_v18  ;;  %v997_v20 = vld [vmem:[#allocation2 + $0x88] sm:$0xff] (!%p1337_p10)  ;;  %1489 = vst [vmem:[%s2035_s3 + $0x18] sm:$0xff] (!%p1337_p10), %v1425_v14  }
 0x16b   : > { %v990_v5 = vld [vmem:[#allocation2 + $0x50] sm:$0xff] (!%p1337_p10) }
 0x16c   : > { %956 = vst [vmem:[#allocation2 + $0x60] sm:$0xff] %v924_v23  ;;  %972 = vst [vmem:[#allocation2 + $0xe0] sm:$0xff] %v940_v24  ;;  %v925_v27 = vadd.f32 %v1559_v25, %v408_v19  ;;  %v941_v28 = vadd.f32 %v1607_v26, %v424_v21  ;;  %v1022_v10 = vmax.f32 (!%p1337_p10), %v990_v5, 0.0  ;;  %v996_v19 = vld [vmem:[#allocation2 + $0x80] sm:$0xff] (!%p1337_p10)  ;;  %v1430_v21 = vpack.c.bf16 (!%p1337_p10), %v1021_v9, %v1020_v4  ;;  %v998_v25 = vld [vmem:[#allocation2 + $0x90] sm:$0xff] (!%p1337_p10) }
 0x16d   : > { %v991_v6 = vld [vmem:[#allocation2 + $0x58] sm:$0xff] (!%p1337_p10)  ;;  %v1028_v24 = vmax.f32 (!%p1337_p10), %v996_v19, 0.0 }
 0x16e   : > { %957 = vst [vmem:[#allocation2 + $0x68] sm:$0xff] %v925_v27  ;;  %973 = vst [vmem:[#allocation2 + $0xe8] sm:$0xff] %v941_v28  ;;  %v1560_v29 = vpop.f32.mrb[28].mxu0  ;;  %v1608_v30 = vpop.f32.mrb[28].mxu1  ;;  %v1023_v15 = vmax.f32 (!%p1337_p10), %v991_v6, 0.0  ;;  %v999_v26 = vld [vmem:[#allocation2 + $0x98] sm:$0xff] (!%p1337_p10) }
 0x16f   : > { %v1561_v32 = vpop.f32.mrb[29].mxu0  ;;  %v1609_v34 = vpop.f32.mrb[29].mxu1  ;;  %v1000_v27 = vld [vmem:[#allocation2 + $0xa0] sm:$0xff] (!%p1337_p10)  ;;  %1490 = vst [vmem:[%s2035_s3 + $0x20] sm:$0xff] (!%p1337_p10), %v1430_v21  }
 0x170   : > { %v1562_v35 = vadd.f32 %v1561_v32, %v1560_v29  ;;  %v1610_v36 = vadd.f32 %v1609_v34, %v1608_v30  ;;  %v1563_v37 = vpop.f32.mrb[30].mxu0  ;;  %v1611_v38 = vpop.f32.mrb[30].mxu1  ;;  %979 = sbr.rel (%p1337_p10) target bundleno = 388 (0x184), region = 78  ;;  %v1435_v28 = vpack.c.bf16 (!%p1337_p10), %v1023_v15, %v1022_v10  ;;  %v1029_v30 = vmax.f32 (!%p1337_p10), %v997_v20, 0.0  ;;  %v1001_v32 = vld [vmem:[#allocation2 + $0xa8] sm:$0xff] (!%p1337_p10)  ;;  %v1003_v34 = vld [vmem:[#allocation2 + $0xb8] sm:$0xff] (!%p1337_p10) }
 0x171   : > { %v1564_v40 = vpop.f32.mrb[31].mxu0  ;;  %v1612_v42 = vpop.f32.mrb[31].mxu1 }
 0x172   : > { %v926_v43 = vadd.f32 %v1562_v35, %v409_v31  ;;  %v942_v44 = vadd.f32 %v1610_v36, %v425_v33  ;;  %v1565_v45 = vadd.f32 %v1564_v40, %v1563_v37  ;;  %v1613_v46 = vadd.f32 %v1612_v42, %v1611_v38  ;;  %v1002_v33 = vld [vmem:[#allocation2 + $0xb0] sm:$0xff] (!%p1337_p10)  ;;  %v1005_v40 = vld [vmem:[#allocation2 + $0xc8] sm:$0xff] (!%p1337_p10)  ;;  %1491 = vst [vmem:[%s2035_s3 + $0x28] sm:$0xff] (!%p1337_p10), %v1435_v28  }
 0x173   : > { %v992_v11 = vld [vmem:[#allocation2 + $0x60] sm:$0xff] (!%p1337_p10)  ;;  %v1030_v31 = vmax.f32 (!%p1337_p10), %v998_v25, 0.0  ;;  %v1031_v36 = vmax.f32 (!%p1337_p10), %v999_v26, 0.0  ;;  %v1032_v37 = vmax.f32 (!%p1337_p10), %v1000_v27, 0.0  ;;  %v1033_v38 = vmax.f32 (!%p1337_p10), %v1001_v32, 0.0 }
 0x174   : > { %958 = vst [vmem:[#allocation2 + $0x70] sm:$0xff] %v926_v43  ;;  %974 = vst [vmem:[#allocation2 + $0xf0] sm:$0xff] %v942_v44  ;;  %v927_v47 = vadd.f32 %v1565_v45, %v410_v39  ;;  %v943_v48 = vadd.f32 %v1613_v46, %v426_v41  ;;  %v1024_v16 = vmax.f32 (!%p1337_p10), %v992_v11, 0.0  ;;  %v1004_v39 = vld [vmem:[#allocation2 + $0xc0] sm:$0xff] (!%p1337_p10)  ;;  %v1006_v41 = vld [vmem:[#allocation2 + $0xd0] sm:$0xff] (!%p1337_p10)  ;;  %v1450_v42 = vpack.c.bf16 (!%p1337_p10), %v1029_v30, %v1028_v24 }
 0x175   : > { %v993_v12 = vld [vmem:[#allocation2 + $0x68] sm:$0xff] (!%p1337_p10)  ;;  %v1034_v43 = vmax.f32 (!%p1337_p10), %v1002_v33, 0.0  ;;  %v1035_v44 = vmax.f32 (!%p1337_p10), %v1003_v34, 0.0  ;;  %v1036_v45 = vmax.f32 (!%p1337_p10), %v1004_v39, 0.0  ;;  %v1007_v46 = vld [vmem:[#allocation2 + $0xd8] sm:$0xff] (!%p1337_p10)  ;;  %v1455_v49 = vpack.c.bf16 (!%p1337_p10), %v1031_v36, %v1030_v31 }
 0x176   : > { %959 = vst [vmem:[#allocation2 + $0x78] sm:$0xff] %v927_v47  ;;  %975 = vst [vmem:[#allocation2 + $0xf8] sm:$0xff] %v943_v48  ;;  %v1025_v17 = vmax.f32 (!%p1337_p10), %v993_v12, 0.0  ;;  %v1008_v47 = vld [vmem:[#allocation2 + $0xe0] sm:$0xff] (!%p1337_p10)  ;;  %v1009_v48 = vld [vmem:[#allocation2 + $0xe8] sm:$0xff] (!%p1337_p10)  ;;  %v1460_v50 = vpack.c.bf16 (!%p1337_p10), %v1033_v38, %v1032_v37  ;;  %v1037_v51 = vmax.f32 (!%p1337_p10), %v1005_v40, 0.0 }
 0x177   : > { %v1038_v52 = vmax.f32 %v1006_v41, 0.0  ;;  %1494 = vst [vmem:[%s2035_s3 + $0x40] sm:$0xff] %v1450_v42   ;;  %v1465_v55 = vpack.c.bf16 %v1035_v44, %v1034_v43  ;;  %v1039_v56 = vmax.f32 %v1007_v46, 0.0  ;;  %v1040_v57 = vmax.f32 %v1008_v47, 0.0  ;;  %1495 = vst [vmem:[%s2035_s3 + $0x48] sm:$0xff] %v1455_v49  }
 0x178   : > { %v1440_v29 = vpack.c.bf16 %v1025_v17, %v1024_v16  ;;  %v1041_v58 = vmax.f32 %v1009_v48, 0.0  ;;  %1496 = vst [vmem:[%s2035_s3 + $0x50] sm:$0xff] %v1460_v50   ;;  %v1470_v59 = vpack.c.bf16 %v1037_v51, %v1036_v45 }
 0x179   : > { %1497 = vst [vmem:[%s2035_s3 + $0x58] sm:$0xff] %v1465_v55   ;;  %v1475_v62 = vpack.c.bf16 %v1039_v56, %v1038_v52 }
 0x17a   : > { %1492 = vst [vmem:[%s2035_s3 + $0x30] sm:$0xff] %v1440_v29   ;;  %v1480_v63 = vpack.c.bf16 %v1041_v58, %v1040_v57  ;;  %1498 = vst [vmem:[%s2035_s3 + $0x60] sm:$0xff] %v1470_v59  }
 0x17b   : > { %v994_v13 = vld [vmem:[#allocation2 + $0x70] sm:$0xff]  ;;  %1499 = vst [vmem:[%s2035_s3 + $0x68] sm:$0xff] %v1475_v62  }
 0x17c   : > { %v1026_v22 = vmax.f32 %v994_v13, 0.0  ;;  %v1010_v53 = vld [vmem:[#allocation2 + $0xf0] sm:$0xff]  ;;  %1500 = vst [vmem:[%s2035_s3 + $0x70] sm:$0xff] %v1480_v63  }
 0x17d   : > { %v995_v18 = vld [vmem:[#allocation2 + $0x78] sm:$0xff]  ;;  %v1042_v60 = vmax.f32 %v1010_v53, 0.0 }
 0x17e   : > { %v1027_v23 = vmax.f32 %v995_v18, 0.0  ;;  %v1011_v54 = vld [vmem:[#allocation2 + $0xf8] sm:$0xff] }
 0x17f   : > { %v1043_v61 = vmax.f32 %v1011_v54, 0.0 }
 0x180   : > { %v1445_v35 = vpack.c.bf16 %v1027_v23, %v1026_v22 }
 0x181   : > { %v1485_v0 = vpack.c.bf16 %v1043_v61, %v1042_v60 }
 0x182   : > { %1493 = vst [vmem:[%s2035_s3 + $0x38] sm:$0xff] %v1445_v35  }
 0x183   : > { %1501 = vst [vmem:[%s2035_s3 + $0x78] sm:$0xff] %v1485_v0  }
 0x184 PF: > { %s13_s16 = sadd.s32 1, %s1772_s16   ;;  %s2036_s12 = smov %s1760_s13 }
 0x185   : > { %p10_p11 = scmp.ge.s32.totalorder %s13_s16, 5   ;;  %s2037_s13 = smov %s1829_s20 }
 0x186   : > { %s2038_s14 = smov %s1768_s15  ;;  %s2039_s15 = smov %s2041_s17 }
 0x187   :  { %12 = sbr.rel (!%p10_p11) target bundleno = 3 (0x3), region = 114 }

// kernel: u2net_forward.10
= control target key start
LH: loop header
LB: loop body
LE: loop exit
PB: predicated region body
PF: predicated region fallthrough
CT: control target
= control target key end

     0   :  { %s1794_s12 = smov 0   ;;  %s1796_s13 = smov 0   ;;  %s2032_s0 = inlined_call_operand.vmem [shape: bf16[256,2304], index: 0, kind: input, shape index: {}]   ;;  %s2033_s1 = inlined_call_operand.vmem [shape: bf16[2304,128], index: 1, kind: input, shape index: {}]   ;;  %s2034_s2 = inlined_call_operand.vmem [shape: f32[1,128], index: 2, kind: input, shape index: {}]   ;;  %s2035_s3 = inlined_call_operand.vmem [shape: bf16[256,128], index: 3, kind: output, shape index: {}]  }
   0x1   :  { %s1798_s14 = smov 0   ;;  %s1800_s15 = smov 0  }
   0x2   :  { %s1802_s16 = smov 0  }
   0x3 LB: > { %s22_s17 = sadd.s32 1, %s1768_s15  ;;  %p41_p1 = scmp.ne.s32.totalorder %s1760_s13, %s1756_s12  ;;  %s1772_s16 = sphi %s1802_s16, %s13_s16   ;;  %s1768_s15 = sphi %s1800_s15, %s2039_s15   ;;  %s1764_s14 = sphi %s1798_s14, %s2038_s14   ;;  %s1760_s13 = sphi %s1796_s13, %s2037_s13   ;;  %s1756_s12 = sphi %s1794_s12, %s2036_s12  }
   0x4   : > { %p23_p0 = scmp.ge.s32.totalorder %s22_s17, 9  ;;  %p42_p2 = scmp.eq.s32.totalorder %s1772_s16, 0 }
   0x5   : > { %s34_s19 = sadd.s32 1, %s1760_s13  ;;  %p1279_p5 = scmp.ge.s32.totalorder %s1772_s16, 9 }
   0x6   : > { %s2041_s17 = smov (%p23_p0, %s22_s17), 0  ;;  %p43_p3 = por %p42_p2, %p41_p1 }
   0x7   : > { %s30_s18 = ssub.s32 %s1768_s15, %s2041_s17  ;;  %141 = sbr.rel (%p1279_p5) target bundleno = 34 (0x22), region = 24 }
   0x8   : > { %p32_p4 = scmp.eq.s32.totalorder %s30_s18, 0 }
   0xa   : > { %s1829_s20 = scalar_select %p32_p4, %s1760_s13, %s34_s19  }
   0xe   : > { %144 = sbr.rel (!%p43_p3) target bundleno = 34 (0x22), region = 28  ;;  %s146_s21 = sand.u32 (%p43_p3), 1, %s1760_s13  }
   0xf   : > { %s1374_s22 = sshll.u32 (%p43_p3), %s1768_s15, 3  ;;  %s1280_s23 = sshll.u32 (%p43_p3), %s146_s21, 8 }
  0x10   : > { %s1837_s26 = scalar_lea.vmem (%p43_p3), %s2032_s0, %s1374_s22  ;;  %s1842_s27 = scalar_lea.vmem (%p43_p3), [#allocation3], %s1280_s23 }
  0x11   : > { %v244_v0 = vld [vmem:[%s1837_s26] sm:$0xff] (%p43_p3)  ;;  %v246_v1 = vld [vmem:[%s1837_s26 + $0x48] sm:$0xff] (%p43_p3)  ;;  %v248_v2 = vld [vmem:[%s1837_s26 + $0x90] sm:$0xff] (%p43_p3) }
  0x12   : > { %245 = vst [vmem:[%s1842_s27] sm:$0xff] (%p43_p3), %v244_v0  ;;  %247 = vst [vmem:[%s1842_s27 + $0x8] sm:$0xff] (%p43_p3), %v246_v1  ;;  %v250_v3 = vld [vmem:[%s1837_s26 + $0xd8] sm:$0xff] (%p43_p3)  ;;  %v252_v4 = vld [vmem:[%s1837_s26 + $0x120] sm:$0xff] (%p43_p3) }
  0x13   : > { %249 = vst [vmem:[%s1842_s27 + $0x10] sm:$0xff] (%p43_p3), %v248_v2  ;;  %v254_v5 = vld [vmem:[%s1837_s26 + $0x168] sm:$0xff] (%p43_p3)  ;;  %251 = vst [vmem:[%s1842_s27 + $0x18] sm:$0xff] (%p43_p3), %v250_v3  ;;  %v256_v6 = vld [vmem:[%s1837_s26 + $0x1b0] sm:$0xff] (%p43_p3) }
  0x14   : > { %253 = vst [vmem:[%s1842_s27 + $0x20] sm:$0xff] (%p43_p3), %v252_v4  ;;  %255 = vst [vmem:[%s1842_s27 + $0x28] sm:$0xff] (%p43_p3), %v254_v5  ;;  %v258_v7 = vld [vmem:[%s1837_s26 + $0x1f8] sm:$0xff] (%p43_p3)  ;;  %v260_v8 = vld [vmem:[%s1837_s26 + $0x240] sm:$0xff] (%p43_p3) }
  0x15   : > { %257 = vst [vmem:[%s1842_s27 + $0x30] sm:$0xff] %v256_v6  ;;  %259 = vst [vmem:[%s1842_s27 + $0x38] sm:$0xff] %v258_v7  ;;  %v262_v9 = vld [vmem:[%s1837_s26 + $0x288] sm:$0xff]  ;;  %v264_v10 = vld [vmem:[%s1837_s26 + $0x2d0] sm:$0xff] }
  0x16   : > { %261 = vst [vmem:[%s1842_s27 + $0x40] sm:$0xff] %v260_v8  ;;  %v266_v11 = vld [vmem:[%s1837_s26 + $0x318] sm:$0xff]  ;;  %263 = vst [vmem:[%s1842_s27 + $0x48] sm:$0xff] %v262_v9  ;;  %v268_v12 = vld [vmem:[%s1837_s26 + $0x360] sm:$0xff] }
  0x17   : > { %265 = vst [vmem:[%s1842_s27 + $0x50] sm:$0xff] %v264_v10  ;;  %267 = vst [vmem:[%s1842_s27 + $0x58] sm:$0xff] %v266_v11  ;;  %v270_v13 = vld [vmem:[%s1837_s26 + $0x3a8] sm:$0xff]  ;;  %v272_v14 = vld [vmem:[%s1837_s26 + $0x3f0] sm:$0xff] }
  0x18   : > { %269 = vst [vmem:[%s1842_s27 + $0x60] sm:$0xff] %v268_v12  ;;  %271 = vst [vmem:[%s1842_s27 + $0x68] sm:$0xff] %v270_v13  ;;  %v274_v15 = vld [vmem:[%s1837_s26 + $0x438] sm:$0xff]  ;;  %v276_v16 = vld [vmem:[%s1837_s26 + $0x480] sm:$0xff] }
  0x19   : > { %273 = vst [vmem:[%s1842_s27 + $0x70] sm:$0xff] %v272_v14  ;;  %v278_v17 = vld [vmem:[%s1837_s26 + $0x4c8] sm:$0xff]  ;;  %275 = vst [vmem:[%s1842_s27 + $0x78] sm:$0xff] %v274_v15  ;;  %v280_v18 = vld [vmem:[%s1837_s26 + $0x510] sm:$0xff] }
  0x1a   : > { %277 = vst [vmem:[%s1842_s27 + $0x80] sm:$0xff] %v276_v16  ;;  %279 = vst [vmem:[%s1842_s27 + $0x88] sm:$0xff] %v278_v17  ;;  %v282_v19 = vld [vmem:[%s1837_s26 + $0x558] sm:$0xff]  ;;  %v284_v20 = vld [vmem:[%s1837_s26 + $0x5a0] sm:$0xff] }
  0x1b   : > { %281 = vst [vmem:[%s1842_s27 + $0x90] sm:$0xff] %v280_v18  ;;  %283 = vst [vmem:[%s1842_s27 + $0x98] sm:$0xff] %v282_v19  ;;  %v286_v21 = vld [vmem:[%s1837_s26 + $0x5e8] sm:$0xff]  ;;  %v288_v22 = vld [vmem:[%s1837_s26 + $0x630] sm:$0xff] }
  0x1c   : > { %285 = vst [vmem:[%s1842_s27 + $0xa0] sm:$0xff] %v284_v20  ;;  %v290_v23 = vld [vmem:[%s1837_s26 + $0x678] sm:$0xff]  ;;  %287 = vst [vmem:[%s1842_s27 + $0xa8] sm:$0xff] %v286_v21  ;;  %v292_v24 = vld [vmem:[%s1837_s26 + $0x6c0] sm:$0xff] }
  0x1d   : > { %289 = vst [vmem:[%s1842_s27 + $0xb0] sm:$0xff] %v288_v22  ;;  %291 = vst [vmem:[%s1842_s27 + $0xb8] sm:$0xff] %v290_v23  ;;  %v294_v25 = vld [vmem:[%s1837_s26 + $0x708] sm:$0xff]  ;;  %v296_v26 = vld [vmem:[%s1837_s26 + $0x750] sm:$0xff] }
  0x1e   : > { %293 = vst [vmem:[%s1842_s27 + $0xc0] sm:$0xff] %v292_v24  ;;  %295 = vst [vmem:[%s1842_s27 + $0xc8] sm:$0xff] %v294_v25  ;;  %v298_v27 = vld [vmem:[%s1837_s26 + $0x798] sm:$0xff]  ;;  %v300_v28 = vld [vmem:[%s1837_s26 + $0x7e0] sm:$0xff] }
  0x1f   : > { %297 = vst [vmem:[%s1842_s27 + $0xd0] sm:$0xff] %v296_v26  ;;  %v302_v29 = vld [vmem:[%s1837_s26 + $0x828] sm:$0xff]  ;;  %299 = vst [vmem:[%s1842_s27 + $0xd8] sm:$0xff] %v298_v27  ;;  %v304_v30 = vld [vmem:[%s1837_s26 + $0x870] sm:$0xff] }
  0x20   : > { %301 = vst [vmem:[%s1842_s27 + $0xe0] sm:$0xff] %v300_v28  ;;  %303 = vst [vmem:[%s1842_s27 + $0xe8] sm:$0xff] %v302_v29  ;;  %v306_v31 = vld [vmem:[%s1837_s26 + $0x8b8] sm:$0xff] }
  0x21   : > { %305 = vst [vmem:[%s1842_s27 + $0xf0] sm:$0xff] %v304_v30  ;;  %307 = vst [vmem:[%s1842_s27 + $0xf8] sm:$0xff] %v306_v31 }
  0x22 PF: > { %p1283_p6 = scmp.ge.s32.totalorder %s1772_s16, 1  ;;  %p312_p7 = scmp.lt.s32.totalorder %s1772_s16, 10 }
  0x24   : > { %p313_p8 = pnand %p1283_p6, %p312_p7 }
  0x25   : > { %s319_s28 = sand.u32 (!%p313_p8), 1, %s1756_s12   ;;  %p1285_p9 = scmp.ne.s32.totalorder (!%p313_p8), %s1764_s14, 0 }
  0x26   : > { %316 = sbr.rel (%p313_p8) target bundleno = 388 (0x184), region = 66  ;;  %s1284_s29 = sshll.u32 (!%p313_p8), %s319_s28, 8 }
  0x27   : > { %s1908_s30 = scalar_lea.vmem (!%p313_p8), [#allocation3], %s1284_s29 }
  0x2d   : > { %354 = sbr.rel (%p1285_p9) target bundleno = 62 (0x3e), region = 74  ;;  %v1286_v32 = vld [vmem:[%s2034_s2] ss:$0 sm:$0xff] (!%p1285_p9) }
  0x2e   : > { %362 = vst [vmem:[#allocation2] sm:$0xff] (!%p1285_p9), %v1286_v32  ;;  %363 = vst [vmem:[#allocation2 + $0x8] sm:$0xff] (!%p1285_p9), %v1286_v32 }
  0x2f   : > { %364 = vst [vmem:[#allocation2 + $0x10] sm:$0xff] (!%p1285_p9), %v1286_v32  ;;  %365 = vst [vmem:[#allocation2 + $0x18] sm:$0xff] (!%p1285_p9), %v1286_v32 }
  0x30   : > { %366 = vst [vmem:[#allocation2 + $0x20] sm:$0xff] (!%p1285_p9), %v1286_v32  ;;  %367 = vst [vmem:[#allocation2 + $0x28] sm:$0xff] (!%p1285_p9), %v1286_v32 }
  0x31   : > { %368 = vst [vmem:[#allocation2 + $0x30] sm:$0xff] (!%p1285_p9), %v1286_v32  ;;  %369 = vst [vmem:[#allocation2 + $0x38] sm:$0xff] (!%p1285_p9), %v1286_v32 }
  0x32   : > { %370 = vst [vmem:[#allocation2 + $0x40] sm:$0xff] (!%p1285_p9), %v1286_v32  ;;  %371 = vst [vmem:[#allocation2 + $0x48] sm:$0xff] (!%p1285_p9), %v1286_v32 }
  0x33   : > { %372 = vst [vmem:[#allocation2 + $0x50] sm:$0xff] (!%p1285_p9), %v1286_v32  ;;  %373 = vst [vmem:[#allocation2 + $0x58] sm:$0xff] (!%p1285_p9), %v1286_v32 }
  0x34   : > { %374 = vst [vmem:[#allocation2 + $0x60] sm:$0xff] %v1286_v32  ;;  %375 = vst [vmem:[#allocation2 + $0x68] sm:$0xff] %v1286_v32 }
  0x35   : > { %376 = vst [vmem:[#allocation2 + $0x70] sm:$0xff] %v1286_v32  ;;  %377 = vst [vmem:[#allocation2 + $0x78] sm:$0xff] %v1286_v32 }
  0x36   : > { %378 = vst [vmem:[#allocation2 + $0x80] sm:$0xff] %v1286_v32  ;;  %379 = vst [vmem:[#allocation2 + $0x88] sm:$0xff] %v1286_v32 }
  0x37   : > { %380 = vst [vmem:[#allocation2 + $0x90] sm:$0xff] %v1286_v32  ;;  %381 = vst [vmem:[#allocation2 + $0x98] sm:$0xff] %v1286_v32 }
  0x38   : > { %382 = vst [vmem:[#allocation2 + $0xa0] sm:$0xff] %v1286_v32  ;;  %383 = vst [vmem:[#allocation2 + $0xa8] sm:$0xff] %v1286_v32 }
  0x39   : > { %384 = vst [vmem:[#allocation2 + $0xb0] sm:$0xff] %v1286_v32  ;;  %385 = vst [vmem:[#allocation2 + $0xb8] sm:$0xff] %v1286_v32 }
  0x3a   : > { %386 = vst [vmem:[#allocation2 + $0xc0] sm:$0xff] %v1286_v32  ;;  %387 = vst [vmem:[#allocation2 + $0xc8] sm:$0xff] %v1286_v32 }
  0x3b   : > { %388 = vst [vmem:[#allocation2 + $0xd0] sm:$0xff] %v1286_v32  ;;  %389 = vst [vmem:[#allocation2 + $0xd8] sm:$0xff] %v1286_v32 }
  0x3c   : > { %390 = vst [vmem:[#allocation2 + $0xe0] sm:$0xff] %v1286_v32  ;;  %391 = vst [vmem:[#allocation2 + $0xe8] sm:$0xff] %v1286_v32 }
  0x3d   : > { %392 = vst [vmem:[#allocation2 + $0xf0] sm:$0xff] %v1286_v32  ;;  %393 = vst [vmem:[#allocation2 + $0xf8] sm:$0xff] %v1286_v32 }
  0x3e PF: > { %s1287_s6 = sshll.u32 %s1764_s14, 8  ;;  %v1688_v33 = vld [vmem:[%s1908_s30 + $0x4] ss:$8 sps:$4 sm:$0xff]   ;;  %v1686_v51 = vld [vmem:[%s1908_s30] ss:$8 sps:$4 sm:$0xff]   ;;  %p1337_p10 = scmp.ne.s32.totalorder %s1764_s14, 8 }
  0x3f   : > { %s459_s7 = sshra.s32 %s1287_s6, 3  ;;  %v1691_v34 = vld [vmem:[%s1908_s30 + $0x84] ss:$8 sps:$4 sm:$0xff]   ;;  %783 = vmatprep.mubr.bf16.mxu0 %v1688_v33  ;;  %v1689_v52 = vld [vmem:[%s1908_s30 + $0x80] ss:$8 sps:$4 sm:$0xff]  }
  0x40   : > { %s1288_s8 = sshll.u32 %s459_s7, 2  ;;  %847 = vmatprep.mubr.bf16.mxu1 %v1691_v34  ;;  %v1692_v53 = vld [vmem:[%s1908_s30 + $0x14] ss:$8 sps:$4 sm:$0xff]   ;;  %v1696_v55 = vld [vmem:[%s1908_s30 + $0x10] ss:$8 sps:$4 sm:$0xff]   ;;  %v395_v19 = vld [vmem:[#allocation2] sm:$0xff] }
  0x41   : > { %s1920_s11 = scalar_lea.vmem %s2033_s1, %s1288_s8  ;;  %v1694_v54 = vld [vmem:[%s1908_s30 + $0x94] ss:$8 sps:$4 sm:$0xff]   ;;  %v1697_v56 = vld [vmem:[%s1908_s30 + $0x90] ss:$8 sps:$4 sm:$0xff]   ;;  %v1698_v57 = vld [vmem:[%s1908_s30 + $0x24] ss:$8 sps:$4 sm:$0xff]  }
  0x42   : > { %v1670_v35 = vld [vmem:[%s1920_s11 + $0x40] sm:$0xff]   ;;  %v1672_v37 = vld [vmem:[%s1920_s11 + $0x48] sm:$0xff]   ;;  %v1674_v39 = vld [vmem:[%s1920_s11 + $0x50] sm:$0xff]  }
  0x43   : > { %v1671_v36 = vld [vmem:[%s1920_s11] sm:$0xff]   ;;  %1502 = vmatprep.subr.bf16.mxu0 %v1670_v35  ;;  %1614 = vmatprep.subr.bf16.mxu1 %v1670_v35  ;;  %v1673_v38 = vld [vmem:[%s1920_s11 + $0x8] sm:$0xff]   ;;  %v1675_v40 = vld [vmem:[%s1920_s11 + $0x10] sm:$0xff]  }
  0x44   : > { %1503 = vmatpush3.bf16.msra.mxu0 %v1671_v36  ;;  %1622 = vmatpush3.bf16.msra.mxu1 %v1671_v36  ;;  %v1676_v41 = vld [vmem:[%s1920_s11 + $0x58] sm:$0xff]   ;;  %v1678_v43 = vld [vmem:[%s1920_s11 + $0x60] sm:$0xff]   ;;  %v1680_v45 = vld [vmem:[%s1920_s11 + $0x68] sm:$0xff]  }
  0x45   : > { %1504 = vmatprep.subr.bf16.mxu0 %v1672_v37  ;;  %1615 = vmatprep.subr.bf16.mxu1 %v1672_v37  ;;  %v1677_v42 = vld [vmem:[%s1920_s11 + $0x18] sm:$0xff]   ;;  %v1679_v44 = vld [vmem:[%s1920_s11 + $0x20] sm:$0xff]   ;;  %v1681_v46 = vld [vmem:[%s1920_s11 + $0x28] sm:$0xff]  }
  0x46   : > { %v1682_v47 = vld [vmem:[%s1920_s11 + $0x70] sm:$0xff]   ;;  %v1684_v49 = vld [vmem:[%s1920_s11 + $0x78] sm:$0xff]   ;;  %v1700_v58 = vld [vmem:[%s1908_s30 + $0xa4] ss:$8 sps:$4 sm:$0xff]  }
  0x47   : > { %v1683_v48 = vld [vmem:[%s1920_s11 + $0x30] sm:$0xff]   ;;  %v1685_v50 = vld [vmem:[%s1920_s11 + $0x38] sm:$0xff]   ;;  %v1702_v59 = vld [vmem:[%s1908_s30 + $0x20] ss:$8 sps:$4 sm:$0xff]  }
  0x48   : > { %1505 = vmatpush3.bf16.msra.mxu0 %v1673_v38  ;;  %1623 = vmatpush3.bf16.msra.mxu1 %v1673_v38  ;;  %v1703_v60 = vld [vmem:[%s1908_s30 + $0xa0] ss:$8 sps:$4 sm:$0xff]   ;;  %v1704_v61 = vld [vmem:[%s1908_s30 + $0x34] ss:$8 sps:$4 sm:$0xff]   ;;  %v1708_v63 = vld [vmem:[%s1908_s30 + $0x30] ss:$8 sps:$4 sm:$0xff]  }
  0x49   : > { %1506 = vmatprep.subr.bf16.mxu0 %v1674_v39  ;;  %1616 = vmatprep.subr.bf16.mxu1 %v1674_v39  ;;  %v1706_v62 = vld [vmem:[%s1908_s30 + $0xb4] ss:$8 sps:$4 sm:$0xff]   ;;  %v1709_v0 = vld [vmem:[%s1908_s30 + $0xb0] ss:$8 sps:$4 sm:$0xff]   ;;  %v1710_v1 = vld [vmem:[%s1908_s30 + $0x44] ss:$8 sps:$4 sm:$0xff]  }
  0x4a   : > { %v1712_v2 = vld [vmem:[%s1908_s30 + $0xc4] ss:$8 sps:$4 sm:$0xff]   ;;  %v1714_v3 = vld [vmem:[%s1908_s30 + $0x40] ss:$8 sps:$4 sm:$0xff]   ;;  %v1716_v5 = vld [vmem:[%s1908_s30 + $0x54] ss:$8 sps:$4 sm:$0xff]  }
  0x4b   : > { %v1715_v4 = vld [vmem:[%s1908_s30 + $0xc0] ss:$8 sps:$4 sm:$0xff]   ;;  %v1718_v6 = vld [vmem:[%s1908_s30 + $0xd4] ss:$8 sps:$4 sm:$0xff]   ;;  %v1720_v7 = vld [vmem:[%s1908_s30 + $0x50] ss:$8 sps:$4 sm:$0xff]  }
  0x4c   : > { %1507 = vmatpush3.bf16.msra.mxu0 %v1675_v40  ;;  %1624 = vmatpush3.bf16.msra.mxu1 %v1675_v40  ;;  %v1721_v8 = vld [vmem:[%s1908_s30 + $0xd0] ss:$8 sps:$4 sm:$0xff]   ;;  %v1722_v9 = vld [vmem:[%s1908_s30 + $0x64] ss:$8 sps:$4 sm:$0xff]   ;;  %v1726_v11 = vld [vmem:[%s1908_s30 + $0x60] ss:$8 sps:$4 sm:$0xff]  }
  0x4d   : > { %1508 = vmatprep.subr.bf16.mxu0 %v1676_v41  ;;  %1617 = vmatprep.subr.bf16.mxu1 %v1676_v41  ;;  %v1724_v10 = vld [vmem:[%s1908_s30 + $0xe4] ss:$8 sps:$4 sm:$0xff]   ;;  %v1727_v12 = vld [vmem:[%s1908_s30 + $0xe0] ss:$8 sps:$4 sm:$0xff]   ;;  %v1728_v13 = vld [vmem:[%s1908_s30 + $0x74] ss:$8 sps:$4 sm:$0xff]  }
  0x4e   : > { %v1730_v14 = vld [vmem:[%s1908_s30 + $0xf4] ss:$8 sps:$4 sm:$0xff]   ;;  %v1732_v15 = vld [vmem:[%s1908_s30 + $0x70] ss:$8 sps:$4 sm:$0xff]   ;;  %v411_v21 = vld [vmem:[#allocation2 + $0x80] sm:$0xff] }
  0x4f   : > { %v1733_v16 = vld [vmem:[%s1908_s30 + $0xf0] ss:$8 sps:$4 sm:$0xff]   ;;  %v396_v27 = vld [vmem:[#allocation2 + $0x8] sm:$0xff] }
  0x50   : > { %1509 = vmatpush3.bf16.msra.mxu0 %v1677_v42  ;;  %1625 = vmatpush3.bf16.msra.mxu1 %v1677_v42  ;;  %v412_v29 = vld [vmem:[#allocation2 + $0x88] sm:$0xff]  ;;  %v397_v39 = vld [vmem:[#allocation2 + $0x10] sm:$0xff] }
  0x51   : > { %1510 = vmatprep.subr.bf16.mxu0 %v1678_v43  ;;  %1618 = vmatprep.subr.bf16.mxu1 %v1678_v43  ;;  %v413_v41 = vld [vmem:[#allocation2 + $0x90] sm:$0xff] }
  0x54   : > { %1511 = vmatpush3.bf16.msra.mxu0 %v1679_v44  ;;  %1626 = vmatpush3.bf16.msra.mxu1 %v1679_v44 }
  0x55   : > { %1512 = vmatprep.subr.bf16.mxu0 %v1680_v45  ;;  %1619 = vmatprep.subr.bf16.mxu1 %v1680_v45 }
  0x58   : > { %1513 = vmatpush3.bf16.msra.mxu0 %v1681_v46  ;;  %1627 = vmatpush3.bf16.msra.mxu1 %v1681_v46 }
  0x59   : > { %1514 = vmatprep.subr.bf16.mxu0 %v1682_v47  ;;  %1620 = vmatprep.subr.bf16.mxu1 %v1682_v47  ;;  %v398_v47 = vld [vmem:[#allocation2 + $0x18] sm:$0xff] }
  0x5c   : > { %1515 = vmatpush3.bf16.msra.mxu0 %v1683_v48  ;;  %1628 = vmatpush3.bf16.msra.mxu1 %v1683_v48 }
  0x5d   : > { %1516 = vmatprep.subr.bf16.mxu0 %v1684_v49  ;;  %1621 = vmatprep.subr.bf16.mxu1 %v1684_v49  ;;  %v414_v49 = vld [vmem:[#allocation2 + $0x98] sm:$0xff] }
  0x60   : > { %1517 = vmatpush3.bf16.msra.mxu0 %v1685_v50  ;;  %1629 = vmatpush3.bf16.msra.mxu1 %v1685_v50 }
  0x63   : > { %784 = vmatmul.mubr.bf16.vlgmr.msra.gmra.mrb[0].mxu0 %v1686_v51  ;;  %848 = vmatmul.mubr.bf16.vlgmr.msra.gmra.mrb[0].mxu1 %v1689_v52 }
  0x64   : > { %791 = vmatprep.mubr.bf16.mxu0 %v1692_v53  ;;  %855 = vmatprep.mubr.bf16.mxu1 %v1694_v54 }
  0x6b   : > { %792 = vmatmul.mubr.bf16.gmra.mrb[4].mxu0 %v1696_v55  ;;  %856 = vmatmul.mubr.bf16.gmra.mrb[4].mxu1 %v1697_v56 }
  0x6c   : > { %799 = vmatprep.mubr.bf16.mxu0 %v1698_v57  ;;  %863 = vmatprep.mubr.bf16.mxu1 %v1700_v58 }
  0x73   : > { %800 = vmatmul.mubr.bf16.gmra.mrb[8].mxu0 %v1702_v59  ;;  %864 = vmatmul.mubr.bf16.gmra.mrb[8].mxu1 %v1703_v60  ;;  %v399_v59 = vld [vmem:[#allocation2 + $0x20] sm:$0xff] }
  0x74   : > { %807 = vmatprep.mubr.bf16.mxu0 %v1704_v61  ;;  %871 = vmatprep.mubr.bf16.mxu1 %v1706_v62  ;;  %v415_v61 = vld [vmem:[#allocation2 + $0xa0] sm:$0xff] }
  0x7b   : > { %808 = vmatmul.mubr.bf16.gmra.mrb[12].mxu0 %v1708_v63  ;;  %872 = vmatmul.mubr.bf16.gmra.mrb[12].mxu1 %v1709_v0 }
  0x7c   : > { %815 = vmatprep.mubr.bf16.mxu0 %v1710_v1  ;;  %879 = vmatprep.mubr.bf16.mxu1 %v1712_v2 }
  0x83   : > { %816 = vmatmul.mubr.bf16.gmra.mrb[16].mxu0 %v1714_v3  ;;  %880 = vmatmul.mubr.bf16.gmra.mrb[16].mxu1 %v1715_v4  ;;  %v400_v3 = vld [vmem:[#allocation2 + $0x28] sm:$0xff] }
  0x84   : > { %823 = vmatprep.mubr.bf16.mxu0 %v1716_v5  ;;  %887 = vmatprep.mubr.bf16.mxu1 %v1718_v6  ;;  %v416_v5 = vld [vmem:[#allocation2 + $0xa8] sm:$0xff] }
  0x8b   : > { %824 = vmatmul.mubr.bf16.gmra.mrb[20].mxu0 %v1720_v7  ;;  %888 = vmatmul.mubr.bf16.gmra.mrb[20].mxu1 %v1721_v8 }
  0x8c   : > { %831 = vmatprep.mubr.bf16.mxu0 %v1722_v9  ;;  %895 = vmatprep.mubr.bf16.mxu1 %v1724_v10 }
  0x93   : > { %832 = vmatmul.mubr.bf16.gmra.mrb[24].mxu0 %v1726_v11  ;;  %896 = vmatmul.mubr.bf16.gmra.mrb[24].mxu1 %v1727_v12 }
  0x94   : > { %839 = vmatprep.mubr.bf16.mxu0 %v1728_v13  ;;  %903 = vmatprep.mubr.bf16.mxu1 %v1730_v14 }
  0x9b   : > { %840 = vmatmul.mubr.bf16.gmra.mrb[28].mxu0 %v1732_v15  ;;  %904 = vmatmul.mubr.bf16.gmra.mrb[28].mxu1 %v1733_v16  ;;  %v401_v15 = vld [vmem:[#allocation2 + $0x30] sm:$0xff] }
 0x136   : > { %v1518_v17 = vpop.f32.mrb[0].mxu0  ;;  %v1566_v18 = vpop.f32.mrb[0].mxu1 }
 0x137   : > { %v1519_v20 = vpop.f32.mrb[1].mxu0  ;;  %v1567_v22 = vpop.f32.mrb[1].mxu1 }
 0x138   : > { %v1520_v23 = vadd.f32 %v1519_v20, %v1518_v17  ;;  %v1568_v24 = vadd.f32 %v1567_v22, %v1566_v18  ;;  %v1521_v25 = vpop.f32.mrb[2].mxu0  ;;  %v1569_v26 = vpop.f32.mrb[2].mxu1  ;;  %v417_v17 = vld [vmem:[#allocation2 + $0xb0] sm:$0xff] }
 0x139   : > { %v1522_v28 = vpop.f32.mrb[3].mxu0  ;;  %v1570_v30 = vpop.f32.mrb[3].mxu1 }
 0x13a   : > { %v912_v31 = vadd.f32 %v1520_v23, %v395_v19  ;;  %v928_v32 = vadd.f32 %v1568_v24, %v411_v21  ;;  %v1523_v33 = vadd.f32 %v1522_v28, %v1521_v25  ;;  %v1571_v34 = vadd.f32 %v1570_v30, %v1569_v26  ;;  %v402_v23 = vld [vmem:[#allocation2 + $0x38] sm:$0xff] }
 0x13b   : > { %v418_v25 = vld [vmem:[#allocation2 + $0xb8] sm:$0xff] }
 0x13c   : > { %944 = vst [vmem:[#allocation2] sm:$0xff] %v912_v31  ;;  %960 = vst [vmem:[#allocation2 + $0x80] sm:$0xff] %v928_v32  ;;  %v913_v35 = vadd.f32 %v1523_v33, %v396_v27  ;;  %v929_v36 = vadd.f32 %v1571_v34, %v412_v29 }
 0x13e   : > { %945 = vst [vmem:[#allocation2 + $0x8] sm:$0xff] %v913_v35  ;;  %961 = vst [vmem:[#allocation2 + $0x88] sm:$0xff] %v929_v36  ;;  %v1524_v37 = vpop.f32.mrb[4].mxu0  ;;  %v1572_v38 = vpop.f32.mrb[4].mxu1  ;;  %v403_v35 = vld [vmem:[#allocation2 + $0x40] sm:$0xff] }
 0x13f   : > { %v1525_v40 = vpop.f32.mrb[5].mxu0  ;;  %v1573_v42 = vpop.f32.mrb[5].mxu1 }
 0x140   : > { %v1526_v43 = vadd.f32 %v1525_v40, %v1524_v37  ;;  %v1574_v44 = vadd.f32 %v1573_v42, %v1572_v38  ;;  %v1527_v45 = vpop.f32.mrb[6].mxu0  ;;  %v1575_v46 = vpop.f32.mrb[6].mxu1  ;;  %v419_v37 = vld [vmem:[#allocation2 + $0xc0] sm:$0xff] }
 0x141   : > { %v1528_v48 = vpop.f32.mrb[7].mxu0  ;;  %v1576_v50 = vpop.f32.mrb[7].mxu1 }
 0x142   : > { %v914_v51 = vadd.f32 %v1526_v43, %v397_v39  ;;  %v930_v52 = vadd.f32 %v1574_v44, %v413_v41  ;;  %v1529_v53 = vadd.f32 %v1528_v48, %v1527_v45  ;;  %v1577_v54 = vadd.f32 %v1576_v50, %v1575_v46  ;;  %v404_v43 = vld [vmem:[#allocation2 + $0x48] sm:$0xff] }
 0x143   : > { %v420_v45 = vld [vmem:[#allocation2 + $0xc8] sm:$0xff] }
 0x144   : > { %946 = vst [vmem:[#allocation2 + $0x10] sm:$0xff] %v914_v51  ;;  %962 = vst [vmem:[#allocation2 + $0x90] sm:$0xff] %v930_v52  ;;  %v915_v55 = vadd.f32 %v1529_v53, %v398_v47  ;;  %v931_v56 = vadd.f32 %v1577_v54, %v414_v49 }
 0x146   : > { %947 = vst [vmem:[#allocation2 + $0x18] sm:$0xff] %v915_v55  ;;  %963 = vst [vmem:[#allocation2 + $0x98] sm:$0xff] %v931_v56  ;;  %v1530_v57 = vpop.f32.mrb[8].mxu0  ;;  %v1578_v58 = vpop.f32.mrb[8].mxu1  ;;  %v405_v55 = vld [vmem:[#allocation2 + $0x50] sm:$0xff] }
 0x147   : > { %v1531_v60 = vpop.f32.mrb[9].mxu0  ;;  %v1579_v62 = vpop.f32.mrb[9].mxu1 }
 0x148   : > { %v1532_v63 = vadd.f32 %v1531_v60, %v1530_v57  ;;  %v1580_v0 = vadd.f32 %v1579_v62, %v1578_v58  ;;  %v1533_v1 = vpop.f32.mrb[10].mxu0  ;;  %v1581_v2 = vpop.f32.mrb[10].mxu1  ;;  %v421_v57 = vld [vmem:[#allocation2 + $0xd0] sm:$0xff] }
 0x149   : > { %v1534_v4 = vpop.f32.mrb[11].mxu0  ;;  %v1582_v6 = vpop.f32.mrb[11].mxu1 }
 0x14a   : > { %v916_v7 = vadd.f32 %v1532_v63, %v399_v59  ;;  %v932_v8 = vadd.f32 %v1580_v0, %v415_v61  ;;  %v1535_v9 = vadd.f32 %v1534_v4, %v1533_v1  ;;  %v1583_v10 = vadd.f32 %v1582_v6, %v1581_v2  ;;  %v406_v63 = vld [vmem:[#allocation2 + $0x58] sm:$0xff] }
 0x14b   : > { %v422_v1 = vld [vmem:[#allocation2 + $0xd8] sm:$0xff] }
 0x14c   : > { %948 = vst [vmem:[#allocation2 + $0x20] sm:$0xff] %v916_v7  ;;  %964 = vst [vmem:[#allocation2 + $0xa0] sm:$0xff] %v932_v8  ;;  %v917_v11 = vadd.f32 %v1535_v9, %v400_v3  ;;  %v933_v12 = vadd.f32 %v1583_v10, %v416_v5 }
 0x14e   : > { %949 = vst [vmem:[#allocation2 + $0x28] sm:$0xff] %v917_v11  ;;  %965 = vst [vmem:[#allocation2 + $0xa8] sm:$0xff] %v933_v12  ;;  %v1536_v13 = vpop.f32.mrb[12].mxu0  ;;  %v1584_v14 = vpop.f32.mrb[12].mxu1  ;;  %v407_v11 = vld [vmem:[#allocation2 + $0x60] sm:$0xff] }
 0x14f   : > { %v1537_v16 = vpop.f32.mrb[13].mxu0  ;;  %v1585_v18 = vpop.f32.mrb[13].mxu1 }
 0x150   : > { %v1538_v19 = vadd.f32 %v1537_v16, %v1536_v13  ;;  %v1586_v20 = vadd.f32 %v1585_v18, %v1584_v14  ;;  %v1539_v21 = vpop.f32.mrb[14].mxu0  ;;  %v1587_v22 = vpop.f32.mrb[14].mxu1  ;;  %v423_v13 = vld [vmem:[#allocation2 + $0xe0] sm:$0xff] }
 0x151   : > { %v1540_v24 = vpop.f32.mrb[15].mxu0  ;;  %v1588_v26 = vpop.f32.mrb[15].mxu1 }
 0x152   : > { %v918_v27 = vadd.f32 %v1538_v19, %v401_v15  ;;  %v934_v28 = vadd.f32 %v1586_v20, %v417_v17  ;;  %v1541_v29 = vadd.f32 %v1540_v24, %v1539_v21  ;;  %v1589_v30 = vadd.f32 %v1588_v26, %v1587_v22  ;;  %v408_v19 = vld [vmem:[#allocation2 + $0x68] sm:$0xff] }
 0x153   : > { %v424_v21 = vld [vmem:[#allocation2 + $0xe8] sm:$0xff] }
 0x154   : > { %950 = vst [vmem:[#allocation2 + $0x30] sm:$0xff] %v918_v27  ;;  %966 = vst [vmem:[#allocation2 + $0xb0] sm:$0xff] %v934_v28  ;;  %v919_v31 = vadd.f32 %v1541_v29, %v402_v23  ;;  %v935_v32 = vadd.f32 %v1589_v30, %v418_v25 }
 0x156   : > { %951 = vst [vmem:[#allocation2 + $0x38] sm:$0xff] %v919_v31  ;;  %967 = vst [vmem:[#allocation2 + $0xb8] sm:$0xff] %v935_v32  ;;  %v1542_v33 = vpop.f32.mrb[16].mxu0  ;;  %v1590_v34 = vpop.f32.mrb[16].mxu1  ;;  %v409_v31 = vld [vmem:[#allocation2 + $0x70] sm:$0xff] }
 0x157   : > { %v1543_v36 = vpop.f32.mrb[17].mxu0  ;;  %v1591_v38 = vpop.f32.mrb[17].mxu1 }
 0x158   : > { %v1544_v39 = vadd.f32 %v1543_v36, %v1542_v33  ;;  %v1592_v40 = vadd.f32 %v1591_v38, %v1590_v34  ;;  %v1545_v41 = vpop.f32.mrb[18].mxu0  ;;  %v1593_v42 = vpop.f32.mrb[18].mxu1  ;;  %v425_v33 = vld [vmem:[#allocation2 + $0xf0] sm:$0xff] }
 0x159   : > { %v1546_v44 = vpop.f32.mrb[19].mxu0  ;;  %v1594_v46 = vpop.f32.mrb[19].mxu1 }
 0x15a   : > { %v920_v47 = vadd.f32 %v1544_v39, %v403_v35  ;;  %v936_v48 = vadd.f32 %v1592_v40, %v419_v37  ;;  %v1547_v49 = vadd.f32 %v1546_v44, %v1545_v41  ;;  %v1595_v50 = vadd.f32 %v1594_v46, %v1593_v42  ;;  %v410_v39 = vld [vmem:[#allocation2 + $0x78] sm:$0xff] }
 0x15b   : > { %v426_v41 = vld [vmem:[#allocation2 + $0xf8] sm:$0xff] }
 0x15c   : > { %952 = vst [vmem:[#allocation2 + $0x40] sm:$0xff] %v920_v47  ;;  %968 = vst [vmem:[#allocation2 + $0xc0] sm:$0xff] %v936_v48  ;;  %v921_v51 = vadd.f32 %v1547_v49, %v404_v43  ;;  %v937_v52 = vadd.f32 %v1595_v50, %v420_v45  ;;  %v980_v49 = vld [vmem:[#allocation2] sm:$0xff] (!%p1337_p10)  ;;  %v981_v50 = vld [vmem:[#allocation2 + $0x8] sm:$0xff] (!%p1337_p10) }
 0x15e   : > { %953 = vst [vmem:[#allocation2 + $0x48] sm:$0xff] %v921_v51  ;;  %969 = vst [vmem:[#allocation2 + $0xc8] sm:$0xff] %v937_v52  ;;  %v1548_v53 = vpop.f32.mrb[20].mxu0  ;;  %v1596_v54 = vpop.f32.mrb[20].mxu1  ;;  %v982_v51 = vld [vmem:[#allocation2 + $0x10] sm:$0xff] (!%p1337_p10)  ;;  %v1012_v52 = vmax.f32 (!%p1337_p10), %v980_v49, 0.0 }
 0x15f   : > { %v1549_v56 = vpop.f32.mrb[21].mxu0  ;;  %v1597_v58 = vpop.f32.mrb[21].mxu1 }
 0x160   : > { %v1550_v59 = vadd.f32 %v1549_v56, %v1548_v53  ;;  %v1598_v60 = vadd.f32 %v1597_v58, %v1596_v54  ;;  %v1551_v61 = vpop.f32.mrb[22].mxu0  ;;  %v1599_v62 = vpop.f32.mrb[22].mxu1  ;;  %v1013_v53 = vmax.f32 (!%p1337_p10), %v981_v50, 0.0  ;;  %v983_v54 = vld [vmem:[#allocation2 + $0x18] sm:$0xff] (!%p1337_p10)  ;;  %v984_v56 = vld [vmem:[#allocation2 + $0x20] sm:$0xff] (!%p1337_p10) }
 0x161   : > { %v1552_v0 = vpop.f32.mrb[23].mxu0  ;;  %v1600_v2 = vpop.f32.mrb[23].mxu1  ;;  %v1015_v58 = vmax.f32 (!%p1337_p10), %v983_v54, 0.0 }
 0x162   : > { %v922_v3 = vadd.f32 %v1550_v59, %v405_v55  ;;  %v938_v4 = vadd.f32 %v1598_v60, %v421_v57  ;;  %v1553_v5 = vadd.f32 %v1552_v0, %v1551_v61  ;;  %v1601_v6 = vadd.f32 %v1600_v2, %v1599_v62  ;;  %v985_v57 = vld [vmem:[#allocation2 + $0x28] sm:$0xff] (!%p1337_p10)  ;;  %v986_v61 = vld [vmem:[#allocation2 + $0x30] sm:$0xff] (!%p1337_p10)  ;;  %v987_v62 = vld [vmem:[#allocation2 + $0x38] sm:$0xff] (!%p1337_p10) }
 0x163   : > { %v1014_v55 = vmax.f32 (!%p1337_p10), %v982_v51, 0.0  ;;  %v1016_v59 = vmax.f32 (!%p1337_p10), %v984_v56, 0.0  ;;  %v1017_v60 = vmax.f32 (!%p1337_p10), %v985_v57, 0.0  ;;  %v1410_v0 = vpack.c.bf16 (!%p1337_p10), %v1013_v53, %v1012_v52 }
 0x164   : > { %954 = vst [vmem:[#allocation2 + $0x50] sm:$0xff] %v922_v3  ;;  %970 = vst [vmem:[#allocation2 + $0xd0] sm:$0xff] %v938_v4  ;;  %v923_v7 = vadd.f32 %v1553_v5, %v406_v63  ;;  %v939_v8 = vadd.f32 %v1601_v6, %v422_v1  ;;  %v988_v63 = vld [vmem:[#allocation2 + $0x40] sm:$0xff] (!%p1337_p10)  ;;  %v1018_v1 = vmax.f32 (!%p1337_p10), %v986_v61, 0.0  ;;  %v1019_v2 = vmax.f32 (!%p1337_p10), %v987_v62, 0.0 }
 0x165   : > { %v989_v3 = vld [vmem:[#allocation2 + $0x48] sm:$0xff] (!%p1337_p10)  ;;  %v1020_v4 = vmax.f32 (!%p1337_p10), %v988_v63, 0.0  ;;  %1411 = vst [vmem:[%s2035_s3] sm:$0xff] (!%p1337_p10), %v1410_v0  }
 0x166   : > { %955 = vst [vmem:[#allocation2 + $0x58] sm:$0xff] %v923_v7  ;;  %971 = vst [vmem:[#allocation2 + $0xd8] sm:$0xff] %v939_v8  ;;  %v1554_v9 = vpop.f32.mrb[24].mxu0  ;;  %v1602_v10 = vpop.f32.mrb[24].mxu1  ;;  %v1415_v7 = vpack.c.bf16 (!%p1337_p10), %v1015_v58, %v1014_v55  ;;  %v1420_v8 = vpack.c.bf16 (!%p1337_p10), %v1017_v60, %v1016_v59 }
 0x167   : > { %v1555_v12 = vpop.f32.mrb[25].mxu0  ;;  %v1603_v14 = vpop.f32.mrb[25].mxu1 }
 0x168   : > { %v1556_v15 = vadd.f32 %v1555_v12, %v1554_v9  ;;  %v1604_v16 = vadd.f32 %v1603_v14, %v1602_v10  ;;  %v1557_v17 = vpop.f32.mrb[26].mxu0  ;;  %v1605_v18 = vpop.f32.mrb[26].mxu1  ;;  %v1021_v9 = vmax.f32 (!%p1337_p10), %v989_v3, 0.0  ;;  %v1425_v14 = vpack.c.bf16 (!%p1337_p10), %v1019_v2, %v1018_v1  ;;  %1487 = vst [vmem:[%s2035_s3 + $0x8] sm:$0xff] (!%p1337_p10), %v1415_v7   ;;  %1488 = vst [vmem:[%s2035_s3 + $0x10] sm:$0xff] (!%p1337_p10), %v1420_v8  }
 0x169   : > { %v1558_v20 = vpop.f32.mrb[27].mxu0  ;;  %v1606_v22 = vpop.f32.mrb[27].mxu1 }
 0x16a   : > { %v924_v23 = vadd.f32 %v1556_v15, %v407_v11  ;;  %v940_v24 = vadd.f32 %v1604_v16, %v423_v13  ;;  %v1559_v25 = vadd.f32 %v1558_v20, %v1557_v17  ;;  %v1607_v26 = vadd.f32 %v1606_v22, %v1605_v18  ;;  %v997_v20 = vld [vmem:[#allocation2 + $0x88] sm:$0xff] (!%p1337_p10)  ;;  %1489 = vst [vmem:[%s2035_s3 + $0x18] sm:$0xff] (!%p1337_p10), %v1425_v14  }
 0x16b   : > { %v990_v5 = vld [vmem:[#allocation2 + $0x50] sm:$0xff] (!%p1337_p10) }
 0x16c   : > { %956 = vst [vmem:[#allocation2 + $0x60] sm:$0xff] %v924_v23  ;;  %972 = vst [vmem:[#allocation2 + $0xe0] sm:$0xff] %v940_v24  ;;  %v925_v27 = vadd.f32 %v1559_v25, %v408_v19  ;;  %v941_v28 = vadd.f32 %v1607_v26, %v424_v21  ;;  %v1022_v10 = vmax.f32 (!%p1337_p10), %v990_v5, 0.0  ;;  %v996_v19 = vld [vmem:[#allocation2 + $0x80] sm:$0xff] (!%p1337_p10)  ;;  %v1430_v21 = vpack.c.bf16 (!%p1337_p10), %v1021_v9, %v1020_v4  ;;  %v998_v25 = vld [vmem:[#allocation2 + $0x90] sm:$0xff] (!%p1337_p10) }
 0x16d   : > { %v991_v6 = vld [vmem:[#allocation2 + $0x58] sm:$0xff] (!%p1337_p10)  ;;  %v1028_v24 = vmax.f32 (!%p1337_p10), %v996_v19, 0.0 }
 0x16e   : > { %957 = vst [vmem:[#allocation2 + $0x68] sm:$0xff] %v925_v27  ;;  %973 = vst [vmem:[#allocation2 + $0xe8] sm:$0xff] %v941_v28  ;;  %v1560_v29 = vpop.f32.mrb[28].mxu0  ;;  %v1608_v30 = vpop.f32.mrb[28].mxu1  ;;  %v1023_v15 = vmax.f32 (!%p1337_p10), %v991_v6, 0.0  ;;  %v999_v26 = vld [vmem:[#allocation2 + $0x98] sm:$0xff] (!%p1337_p10) }
 0x16f   : > { %v1561_v32 = vpop.f32.mrb[29].mxu0  ;;  %v1609_v34 = vpop.f32.mrb[29].mxu1  ;;  %v1000_v27 = vld [vmem:[#allocation2 + $0xa0] sm:$0xff] (!%p1337_p10)  ;;  %1490 = vst [vmem:[%s2035_s3 + $0x20] sm:$0xff] (!%p1337_p10), %v1430_v21  }
 0x170   : > { %v1562_v35 = vadd.f32 %v1561_v32, %v1560_v29  ;;  %v1610_v36 = vadd.f32 %v1609_v34, %v1608_v30  ;;  %v1563_v37 = vpop.f32.mrb[30].mxu0  ;;  %v1611_v38 = vpop.f32.mrb[30].mxu1  ;;  %979 = sbr.rel (%p1337_p10) target bundleno = 388 (0x184), region = 78  ;;  %v1435_v28 = vpack.c.bf16 (!%p1337_p10), %v1023_v15, %v1022_v10  ;;  %v1029_v30 = vmax.f32 (!%p1337_p10), %v997_v20, 0.0  ;;  %v1001_v32 = vld [vmem:[#allocation2 + $0xa8] sm:$0xff] (!%p1337_p10)  ;;  %v1003_v34 = vld [vmem:[#allocation2 + $0xb8] sm:$0xff] (!%p1337_p10) }
 0x171   : > { %v1564_v40 = vpop.f32.mrb[31].mxu0  ;;  %v1612_v42 = vpop.f32.mrb[31].mxu1 }
 0x172   : > { %v926_v43 = vadd.f32 %v1562_v35, %v409_v31  ;;  %v942_v44 = vadd.f32 %v1610_v36, %v425_v33  ;;  %v1565_v45 = vadd.f32 %v1564_v40, %v1563_v37  ;;  %v1613_v46 = vadd.f32 %v1612_v42, %v1611_v38  ;;  %v1002_v33 = vld [vmem:[#allocation2 + $0xb0] sm:$0xff] (!%p1337_p10)  ;;  %v1005_v40 = vld [vmem:[#allocation2 + $0xc8] sm:$0xff] (!%p1337_p10)  ;;  %1491 = vst [vmem:[%s2035_s3 + $0x28] sm:$0xff] (!%p1337_p10), %v1435_v28  }
 0x173   : > { %v992_v11 = vld [vmem:[#allocation2 + $0x60] sm:$0xff] (!%p1337_p10)  ;;  %v1030_v31 = vmax.f32 (!%p1337_p10), %v998_v25, 0.0  ;;  %v1031_v36 = vmax.f32 (!%p1337_p10), %v999_v26, 0.0  ;;  %v1032_v37 = vmax.f32 (!%p1337_p10), %v1000_v27, 0.0  ;;  %v1033_v38 = vmax.f32 (!%p1337_p10), %v1001_v32, 0.0 }
 0x174   : > { %958 = vst [vmem:[#allocation2 + $0x70] sm:$0xff] %v926_v43  ;;  %974 = vst [vmem:[#allocation2 + $0xf0] sm:$0xff] %v942_v44  ;;  %v927_v47 = vadd.f32 %v1565_v45, %v410_v39  ;;  %v943_v48 = vadd.f32 %v1613_v46, %v426_v41  ;;  %v1024_v16 = vmax.f32 (!%p1337_p10), %v992_v11, 0.0  ;;  %v1004_v39 = vld [vmem:[#allocation2 + $0xc0] sm:$0xff] (!%p1337_p10)  ;;  %v1006_v41 = vld [vmem:[#allocation2 + $0xd0] sm:$0xff] (!%p1337_p10)  ;;  %v1450_v42 = vpack.c.bf16 (!%p1337_p10), %v1029_v30, %v1028_v24 }
 0x175   : > { %v993_v12 = vld [vmem:[#allocation2 + $0x68] sm:$0xff] (!%p1337_p10)  ;;  %v1034_v43 = vmax.f32 (!%p1337_p10), %v1002_v33, 0.0  ;;  %v1035_v44 = vmax.f32 (!%p1337_p10), %v1003_v34, 0.0  ;;  %v1036_v45 = vmax.f32 (!%p1337_p10), %v1004_v39, 0.0  ;;  %v1007_v46 = vld [vmem:[#allocation2 + $0xd8] sm:$0xff] (!%p1337_p10)  ;;  %v1455_v49 = vpack.c.bf16 (!%p1337_p10), %v1031_v36, %v1030_v31 }
 0x176   : > { %959 = vst [vmem:[#allocation2 + $0x78] sm:$0xff] %v927_v47  ;;  %975 = vst [vmem:[#allocation2 + $0xf8] sm:$0xff] %v943_v48  ;;  %v1025_v17 = vmax.f32 (!%p1337_p10), %v993_v12, 0.0  ;;  %v1008_v47 = vld [vmem:[#allocation2 + $0xe0] sm:$0xff] (!%p1337_p10)  ;;  %v1009_v48 = vld [vmem:[#allocation2 + $0xe8] sm:$0xff] (!%p1337_p10)  ;;  %v1460_v50 = vpack.c.bf16 (!%p1337_p10), %v1033_v38, %v1032_v37  ;;  %v1037_v51 = vmax.f32 (!%p1337_p10), %v1005_v40, 0.0 }
 0x177   : > { %v1038_v52 = vmax.f32 %v1006_v41, 0.0  ;;  %1494 = vst [vmem:[%s2035_s3 + $0x40] sm:$0xff] %v1450_v42   ;;  %v1465_v55 = vpack.c.bf16 %v1035_v44, %v1034_v43  ;;  %v1039_v56 = vmax.f32 %v1007_v46, 0.0  ;;  %v1040_v57 = vmax.f32 %v1008_v47, 0.0  ;;  %1495 = vst [vmem:[%s2035_s3 + $0x48] sm:$0xff] %v1455_v49  }
 0x178   : > { %v1440_v29 = vpack.c.bf16 %v1025_v17, %v1024_v16  ;;  %v1041_v58 = vmax.f32 %v1009_v48, 0.0  ;;  %1496 = vst [vmem:[%s2035_s3 + $0x50] sm:$0xff] %v1460_v50   ;;  %v1470_v59 = vpack.c.bf16 %v1037_v51, %v1036_v45 }
 0x179   : > { %1497 = vst [vmem:[%s2035_s3 + $0x58] sm:$0xff] %v1465_v55   ;;  %v1475_v62 = vpack.c.bf16 %v1039_v56, %v1038_v52 }
 0x17a   : > { %1492 = vst [vmem:[%s2035_s3 + $0x30] sm:$0xff] %v1440_v29   ;;  %v1480_v63 = vpack.c.bf16 %v1041_v58, %v1040_v57  ;;  %1498 = vst [vmem:[%s2035_s3 + $0x60] sm:$0xff] %v1470_v59  }
 0x17b   : > { %v994_v13 = vld [vmem:[#allocation2 + $0x70] sm:$0xff]  ;;  %1499 = vst [vmem:[%s2035_s3 + $0x68] sm:$0xff] %v1475_v62  }
 0x17c   : > { %v1026_v22 = vmax.f32 %v994_v13, 0.0  ;;  %v1010_v53 = vld [vmem:[#allocation2 + $0xf0] sm:$0xff]  ;;  %1500 = vst [vmem:[%s2035_s3 + $0x70] sm:$0xff] %v1480_v63  }
 0x17d   : > { %v995_v18 = vld [vmem:[#allocation2 + $0x78] sm:$0xff]  ;;  %v1042_v60 = vmax.f32 %v1010_v53, 0.0 }
 0x17e   : > { %v1027_v23 = vmax.f32 %v995_v18, 0.0  ;;  %v1011_v54 = vld [vmem:[#allocation2 + $0xf8] sm:$0xff] }
 0x17f   : > { %v1043_v61 = vmax.f32 %v1011_v54, 0.0 }
 0x180   : > { %v1445_v35 = vpack.c.bf16 %v1027_v23, %v1026_v22 }
 0x181   : > { %v1485_v0 = vpack.c.bf16 %v1043_v61, %v1042_v60 }
 0x182   : > { %1493 = vst [vmem:[%s2035_s3 + $0x38] sm:$0xff] %v1445_v35  }
 0x183   : > { %1501 = vst [vmem:[%s2035_s3 + $0x78] sm:$0xff] %v1485_v0  }
 0x184 PF: > { %s13_s16 = sadd.s32 1, %s1772_s16   ;;  %s2036_s12 = smov %s1760_s13 }
 0x185   : > { %p10_p11 = scmp.ge.s32.totalorder %s13_s16, 11   ;;  %s2037_s13 = smov %s1829_s20 }
 0x186   : > { %s2038_s14 = smov %s1768_s15  ;;  %s2039_s15 = smov %s2041_s17 }
 0x187   :  { %12 = sbr.rel (!%p10_p11) target bundleno = 3 (0x3), region = 114 }

// kernel: u2net_forward.12
= control target key start
LH: loop header
LB: loop body
LE: loop exit
PB: predicated region body
PF: predicated region fallthrough
CT: control target
= control target key end

     0   :  { %s2781_s12 = smov 0   ;;  %s2783_s13 = smov 0   ;;  %s3226_s0 = inlined_call_operand.vmem [shape: bf16[1024,1280], index: 0, kind: input, shape index: {}]   ;;  %s3227_s1 = inlined_call_operand.vmem [shape: bf16[1280,128], index: 1, kind: input, shape index: {}]   ;;  %s3228_s2 = inlined_call_operand.vmem [shape: f32[1,128], index: 2, kind: input, shape index: {}]   ;;  %s3229_s3 = inlined_call_operand.vmem [shape: bf16[1024,128], index: 3, kind: output, shape index: {}]  }
   0x1   :  { %s2785_s14 = smov 0   ;;  %s2787_s15 = smov 0  }
   0x2   :  { %s2789_s16 = smov 0   ;;  %s2791_s17 = smov 0  }
   0x3   :  { %s2793_s18 = smov 0  }
   0x4 LB: > { %s22_s19 = sadd.s32 1, %s2750_s16  ;;  %s25_s20 = sadd.s32 1, %s2754_s17  ;;  %s2758_s18 = sphi %s2793_s18, %s13_s18   ;;  %s2754_s17 = sphi %s2791_s17, %s3235_s17   ;;  %s2750_s16 = sphi %s2789_s16, %s3234_s16   ;;  %s2746_s15 = sphi %s2787_s15, %s3233_s15   ;;  %s2742_s14 = sphi %s2785_s14, %s3232_s14   ;;  %s2738_s13 = sphi %s2783_s13, %s3231_s13   ;;  %s2734_s12 = sphi %s2781_s12, %s3230_s12  }
   0x5   : > { %p23_p0 = scmp.ge.s32.totalorder %s22_s19, 5  ;;  %p41_p1 = scmp.ne.s32.totalorder %s2738_s13, %s2734_s12 }
   0x6   : > { %p42_p2 = scmp.eq.s32.totalorder %s2758_s18, 0  ;;  %s34_s24 = sadd.s32 1, %s2738_s13 }
   0x7   : > { %s3237_s19 = smov (%p23_p0, %s22_s19), 0  ;;  %s3239_s20 = smov (!%p23_p0, %s25_s20), %s2754_s17 }
   0x8   : > { %p43_p3 = por %p42_p2, %p41_p1  ;;  %p27_p4 = scmp.ge.s32.totalorder %s3239_s20, 2 }
   0x9   : > { %s30_s21 = ssub.s32 %s2750_s16, %s3237_s19  ;;  %p2086_p6 = scmp.ge.s32.totalorder %s2758_s18, 10 }
   0xa   : > { %s3241_s20 = smov (%p27_p4, %s3239_s20), 0 }
   0xb   : > { %s29_s22 = ssub.s32 %s2754_s17, %s3241_s20  ;;  %141 = sbr.rel (%p2086_p6) target bundleno = 58 (0x3a), region = 24 }
   0xc   : > { %s31_s23 = sor.u32 %s30_s21, %s29_s22 }
   0xd   : > { %p32_p5 = scmp.eq.s32.totalorder %s31_s23, 0 }
   0xf   : > { %s2832_s25 = scalar_select %p32_p5, %s2738_s13, %s34_s24  }
  0x12   : > { %144 = sbr.rel (!%p43_p3) target bundleno = 58 (0x3a), region = 28  ;;  %s146_s26 = sand.u32 (%p43_p3), 1, %s2738_s13  }
  0x13   : > { %s2089_s27 = sshll.u32 (%p43_p3), %s2750_s16, 1  ;;  %s2087_s28 = sshll.u32 (%p43_p3), %s146_s26, 9 }
  0x14   : > { %s2534_s29 = smul.u32 (%p43_p3), 640, %s2754_s17  ;;  %s2846_s8 = scalar_lea.vmem (%p43_p3), [#allocation3], %s2087_s28 }
  0x16   : > { %s152_s30 = sadd.s32 (%p43_p3), %s2534_s29, %s2089_s27 }
  0x17   : > { %s2091_s4 = sshll.u32 (%p43_p3), %s152_s30, 2 }
  0x18   : > { %s2841_s7 = scalar_lea.vmem (%p43_p3), %s3226_s0, %s2091_s4 }
  0x19   : > { %v308_v0 = vld [vmem:[%s2841_s7] sm:$0xff]  ;;  %v310_v1 = vld [vmem:[%s2841_s7 + $0x28] sm:$0xff]  ;;  %v312_v2 = vld [vmem:[%s2841_s7 + $0x50] sm:$0xff] }
  0x1a   : > { %309 = vst [vmem:[%s2846_s8] sm:$0xff] %v308_v0  ;;  %311 = vst [vmem:[%s2846_s8 + $0x8] sm:$0xff] %v310_v1  ;;  %v314_v3 = vld [vmem:[%s2841_s7 + $0x78] sm:$0xff]  ;;  %v316_v4 = vld [vmem:[%s2841_s7 + $0xa0] sm:$0xff] }
  0x1b   : > { %313 = vst [vmem:[%s2846_s8 + $0x10] sm:$0xff] %v312_v2  ;;  %v318_v5 = vld [vmem:[%s2841_s7 + $0xc8] sm:$0xff]  ;;  %315 = vst [vmem:[%s2846_s8 + $0x18] sm:$0xff] %v314_v3  ;;  %v320_v6 = vld [vmem:[%s2841_s7 + $0xf0] sm:$0xff] }
  0x1c   : > { %317 = vst [vmem:[%s2846_s8 + $0x20] sm:$0xff] %v316_v4  ;;  %319 = vst [vmem:[%s2846_s8 + $0x28] sm:$0xff] %v318_v5  ;;  %v322_v7 = vld [vmem:[%s2841_s7 + $0x118] sm:$0xff]  ;;  %v324_v8 = vld [vmem:[%s2841_s7 + $0x140] sm:$0xff] }
  0x1d   : > { %321 = vst [vmem:[%s2846_s8 + $0x30] sm:$0xff] %v320_v6  ;;  %323 = vst [vmem:[%s2846_s8 + $0x38] sm:$0xff] %v322_v7  ;;  %v326_v9 = vld [vmem:[%s2841_s7 + $0x168] sm:$0xff]  ;;  %v328_v10 = vld [vmem:[%s2841_s7 + $0x190] sm:$0xff] }
  0x1e   : > { %325 = vst [vmem:[%s2846_s8 + $0x40] sm:$0xff] %v324_v8  ;;  %v330_v11 = vld [vmem:[%s2841_s7 + $0x1b8] sm:$0xff]  ;;  %327 = vst [vmem:[%s2846_s8 + $0x48] sm:$0xff] %v326_v9  ;;  %v332_v12 = vld [vmem:[%s2841_s7 + $0x1e0] sm:$0xff] }
  0x1f   : > { %329 = vst [vmem:[%s2846_s8 + $0x50] sm:$0xff] %v328_v10  ;;  %331 = vst [vmem:[%s2846_s8 + $0x58] sm:$0xff] %v330_v11  ;;  %v334_v13 = vld [vmem:[%s2841_s7 + $0x208] sm:$0xff]  ;;  %v336_v14 = vld [vmem:[%s2841_s7 + $0x230] sm:$0xff] }
  0x20   : > { %333 = vst [vmem:[%s2846_s8 + $0x60] sm:$0xff] %v332_v12  ;;  %335 = vst [vmem:[%s2846_s8 + $0x68] sm:$0xff] %v334_v13  ;;  %v338_v15 = vld [vmem:[%s2841_s7 + $0x258] sm:$0xff]  ;;  %v340_v16 = vld [vmem:[%s2841_s7 + $0x280] sm:$0xff] }
  0x21   : > { %337 = vst [vmem:[%s2846_s8 + $0x70] sm:$0xff] %v336_v14  ;;  %v342_v17 = vld [vmem:[%s2841_s7 + $0x2a8] sm:$0xff]  ;;  %339 = vst [vmem:[%s2846_s8 + $0x78] sm:$0xff] %v338_v15  ;;  %v344_v18 = vld [vmem:[%s2841_s7 + $0x2d0] sm:$0xff] }
  0x22   : > { %341 = vst [vmem:[%s2846_s8 + $0x80] sm:$0xff] %v340_v16  ;;  %343 = vst [vmem:[%s2846_s8 + $0x88] sm:$0xff] %v342_v17  ;;  %v346_v19 = vld [vmem:[%s2841_s7 + $0x2f8] sm:$0xff]  ;;  %v348_v20 = vld [vmem:[%s2841_s7 + $0x320] sm:$0xff] }
  0x23   : > { %345 = vst [vmem:[%s2846_s8 + $0x90] sm:$0xff] %v344_v18  ;;  %347 = vst [vmem:[%s2846_s8 + $0x98] sm:$0xff] %v346_v19  ;;  %v350_v21 = vld [vmem:[%s2841_s7 + $0x348] sm:$0xff]  ;;  %v352_v22 = vld [vmem:[%s2841_s7 + $0x370] sm:$0xff] }
  0x24   : > { %349 = vst [vmem:[%s2846_s8 + $0xa0] sm:$0xff] %v348_v20  ;;  %v354_v23 = vld [vmem:[%s2841_s7 + $0x398] sm:$0xff]  ;;  %351 = vst [vmem:[%s2846_s8 + $0xa8] sm:$0xff] %v350_v21  ;;  %v356_v24 = vld [vmem:[%s2841_s7 + $0x3c0] sm:$0xff] }
  0x25   : > { %353 = vst [vmem:[%s2846_s8 + $0xb0] sm:$0xff] %v352_v22  ;;  %355 = vst [vmem:[%s2846_s8 + $0xb8] sm:$0xff] %v354_v23  ;;  %v358_v25 = vld [vmem:[%s2841_s7 + $0x3e8] sm:$0xff]  ;;  %v360_v26 = vld [vmem:[%s2841_s7 + $0x410] sm:$0xff] }
  0x26   : > { %357 = vst [vmem:[%s2846_s8 + $0xc0] sm:$0xff] %v356_v24  ;;  %359 = vst [vmem:[%s2846_s8 + $0xc8] sm:$0xff] %v358_v25  ;;  %v362_v27 = vld [vmem:[%s2841_s7 + $0x438] sm:$0xff]  ;;  %v364_v28 = vld [vmem:[%s2841_s7 + $0x460] sm:$0xff] }
  0x27   : > { %361 = vst [vmem:[%s2846_s8 + $0xd0] sm:$0xff] %v360_v26  ;;  %v366_v29 = vld [vmem:[%s2841_s7 + $0x488] sm:$0xff]  ;;  %363 = vst [vmem:[%s2846_s8 + $0xd8] sm:$0xff] %v362_v27  ;;  %v368_v30 = vld [vmem:[%s2841_s7 + $0x4b0] sm:$0xff] }
  0x28   : > { %365 = vst [vmem:[%s2846_s8 + $0xe0] sm:$0xff] %v364_v28  ;;  %367 = vst [vmem:[%s2846_s8 + $0xe8] sm:$0xff] %v366_v29  ;;  %v370_v31 = vld [vmem:[%s2841_s7 + $0x4d8] sm:$0xff]  ;;  %v372_v32 = vld [vmem:[%s2841_s7 + $0x500] sm:$0xff] }
  0x29   : > { %369 = vst [vmem:[%s2846_s8 + $0xf0] sm:$0xff] %v368_v30  ;;  %371 = vst [vmem:[%s2846_s8 + $0xf8] sm:$0xff] %v370_v31  ;;  %v374_v33 = vld [vmem:[%s2841_s7 + $0x528] sm:$0xff]  ;;  %v376_v34 = vld [vmem:[%s2841_s7 + $0x550] sm:$0xff] }
  0x2a   : > { %373 = vst [vmem:[%s2846_s8 + $0x100] sm:$0xff] %v372_v32  ;;  %v378_v35 = vld [vmem:[%s2841_s7 + $0x578] sm:$0xff]  ;;  %375 = vst [vmem:[%s2846_s8 + $0x108] sm:$0xff] %v374_v33  ;;  %v380_v36 = vld [vmem:[%s2841_s7 + $0x5a0] sm:$0xff] }
  0x2b   : > { %377 = vst [vmem:[%s2846_s8 + $0x110] sm:$0xff] %v376_v34  ;;  %379 = vst [vmem:[%s2846_s8 + $0x118] sm:$0xff] %v378_v35  ;;  %v382_v37 = vld [vmem:[%s2841_s7 + $0x5c8] sm:$0xff]  ;;  %v384_v38 = vld [vmem:[%s2841_s7 + $0x5f0] sm:$0xff] }
  0x2c   : > { %381 = vst [vmem:[%s2846_s8 + $0x120] sm:$0xff] %v380_v36  ;;  %383 = vst [vmem:[%s2846_s8 + $0x128] sm:$0xff] %v382_v37  ;;  %v386_v39 = vld [vmem:[%s2841_s7 + $0x618] sm:$0xff]  ;;  %v388_v40 = vld [vmem:[%s2841_s7 + $0x640] sm:$0xff] }
  0x2d   : > { %385 = vst [vmem:[%s2846_s8 + $0x130] sm:$0xff] %v384_v38  ;;  %v390_v41 = vld [vmem:[%s2841_s7 + $0x668] sm:$0xff]  ;;  %387 = vst [vmem:[%s2846_s8 + $0x138] sm:$0xff] %v386_v39  ;;  %v392_v42 = vld [vmem:[%s2841_s7 + $0x690] sm:$0xff] }
  0x2e   : > { %389 = vst [vmem:[%s2846_s8 + $0x140] sm:$0xff] %v388_v40  ;;  %391 = vst [vmem:[%s2846_s8 + $0x148] sm:$0xff] %v390_v41  ;;  %v394_v43 = vld [vmem:[%s2841_s7 + $0x6b8] sm:$0xff]  ;;  %v396_v44 = vld [vmem:[%s2841_s7 + $0x6e0] sm:$0xff] }
  0x2f   : > { %393 = vst [vmem:[%s2846_s8 + $0x150] sm:$0xff] %v392_v42  ;;  %395 = vst [vmem:[%s2846_s8 + $0x158] sm:$0xff] %v394_v43  ;;  %v398_v45 = vld [vmem:[%s2841_s7 + $0x708] sm:$0xff]  ;;  %v400_v46 = vld [vmem:[%s2841_s7 + $0x730] sm:$0xff] }
  0x30   : > { %397 = vst [vmem:[%s2846_s8 + $0x160] sm:$0xff] %v396_v44  ;;  %v402_v47 = vld [vmem:[%s2841_s7 + $0x758] sm:$0xff]  ;;  %399 = vst [vmem:[%s2846_s8 + $0x168] sm:$0xff] %v398_v45  ;;  %v404_v48 = vld [vmem:[%s2841_s7 + $0x780] sm:$0xff] }
  0x31   : > { %401 = vst [vmem:[%s2846_s8 + $0x170] sm:$0xff] %v400_v46  ;;  %403 = vst [vmem:[%s2846_s8 + $0x178] sm:$0xff] %v402_v47  ;;  %v406_v49 = vld [vmem:[%s2841_s7 + $0x7a8] sm:$0xff]  ;;  %v408_v50 = vld [vmem:[%s2841_s7 + $0x7d0] sm:$0xff] }
  0x32   : > { %405 = vst [vmem:[%s2846_s8 + $0x180] sm:$0xff] %v404_v48  ;;  %407 = vst [vmem:[%s2846_s8 + $0x188] sm:$0xff] %v406_v49  ;;  %v410_v51 = vld [vmem:[%s2841_s7 + $0x7f8] sm:$0xff]  ;;  %v412_v52 = vld [vmem:[%s2841_s7 + $0x820] sm:$0xff] }
  0x33   : > { %409 = vst [vmem:[%s2846_s8 + $0x190] sm:$0xff] %v408_v50  ;;  %v414_v53 = vld [vmem:[%s2841_s7 + $0x848] sm:$0xff]  ;;  %411 = vst [vmem:[%s2846_s8 + $0x198] sm:$0xff] %v410_v51  ;;  %v416_v54 = vld [vmem:[%s2841_s7 + $0x870] sm:$0xff] }
  0x34   : > { %413 = vst [vmem:[%s2846_s8 + $0x1a0] sm:$0xff] %v412_v52  ;;  %415 = vst [vmem:[%s2846_s8 + $0x1a8] sm:$0xff] %v414_v53  ;;  %v418_v55 = vld [vmem:[%s2841_s7 + $0x898] sm:$0xff]  ;;  %v420_v56 = vld [vmem:[%s2841_s7 + $0x8c0] sm:$0xff] }
  0x35   : > { %417 = vst [vmem:[%s2846_s8 + $0x1b0] sm:$0xff] %v416_v54  ;;  %419 = vst [vmem:[%s2846_s8 + $0x1b8] sm:$0xff] %v418_v55  ;;  %v422_v57 = vld [vmem:[%s2841_s7 + $0x8e8] sm:$0xff]  ;;  %v424_v58 = vld [vmem:[%s2841_s7 + $0x910] sm:$0xff] }
  0x36   : > { %421 = vst [vmem:[%s2846_s8 + $0x1c0] sm:$0xff] %v420_v56  ;;  %v426_v59 = vld [vmem:[%s2841_s7 + $0x938] sm:$0xff]  ;;  %423 = vst [vmem:[%s2846_s8 + $0x1c8] sm:$0xff] %v422_v57  ;;  %v428_v60 = vld [vmem:[%s2841_s7 + $0x960] sm:$0xff] }
  0x37   : > { %425 = vst [vmem:[%s2846_s8 + $0x1d0] sm:$0xff] %v424_v58  ;;  %427 = vst [vmem:[%s2846_s8 + $0x1d8] sm:$0xff] %v426_v59  ;;  %v430_v61 = vld [vmem:[%s2841_s7 + $0x988] sm:$0xff]  ;;  %v432_v62 = vld [vmem:[%s2841_s7 + $0x9b0] sm:$0xff] }
  0x38   : > { %429 = vst [vmem:[%s2846_s8 + $0x1e0] sm:$0xff] %v428_v60  ;;  %431 = vst [vmem:[%s2846_s8 + $0x1e8] sm:$0xff] %v430_v61  ;;  %v434_v63 = vld [vmem:[%s2841_s7 + $0x9d8] sm:$0xff] }
  0x39   : > { %433 = vst [vmem:[%s2846_s8 + $0x1f0] sm:$0xff] %v432_v62  ;;  %435 = vst [vmem:[%s2846_s8 + $0x1f8] sm:$0xff] %v434_v63 }
  0x3a PF: > { %p2092_p7 = scmp.ge.s32.totalorder %s2758_s18, 1  ;;  %p440_p8 = scmp.lt.s32.totalorder %s2758_s18, 11 }
  0x3c   : > { %p441_p9 = pnand %p2092_p7, %p440_p8 }
  0x3d   : > { %s447_s9 = sand.u32 (!%p441_p9), 1, %s2734_s12   ;;  %s2094_s10 = sshll.u32 (!%p441_p9), %s2746_s15, 6 }
  0x3e   : > { %444 = sbr.rel (%p441_p9) target bundleno = 524 (0x20c), region = 66  ;;  %s2093_s11 = sshll.u32 (!%p441_p9), %s447_s9, 9 }
  0x3f   : > { %p473_p10 = scmp.lt.s32.totalorder (!%p441_p9), %s2094_s10, 127  ;;  %s2982_s26 = scalar_lea.vmem (!%p441_p9), [#allocation3], %s2093_s11 }
  0x40   : > { %p2096_p11 = scmp.ne.s32.totalorder (!%p441_p9), %s2742_s14, 0 }
  0x45   : > { %s3243_s10 = smov (!%p473_p10, %s2094_s10), 127  ;;  %482 = sbr.rel (%p2096_p11) target bundleno = 103 (0x67), region = 74 }
  0x46   : > { %s2095_s21 = sshll.u32 %s3243_s10, 2  ;;  %v2988_v0 = vld [vmem:[%s3228_s2] ss:$0 sm:$0xff] (!%p2096_p11) }
  0x47   : > { %s2980_s24 = scalar_lea.vmem %s3229_s3, %s2095_s21  ;;  %490 = vst [vmem:[#allocation2] sm:$0xff] (!%p2096_p11), %v2988_v0  ;;  %491 = vst [vmem:[#allocation2 + $0x8] sm:$0xff] (!%p2096_p11), %v2988_v0 }
  0x48   : > { %492 = vst [vmem:[#allocation2 + $0x10] sm:$0xff] (!%p2096_p11), %v2988_v0  ;;  %493 = vst [vmem:[#allocation2 + $0x18] sm:$0xff] (!%p2096_p11), %v2988_v0 }
  0x49   : > { %494 = vst [vmem:[#allocation2 + $0x20] sm:$0xff] (!%p2096_p11), %v2988_v0  ;;  %495 = vst [vmem:[#allocation2 + $0x28] sm:$0xff] (!%p2096_p11), %v2988_v0 }
  0x4a   : > { %496 = vst [vmem:[#allocation2 + $0x30] sm:$0xff] (!%p2096_p11), %v2988_v0  ;;  %497 = vst [vmem:[#allocation2 + $0x38] sm:$0xff] (!%p2096_p11), %v2988_v0 }
  0x4b   : > { %498 = vst [vmem:[#allocation2 + $0x40] sm:$0xff] (!%p2096_p11), %v2988_v0  ;;  %499 = vst [vmem:[#allocation2 + $0x48] sm:$0xff] (!%p2096_p11), %v2988_v0 }
  0x4c   : > { %500 = vst [vmem:[#allocation2 + $0x50] sm:$0xff] %v2988_v0  ;;  %501 = vst [vmem:[#allocation2 + $0x58] sm:$0xff] %v2988_v0 }
  0x4d   : > { %502 = vst [vmem:[#allocation2 + $0x60] sm:$0xff] %v2988_v0  ;;  %503 = vst [vmem:[#allocation2 + $0x68] sm:$0xff] %v2988_v0 }
  0x4e   : > { %504 = vst [vmem:[#allocation2 + $0x70] sm:$0xff] %v2988_v0  ;;  %505 = vst [vmem:[#allocation2 + $0x78] sm:$0xff] %v2988_v0 }
  0x4f   : > { %506 = vst [vmem:[#allocation2 + $0x80] sm:$0xff] %v2988_v0  ;;  %507 = vst [vmem:[#allocation2 + $0x88] sm:$0xff] %v2988_v0 }
  0x50   : > { %508 = vst [vmem:[#allocation2 + $0x90] sm:$0xff] %v2988_v0  ;;  %509 = vst [vmem:[#allocation2 + $0x98] sm:$0xff] %v2988_v0 }
  0x51   : > { %510 = vst [vmem:[#allocation2 + $0xa0] sm:$0xff] %v2988_v0  ;;  %511 = vst [vmem:[#allocation2 + $0xa8] sm:$0xff] %v2988_v0 }
  0x52   : > { %512 = vst [vmem:[#allocation2 + $0xb0] sm:$0xff] %v2988_v0  ;;  %513 = vst [vmem:[#allocation2 + $0xb8] sm:$0xff] %v2988_v0 }
  0x53   : > { %514 = vst [vmem:[#allocation2 + $0xc0] sm:$0xff] %v2988_v0  ;;  %515 = vst [vmem:[#allocation2 + $0xc8] sm:$0xff] %v2988_v0 }
  0x54   : > { %516 = vst [vmem:[#allocation2 + $0xd0] sm:$0xff] %v2988_v0  ;;  %517 = vst [vmem:[#allocation2 + $0xd8] sm:$0xff] %v2988_v0 }
  0x55   : > { %518 = vst [vmem:[#allocation2 + $0xe0] sm:$0xff] %v2988_v0  ;;  %519 = vst [vmem:[#allocation2 + $0xe8] sm:$0xff] %v2988_v0 }
  0x56   : > { %520 = vst [vmem:[#allocation2 + $0xf0] sm:$0xff] %v2988_v0  ;;  %521 = vst [vmem:[#allocation2 + $0xf8] sm:$0xff] %v2988_v0 }
  0x57   : > { %522 = vst [vmem:[#allocation2 + $0x100] sm:$0xff] %v2988_v0  ;;  %523 = vst [vmem:[#allocation2 + $0x108] sm:$0xff] %v2988_v0 }
  0x58   : > { %524 = vst [vmem:[#allocation2 + $0x110] sm:$0xff] %v2988_v0  ;;  %525 = vst [vmem:[#allocation2 + $0x118] sm:$0xff] %v2988_v0 }
  0x59   : > { %526 = vst [vmem:[#allocation2 + $0x120] sm:$0xff] %v2988_v0  ;;  %527 = vst [vmem:[#allocation2 + $0x128] sm:$0xff] %v2988_v0 }
  0x5a   : > { %528 = vst [vmem:[#allocation2 + $0x130] sm:$0xff] %v2988_v0  ;;  %529 = vst [vmem:[#allocation2 + $0x138] sm:$0xff] %v2988_v0 }
  0x5b   : > { %530 = vst [vmem:[#allocation2 + $0x140] sm:$0xff] %v2988_v0  ;;  %531 = vst [vmem:[#allocation2 + $0x148] sm:$0xff] %v2988_v0 }
  0x5c   : > { %532 = vst [vmem:[#allocation2 + $0x150] sm:$0xff] %v2988_v0  ;;  %533 = vst [vmem:[#allocation2 + $0x158] sm:$0xff] %v2988_v0 }
  0x5d   : > { %534 = vst [vmem:[#allocation2 + $0x160] sm:$0xff] %v2988_v0  ;;  %535 = vst [vmem:[#allocation2 + $0x168] sm:$0xff] %v2988_v0 }
  0x5e   : > { %536 = vst [vmem:[#allocation2 + $0x170] sm:$0xff] %v2988_v0  ;;  %537 = vst [vmem:[#allocation2 + $0x178] sm:$0xff] %v2988_v0 }
  0x5f   : > { %538 = vst [vmem:[#allocation2 + $0x180] sm:$0xff] %v2988_v0  ;;  %539 = vst [vmem:[#allocation2 + $0x188] sm:$0xff] %v2988_v0 }
  0x60   : > { %540 = vst [vmem:[#allocation2 + $0x190] sm:$0xff] %v2988_v0  ;;  %541 = vst [vmem:[#allocation2 + $0x198] sm:$0xff] %v2988_v0 }
  0x61   : > { %542 = vst [vmem:[#allocation2 + $0x1a0] sm:$0xff] %v2988_v0  ;;  %543 = vst [vmem:[#allocation2 + $0x1a8] sm:$0xff] %v2988_v0 }
  0x62   : > { %544 = vst [vmem:[#allocation2 + $0x1b0] sm:$0xff] %v2988_v0  ;;  %545 = vst [vmem:[#allocation2 + $0x1b8] sm:$0xff] %v2988_v0 }
  0x63   : > { %546 = vst [vmem:[#allocation2 + $0x1c0] sm:$0xff] %v2988_v0  ;;  %547 = vst [vmem:[#allocation2 + $0x1c8] sm:$0xff] %v2988_v0 }
  0x64   : > { %548 = vst [vmem:[#allocation2 + $0x1d0] sm:$0xff] %v2988_v0  ;;  %549 = vst [vmem:[#allocation2 + $0x1d8] sm:$0xff] %v2988_v0 }
  0x65   : > { %550 = vst [vmem:[#allocation2 + $0x1e0] sm:$0xff] %v2988_v0  ;;  %551 = vst [vmem:[#allocation2 + $0x1e8] sm:$0xff] %v2988_v0 }
  0x66   : > { %552 = vst [vmem:[#allocation2 + $0x1f0] sm:$0xff] %v2988_v0  ;;  %553 = vst [vmem:[#allocation2 + $0x1f8] sm:$0xff] %v2988_v0 }
  0x67 PF: > { %s2098_s12 = sshll.u32 %s2742_s14, 8  ;;  %v2760_v1 = vmov 0   ;;  %v2610_v2 = vld [vmem:[%s2982_s26 + $0x4] ss:$8 sps:$4 sm:$0xff]   ;;  %v2608_v20 = vld [vmem:[%s2982_s26] ss:$8 sps:$4 sm:$0xff]  }
  0x68   : > { %1135 = vmatprep.subr.bf16.mxu0 %v2760_v1  ;;  %2502 = vmatprep.subr.bf16.mxu1 %v2760_v1  ;;  %s683_s15 = sshra.s32 %s2098_s12, 3  ;;  %v2613_v3 = vld [vmem:[%s2982_s26 + $0x104] ss:$8 sps:$4 sm:$0xff]   ;;  %v2611_v21 = vld [vmem:[%s2982_s26 + $0x100] ss:$8 sps:$4 sm:$0xff]   ;;  %p2180_p12 = scmp.ne.s32.totalorder %s2742_s14, 4 }
  0x69   : > { %s2099_s29 = sshll.u32 %s683_s15, 2  ;;  %1167 = vmatprep.mubr.bf16.mxu0 %v2610_v2  ;;  %1295 = vmatprep.mubr.bf16.mxu1 %v2613_v3  ;;  %v2614_v22 = vld [vmem:[%s2982_s26 + $0x14] ss:$8 sps:$4 sm:$0xff]   ;;  %v2618_v24 = vld [vmem:[%s2982_s26 + $0x10] ss:$8 sps:$4 sm:$0xff]  }
  0x6a   : > { %s3062_s5 = scalar_lea.vmem %s3227_s1, %s2099_s29  ;;  %v2616_v23 = vld [vmem:[%s2982_s26 + $0x114] ss:$8 sps:$4 sm:$0xff]   ;;  %v2619_v25 = vld [vmem:[%s2982_s26 + $0x110] ss:$8 sps:$4 sm:$0xff]   ;;  %v2620_v26 = vld [vmem:[%s2982_s26 + $0x24] ss:$8 sps:$4 sm:$0xff]  }
  0x6b   : > { %v2592_v4 = vld [vmem:[%s3062_s5] sm:$0xff]   ;;  %v2593_v5 = vld [vmem:[%s3062_s5 + $0x8] sm:$0xff]   ;;  %v2594_v6 = vld [vmem:[%s3062_s5 + $0x10] sm:$0xff]  }
  0x6c   : > { %1136 = vmatpush1.bf16.msra.mxu0 %v2592_v4  ;;  %2518 = vmatpush1.bf16.msra.mxu1 %v2592_v4  ;;  %v2595_v7 = vld [vmem:[%s3062_s5 + $0x18] sm:$0xff]   ;;  %v2596_v8 = vld [vmem:[%s3062_s5 + $0x20] sm:$0xff]   ;;  %v2597_v9 = vld [vmem:[%s3062_s5 + $0x28] sm:$0xff]  }
  0x6d   : > { %1137 = vmatprep.subr.bf16.mxu0 %v2760_v1  ;;  %2503 = vmatprep.subr.bf16.mxu1 %v2760_v1  ;;  %v2598_v10 = vld [vmem:[%s3062_s5 + $0x30] sm:$0xff]   ;;  %v2599_v11 = vld [vmem:[%s3062_s5 + $0x38] sm:$0xff]   ;;  %v2600_v12 = vld [vmem:[%s3062_s5 + $0x40] sm:$0xff]  }
  0x6e   : > { %v2601_v13 = vld [vmem:[%s3062_s5 + $0x48] sm:$0xff]   ;;  %v2602_v14 = vld [vmem:[%s3062_s5 + $0x50] sm:$0xff]   ;;  %v2603_v15 = vld [vmem:[%s3062_s5 + $0x58] sm:$0xff]  }
  0x6f   : > { %v2604_v16 = vld [vmem:[%s3062_s5 + $0x60] sm:$0xff]   ;;  %v2605_v17 = vld [vmem:[%s3062_s5 + $0x68] sm:$0xff]   ;;  %v2606_v18 = vld [vmem:[%s3062_s5 + $0x70] sm:$0xff]  }
  0x70   : > { %1138 = vmatpush1.bf16.msra.mxu0 %v2593_v5  ;;  %2519 = vmatpush1.bf16.msra.mxu1 %v2593_v5  ;;  %v2607_v19 = vld [vmem:[%s3062_s5 + $0x78] sm:$0xff]   ;;  %v2622_v27 = vld [vmem:[%s2982_s26 + $0x124] ss:$8 sps:$4 sm:$0xff]   ;;  %v2624_v28 = vld [vmem:[%s2982_s26 + $0x20] ss:$8 sps:$4 sm:$0xff]  }
  0x71   : > { %1139 = vmatprep.subr.bf16.mxu0 %v2760_v1  ;;  %2504 = vmatprep.subr.bf16.mxu1 %v2760_v1  ;;  %v2625_v29 = vld [vmem:[%s2982_s26 + $0x120] ss:$8 sps:$4 sm:$0xff]   ;;  %v2626_v30 = vld [vmem:[%s2982_s26 + $0x34] ss:$8 sps:$4 sm:$0xff]   ;;  %v2630_v32 = vld [vmem:[%s2982_s26 + $0x30] ss:$8 sps:$4 sm:$0xff]  }
  0x72   : > { %v2628_v31 = vld [vmem:[%s2982_s26 + $0x134] ss:$8 sps:$4 sm:$0xff]   ;;  %v2631_v33 = vld [vmem:[%s2982_s26 + $0x130] ss:$8 sps:$4 sm:$0xff]   ;;  %v2632_v34 = vld [vmem:[%s2982_s26 + $0x44] ss:$8 sps:$4 sm:$0xff]  }
  0x73   : > { %v2634_v35 = vld [vmem:[%s2982_s26 + $0x144] ss:$8 sps:$4 sm:$0xff]   ;;  %v2636_v36 = vld [vmem:[%s2982_s26 + $0x40] ss:$8 sps:$4 sm:$0xff]   ;;  %v2638_v38 = vld [vmem:[%s2982_s26 + $0x54] ss:$8 sps:$4 sm:$0xff]  }
  0x74   : > { %1140 = vmatpush1.bf16.msra.mxu0 %v2594_v6  ;;  %2520 = vmatpush1.bf16.msra.mxu1 %v2594_v6  ;;  %v2637_v37 = vld [vmem:[%s2982_s26 + $0x140] ss:$8 sps:$4 sm:$0xff]   ;;  %v2640_v39 = vld [vmem:[%s2982_s26 + $0x154] ss:$8 sps:$4 sm:$0xff]   ;;  %v2642_v40 = vld [vmem:[%s2982_s26 + $0x50] ss:$8 sps:$4 sm:$0xff]  }
  0x75   : > { %1141 = vmatprep.subr.bf16.mxu0 %v2760_v1  ;;  %2505 = vmatprep.subr.bf16.mxu1 %v2760_v1  ;;  %v2643_v41 = vld [vmem:[%s2982_s26 + $0x150] ss:$8 sps:$4 sm:$0xff]   ;;  %v2644_v42 = vld [vmem:[%s2982_s26 + $0x64] ss:$8 sps:$4 sm:$0xff]   ;;  %v2648_v44 = vld [vmem:[%s2982_s26 + $0x60] ss:$8 sps:$4 sm:$0xff]  }
  0x76   : > { %v2646_v43 = vld [vmem:[%s2982_s26 + $0x164] ss:$8 sps:$4 sm:$0xff]   ;;  %v2649_v45 = vld [vmem:[%s2982_s26 + $0x160] ss:$8 sps:$4 sm:$0xff]   ;;  %v2650_v46 = vld [vmem:[%s2982_s26 + $0x74] ss:$8 sps:$4 sm:$0xff]  }
  0x77   : > { %v2652_v47 = vld [vmem:[%s2982_s26 + $0x174] ss:$8 sps:$4 sm:$0xff]   ;;  %v2654_v48 = vld [vmem:[%s2982_s26 + $0x70] ss:$8 sps:$4 sm:$0xff]   ;;  %v2656_v50 = vld [vmem:[%s2982_s26 + $0x84] ss:$8 sps:$4 sm:$0xff]  }
  0x78   : > { %1142 = vmatpush1.bf16.msra.mxu0 %v2595_v7  ;;  %2521 = vmatpush1.bf16.msra.mxu1 %v2595_v7  ;;  %v2655_v49 = vld [vmem:[%s2982_s26 + $0x170] ss:$8 sps:$4 sm:$0xff]   ;;  %v2658_v51 = vld [vmem:[%s2982_s26 + $0x184] ss:$8 sps:$4 sm:$0xff]   ;;  %v2660_v52 = vld [vmem:[%s2982_s26 + $0x80] ss:$8 sps:$4 sm:$0xff]  }
  0x79   : > { %1143 = vmatprep.subr.bf16.mxu0 %v2760_v1  ;;  %2506 = vmatprep.subr.bf16.mxu1 %v2760_v1  ;;  %v2661_v53 = vld [vmem:[%s2982_s26 + $0x180] ss:$8 sps:$4 sm:$0xff]   ;;  %v2662_v54 = vld [vmem:[%s2982_s26 + $0x94] ss:$8 sps:$4 sm:$0xff]   ;;  %v2666_v56 = vld [vmem:[%s2982_s26 + $0x90] ss:$8 sps:$4 sm:$0xff]  }
  0x7a   : > { %v2664_v55 = vld [vmem:[%s2982_s26 + $0x194] ss:$8 sps:$4 sm:$0xff]   ;;  %v2667_v57 = vld [vmem:[%s2982_s26 + $0x190] ss:$8 sps:$4 sm:$0xff]   ;;  %v2668_v58 = vld [vmem:[%s2982_s26 + $0xa4] ss:$8 sps:$4 sm:$0xff]  }
  0x7b   : > { %v2670_v59 = vld [vmem:[%s2982_s26 + $0x1a4] ss:$8 sps:$4 sm:$0xff]   ;;  %v2672_v60 = vld [vmem:[%s2982_s26 + $0xa0] ss:$8 sps:$4 sm:$0xff]   ;;  %v2674_v62 = vld [vmem:[%s2982_s26 + $0xb4] ss:$8 sps:$4 sm:$0xff]  }
  0x7c   : > { %1144 = vmatpush1.bf16.msra.mxu0 %v2596_v8  ;;  %2522 = vmatpush1.bf16.msra.mxu1 %v2596_v8  ;;  %v2673_v61 = vld [vmem:[%s2982_s26 + $0x1a0] ss:$8 sps:$4 sm:$0xff]   ;;  %v2676_v63 = vld [vmem:[%s2982_s26 + $0x1b4] ss:$8 sps:$4 sm:$0xff]   ;;  %v2678_v0 = vld [vmem:[%s2982_s26 + $0xb0] ss:$8 sps:$4 sm:$0xff]  }
  0x7d   : > { %1145 = vmatprep.subr.bf16.mxu0 %v2760_v1  ;;  %2507 = vmatprep.subr.bf16.mxu1 %v2760_v1  ;;  %v2680_v2 = vld [vmem:[%s2982_s26 + $0xc4] ss:$8 sps:$4 sm:$0xff]   ;;  %v2684_v4 = vld [vmem:[%s2982_s26 + $0xc0] ss:$8 sps:$4 sm:$0xff]   ;;  %v2686_v6 = vld [vmem:[%s2982_s26 + $0xd4] ss:$8 sps:$4 sm:$0xff]  }
  0x7e   : > { %v2682_v3 = vld [vmem:[%s2982_s26 + $0x1c4] ss:$8 sps:$4 sm:$0xff]   ;;  %v2685_v5 = vld [vmem:[%s2982_s26 + $0x1c0] ss:$8 sps:$4 sm:$0xff]   ;;  %v2688_v7 = vld [vmem:[%s2982_s26 + $0x1d4] ss:$8 sps:$4 sm:$0xff]  }
  0x7f   : > { %v2690_v8 = vld [vmem:[%s2982_s26 + $0xd0] ss:$8 sps:$4 sm:$0xff]  }
  0x80   : > { %1146 = vmatpush1.bf16.msra.mxu0 %v2597_v9  ;;  %2523 = vmatpush1.bf16.msra.mxu1 %v2597_v9  ;;  %v2691_v9 = vld [vmem:[%s2982_s26 + $0x1d0] ss:$8 sps:$4 sm:$0xff]  }
  0x81   : > { %1147 = vmatprep.subr.bf16.mxu0 %v2760_v1  ;;  %2508 = vmatprep.subr.bf16.mxu1 %v2760_v1 }
  0x84   : > { %1148 = vmatpush1.bf16.msra.mxu0 %v2598_v10  ;;  %2524 = vmatpush1.bf16.msra.mxu1 %v2598_v10  ;;  %v2692_v10 = vld [vmem:[%s2982_s26 + $0xe4] ss:$8 sps:$4 sm:$0xff]  }
  0x85   : > { %1149 = vmatprep.subr.bf16.mxu0 %v2760_v1  ;;  %2509 = vmatprep.subr.bf16.mxu1 %v2760_v1 }
  0x88   : > { %1150 = vmatpush1.bf16.msra.mxu0 %v2599_v11  ;;  %2525 = vmatpush1.bf16.msra.mxu1 %v2599_v11  ;;  %v2694_v11 = vld [vmem:[%s2982_s26 + $0x1e4] ss:$8 sps:$4 sm:$0xff]  }
  0x89   : > { %1151 = vmatprep.subr.bf16.mxu0 %v2760_v1  ;;  %2510 = vmatprep.subr.bf16.mxu1 %v2760_v1 }
  0x8c   : > { %1152 = vmatpush1.bf16.msra.mxu0 %v2600_v12  ;;  %2526 = vmatpush1.bf16.msra.mxu1 %v2600_v12  ;;  %v2696_v12 = vld [vmem:[%s2982_s26 + $0xe0] ss:$8 sps:$4 sm:$0xff]  }
  0x8d   : > { %1153 = vmatprep.subr.bf16.mxu0 %v2760_v1  ;;  %2511 = vmatprep.subr.bf16.mxu1 %v2760_v1 }
  0x90   : > { %1154 = vmatpush1.bf16.msra.mxu0 %v2601_v13  ;;  %2527 = vmatpush1.bf16.msra.mxu1 %v2601_v13  ;;  %v2697_v13 = vld [vmem:[%s2982_s26 + $0x1e0] ss:$8 sps:$4 sm:$0xff]  }
  0x91   : > { %1155 = vmatprep.subr.bf16.mxu0 %v2760_v1  ;;  %2512 = vmatprep.subr.bf16.mxu1 %v2760_v1 }
  0x94   : > { %1156 = vmatpush1.bf16.msra.mxu0 %v2602_v14  ;;  %2528 = vmatpush1.bf16.msra.mxu1 %v2602_v14  ;;  %v2698_v14 = vld [vmem:[%s2982_s26 + $0xf4] ss:$8 sps:$4 sm:$0xff]  }
  0x95   : > { %1157 = vmatprep.subr.bf16.mxu0 %v2760_v1  ;;  %2513 = vmatprep.subr.bf16.mxu1 %v2760_v1 }
  0x98   : > { %1158 = vmatpush1.bf16.msra.mxu0 %v2603_v15  ;;  %2529 = vmatpush1.bf16.msra.mxu1 %v2603_v15  ;;  %v2700_v15 = vld [vmem:[%s2982_s26 + $0x1f4] ss:$8 sps:$4 sm:$0xff]  }
  0x99   : > { %1159 = vmatprep.subr.bf16.mxu0 %v2760_v1  ;;  %2514 = vmatprep.subr.bf16.mxu1 %v2760_v1 }
  0x9c   : > { %1160 = vmatpush1.bf16.msra.mxu0 %v2604_v16  ;;  %2530 = vmatpush1.bf16.msra.mxu1 %v2604_v16  ;;  %v2702_v16 = vld [vmem:[%s2982_s26 + $0xf0] ss:$8 sps:$4 sm:$0xff]  }
  0x9d   : > { %1161 = vmatprep.subr.bf16.mxu0 %v2760_v1  ;;  %2515 = vmatprep.subr.bf16.mxu1 %v2760_v1 }
  0xa0   : > { %1162 = vmatpush1.bf16.msra.mxu0 %v2605_v17  ;;  %2531 = vmatpush1.bf16.msra.mxu1 %v2605_v17  ;;  %v2703_v17 = vld [vmem:[%s2982_s26 + $0x1f0] ss:$8 sps:$4 sm:$0xff]  }
  0xa1   : > { %1163 = vmatprep.subr.bf16.mxu0 %v2760_v1  ;;  %2516 = vmatprep.subr.bf16.mxu1 %v2760_v1 }
  0xa4   : > { %1164 = vmatpush1.bf16.msra.mxu0 %v2606_v18  ;;  %2532 = vmatpush1.bf16.msra.mxu1 %v2606_v18  ;;  %v555_v18 = vld [vmem:[#allocation2] sm:$0xff] }
  0xa5   : > { %1165 = vmatprep.subr.bf16.mxu0 %v2760_v1  ;;  %2517 = vmatprep.subr.bf16.mxu1 %v2760_v1  ;;  %v2679_v1 = vld [vmem:[%s2982_s26 + $0x1b0] ss:$8 sps:$4 sm:$0xff]  }
  0xa8   : > { %1166 = vmatpush1.bf16.msra.mxu0 %v2607_v19  ;;  %2533 = vmatpush1.bf16.msra.mxu1 %v2607_v19  ;;  %v587_v19 = vld [vmem:[#allocation2 + $0x100] sm:$0xff] }
  0xab   : > { %1168 = vmatmul.mubr.bf16.vlgmr.msra.gmra.mrb[0].mxu0 %v2608_v20  ;;  %1296 = vmatmul.mubr.bf16.vlgmr.msra.gmra.mrb[0].mxu1 %v2611_v21 }
  0xac   : > { %1175 = vmatprep.mubr.bf16.mxu0 %v2614_v22  ;;  %1303 = vmatprep.mubr.bf16.mxu1 %v2616_v23  ;;  %v556_v22 = vld [vmem:[#allocation2 + $0x8] sm:$0xff] }
  0xad   : > { %v588_v23 = vld [vmem:[#allocation2 + $0x108] sm:$0xff] }
  0xb3   : > { %1176 = vmatmul.mubr.bf16.gmra.mrb[4].mxu0 %v2618_v24  ;;  %1304 = vmatmul.mubr.bf16.gmra.mrb[4].mxu1 %v2619_v25 }
  0xb4   : > { %1183 = vmatprep.mubr.bf16.mxu0 %v2620_v26  ;;  %1311 = vmatprep.mubr.bf16.mxu1 %v2622_v27 }
  0xbb   : > { %1184 = vmatmul.mubr.bf16.gmra.mrb[8].mxu0 %v2624_v28  ;;  %1312 = vmatmul.mubr.bf16.gmra.mrb[8].mxu1 %v2625_v29 }
  0xbc   : > { %1191 = vmatprep.mubr.bf16.mxu0 %v2626_v30  ;;  %1319 = vmatprep.mubr.bf16.mxu1 %v2628_v31 }
  0xc3   : > { %1192 = vmatmul.mubr.bf16.gmra.mrb[12].mxu0 %v2630_v32  ;;  %1320 = vmatmul.mubr.bf16.gmra.mrb[12].mxu1 %v2631_v33 }
  0xc4   : > { %1199 = vmatprep.mubr.bf16.mxu0 %v2632_v34  ;;  %1327 = vmatprep.mubr.bf16.mxu1 %v2634_v35  ;;  %v557_v34 = vld [vmem:[#allocation2 + $0x10] sm:$0xff] }
  0xc5   : > { %v589_v35 = vld [vmem:[#allocation2 + $0x110] sm:$0xff] }
  0xcb   : > { %1200 = vmatmul.mubr.bf16.gmra.mrb[16].mxu0 %v2636_v36  ;;  %1328 = vmatmul.mubr.bf16.gmra.mrb[16].mxu1 %v2637_v37 }
  0xcc   : > { %1207 = vmatprep.mubr.bf16.mxu0 %v2638_v38  ;;  %1335 = vmatprep.mubr.bf16.mxu1 %v2640_v39  ;;  %v558_v38 = vld [vmem:[#allocation2 + $0x18] sm:$0xff] }
  0xcd   : > { %v590_v39 = vld [vmem:[#allocation2 + $0x118] sm:$0xff] }
  0xd3   : > { %1208 = vmatmul.mubr.bf16.gmra.mrb[20].mxu0 %v2642_v40  ;;  %1336 = vmatmul.mubr.bf16.gmra.mrb[20].mxu1 %v2643_v41 }
  0xd4   : > { %1215 = vmatprep.mubr.bf16.mxu0 %v2644_v42  ;;  %1343 = vmatprep.mubr.bf16.mxu1 %v2646_v43 }
  0xdb   : > { %1216 = vmatmul.mubr.bf16.gmra.mrb[24].mxu0 %v2648_v44  ;;  %1344 = vmatmul.mubr.bf16.gmra.mrb[24].mxu1 %v2649_v45 }
  0xdc   : > { %1223 = vmatprep.mubr.bf16.mxu0 %v2650_v46  ;;  %1351 = vmatprep.mubr.bf16.mxu1 %v2652_v47 }
  0xe3   : > { %1224 = vmatmul.mubr.bf16.gmra.mrb[28].mxu0 %v2654_v48  ;;  %1352 = vmatmul.mubr.bf16.gmra.mrb[28].mxu1 %v2655_v49 }
  0xe4   : > { %1231 = vmatprep.mubr.bf16.mxu0 %v2656_v50  ;;  %1359 = vmatprep.mubr.bf16.mxu1 %v2658_v51  ;;  %v559_v50 = vld [vmem:[#allocation2 + $0x20] sm:$0xff] }
  0xe5   : > { %v591_v51 = vld [vmem:[#allocation2 + $0x120] sm:$0xff] }
  0xeb   : > { %1232 = vmatmul.mubr.bf16.gmra.mrb[32].mxu0 %v2660_v52  ;;  %1360 = vmatmul.mubr.bf16.gmra.mrb[32].mxu1 %v2661_v53 }
  0xec   : > { %1239 = vmatprep.mubr.bf16.mxu0 %v2662_v54  ;;  %1367 = vmatprep.mubr.bf16.mxu1 %v2664_v55  ;;  %v560_v54 = vld [vmem:[#allocation2 + $0x28] sm:$0xff] }
  0xed   : > { %v592_v55 = vld [vmem:[#allocation2 + $0x128] sm:$0xff] }
  0xf3   : > { %1240 = vmatmul.mubr.bf16.gmra.mrb[36].mxu0 %v2666_v56  ;;  %1368 = vmatmul.mubr.bf16.gmra.mrb[36].mxu1 %v2667_v57 }
  0xf4   : > { %1247 = vmatprep.mubr.bf16.mxu0 %v2668_v58  ;;  %1375 = vmatprep.mubr.bf16.mxu1 %v2670_v59 }
  0xfb   : > { %1248 = vmatmul.mubr.bf16.gmra.mrb[40].mxu0 %v2672_v60  ;;  %1376 = vmatmul.mubr.bf16.gmra.mrb[40].mxu1 %v2673_v61 }
  0xfc   : > { %1255 = vmatprep.mubr.bf16.mxu0 %v2674_v62  ;;  %1383 = vmatprep.mubr.bf16.mxu1 %v2676_v63 }
 0x103   : > { %1256 = vmatmul.mubr.bf16.gmra.mrb[44].mxu0 %v2678_v0  ;;  %1384 = vmatmul.mubr.bf16.gmra.mrb[44].mxu1 %v2679_v1 }
 0x104   : > { %1263 = vmatprep.mubr.bf16.mxu0 %v2680_v2  ;;  %1391 = vmatprep.mubr.bf16.mxu1 %v2682_v3  ;;  %v561_v2 = vld [vmem:[#allocation2 + $0x30] sm:$0xff] }
 0x105   : > { %v593_v3 = vld [vmem:[#allocation2 + $0x130] sm:$0xff] }
 0x10b   : > { %1264 = vmatmul.mubr.bf16.gmra.mrb[48].mxu0 %v2684_v4  ;;  %1392 = vmatmul.mubr.bf16.gmra.mrb[48].mxu1 %v2685_v5 }
 0x10c   : > { %1271 = vmatprep.mubr.bf16.mxu0 %v2686_v6  ;;  %1399 = vmatprep.mubr.bf16.mxu1 %v2688_v7  ;;  %v562_v6 = vld [vmem:[#allocation2 + $0x38] sm:$0xff] }
 0x10d   : > { %v594_v7 = vld [vmem:[#allocation2 + $0x138] sm:$0xff] }
 0x113   : > { %1272 = vmatmul.mubr.bf16.gmra.mrb[52].mxu0 %v2690_v8  ;;  %1400 = vmatmul.mubr.bf16.gmra.mrb[52].mxu1 %v2691_v9 }
 0x114   : > { %1279 = vmatprep.mubr.bf16.mxu0 %v2692_v10  ;;  %1407 = vmatprep.mubr.bf16.mxu1 %v2694_v11 }
 0x11b   : > { %1280 = vmatmul.mubr.bf16.gmra.mrb[56].mxu0 %v2696_v12  ;;  %1408 = vmatmul.mubr.bf16.gmra.mrb[56].mxu1 %v2697_v13 }
 0x11c   : > { %1287 = vmatprep.mubr.bf16.mxu0 %v2698_v14  ;;  %1415 = vmatprep.mubr.bf16.mxu1 %v2700_v15 }
 0x123   : > { %1288 = vmatmul.mubr.bf16.gmra.mrb[60].mxu0 %v2702_v16  ;;  %1416 = vmatmul.mubr.bf16.gmra.mrb[60].mxu1 %v2703_v17 }
 0x17e   : > { %v1169_v20 = vpop.f32.mrb[0].mxu0  ;;  %v1297_v21 = vpop.f32.mrb[0].mxu1 }
 0x17f   : > { %v1424_v24 = vadd.f32 %v1169_v20, %v555_v18  ;;  %v1456_v25 = vadd.f32 %v1297_v21, %v587_v19  ;;  %v1171_v26 = vpop.f32.mrb[1].mxu0  ;;  %v1299_v27 = vpop.f32.mrb[1].mxu1  ;;  %v563_v18 = vld [vmem:[#allocation2 + $0x40] sm:$0xff] }
 0x180   : > { %v1172_v28 = vpop.f32.mrb[2].mxu0  ;;  %v1300_v29 = vpop.f32.mrb[2].mxu1  ;;  %v595_v19 = vld [vmem:[#allocation2 + $0x140] sm:$0xff] }
 0x181   : > { %1488 = vst [vmem:[#allocation2] sm:$0xff] %v1424_v24  ;;  %1520 = vst [vmem:[#allocation2 + $0x100] sm:$0xff] %v1456_v25  ;;  %v1425_v30 = vadd.f32 %v1172_v28, %v556_v22  ;;  %v1457_v31 = vadd.f32 %v1300_v29, %v588_v23  ;;  %v1174_v32 = vpop.f32.mrb[3].mxu0  ;;  %v1302_v33 = vpop.f32.mrb[3].mxu1  ;;  %v564_v22 = vld [vmem:[#allocation2 + $0x48] sm:$0xff] }
 0x182   : > { %v596_v23 = vld [vmem:[#allocation2 + $0x148] sm:$0xff] }
 0x183   : > { %1489 = vst [vmem:[#allocation2 + $0x8] sm:$0xff] %v1425_v30  ;;  %1521 = vst [vmem:[#allocation2 + $0x108] sm:$0xff] %v1457_v31 }
 0x186   : > { %v1177_v36 = vpop.f32.mrb[4].mxu0  ;;  %v1305_v37 = vpop.f32.mrb[4].mxu1 }
 0x187   : > { %v1426_v40 = vadd.f32 %v1177_v36, %v557_v34  ;;  %v1458_v41 = vadd.f32 %v1305_v37, %v589_v35  ;;  %v1179_v42 = vpop.f32.mrb[5].mxu0  ;;  %v1307_v43 = vpop.f32.mrb[5].mxu1  ;;  %v565_v34 = vld [vmem:[#allocation2 + $0x50] sm:$0xff] }
 0x188   : > { %v1180_v44 = vpop.f32.mrb[6].mxu0  ;;  %v1308_v45 = vpop.f32.mrb[6].mxu1  ;;  %v597_v35 = vld [vmem:[#allocation2 + $0x150] sm:$0xff] }
 0x189   : > { %1490 = vst [vmem:[#allocation2 + $0x10] sm:$0xff] %v1426_v40  ;;  %1522 = vst [vmem:[#allocation2 + $0x110] sm:$0xff] %v1458_v41  ;;  %v1427_v46 = vadd.f32 %v1180_v44, %v558_v38  ;;  %v1459_v47 = vadd.f32 %v1308_v45, %v590_v39  ;;  %v1182_v48 = vpop.f32.mrb[7].mxu0  ;;  %v1310_v49 = vpop.f32.mrb[7].mxu1  ;;  %v566_v38 = vld [vmem:[#allocation2 + $0x58] sm:$0xff] }
 0x18a   : > { %v598_v39 = vld [vmem:[#allocation2 + $0x158] sm:$0xff] }
 0x18b   : > { %1491 = vst [vmem:[#allocation2 + $0x18] sm:$0xff] %v1427_v46  ;;  %1523 = vst [vmem:[#allocation2 + $0x118] sm:$0xff] %v1459_v47 }
 0x18e   : > { %v1185_v52 = vpop.f32.mrb[8].mxu0  ;;  %v1313_v53 = vpop.f32.mrb[8].mxu1 }
 0x18f   : > { %v1428_v56 = vadd.f32 %v1185_v52, %v559_v50  ;;  %v1460_v57 = vadd.f32 %v1313_v53, %v591_v51  ;;  %v1187_v58 = vpop.f32.mrb[9].mxu0  ;;  %v1315_v59 = vpop.f32.mrb[9].mxu1  ;;  %v567_v50 = vld [vmem:[#allocation2 + $0x60] sm:$0xff] }
 0x190   : > { %v1188_v60 = vpop.f32.mrb[10].mxu0  ;;  %v1316_v61 = vpop.f32.mrb[10].mxu1  ;;  %v599_v51 = vld [vmem:[#allocation2 + $0x160] sm:$0xff] }
 0x191   : > { %1492 = vst [vmem:[#allocation2 + $0x20] sm:$0xff] %v1428_v56  ;;  %1524 = vst [vmem:[#allocation2 + $0x120] sm:$0xff] %v1460_v57  ;;  %v1429_v62 = vadd.f32 %v1188_v60, %v560_v54  ;;  %v1461_v63 = vadd.f32 %v1316_v61, %v592_v55  ;;  %v1190_v0 = vpop.f32.mrb[11].mxu0  ;;  %v1318_v1 = vpop.f32.mrb[11].mxu1  ;;  %v568_v54 = vld [vmem:[#allocation2 + $0x68] sm:$0xff] }
 0x192   : > { %v600_v55 = vld [vmem:[#allocation2 + $0x168] sm:$0xff] }
 0x193   : > { %1493 = vst [vmem:[#allocation2 + $0x28] sm:$0xff] %v1429_v62  ;;  %1525 = vst [vmem:[#allocation2 + $0x128] sm:$0xff] %v1461_v63 }
 0x196   : > { %v1193_v4 = vpop.f32.mrb[12].mxu0  ;;  %v1321_v5 = vpop.f32.mrb[12].mxu1 }
 0x197   : > { %v1430_v8 = vadd.f32 %v1193_v4, %v561_v2  ;;  %v1462_v9 = vadd.f32 %v1321_v5, %v593_v3  ;;  %v1195_v10 = vpop.f32.mrb[13].mxu0  ;;  %v1323_v11 = vpop.f32.mrb[13].mxu1  ;;  %v569_v2 = vld [vmem:[#allocation2 + $0x70] sm:$0xff] }
 0x198   : > { %v1196_v12 = vpop.f32.mrb[14].mxu0  ;;  %v1324_v13 = vpop.f32.mrb[14].mxu1  ;;  %v601_v3 = vld [vmem:[#allocation2 + $0x170] sm:$0xff] }
 0x199   : > { %1494 = vst [vmem:[#allocation2 + $0x30] sm:$0xff] %v1430_v8  ;;  %1526 = vst [vmem:[#allocation2 + $0x130] sm:$0xff] %v1462_v9  ;;  %v1431_v14 = vadd.f32 %v1196_v12, %v562_v6  ;;  %v1463_v15 = vadd.f32 %v1324_v13, %v594_v7  ;;  %v1198_v16 = vpop.f32.mrb[15].mxu0  ;;  %v1326_v17 = vpop.f32.mrb[15].mxu1  ;;  %v570_v6 = vld [vmem:[#allocation2 + $0x78] sm:$0xff] }
 0x19a   : > { %v602_v7 = vld [vmem:[#allocation2 + $0x178] sm:$0xff] }
 0x19b   : > { %1495 = vst [vmem:[#allocation2 + $0x38] sm:$0xff] %v1431_v14  ;;  %1527 = vst [vmem:[#allocation2 + $0x138] sm:$0xff] %v1463_v15 }
 0x19e   : > { %v1201_v20 = vpop.f32.mrb[16].mxu0  ;;  %v1329_v21 = vpop.f32.mrb[16].mxu1 }
 0x19f   : > { %v1432_v24 = vadd.f32 %v1201_v20, %v563_v18  ;;  %v1464_v25 = vadd.f32 %v1329_v21, %v595_v19  ;;  %v1203_v26 = vpop.f32.mrb[17].mxu0  ;;  %v1331_v27 = vpop.f32.mrb[17].mxu1  ;;  %v571_v18 = vld [vmem:[#allocation2 + $0x80] sm:$0xff] }
 0x1a0   : > { %v1204_v28 = vpop.f32.mrb[18].mxu0  ;;  %v1332_v29 = vpop.f32.mrb[18].mxu1  ;;  %v603_v19 = vld [vmem:[#allocation2 + $0x180] sm:$0xff] }
 0x1a1   : > { %1496 = vst [vmem:[#allocation2 + $0x40] sm:$0xff] %v1432_v24  ;;  %1528 = vst [vmem:[#allocation2 + $0x140] sm:$0xff] %v1464_v25  ;;  %v1433_v30 = vadd.f32 %v1204_v28, %v564_v22  ;;  %v1465_v31 = vadd.f32 %v1332_v29, %v596_v23  ;;  %v1206_v32 = vpop.f32.mrb[19].mxu0  ;;  %v1334_v33 = vpop.f32.mrb[19].mxu1  ;;  %v572_v22 = vld [vmem:[#allocation2 + $0x88] sm:$0xff] }
 0x1a2   : > { %v604_v23 = vld [vmem:[#allocation2 + $0x188] sm:$0xff] }
 0x1a3   : > { %1497 = vst [vmem:[#allocation2 + $0x48] sm:$0xff] %v1433_v30  ;;  %1529 = vst [vmem:[#allocation2 + $0x148] sm:$0xff] %v1465_v31 }
 0x1a6   : > { %v1209_v36 = vpop.f32.mrb[20].mxu0  ;;  %v1337_v37 = vpop.f32.mrb[20].mxu1 }
 0x1a7   : > { %v1434_v40 = vadd.f32 %v1209_v36, %v565_v34  ;;  %v1466_v41 = vadd.f32 %v1337_v37, %v597_v35  ;;  %v1211_v42 = vpop.f32.mrb[21].mxu0  ;;  %v1339_v43 = vpop.f32.mrb[21].mxu1  ;;  %v573_v34 = vld [vmem:[#allocation2 + $0x90] sm:$0xff] }
 0x1a8   : > { %v1212_v44 = vpop.f32.mrb[22].mxu0  ;;  %v1340_v45 = vpop.f32.mrb[22].mxu1  ;;  %v605_v35 = vld [vmem:[#allocation2 + $0x190] sm:$0xff] }
 0x1a9   : > { %1498 = vst [vmem:[#allocation2 + $0x50] sm:$0xff] %v1434_v40  ;;  %1530 = vst [vmem:[#allocation2 + $0x150] sm:$0xff] %v1466_v41  ;;  %v1435_v46 = vadd.f32 %v1212_v44, %v566_v38  ;;  %v1467_v47 = vadd.f32 %v1340_v45, %v598_v39  ;;  %v1214_v48 = vpop.f32.mrb[23].mxu0  ;;  %v1342_v49 = vpop.f32.mrb[23].mxu1  ;;  %v574_v38 = vld [vmem:[#allocation2 + $0x98] sm:$0xff] }
 0x1aa   : > { %v606_v39 = vld [vmem:[#allocation2 + $0x198] sm:$0xff] }
 0x1ab   : > { %1499 = vst [vmem:[#allocation2 + $0x58] sm:$0xff] %v1435_v46  ;;  %1531 = vst [vmem:[#allocation2 + $0x158] sm:$0xff] %v1467_v47 }
 0x1ae   : > { %v1217_v52 = vpop.f32.mrb[24].mxu0  ;;  %v1345_v53 = vpop.f32.mrb[24].mxu1 }
 0x1af   : > { %v1436_v56 = vadd.f32 %v1217_v52, %v567_v50  ;;  %v1468_v57 = vadd.f32 %v1345_v53, %v599_v51  ;;  %v1219_v58 = vpop.f32.mrb[25].mxu0  ;;  %v1347_v59 = vpop.f32.mrb[25].mxu1  ;;  %v575_v50 = vld [vmem:[#allocation2 + $0xa0] sm:$0xff] }
 0x1b0   : > { %v1220_v60 = vpop.f32.mrb[26].mxu0  ;;  %v1348_v61 = vpop.f32.mrb[26].mxu1  ;;  %v607_v51 = vld [vmem:[#allocation2 + $0x1a0] sm:$0xff] }
 0x1b1   : > { %1500 = vst [vmem:[#allocation2 + $0x60] sm:$0xff] %v1436_v56  ;;  %1532 = vst [vmem:[#allocation2 + $0x160] sm:$0xff] %v1468_v57  ;;  %v1437_v62 = vadd.f32 %v1220_v60, %v568_v54  ;;  %v1469_v63 = vadd.f32 %v1348_v61, %v600_v55  ;;  %v1222_v0 = vpop.f32.mrb[27].mxu0  ;;  %v1350_v1 = vpop.f32.mrb[27].mxu1  ;;  %v576_v54 = vld [vmem:[#allocation2 + $0xa8] sm:$0xff] }
 0x1b2   : > { %v608_v55 = vld [vmem:[#allocation2 + $0x1a8] sm:$0xff] }
 0x1b3   : > { %1501 = vst [vmem:[#allocation2 + $0x68] sm:$0xff] %v1437_v62  ;;  %1533 = vst [vmem:[#allocation2 + $0x168] sm:$0xff] %v1469_v63 }
 0x1b6   : > { %v1225_v4 = vpop.f32.mrb[28].mxu0  ;;  %v1353_v5 = vpop.f32.mrb[28].mxu1 }
 0x1b7   : > { %v1438_v8 = vadd.f32 %v1225_v4, %v569_v2  ;;  %v1470_v9 = vadd.f32 %v1353_v5, %v601_v3  ;;  %v1227_v10 = vpop.f32.mrb[29].mxu0  ;;  %v1355_v11 = vpop.f32.mrb[29].mxu1  ;;  %v577_v2 = vld [vmem:[#allocation2 + $0xb0] sm:$0xff] }
 0x1b8   : > { %v1228_v12 = vpop.f32.mrb[30].mxu0  ;;  %v1356_v13 = vpop.f32.mrb[30].mxu1  ;;  %v609_v3 = vld [vmem:[#allocation2 + $0x1b0] sm:$0xff] }
 0x1b9   : > { %1502 = vst [vmem:[#allocation2 + $0x70] sm:$0xff] %v1438_v8  ;;  %1534 = vst [vmem:[#allocation2 + $0x170] sm:$0xff] %v1470_v9  ;;  %v1439_v14 = vadd.f32 %v1228_v12, %v570_v6  ;;  %v1471_v15 = vadd.f32 %v1356_v13, %v602_v7  ;;  %v1230_v16 = vpop.f32.mrb[31].mxu0  ;;  %v1358_v17 = vpop.f32.mrb[31].mxu1  ;;  %v578_v6 = vld [vmem:[#allocation2 + $0xb8] sm:$0xff] }
 0x1ba   : > { %v610_v7 = vld [vmem:[#allocation2 + $0x1b8] sm:$0xff] }
 0x1bb   : > { %1503 = vst [vmem:[#allocation2 + $0x78] sm:$0xff] %v1439_v14  ;;  %1535 = vst [vmem:[#allocation2 + $0x178] sm:$0xff] %v1471_v15 }
 0x1be   : > { %v1233_v20 = vpop.f32.mrb[32].mxu0  ;;  %v1361_v21 = vpop.f32.mrb[32].mxu1 }
 0x1bf   : > { %v1440_v24 = vadd.f32 %v1233_v20, %v571_v18  ;;  %v1472_v25 = vadd.f32 %v1361_v21, %v603_v19  ;;  %v1235_v26 = vpop.f32.mrb[33].mxu0  ;;  %v1363_v27 = vpop.f32.mrb[33].mxu1  ;;  %v579_v18 = vld [vmem:[#allocation2 + $0xc0] sm:$0xff] }
 0x1c0   : > { %v1236_v28 = vpop.f32.mrb[34].mxu0  ;;  %v1364_v29 = vpop.f32.mrb[34].mxu1  ;;  %v611_v19 = vld [vmem:[#allocation2 + $0x1c0] sm:$0xff] }
 0x1c1   : > { %1504 = vst [vmem:[#allocation2 + $0x80] sm:$0xff] %v1440_v24  ;;  %1536 = vst [vmem:[#allocation2 + $0x180] sm:$0xff] %v1472_v25  ;;  %v1441_v30 = vadd.f32 %v1236_v28, %v572_v22  ;;  %v1473_v31 = vadd.f32 %v1364_v29, %v604_v23  ;;  %v1238_v32 = vpop.f32.mrb[35].mxu0  ;;  %v1366_v33 = vpop.f32.mrb[35].mxu1  ;;  %v580_v22 = vld [vmem:[#allocation2 + $0xc8] sm:$0xff] }
 0x1c2   : > { %v612_v23 = vld [vmem:[#allocation2 + $0x1c8] sm:$0xff] }
 0x1c3   : > { %1505 = vst [vmem:[#allocation2 + $0x88] sm:$0xff] %v1441_v30  ;;  %1537 = vst [vmem:[#allocation2 + $0x188] sm:$0xff] %v1473_v31 }
 0x1c6   : > { %v1241_v36 = vpop.f32.mrb[36].mxu0  ;;  %v1369_v37 = vpop.f32.mrb[36].mxu1 }
 0x1c7   : > { %v1442_v40 = vadd.f32 %v1241_v36, %v573_v34  ;;  %v1474_v41 = vadd.f32 %v1369_v37, %v605_v35  ;;  %v1243_v42 = vpop.f32.mrb[37].mxu0  ;;  %v1371_v43 = vpop.f32.mrb[37].mxu1  ;;  %v581_v34 = vld [vmem:[#allocation2 + $0xd0] sm:$0xff] }
 0x1c8   : > { %v1244_v44 = vpop.f32.mrb[38].mxu0  ;;  %v1372_v45 = vpop.f32.mrb[38].mxu1  ;;  %v613_v35 = vld [vmem:[#allocation2 + $0x1d0] sm:$0xff] }
 0x1c9   : > { %1506 = vst [vmem:[#allocation2 + $0x90] sm:$0xff] %v1442_v40  ;;  %1538 = vst [vmem:[#allocation2 + $0x190] sm:$0xff] %v1474_v41  ;;  %v1443_v46 = vadd.f32 %v1244_v44, %v574_v38  ;;  %v1475_v47 = vadd.f32 %v1372_v45, %v606_v39  ;;  %v1246_v48 = vpop.f32.mrb[39].mxu0  ;;  %v1374_v49 = vpop.f32.mrb[39].mxu1  ;;  %v582_v38 = vld [vmem:[#allocation2 + $0xd8] sm:$0xff] }
 0x1ca   : > { %v614_v39 = vld [vmem:[#allocation2 + $0x1d8] sm:$0xff] }
 0x1cb   : > { %1507 = vst [vmem:[#allocation2 + $0x98] sm:$0xff] %v1443_v46  ;;  %1539 = vst [vmem:[#allocation2 + $0x198] sm:$0xff] %v1475_v47 }
 0x1ce   : > { %v1249_v52 = vpop.f32.mrb[40].mxu0  ;;  %v1377_v53 = vpop.f32.mrb[40].mxu1 }
 0x1cf   : > { %v1444_v56 = vadd.f32 %v1249_v52, %v575_v50  ;;  %v1476_v57 = vadd.f32 %v1377_v53, %v607_v51  ;;  %v1251_v58 = vpop.f32.mrb[41].mxu0  ;;  %v1379_v59 = vpop.f32.mrb[41].mxu1  ;;  %v583_v50 = vld [vmem:[#allocation2 + $0xe0] sm:$0xff] }
 0x1d0   : > { %v1252_v60 = vpop.f32.mrb[42].mxu0  ;;  %v1380_v61 = vpop.f32.mrb[42].mxu1  ;;  %v615_v51 = vld [vmem:[#allocation2 + $0x1e0] sm:$0xff] }
 0x1d1   : > { %1508 = vst [vmem:[#allocation2 + $0xa0] sm:$0xff] %v1444_v56  ;;  %1540 = vst [vmem:[#allocation2 + $0x1a0] sm:$0xff] %v1476_v57  ;;  %v1445_v62 = vadd.f32 %v1252_v60, %v576_v54  ;;  %v1477_v63 = vadd.f32 %v1380_v61, %v608_v55  ;;  %v1254_v0 = vpop.f32.mrb[43].mxu0  ;;  %v1382_v1 = vpop.f32.mrb[43].mxu1  ;;  %v584_v54 = vld [vmem:[#allocation2 + $0xe8] sm:$0xff] }
 0x1d2   : > { %v616_v55 = vld [vmem:[#allocation2 + $0x1e8] sm:$0xff] }
 0x1d3   : > { %1509 = vst [vmem:[#allocation2 + $0xa8] sm:$0xff] %v1445_v62  ;;  %1541 = vst [vmem:[#allocation2 + $0x1a8] sm:$0xff] %v1477_v63 }
 0x1d6   : > { %v1257_v4 = vpop.f32.mrb[44].mxu0  ;;  %v1385_v5 = vpop.f32.mrb[44].mxu1 }
 0x1d7   : > { %v1446_v8 = vadd.f32 %v1257_v4, %v577_v2  ;;  %v1478_v9 = vadd.f32 %v1385_v5, %v609_v3  ;;  %v1259_v10 = vpop.f32.mrb[45].mxu0  ;;  %v1387_v11 = vpop.f32.mrb[45].mxu1  ;;  %v585_v2 = vld [vmem:[#allocation2 + $0xf0] sm:$0xff] }
 0x1d8   : > { %v1260_v12 = vpop.f32.mrb[46].mxu0  ;;  %v1388_v13 = vpop.f32.mrb[46].mxu1  ;;  %v617_v3 = vld [vmem:[#allocation2 + $0x1f0] sm:$0xff] }
 0x1d9   : > { %1510 = vst [vmem:[#allocation2 + $0xb0] sm:$0xff] %v1446_v8  ;;  %1542 = vst [vmem:[#allocation2 + $0x1b0] sm:$0xff] %v1478_v9  ;;  %v1447_v14 = vadd.f32 %v1260_v12, %v578_v6  ;;  %v1479_v15 = vadd.f32 %v1388_v13, %v610_v7  ;;  %v1262_v16 = vpop.f32.mrb[47].mxu0  ;;  %v1390_v17 = vpop.f32.mrb[47].mxu1  ;;  %v586_v6 = vld [vmem:[#allocation2 + $0xf8] sm:$0xff] }
 0x1da   : > { %v618_v7 = vld [vmem:[#allocation2 + $0x1f8] sm:$0xff] }
 0x1db   : > { %1511 = vst [vmem:[#allocation2 + $0xb8] sm:$0xff] %v1447_v14  ;;  %1543 = vst [vmem:[#allocation2 + $0x1b8] sm:$0xff] %v1479_v15 }
 0x1de   : > { %v1265_v20 = vpop.f32.mrb[48].mxu0  ;;  %v1393_v21 = vpop.f32.mrb[48].mxu1 }
 0x1df   : > { %v1448_v24 = vadd.f32 %v1265_v20, %v579_v18  ;;  %v1480_v25 = vadd.f32 %v1393_v21, %v611_v19  ;;  %v1267_v26 = vpop.f32.mrb[49].mxu0  ;;  %v1395_v27 = vpop.f32.mrb[49].mxu1  ;;  %v1556_v18 = vld [vmem:[#allocation2] sm:$0xff] (!%p2180_p12)  ;;  %v1557_v19 = vld [vmem:[#allocation2 + $0x8] sm:$0xff] (!%p2180_p12)  ;;  %v1558_v20 = vld [vmem:[#allocation2 + $0x10] sm:$0xff] (!%p2180_p12) }
 0x1e0   : > { %v1268_v28 = vpop.f32.mrb[50].mxu0  ;;  %v1396_v29 = vpop.f32.mrb[50].mxu1  ;;  %v1620_v21 = vmax.f32 (!%p2180_p12), %v1556_v18, 0.0  ;;  %v1561_v26 = vld [vmem:[#allocation2 + $0x28] sm:$0xff] (!%p2180_p12) }
 0x1e1   : > { %1512 = vst [vmem:[#allocation2 + $0xc0] sm:$0xff] %v1448_v24  ;;  %1544 = vst [vmem:[#allocation2 + $0x1c0] sm:$0xff] %v1480_v25  ;;  %v1449_v30 = vadd.f32 %v1268_v28, %v580_v22  ;;  %v1481_v31 = vadd.f32 %v1396_v29, %v612_v23  ;;  %v1270_v32 = vpop.f32.mrb[51].mxu0  ;;  %v1398_v33 = vpop.f32.mrb[51].mxu1  ;;  %v1621_v22 = vmax.f32 (!%p2180_p12), %v1557_v19, 0.0  ;;  %v1559_v23 = vld [vmem:[#allocation2 + $0x18] sm:$0xff] (!%p2180_p12) }
 0x1e2   : > { %v1622_v24 = vmax.f32 (!%p2180_p12), %v1558_v20, 0.0  ;;  %v1560_v25 = vld [vmem:[#allocation2 + $0x20] sm:$0xff] (!%p2180_p12)  ;;  %v1623_v27 = vmax.f32 (!%p2180_p12), %v1559_v23, 0.0  ;;  %v1625_v29 = vmax.f32 (!%p2180_p12), %v1561_v26, 0.0 }
 0x1e3   : > { %1513 = vst [vmem:[#allocation2 + $0xc8] sm:$0xff] %v1449_v30  ;;  %1545 = vst [vmem:[#allocation2 + $0x1c8] sm:$0xff] %v1481_v31  ;;  %v1624_v28 = vmax.f32 (!%p2180_p12), %v1560_v25, 0.0  ;;  %v1562_v30 = vld [vmem:[#allocation2 + $0x30] sm:$0xff] (!%p2180_p12)  ;;  %v1563_v31 = vld [vmem:[#allocation2 + $0x38] sm:$0xff] (!%p2180_p12)  ;;  %v2314_v33 = vpack.c.bf16 (!%p2180_p12), %v1621_v22, %v1620_v21 }
 0x1e4   : > { %v1564_v32 = vld [vmem:[#allocation2 + $0x40] sm:$0xff] (!%p2180_p12) }
 0x1e5   : > { %2315 = vst [vmem:[%s2980_s24] sm:$0xff] (!%p2180_p12), %v2314_v33  }
 0x1e6   : > { %v1273_v36 = vpop.f32.mrb[52].mxu0  ;;  %v1401_v37 = vpop.f32.mrb[52].mxu1 }
 0x1e7   : > { %v1450_v40 = vadd.f32 %v1273_v36, %v581_v34  ;;  %v1482_v41 = vadd.f32 %v1401_v37, %v613_v35  ;;  %v1275_v42 = vpop.f32.mrb[53].mxu0  ;;  %v1403_v43 = vpop.f32.mrb[53].mxu1  ;;  %v1626_v34 = vmax.f32 (!%p2180_p12), %v1562_v30, 0.0  ;;  %v1627_v35 = vmax.f32 (!%p2180_p12), %v1563_v31, 0.0  ;;  %v1565_v36 = vld [vmem:[#allocation2 + $0x48] sm:$0xff] (!%p2180_p12)  ;;  %v1590_v30 = vld [vmem:[#allocation2 + $0x110] sm:$0xff] (!%p2180_p12) }
 0x1e8   : > { %v1276_v44 = vpop.f32.mrb[54].mxu0  ;;  %v1404_v45 = vpop.f32.mrb[54].mxu1  ;;  %v1628_v37 = vmax.f32 (!%p2180_p12), %v1564_v32, 0.0  ;;  %v1629_v42 = vmax.f32 (!%p2180_p12), %v1565_v36, 0.0  ;;  %v1591_v31 = vld [vmem:[#allocation2 + $0x118] sm:$0xff] (!%p2180_p12)  ;;  %v1592_v36 = vld [vmem:[#allocation2 + $0x120] sm:$0xff] (!%p2180_p12) }
 0x1e9   : > { %1514 = vst [vmem:[#allocation2 + $0xd0] sm:$0xff] %v1450_v40  ;;  %1546 = vst [vmem:[#allocation2 + $0x1d0] sm:$0xff] %v1482_v41  ;;  %v1451_v46 = vadd.f32 %v1276_v44, %v582_v38  ;;  %v1483_v47 = vadd.f32 %v1404_v45, %v614_v39  ;;  %v1278_v48 = vpop.f32.mrb[55].mxu0  ;;  %v1406_v49 = vpop.f32.mrb[55].mxu1  ;;  %v1566_v38 = vld [vmem:[#allocation2 + $0x50] sm:$0xff] (!%p2180_p12)  ;;  %v1567_v39 = vld [vmem:[#allocation2 + $0x58] sm:$0xff] (!%p2180_p12)  ;;  %v2319_v40 = vpack.c.bf16 (!%p2180_p12), %v1623_v27, %v1622_v24 }
 0x1ea   : > { %v2324_v41 = vpack.c.bf16 (!%p2180_p12), %v1625_v29, %v1624_v28  ;;  %v1630_v43 = vmax.f32 (!%p2180_p12), %v1566_v38, 0.0  ;;  %v1568_v44 = vld [vmem:[#allocation2 + $0x60] sm:$0xff] (!%p2180_p12)  ;;  %v1569_v45 = vld [vmem:[#allocation2 + $0x68] sm:$0xff] (!%p2180_p12)  ;;  %v1631_v48 = vmax.f32 (!%p2180_p12), %v1567_v39, 0.0  ;;  %v1594_v38 = vld [vmem:[#allocation2 + $0x130] sm:$0xff] (!%p2180_p12) }
 0x1eb   : > { %1515 = vst [vmem:[#allocation2 + $0xd8] sm:$0xff] %v1451_v46  ;;  %1547 = vst [vmem:[#allocation2 + $0x1d8] sm:$0xff] %v1483_v47  ;;  %v1570_v46 = vld [vmem:[#allocation2 + $0x70] sm:$0xff] (!%p2180_p12)  ;;  %v2329_v47 = vpack.c.bf16 (!%p2180_p12), %v1627_v35, %v1626_v34  ;;  %v1632_v49 = vmax.f32 (!%p2180_p12), %v1568_v44, 0.0  ;;  %v1588_v24 = vld [vmem:[#allocation2 + $0x100] sm:$0xff] (!%p2180_p12) }
 0x1ec   : > { %2471 = vst [vmem:[%s2980_s24 + $0x8] sm:$0xff] (!%p2180_p12), %v2319_v40   ;;  %2472 = vst [vmem:[%s2980_s24 + $0x10] sm:$0xff] (!%p2180_p12), %v2324_v41   ;;  %v1589_v29 = vld [vmem:[#allocation2 + $0x108] sm:$0xff] (!%p2180_p12)  ;;  %v1652_v35 = vmax.f32 (!%p2180_p12), %v1588_v24, 0.0  ;;  %v1596_v44 = vld [vmem:[#allocation2 + $0x140] sm:$0xff] (!%p2180_p12) }
 0x1ed   : > { %2473 = vst [vmem:[%s2980_s24 + $0x18] sm:$0xff] (!%p2180_p12), %v2329_v47   ;;  %v1653_v41 = vmax.f32 (!%p2180_p12), %v1589_v29, 0.0  ;;  %v1655_v47 = vmax.f32 (!%p2180_p12), %v1591_v31, 0.0 }
 0x1ee   : > { %v1281_v52 = vpop.f32.mrb[56].mxu0  ;;  %v1409_v53 = vpop.f32.mrb[56].mxu1 }
 0x1ef   : > { %v1452_v56 = vadd.f32 %v1281_v52, %v583_v50  ;;  %v1484_v57 = vadd.f32 %v1409_v53, %v615_v51  ;;  %v1283_v58 = vpop.f32.mrb[57].mxu0  ;;  %v1411_v59 = vpop.f32.mrb[57].mxu1  ;;  %v1633_v50 = vmax.f32 (!%p2180_p12), %v1569_v45, 0.0  ;;  %v1571_v51 = vld [vmem:[#allocation2 + $0x78] sm:$0xff] (!%p2180_p12)  ;;  %v1572_v52 = vld [vmem:[#allocation2 + $0x80] sm:$0xff] (!%p2180_p12)  ;;  %v1573_v53 = vld [vmem:[#allocation2 + $0x88] sm:$0xff] (!%p2180_p12) }
 0x1f0   : > { %v1284_v60 = vpop.f32.mrb[58].mxu0  ;;  %v1412_v61 = vpop.f32.mrb[58].mxu1  ;;  %v1574_v58 = vld [vmem:[#allocation2 + $0x90] sm:$0xff] (!%p2180_p12)  ;;  %v1575_v59 = vld [vmem:[#allocation2 + $0x98] sm:$0xff] (!%p2180_p12)  ;;  %v1597_v45 = vld [vmem:[#allocation2 + $0x148] sm:$0xff] (!%p2180_p12) }
 0x1f1   : > { %1516 = vst [vmem:[#allocation2 + $0xe0] sm:$0xff] %v1452_v56  ;;  %1548 = vst [vmem:[#allocation2 + $0x1e0] sm:$0xff] %v1484_v57  ;;  %v1453_v62 = vadd.f32 %v1284_v60, %v584_v54  ;;  %v1485_v63 = vadd.f32 %v1412_v61, %v616_v55  ;;  %v1286_v0 = vpop.f32.mrb[59].mxu0  ;;  %v1414_v1 = vpop.f32.mrb[59].mxu1  ;;  %v2334_v54 = vpack.c.bf16 (!%p2180_p12), %v1629_v42, %v1628_v37  ;;  %v1634_v55 = vmax.f32 (!%p2180_p12), %v1570_v46, 0.0  ;;  %v1576_v60 = vld [vmem:[#allocation2 + $0xa0] sm:$0xff] (!%p2180_p12) }
 0x1f2   : > { %v1635_v56 = vmax.f32 (!%p2180_p12), %v1571_v51, 0.0  ;;  %v1636_v57 = vmax.f32 (!%p2180_p12), %v1572_v52, 0.0  ;;  %v2339_v61 = vpack.c.bf16 (!%p2180_p12), %v1631_v48, %v1630_v43  ;;  %v1638_v0 = vmax.f32 (!%p2180_p12), %v1574_v58, 0.0  ;;  %v1577_v1 = vld [vmem:[#allocation2 + $0xa8] sm:$0xff] (!%p2180_p12)  ;;  %v1595_v43 = vld [vmem:[#allocation2 + $0x138] sm:$0xff] (!%p2180_p12)  ;;  %v1600_v52 = vld [vmem:[#allocation2 + $0x160] sm:$0xff] (!%p2180_p12) }
 0x1f3   : > { %1517 = vst [vmem:[#allocation2 + $0xe8] sm:$0xff] %v1453_v62  ;;  %1549 = vst [vmem:[#allocation2 + $0x1e8] sm:$0xff] %v1485_v63  ;;  %v2344_v62 = vpack.c.bf16 (!%p2180_p12), %v1633_v50, %v1632_v49  ;;  %v1637_v63 = vmax.f32 (!%p2180_p12), %v1573_v53, 0.0  ;;  %v1593_v37 = vld [vmem:[#allocation2 + $0x128] sm:$0xff] (!%p2180_p12)  ;;  %v1654_v42 = vmax.f32 (!%p2180_p12), %v1590_v30, 0.0  ;;  %v1656_v48 = vmax.f32 (!%p2180_p12), %v1592_v36, 0.0 }
 0x1f4   : > { %2474 = vst [vmem:[%s2980_s24 + $0x20] sm:$0xff] (!%p2180_p12), %v2334_v54   ;;  %2475 = vst [vmem:[%s2980_s24 + $0x28] sm:$0xff] (!%p2180_p12), %v2339_v61   ;;  %v1657_v49 = vmax.f32 (!%p2180_p12), %v1593_v37, 0.0  ;;  %v1598_v50 = vld [vmem:[#allocation2 + $0x150] sm:$0xff] (!%p2180_p12)  ;;  %v1599_v51 = vld [vmem:[#allocation2 + $0x158] sm:$0xff] (!%p2180_p12)  ;;  %v2394_v53 = vpack.c.bf16 (!%p2180_p12), %v1653_v41, %v1652_v35  ;;  %v1658_v54 = vmax.f32 (!%p2180_p12), %v1594_v38, 0.0 }
 0x1f5   : > { %1555 = sbr.rel (%p2180_p12) target bundleno = 524 (0x20c), region = 78  ;;  %2476 = vst [vmem:[%s2980_s24 + $0x30] sm:$0xff] (!%p2180_p12), %v2344_v62   ;;  %v1602_v58 = vld [vmem:[#allocation2 + $0x170] sm:$0xff] (!%p2180_p12)  ;;  %v1661_v62 = vmax.f32 (!%p2180_p12), %v1597_v45, 0.0 }
 0x1f6   : > { %v1289_v4 = vpop.f32.mrb[60].mxu0  ;;  %v1417_v5 = vpop.f32.mrb[60].mxu1  ;;  %v2404_v61 = vpack.c.bf16 (!%p2180_p12), %v1657_v49, %v1656_v48  ;;  %2486 = vst [vmem:[%s2980_s24 + $0x80] sm:$0xff] (!%p2180_p12), %v2394_v53  }
 0x1f7   : > { %v1454_v8 = vadd.f32 %v1289_v4, %v585_v2  ;;  %v1486_v9 = vadd.f32 %v1417_v5, %v617_v3  ;;  %v1291_v10 = vpop.f32.mrb[61].mxu0  ;;  %v1419_v11 = vpop.f32.mrb[61].mxu1  ;;  %v1578_v2 = vld [vmem:[#allocation2 + $0xb0] sm:$0xff] (!%p2180_p12)  ;;  %v1579_v3 = vld [vmem:[#allocation2 + $0xb8] sm:$0xff] (!%p2180_p12)  ;;  %v2349_v4 = vpack.c.bf16 (!%p2180_p12), %v1635_v56, %v1634_v55  ;;  %v1639_v5 = vmax.f32 (!%p2180_p12), %v1575_v59, 0.0 }
 0x1f8   : > { %v1292_v12 = vpop.f32.mrb[62].mxu0  ;;  %v1420_v13 = vpop.f32.mrb[62].mxu1  ;;  %v1582_v10 = vld [vmem:[#allocation2 + $0xd0] sm:$0xff] (!%p2180_p12)  ;;  %v2354_v11 = vpack.c.bf16 (!%p2180_p12), %v1637_v63, %v1636_v57  ;;  %v1659_v55 = vmax.f32 (!%p2180_p12), %v1595_v43, 0.0  ;;  %v1660_v56 = vmax.f32 (!%p2180_p12), %v1596_v44, 0.0  ;;  %v1601_v57 = vld [vmem:[#allocation2 + $0x168] sm:$0xff] (!%p2180_p12) }
 0x1f9   : > { %1518 = vst [vmem:[#allocation2 + $0xf0] sm:$0xff] %v1454_v8  ;;  %1550 = vst [vmem:[#allocation2 + $0x1f0] sm:$0xff] %v1486_v9  ;;  %v1455_v14 = vadd.f32 %v1292_v12, %v586_v6  ;;  %v1487_v15 = vadd.f32 %v1420_v13, %v618_v7  ;;  %v1294_v16 = vpop.f32.mrb[63].mxu0  ;;  %v1422_v17 = vpop.f32.mrb[63].mxu1  ;;  %v1640_v6 = vmax.f32 (!%p2180_p12), %v1576_v60, 0.0  ;;  %v1641_v7 = vmax.f32 (!%p2180_p12), %v1577_v1, 0.0 }
 0x1fa   : > { %v1580_v8 = vld [vmem:[#allocation2 + $0xc0] sm:$0xff] (!%p2180_p12)  ;;  %v1581_v9 = vld [vmem:[#allocation2 + $0xc8] sm:$0xff] (!%p2180_p12)  ;;  %v1642_v12 = vmax.f32 (!%p2180_p12), %v1578_v2, 0.0  ;;  %v1643_v13 = vmax.f32 (!%p2180_p12), %v1579_v3, 0.0  ;;  %2477 = vst [vmem:[%s2980_s24 + $0x38] sm:$0xff] (!%p2180_p12), %v2349_v4   ;;  %v2359_v18 = vpack.c.bf16 (!%p2180_p12), %v1639_v5, %v1638_v0  ;;  %v1646_v21 = vmax.f32 (!%p2180_p12), %v1582_v10, 0.0 }
 0x1fb   : > { %1519 = vst [vmem:[#allocation2 + $0xf8] sm:$0xff] %v1455_v14  ;;  %1551 = vst [vmem:[#allocation2 + $0x1f8] sm:$0xff] %v1487_v15  ;;  %v1644_v14 = vmax.f32 (!%p2180_p12), %v1580_v8, 0.0  ;;  %v1583_v15 = vld [vmem:[#allocation2 + $0xd8] sm:$0xff] (!%p2180_p12)  ;;  %v1584_v16 = vld [vmem:[#allocation2 + $0xe0] sm:$0xff] (!%p2180_p12)  ;;  %v2364_v19 = vpack.c.bf16 (!%p2180_p12), %v1641_v7, %v1640_v6  ;;  %v1645_v20 = vmax.f32 (!%p2180_p12), %v1581_v9, 0.0  ;;  %v2399_v60 = vpack.c.bf16 (!%p2180_p12), %v1655_v47, %v1654_v42 }
 0x1fc   : > { %v1585_v17 = vld [vmem:[#allocation2 + $0xe8] sm:$0xff]  ;;  %2478 = vst [vmem:[%s2980_s24 + $0x40] sm:$0xff] %v2354_v11   ;;  %v2369_v25 = vpack.c.bf16 %v1643_v13, %v1642_v12  ;;  %v1647_v26 = vmax.f32 %v1583_v15, 0.0  ;;  %v1648_v27 = vmax.f32 %v1584_v16, 0.0  ;;  %2479 = vst [vmem:[%s2980_s24 + $0x48] sm:$0xff] %v2359_v18   ;;  %v1603_v59 = vld [vmem:[#allocation2 + $0x178] sm:$0xff]  ;;  %v2409_v3 = vpack.c.bf16 %v1659_v55, %v1658_v54 }
 0x1fd   : > { %v1649_v28 = vmax.f32 %v1585_v17, 0.0  ;;  %2480 = vst [vmem:[%s2980_s24 + $0x50] sm:$0xff] %v2364_v19   ;;  %v2374_v32 = vpack.c.bf16 %v1645_v20, %v1644_v14  ;;  %v1662_v63 = vmax.f32 %v1598_v50, 0.0  ;;  %v1604_v0 = vld [vmem:[#allocation2 + $0x180] sm:$0xff]  ;;  %v1605_v1 = vld [vmem:[#allocation2 + $0x188] sm:$0xff]  ;;  %v1606_v2 = vld [vmem:[#allocation2 + $0x190] sm:$0xff]  ;;  %v2414_v10 = vpack.c.bf16 %v1661_v62, %v1660_v56 }
 0x1fe   : > { %2481 = vst [vmem:[%s2980_s24 + $0x58] sm:$0xff] %v2369_v25   ;;  %v2379_v39 = vpack.c.bf16 %v1647_v26, %v1646_v21  ;;  %v1663_v4 = vmax.f32 %v1599_v51, 0.0  ;;  %v1664_v5 = vmax.f32 %v1600_v52, 0.0  ;;  %v1665_v6 = vmax.f32 %v1601_v57, 0.0  ;;  %v1607_v7 = vld [vmem:[#allocation2 + $0x198] sm:$0xff]  ;;  %v1608_v8 = vld [vmem:[#allocation2 + $0x1a0] sm:$0xff] }
 0x1ff   : > { %v2384_v40 = vpack.c.bf16 %v1649_v28, %v1648_v27  ;;  %2482 = vst [vmem:[%s2980_s24 + $0x60] sm:$0xff] %v2374_v32   ;;  %v1609_v9 = vld [vmem:[#allocation2 + $0x1a8] sm:$0xff]  ;;  %2487 = vst [vmem:[%s2980_s24 + $0x88] sm:$0xff] %v2399_v60   ;;  %v1666_v11 = vmax.f32 %v1602_v58, 0.0  ;;  %v1667_v12 = vmax.f32 %v1603_v59, 0.0  ;;  %v1668_v13 = vmax.f32 %v1604_v0, 0.0 }
 0x200   : > { %v1586_v22 = vld [vmem:[#allocation2 + $0xf0] sm:$0xff]  ;;  %2483 = vst [vmem:[%s2980_s24 + $0x68] sm:$0xff] %v2379_v39   ;;  %2488 = vst [vmem:[%s2980_s24 + $0x90] sm:$0xff] %v2404_v61   ;;  %v1611_v15 = vld [vmem:[#allocation2 + $0x1b8] sm:$0xff]  ;;  %v2419_v17 = vpack.c.bf16 %v1663_v4, %v1662_v63  ;;  %v2424_v18 = vpack.c.bf16 %v1665_v6, %v1664_v5  ;;  %v1669_v19 = vmax.f32 %v1605_v1, 0.0  ;;  %v1670_v20 = vmax.f32 %v1606_v2, 0.0 }
 0x201   : > { %v1650_v33 = vmax.f32 %v1586_v22, 0.0  ;;  %2484 = vst [vmem:[%s2980_s24 + $0x70] sm:$0xff] %v2384_v40   ;;  %v1610_v14 = vld [vmem:[#allocation2 + $0x1b0] sm:$0xff]  ;;  %v1612_v16 = vld [vmem:[#allocation2 + $0x1c0] sm:$0xff]  ;;  %2489 = vst [vmem:[%s2980_s24 + $0x98] sm:$0xff] %v2409_v3   ;;  %v1671_v24 = vmax.f32 %v1607_v7, 0.0 }
 0x202   : > { %v1587_v23 = vld [vmem:[#allocation2 + $0xf8] sm:$0xff]  ;;  %v1613_v21 = vld [vmem:[#allocation2 + $0x1c8] sm:$0xff]  ;;  %v1614_v22 = vld [vmem:[#allocation2 + $0x1d0] sm:$0xff]  ;;  %2490 = vst [vmem:[%s2980_s24 + $0xa0] sm:$0xff] %v2414_v10   ;;  %v1672_v25 = vmax.f32 %v1608_v8, 0.0  ;;  %v1673_v26 = vmax.f32 %v1609_v9, 0.0  ;;  %v2434_v30 = vpack.c.bf16 %v1669_v19, %v1668_v13 }
 0x203   : > { %v1651_v34 = vmax.f32 %v1587_v23, 0.0  ;;  %v2429_v23 = vpack.c.bf16 %v1667_v12, %v1666_v11  ;;  %v1615_v27 = vld [vmem:[#allocation2 + $0x1d8] sm:$0xff]  ;;  %v1616_v28 = vld [vmem:[#allocation2 + $0x1e0] sm:$0xff]  ;;  %v1617_v29 = vld [vmem:[#allocation2 + $0x1e8] sm:$0xff]  ;;  %2491 = vst [vmem:[%s2980_s24 + $0xa8] sm:$0xff] %v2419_v17   ;;  %v1674_v31 = vmax.f32 %v1610_v14, 0.0  ;;  %v2439_v36 = vpack.c.bf16 %v1671_v24, %v1670_v20 }
 0x204   : > { %2492 = vst [vmem:[%s2980_s24 + $0xb0] sm:$0xff] %v2424_v18   ;;  %v1675_v32 = vmax.f32 %v1611_v15, 0.0  ;;  %v1619_v35 = vld [vmem:[#allocation2 + $0x1f8] sm:$0xff]  ;;  %v2444_v37 = vpack.c.bf16 %v1673_v26, %v1672_v25  ;;  %v1677_v38 = vmax.f32 %v1613_v21, 0.0  ;;  %v1678_v39 = vmax.f32 %v1614_v22, 0.0  ;;  %2494 = vst [vmem:[%s2980_s24 + $0xc0] sm:$0xff] %v2434_v30  }
 0x205   : > { %v2389_v46 = vpack.c.bf16 %v1651_v34, %v1650_v33  ;;  %v1676_v33 = vmax.f32 %v1612_v16, 0.0  ;;  %v1618_v34 = vld [vmem:[#allocation2 + $0x1f0] sm:$0xff]  ;;  %2493 = vst [vmem:[%s2980_s24 + $0xb8] sm:$0xff] %v2429_v23   ;;  %v1679_v41 = vmax.f32 %v1615_v27, 0.0  ;;  %v1680_v42 = vmax.f32 %v1616_v28, 0.0  ;;  %2495 = vst [vmem:[%s2980_s24 + $0xc8] sm:$0xff] %v2439_v36  }
 0x206   : > { %v2449_v40 = vpack.c.bf16 %v1675_v32, %v1674_v31  ;;  %v1681_v43 = vmax.f32 %v1617_v29, 0.0  ;;  %2496 = vst [vmem:[%s2980_s24 + $0xd0] sm:$0xff] %v2444_v37   ;;  %v1682_v45 = vmax.f32 %v1618_v34, 0.0 }
 0x207   : > { %2485 = vst [vmem:[%s2980_s24 + $0x78] sm:$0xff] %v2389_v46   ;;  %v2454_v44 = vpack.c.bf16 %v1677_v38, %v1676_v33  ;;  %v1683_v46 = vmax.f32 %v1619_v35, 0.0  ;;  %v2459_v47 = vpack.c.bf16 %v1679_v41, %v1678_v39 }
 0x208   : > { %2497 = vst [vmem:[%s2980_s24 + $0xd8] sm:$0xff] %v2449_v40   ;;  %v2464_v48 = vpack.c.bf16 %v1681_v43, %v1680_v42 }
 0x209   : > { %2498 = vst [vmem:[%s2980_s24 + $0xe0] sm:$0xff] %v2454_v44   ;;  %v2469_v49 = vpack.c.bf16 %v1683_v46, %v1682_v45  ;;  %2499 = vst [vmem:[%s2980_s24 + $0xe8] sm:$0xff] %v2459_v47  }
 0x20a   : > { %2500 = vst [vmem:[%s2980_s24 + $0xf0] sm:$0xff] %v2464_v48  }
 0x20b   : > { %2501 = vst [vmem:[%s2980_s24 + $0xf8] sm:$0xff] %v2469_v49  }
 0x20c PF: > { %s13_s18 = sadd.s32 1, %s2758_s18   ;;  %s3230_s12 = smov %s2738_s13 }
 0x20d   : > { %p10_p13 = scmp.ge.s32.totalorder %s13_s18, 12   ;;  %s3231_s13 = smov %s2832_s25 }
 0x20e   : > { %s3232_s14 = smov %s2750_s16  ;;  %s3233_s15 = smov %s2754_s17 }
 0x20f   : > { %s3234_s16 = smov %s3237_s19  ;;  %s3235_s17 = smov %s3241_s20 }
 0x210   :  { %12 = sbr.rel (!%p10_p13) target bundleno = 4 (0x4), region = 114 }

// kernel: u2net_forward.13
= control target key start
LH: loop header
LB: loop body
LE: loop exit
PB: predicated region body
PF: predicated region fallthrough
CT: control target
= control target key end

     0   :  { %s2781_s12 = smov 0   ;;  %s2783_s13 = smov 0   ;;  %s3226_s0 = inlined_call_operand.vmem [shape: bf16[1024,512], index: 0, kind: input, shape index: {}]   ;;  %s3227_s1 = inlined_call_operand.vmem [shape: bf16[512,128], index: 1, kind: input, shape index: {}]   ;;  %s3228_s2 = inlined_call_operand.vmem [shape: f32[1,128], index: 2, kind: input, shape index: {}]   ;;  %s3229_s3 = inlined_call_operand.vmem [shape: bf16[1024,128], index: 3, kind: output, shape index: {}]  }
   0x1   :  { %s2785_s14 = smov 0   ;;  %s2787_s15 = smov 0  }
   0x2   :  { %s2789_s16 = smov 0   ;;  %s2791_s17 = smov 0  }
   0x3   :  { %s2793_s18 = smov 0  }
   0x4 LB: > { %s22_s19 = sadd.s32 1, %s2750_s16  ;;  %s25_s20 = sadd.s32 1, %s2754_s17  ;;  %s2758_s18 = sphi %s2793_s18, %s13_s18   ;;  %s2754_s17 = sphi %s2791_s17, %s3235_s17   ;;  %s2750_s16 = sphi %s2789_s16, %s3234_s16   ;;  %s2746_s15 = sphi %s2787_s15, %s3233_s15   ;;  %s2742_s14 = sphi %s2785_s14, %s3232_s14   ;;  %s2738_s13 = sphi %s2783_s13, %s3231_s13   ;;  %s2734_s12 = sphi %s2781_s12, %s3230_s12  }
   0x5   : > { %p23_p0 = scmp.ge.s32.totalorder %s22_s19, 2  ;;  %p41_p1 = scmp.ne.s32.totalorder %s2738_s13, %s2734_s12 }
   0x6   : > { %p42_p2 = scmp.eq.s32.totalorder %s2758_s18, 0  ;;  %s34_s24 = sadd.s32 1, %s2738_s13 }
   0x7   : > { %s3237_s19 = smov (%p23_p0, %s22_s19), 0  ;;  %s3239_s20 = smov (!%p23_p0, %s25_s20), %s2754_s17 }
   0x8   : > { %p43_p3 = por %p42_p2, %p41_p1  ;;  %p27_p4 = scmp.ge.s32.totalorder %s3239_s20, 2 }
   0x9   : > { %s30_s21 = ssub.s32 %s2750_s16, %s3237_s19  ;;  %p2086_p6 = scmp.ge.s32.totalorder %s2758_s18, 4 }
   0xa   : > { %s3241_s20 = smov (%p27_p4, %s3239_s20), 0 }
   0xb   : > { %s29_s22 = ssub.s32 %s2754_s17, %s3241_s20  ;;  %141 = sbr.rel (%p2086_p6) target bundleno = 57 (0x39), region = 24 }
   0xc   : > { %s31_s23 = sor.u32 %s30_s21, %s29_s22 }
   0xd   : > { %p32_p5 = scmp.eq.s32.totalorder %s31_s23, 0 }
   0xf   : > { %s2832_s25 = scalar_select %p32_p5, %s2738_s13, %s34_s24  }
  0x12   : > { %144 = sbr.rel (!%p43_p3) target bundleno = 57 (0x39), region = 28  ;;  %s146_s26 = sand.u32 (%p43_p3), 1, %s2738_s13  }
  0x13   : > { %s2089_s27 = sshll.u32 (%p43_p3), %s2750_s16, 1  ;;  %s2087_s28 = sshll.u32 (%p43_p3), %s146_s26, 9 }
  0x14   : > { %s2247_s29 = sshll.u32 (%p43_p3), %s2754_s17, 8  ;;  %s2846_s8 = scalar_lea.vmem (%p43_p3), [#allocation3], %s2087_s28 }
  0x15   : > { %s152_s30 = sadd.s32 (%p43_p3), %s2247_s29, %s2089_s27 }
  0x16   : > { %s2091_s4 = sshll.u32 (%p43_p3), %s152_s30, 2 }
  0x17   : > { %s2841_s7 = scalar_lea.vmem (%p43_p3), %s3226_s0, %s2091_s4 }
  0x18   : > { %v308_v0 = vld [vmem:[%s2841_s7] sm:$0xff] (%p43_p3)  ;;  %v310_v1 = vld [vmem:[%s2841_s7 + $0x10] sm:$0xff] (%p43_p3) }
  0x19   : > { %v312_v2 = vld [vmem:[%s2841_s7 + $0x20] sm:$0xff]  ;;  %309 = vst [vmem:[%s2846_s8] sm:$0xff] %v308_v0  ;;  %311 = vst [vmem:[%s2846_s8 + $0x8] sm:$0xff] %v310_v1  ;;  %v314_v3 = vld [vmem:[%s2841_s7 + $0x30] sm:$0xff] }
  0x1a   : > { %313 = vst [vmem:[%s2846_s8 + $0x10] sm:$0xff] %v312_v2  ;;  %v316_v4 = vld [vmem:[%s2841_s7 + $0x40] sm:$0xff]  ;;  %v318_v5 = vld [vmem:[%s2841_s7 + $0x50] sm:$0xff]  ;;  %315 = vst [vmem:[%s2846_s8 + $0x18] sm:$0xff] %v314_v3 }
  0x1b   : > { %317 = vst [vmem:[%s2846_s8 + $0x20] sm:$0xff] %v316_v4  ;;  %319 = vst [vmem:[%s2846_s8 + $0x28] sm:$0xff] %v318_v5  ;;  %v320_v6 = vld [vmem:[%s2841_s7 + $0x60] sm:$0xff]  ;;  %v322_v7 = vld [vmem:[%s2841_s7 + $0x70] sm:$0xff] }
  0x1c   : > { %v324_v8 = vld [vmem:[%s2841_s7 + $0x80] sm:$0xff]  ;;  %321 = vst [vmem:[%s2846_s8 + $0x30] sm:$0xff] %v320_v6  ;;  %323 = vst [vmem:[%s2846_s8 + $0x38] sm:$0xff] %v322_v7  ;;  %v326_v9 = vld [vmem:[%s2841_s7 + $0x90] sm:$0xff] }
  0x1d   : > { %325 = vst [vmem:[%s2846_s8 + $0x40] sm:$0xff] %v324_v8  ;;  %v328_v10 = vld [vmem:[%s2841_s7 + $0xa0] sm:$0xff]  ;;  %v330_v11 = vld [vmem:[%s2841_s7 + $0xb0] sm:$0xff]  ;;  %327 = vst [vmem:[%s2846_s8 + $0x48] sm:$0xff] %v326_v9 }
  0x1e   : > { %329 = vst [vmem:[%s2846_s8 + $0x50] sm:$0xff] %v328_v10  ;;  %331 = vst [vmem:[%s2846_s8 + $0x58] sm:$0xff] %v330_v11  ;;  %v332_v12 = vld [vmem:[%s2841_s7 + $0xc0] sm:$0xff]  ;;  %v334_v13 = vld [vmem:[%s2841_s7 + $0xd0] sm:$0xff] }
  0x1f   : > { %v336_v14 = vld [vmem:[%s2841_s7 + $0xe0] sm:$0xff]  ;;  %333 = vst [vmem:[%s2846_s8 + $0x60] sm:$0xff] %v332_v12  ;;  %335 = vst [vmem:[%s2846_s8 + $0x68] sm:$0xff] %v334_v13  ;;  %v338_v15 = vld [vmem:[%s2841_s7 + $0xf0] sm:$0xff] }
  0x20   : > { %337 = vst [vmem:[%s2846_s8 + $0x70] sm:$0xff] %v336_v14  ;;  %v340_v16 = vld [vmem:[%s2841_s7 + $0x100] sm:$0xff]  ;;  %v342_v17 = vld [vmem:[%s2841_s7 + $0x110] sm:$0xff]  ;;  %339 = vst [vmem:[%s2846_s8 + $0x78] sm:$0xff] %v338_v15 }
  0x21   : > { %341 = vst [vmem:[%s2846_s8 + $0x80] sm:$0xff] %v340_v16  ;;  %343 = vst [vmem:[%s2846_s8 + $0x88] sm:$0xff] %v342_v17  ;;  %v344_v18 = vld [vmem:[%s2841_s7 + $0x120] sm:$0xff]  ;;  %v346_v19 = vld [vmem:[%s2841_s7 + $0x130] sm:$0xff] }
  0x22   : > { %v348_v20 = vld [vmem:[%s2841_s7 + $0x140] sm:$0xff]  ;;  %345 = vst [vmem:[%s2846_s8 + $0x90] sm:$0xff] %v344_v18  ;;  %347 = vst [vmem:[%s2846_s8 + $0x98] sm:$0xff] %v346_v19  ;;  %v350_v21 = vld [vmem:[%s2841_s7 + $0x150] sm:$0xff] }
  0x23   : > { %349 = vst [vmem:[%s2846_s8 + $0xa0] sm:$0xff] %v348_v20  ;;  %v352_v22 = vld [vmem:[%s2841_s7 + $0x160] sm:$0xff]  ;;  %v354_v23 = vld [vmem:[%s2841_s7 + $0x170] sm:$0xff]  ;;  %351 = vst [vmem:[%s2846_s8 + $0xa8] sm:$0xff] %v350_v21 }
  0x24   : > { %353 = vst [vmem:[%s2846_s8 + $0xb0] sm:$0xff] %v352_v22  ;;  %355 = vst [vmem:[%s2846_s8 + $0xb8] sm:$0xff] %v354_v23  ;;  %v356_v24 = vld [vmem:[%s2841_s7 + $0x180] sm:$0xff]  ;;  %v358_v25 = vld [vmem:[%s2841_s7 + $0x190] sm:$0xff] }
  0x25   : > { %v360_v26 = vld [vmem:[%s2841_s7 + $0x1a0] sm:$0xff]  ;;  %357 = vst [vmem:[%s2846_s8 + $0xc0] sm:$0xff] %v356_v24  ;;  %359 = vst [vmem:[%s2846_s8 + $0xc8] sm:$0xff] %v358_v25  ;;  %v362_v27 = vld [vmem:[%s2841_s7 + $0x1b0] sm:$0xff] }
  0x26   : > { %361 = vst [vmem:[%s2846_s8 + $0xd0] sm:$0xff] %v360_v26  ;;  %v364_v28 = vld [vmem:[%s2841_s7 + $0x1c0] sm:$0xff]  ;;  %v366_v29 = vld [vmem:[%s2841_s7 + $0x1d0] sm:$0xff]  ;;  %363 = vst [vmem:[%s2846_s8 + $0xd8] sm:$0xff] %v362_v27 }
  0x27   : > { %365 = vst [vmem:[%s2846_s8 + $0xe0] sm:$0xff] %v364_v28  ;;  %367 = vst [vmem:[%s2846_s8 + $0xe8] sm:$0xff] %v366_v29  ;;  %v368_v30 = vld [vmem:[%s2841_s7 + $0x1e0] sm:$0xff]  ;;  %v370_v31 = vld [vmem:[%s2841_s7 + $0x1f0] sm:$0xff] }
  0x28   : > { %v372_v32 = vld [vmem:[%s2841_s7 + $0x200] sm:$0xff]  ;;  %369 = vst [vmem:[%s2846_s8 + $0xf0] sm:$0xff] %v368_v30  ;;  %371 = vst [vmem:[%s2846_s8 + $0xf8] sm:$0xff] %v370_v31  ;;  %v374_v33 = vld [vmem:[%s2841_s7 + $0x210] sm:$0xff] }
  0x29   : > { %373 = vst [vmem:[%s2846_s8 + $0x100] sm:$0xff] %v372_v32  ;;  %v376_v34 = vld [vmem:[%s2841_s7 + $0x220] sm:$0xff]  ;;  %v378_v35 = vld [vmem:[%s2841_s7 + $0x230] sm:$0xff]  ;;  %375 = vst [vmem:[%s2846_s8 + $0x108] sm:$0xff] %v374_v33 }
  0x2a   : > { %377 = vst [vmem:[%s2846_s8 + $0x110] sm:$0xff] %v376_v34  ;;  %379 = vst [vmem:[%s2846_s8 + $0x118] sm:$0xff] %v378_v35  ;;  %v380_v36 = vld [vmem:[%s2841_s7 + $0x240] sm:$0xff]  ;;  %v382_v37 = vld [vmem:[%s2841_s7 + $0x250] sm:$0xff] }
  0x2b   : > { %v384_v38 = vld [vmem:[%s2841_s7 + $0x260] sm:$0xff]  ;;  %381 = vst [vmem:[%s2846_s8 + $0x120] sm:$0xff] %v380_v36  ;;  %383 = vst [vmem:[%s2846_s8 + $0x128] sm:$0xff] %v382_v37  ;;  %v386_v39 = vld [vmem:[%s2841_s7 + $0x270] sm:$0xff] }
  0x2c   : > { %385 = vst [vmem:[%s2846_s8 + $0x130] sm:$0xff] %v384_v38  ;;  %v388_v40 = vld [vmem:[%s2841_s7 + $0x280] sm:$0xff]  ;;  %v390_v41 = vld [vmem:[%s2841_s7 + $0x290] sm:$0xff]  ;;  %387 = vst [vmem:[%s2846_s8 + $0x138] sm:$0xff] %v386_v39 }
  0x2d   : > { %389 = vst [vmem:[%s2846_s8 + $0x140] sm:$0xff] %v388_v40  ;;  %391 = vst [vmem:[%s2846_s8 + $0x148] sm:$0xff] %v390_v41  ;;  %v392_v42 = vld [vmem:[%s2841_s7 + $0x2a0] sm:$0xff]  ;;  %v394_v43 = vld [vmem:[%s2841_s7 + $0x2b0] sm:$0xff] }
  0x2e   : > { %v396_v44 = vld [vmem:[%s2841_s7 + $0x2c0] sm:$0xff]  ;;  %393 = vst [vmem:[%s2846_s8 + $0x150] sm:$0xff] %v392_v42  ;;  %395 = vst [vmem:[%s2846_s8 + $0x158] sm:$0xff] %v394_v43  ;;  %v398_v45 = vld [vmem:[%s2841_s7 + $0x2d0] sm:$0xff] }
  0x2f   : > { %397 = vst [vmem:[%s2846_s8 + $0x160] sm:$0xff] %v396_v44  ;;  %v400_v46 = vld [vmem:[%s2841_s7 + $0x2e0] sm:$0xff]  ;;  %v402_v47 = vld [vmem:[%s2841_s7 + $0x2f0] sm:$0xff]  ;;  %399 = vst [vmem:[%s2846_s8 + $0x168] sm:$0xff] %v398_v45 }
  0x30   : > { %401 = vst [vmem:[%s2846_s8 + $0x170] sm:$0xff] %v400_v46  ;;  %403 = vst [vmem:[%s2846_s8 + $0x178] sm:$0xff] %v402_v47  ;;  %v404_v48 = vld [vmem:[%s2841_s7 + $0x300] sm:$0xff]  ;;  %v406_v49 = vld [vmem:[%s2841_s7 + $0x310] sm:$0xff] }
  0x31   : > { %v408_v50 = vld [vmem:[%s2841_s7 + $0x320] sm:$0xff]  ;;  %405 = vst [vmem:[%s2846_s8 + $0x180] sm:$0xff] %v404_v48  ;;  %407 = vst [vmem:[%s2846_s8 + $0x188] sm:$0xff] %v406_v49  ;;  %v410_v51 = vld [vmem:[%s2841_s7 + $0x330] sm:$0xff] }
  0x32   : > { %409 = vst [vmem:[%s2846_s8 + $0x190] sm:$0xff] %v408_v50  ;;  %v412_v52 = vld [vmem:[%s2841_s7 + $0x340] sm:$0xff]  ;;  %v414_v53 = vld [vmem:[%s2841_s7 + $0x350] sm:$0xff]  ;;  %411 = vst [vmem:[%s2846_s8 + $0x198] sm:$0xff] %v410_v51 }
  0x33   : > { %413 = vst [vmem:[%s2846_s8 + $0x1a0] sm:$0xff] %v412_v52  ;;  %415 = vst [vmem:[%s2846_s8 + $0x1a8] sm:$0xff] %v414_v53  ;;  %v416_v54 = vld [vmem:[%s2841_s7 + $0x360] sm:$0xff]  ;;  %v418_v55 = vld [vmem:[%s2841_s7 + $0x370] sm:$0xff] }
  0x34   : > { %v420_v56 = vld [vmem:[%s2841_s7 + $0x380] sm:$0xff]  ;;  %417 = vst [vmem:[%s2846_s8 + $0x1b0] sm:$0xff] %v416_v54  ;;  %419 = vst [vmem:[%s2846_s8 + $0x1b8] sm:$0xff] %v418_v55  ;;  %v422_v57 = vld [vmem:[%s2841_s7 + $0x390] sm:$0xff] }
  0x35   : > { %421 = vst [vmem:[%s2846_s8 + $0x1c0] sm:$0xff] %v420_v56  ;;  %v424_v58 = vld [vmem:[%s2841_s7 + $0x3a0] sm:$0xff]  ;;  %v426_v59 = vld [vmem:[%s2841_s7 + $0x3b0] sm:$0xff]  ;;  %423 = vst [vmem:[%s2846_s8 + $0x1c8] sm:$0xff] %v422_v57 }
  0x36   : > { %425 = vst [vmem:[%s2846_s8 + $0x1d0] sm:$0xff] %v424_v58  ;;  %427 = vst [vmem:[%s2846_s8 + $0x1d8] sm:$0xff] %v426_v59  ;;  %v428_v60 = vld [vmem:[%s2841_s7 + $0x3c0] sm:$0xff]  ;;  %v430_v61 = vld [vmem:[%s2841_s7 + $0x3d0] sm:$0xff] }
  0x37   : > { %v432_v62 = vld [vmem:[%s2841_s7 + $0x3e0] sm:$0xff]  ;;  %429 = vst [vmem:[%s2846_s8 + $0x1e0] sm:$0xff] %v428_v60  ;;  %431 = vst [vmem:[%s2846_s8 + $0x1e8] sm:$0xff] %v430_v61  ;;  %v434_v63 = vld [vmem:[%s2841_s7 + $0x3f0] sm:$0xff] }
  0x38   : > { %433 = vst [vmem:[%s2846_s8 + $0x1f0] sm:$0xff] %v432_v62  ;;  %435 = vst [vmem:[%s2846_s8 + $0x1f8] sm:$0xff] %v434_v63 }
  0x39 PF: > { %p2092_p7 = scmp.ge.s32.totalorder %s2758_s18, 1  ;;  %p440_p8 = scmp.lt.s32.totalorder %s2758_s18, 5 }
  0x3b   : > { %p441_p9 = pnand %p2092_p7, %p440_p8 }
  0x3c   : > { %s447_s9 = sand.u32 (!%p441_p9), 1, %s2734_s12   ;;  %s2094_s10 = sshll.u32 (!%p441_p9), %s2746_s15, 6 }
  0x3d   : > { %444 = sbr.rel (%p441_p9) target bundleno = 523 (0x20b), region = 66  ;;  %s2093_s11 = sshll.u32 (!%p441_p9), %s447_s9, 9 }
  0x3e   : > { %p473_p10 = scmp.lt.s32.totalorder (!%p441_p9), %s2094_s10, 127  ;;  %s2982_s26 = scalar_lea.vmem (!%p441_p9), [#allocation3], %s2093_s11 }
  0x3f   : > { %p2096_p11 = scmp.ne.s32.totalorder (!%p441_p9), %s2742_s14, 0 }
  0x44   : > { %s3243_s10 = smov (!%p473_p10, %s2094_s10), 127  ;;  %482 = sbr.rel (%p2096_p11) target bundleno = 102 (0x66), region = 74 }
  0x45   : > { %s2095_s21 = sshll.u32 %s3243_s10, 2  ;;  %v2988_v0 = vld [vmem:[%s3228_s2] ss:$0 sm:$0xff] (!%p2096_p11) }
  0x46   : > { %s2980_s24 = scalar_lea.vmem %s3229_s3, %s2095_s21  ;;  %490 = vst [vmem:[#allocation2] sm:$0xff] (!%p2096_p11), %v2988_v0  ;;  %491 = vst [vmem:[#allocation2 + $0x8] sm:$0xff] (!%p2096_p11), %v2988_v0 }
  0x47   : > { %492 = vst [vmem:[#allocation2 + $0x10] sm:$0xff] (!%p2096_p11), %v2988_v0  ;;  %493 = vst [vmem:[#allocation2 + $0x18] sm:$0xff] (!%p2096_p11), %v2988_v0 }
  0x48   : > { %494 = vst [vmem:[#allocation2 + $0x20] sm:$0xff] (!%p2096_p11), %v2988_v0  ;;  %495 = vst [vmem:[#allocation2 + $0x28] sm:$0xff] (!%p2096_p11), %v2988_v0 }
  0x49   : > { %496 = vst [vmem:[#allocation2 + $0x30] sm:$0xff] (!%p2096_p11), %v2988_v0  ;;  %497 = vst [vmem:[#allocation2 + $0x38] sm:$0xff] (!%p2096_p11), %v2988_v0 }
  0x4a   : > { %498 = vst [vmem:[#allocation2 + $0x40] sm:$0xff] (!%p2096_p11), %v2988_v0  ;;  %499 = vst [vmem:[#allocation2 + $0x48] sm:$0xff] (!%p2096_p11), %v2988_v0 }
  0x4b   : > { %500 = vst [vmem:[#allocation2 + $0x50] sm:$0xff] %v2988_v0  ;;  %501 = vst [vmem:[#allocation2 + $0x58] sm:$0xff] %v2988_v0 }
  0x4c   : > { %502 = vst [vmem:[#allocation2 + $0x60] sm:$0xff] %v2988_v0  ;;  %503 = vst [vmem:[#allocation2 + $0x68] sm:$0xff] %v2988_v0 }
  0x4d   : > { %504 = vst [vmem:[#allocation2 + $0x70] sm:$0xff] %v2988_v0  ;;  %505 = vst [vmem:[#allocation2 + $0x78] sm:$0xff] %v2988_v0 }
  0x4e   : > { %506 = vst [vmem:[#allocation2 + $0x80] sm:$0xff] %v2988_v0  ;;  %507 = vst [vmem:[#allocation2 + $0x88] sm:$0xff] %v2988_v0 }
  0x4f   : > { %508 = vst [vmem:[#allocation2 + $0x90] sm:$0xff] %v2988_v0  ;;  %509 = vst [vmem:[#allocation2 + $0x98] sm:$0xff] %v2988_v0 }
  0x50   : > { %510 = vst [vmem:[#allocation2 + $0xa0] sm:$0xff] %v2988_v0  ;;  %511 = vst [vmem:[#allocation2 + $0xa8] sm:$0xff] %v2988_v0 }
  0x51   : > { %512 = vst [vmem:[#allocation2 + $0xb0] sm:$0xff] %v2988_v0  ;;  %513 = vst [vmem:[#allocation2 + $0xb8] sm:$0xff] %v2988_v0 }
  0x52   : > { %514 = vst [vmem:[#allocation2 + $0xc0] sm:$0xff] %v2988_v0  ;;  %515 = vst [vmem:[#allocation2 + $0xc8] sm:$0xff] %v2988_v0 }
  0x53   : > { %516 = vst [vmem:[#allocation2 + $0xd0] sm:$0xff] %v2988_v0  ;;  %517 = vst [vmem:[#allocation2 + $0xd8] sm:$0xff] %v2988_v0 }
  0x54   : > { %518 = vst [vmem:[#allocation2 + $0xe0] sm:$0xff] %v2988_v0  ;;  %519 = vst [vmem:[#allocation2 + $0xe8] sm:$0xff] %v2988_v0 }
  0x55   : > { %520 = vst [vmem:[#allocation2 + $0xf0] sm:$0xff] %v2988_v0  ;;  %521 = vst [vmem:[#allocation2 + $0xf8] sm:$0xff] %v2988_v0 }
  0x56   : > { %522 = vst [vmem:[#allocation2 + $0x100] sm:$0xff] %v2988_v0  ;;  %523 = vst [vmem:[#allocation2 + $0x108] sm:$0xff] %v2988_v0 }
  0x57   : > { %524 = vst [vmem:[#allocation2 + $0x110] sm:$0xff] %v2988_v0  ;;  %525 = vst [vmem:[#allocation2 + $0x118] sm:$0xff] %v2988_v0 }
  0x58   : > { %526 = vst [vmem:[#allocation2 + $0x120] sm:$0xff] %v2988_v0  ;;  %527 = vst [vmem:[#allocation2 + $0x128] sm:$0xff] %v2988_v0 }
  0x59   : > { %528 = vst [vmem:[#allocation2 + $0x130] sm:$0xff] %v2988_v0  ;;  %529 = vst [vmem:[#allocation2 + $0x138] sm:$0xff] %v2988_v0 }
  0x5a   : > { %530 = vst [vmem:[#allocation2 + $0x140] sm:$0xff] %v2988_v0  ;;  %531 = vst [vmem:[#allocation2 + $0x148] sm:$0xff] %v2988_v0 }
  0x5b   : > { %532 = vst [vmem:[#allocation2 + $0x150] sm:$0xff] %v2988_v0  ;;  %533 = vst [vmem:[#allocation2 + $0x158] sm:$0xff] %v2988_v0 }
  0x5c   : > { %534 = vst [vmem:[#allocation2 + $0x160] sm:$0xff] %v2988_v0  ;;  %535 = vst [vmem:[#allocation2 + $0x168] sm:$0xff] %v2988_v0 }
  0x5d   : > { %536 = vst [vmem:[#allocation2 + $0x170] sm:$0xff] %v2988_v0  ;;  %537 = vst [vmem:[#allocation2 + $0x178] sm:$0xff] %v2988_v0 }
  0x5e   : > { %538 = vst [vmem:[#allocation2 + $0x180] sm:$0xff] %v2988_v0  ;;  %539 = vst [vmem:[#allocation2 + $0x188] sm:$0xff] %v2988_v0 }
  0x5f   : > { %540 = vst [vmem:[#allocation2 + $0x190] sm:$0xff] %v2988_v0  ;;  %541 = vst [vmem:[#allocation2 + $0x198] sm:$0xff] %v2988_v0 }
  0x60   : > { %542 = vst [vmem:[#allocation2 + $0x1a0] sm:$0xff] %v2988_v0  ;;  %543 = vst [vmem:[#allocation2 + $0x1a8] sm:$0xff] %v2988_v0 }
  0x61   : > { %544 = vst [vmem:[#allocation2 + $0x1b0] sm:$0xff] %v2988_v0  ;;  %545 = vst [vmem:[#allocation2 + $0x1b8] sm:$0xff] %v2988_v0 }
  0x62   : > { %546 = vst [vmem:[#allocation2 + $0x1c0] sm:$0xff] %v2988_v0  ;;  %547 = vst [vmem:[#allocation2 + $0x1c8] sm:$0xff] %v2988_v0 }
  0x63   : > { %548 = vst [vmem:[#allocation2 + $0x1d0] sm:$0xff] %v2988_v0  ;;  %549 = vst [vmem:[#allocation2 + $0x1d8] sm:$0xff] %v2988_v0 }
  0x64   : > { %550 = vst [vmem:[#allocation2 + $0x1e0] sm:$0xff] %v2988_v0  ;;  %551 = vst [vmem:[#allocation2 + $0x1e8] sm:$0xff] %v2988_v0 }
  0x65   : > { %552 = vst [vmem:[#allocation2 + $0x1f0] sm:$0xff] %v2988_v0  ;;  %553 = vst [vmem:[#allocation2 + $0x1f8] sm:$0xff] %v2988_v0 }
  0x66 PF: > { %s2098_s12 = sshll.u32 %s2742_s14, 8  ;;  %v2760_v1 = vmov 0   ;;  %v2610_v2 = vld [vmem:[%s2982_s26 + $0x4] ss:$8 sps:$4 sm:$0xff]   ;;  %v2608_v20 = vld [vmem:[%s2982_s26] ss:$8 sps:$4 sm:$0xff]  }
  0x67   : > { %1135 = vmatprep.subr.bf16.mxu0 %v2760_v1  ;;  %2503 = vmatprep.subr.bf16.mxu1 %v2760_v1  ;;  %s683_s15 = sshra.s32 %s2098_s12, 3  ;;  %v2613_v3 = vld [vmem:[%s2982_s26 + $0x104] ss:$8 sps:$4 sm:$0xff]   ;;  %v2611_v21 = vld [vmem:[%s2982_s26 + $0x100] ss:$8 sps:$4 sm:$0xff]   ;;  %p2180_p12 = scmp.ne.s32.totalorder %s2742_s14, 1 }
  0x68   : > { %s2099_s29 = sshll.u32 %s683_s15, 2  ;;  %1167 = vmatprep.mubr.bf16.mxu0 %v2610_v2  ;;  %1295 = vmatprep.mubr.bf16.mxu1 %v2613_v3  ;;  %v2614_v22 = vld [vmem:[%s2982_s26 + $0x14] ss:$8 sps:$4 sm:$0xff]   ;;  %v2618_v24 = vld [vmem:[%s2982_s26 + $0x10] ss:$8 sps:$4 sm:$0xff]  }
  0x69   : > { %s3062_s5 = scalar_lea.vmem %s3227_s1, %s2099_s29  ;;  %v2616_v23 = vld [vmem:[%s2982_s26 + $0x114] ss:$8 sps:$4 sm:$0xff]   ;;  %v2619_v25 = vld [vmem:[%s2982_s26 + $0x110] ss:$8 sps:$4 sm:$0xff]   ;;  %v2620_v26 = vld [vmem:[%s2982_s26 + $0x24] ss:$8 sps:$4 sm:$0xff]  }
  0x6a   : > { %v2592_v4 = vld [vmem:[%s3062_s5] sm:$0xff]   ;;  %v2593_v5 = vld [vmem:[%s3062_s5 + $0x8] sm:$0xff]   ;;  %v2594_v6 = vld [vmem:[%s3062_s5 + $0x10] sm:$0xff]  }
  0x6b   : > { %1136 = vmatpush1.bf16.msra.mxu0 %v2592_v4  ;;  %2519 = vmatpush1.bf16.msra.mxu1 %v2592_v4  ;;  %v2595_v7 = vld [vmem:[%s3062_s5 + $0x18] sm:$0xff]   ;;  %v2596_v8 = vld [vmem:[%s3062_s5 + $0x20] sm:$0xff]   ;;  %v2597_v9 = vld [vmem:[%s3062_s5 + $0x28] sm:$0xff]  }
  0x6c   : > { %1137 = vmatprep.subr.bf16.mxu0 %v2760_v1  ;;  %2504 = vmatprep.subr.bf16.mxu1 %v2760_v1  ;;  %v2598_v10 = vld [vmem:[%s3062_s5 + $0x30] sm:$0xff]   ;;  %v2599_v11 = vld [vmem:[%s3062_s5 + $0x38] sm:$0xff]   ;;  %v2600_v12 = vld [vmem:[%s3062_s5 + $0x40] sm:$0xff]  }
  0x6d   : > { %v2601_v13 = vld [vmem:[%s3062_s5 + $0x48] sm:$0xff]   ;;  %v2602_v14 = vld [vmem:[%s3062_s5 + $0x50] sm:$0xff]   ;;  %v2603_v15 = vld [vmem:[%s3062_s5 + $0x58] sm:$0xff]  }
  0x6e   : > { %v2604_v16 = vld [vmem:[%s3062_s5 + $0x60] sm:$0xff]   ;;  %v2605_v17 = vld [vmem:[%s3062_s5 + $0x68] sm:$0xff]   ;;  %v2606_v18 = vld [vmem:[%s3062_s5 + $0x70] sm:$0xff]  }
  0x6f   : > { %1138 = vmatpush1.bf16.msra.mxu0 %v2593_v5  ;;  %2520 = vmatpush1.bf16.msra.mxu1 %v2593_v5  ;;  %v2607_v19 = vld [vmem:[%s3062_s5 + $0x78] sm:$0xff]   ;;  %v2622_v27 = vld [vmem:[%s2982_s26 + $0x124] ss:$8 sps:$4 sm:$0xff]   ;;  %v2624_v28 = vld [vmem:[%s2982_s26 + $0x20] ss:$8 sps:$4 sm:$0xff]  }
  0x70   : > { %1139 = vmatprep.subr.bf16.mxu0 %v2760_v1  ;;  %2505 = vmatprep.subr.bf16.mxu1 %v2760_v1  ;;  %v2625_v29 = vld [vmem:[%s2982_s26 + $0x120] ss:$8 sps:$4 sm:$0xff]   ;;  %v2626_v30 = vld [vmem:[%s2982_s26 + $0x34] ss:$8 sps:$4 sm:$0xff]   ;;  %v2630_v32 = vld [vmem:[%s2982_s26 + $0x30] ss:$8 sps:$4 sm:$0xff]  }
  0x71   : > { %v2628_v31 = vld [vmem:[%s2982_s26 + $0x134] ss:$8 sps:$4 sm:$0xff]   ;;  %v2631_v33 = vld [vmem:[%s2982_s26 + $0x130] ss:$8 sps:$4 sm:$0xff]   ;;  %v2632_v34 = vld [vmem:[%s2982_s26 + $0x44] ss:$8 sps:$4 sm:$0xff]  }
  0x72   : > { %v2634_v35 = vld [vmem:[%s2982_s26 + $0x144] ss:$8 sps:$4 sm:$0xff]   ;;  %v2636_v36 = vld [vmem:[%s2982_s26 + $0x40] ss:$8 sps:$4 sm:$0xff]   ;;  %v2638_v38 = vld [vmem:[%s2982_s26 + $0x54] ss:$8 sps:$4 sm:$0xff]  }
  0x73   : > { %1140 = vmatpush1.bf16.msra.mxu0 %v2594_v6  ;;  %2521 = vmatpush1.bf16.msra.mxu1 %v2594_v6  ;;  %v2637_v37 = vld [vmem:[%s2982_s26 + $0x140] ss:$8 sps:$4 sm:$0xff]   ;;  %v2640_v39 = vld [vmem:[%s2982_s26 + $0x154] ss:$8 sps:$4 sm:$0xff]   ;;  %v2642_v40 = vld [vmem:[%s2982_s26 + $0x50] ss:$8 sps:$4 sm:$0xff]  }
  0x74   : > { %1141 = vmatprep.subr.bf16.mxu0 %v2760_v1  ;;  %2506 = vmatprep.subr.bf16.mxu1 %v2760_v1  ;;  %v2643_v41 = vld [vmem:[%s2982_s26 + $0x150] ss:$8 sps:$4 sm:$0xff]   ;;  %v2644_v42 = vld [vmem:[%s2982_s26 + $0x64] ss:$8 sps:$4 sm:$0xff]   ;;  %v2648_v44 = vld [vmem:[%s2982_s26 + $0x60] ss:$8 sps:$4 sm:$0xff]  }
  0x75   : > { %v2646_v43 = vld [vmem:[%s2982_s26 + $0x164] ss:$8 sps:$4 sm:$0xff]   ;;  %v2649_v45 = vld [vmem:[%s2982_s26 + $0x160] ss:$8 sps:$4 sm:$0xff]   ;;  %v2650_v46 = vld [vmem:[%s2982_s26 + $0x74] ss:$8 sps:$4 sm:$0xff]  }
  0x76   : > { %v2652_v47 = vld [vmem:[%s2982_s26 + $0x174] ss:$8 sps:$4 sm:$0xff]   ;;  %v2654_v48 = vld [vmem:[%s2982_s26 + $0x70] ss:$8 sps:$4 sm:$0xff]   ;;  %v2656_v50 = vld [vmem:[%s2982_s26 + $0x84] ss:$8 sps:$4 sm:$0xff]  }
  0x77   : > { %1142 = vmatpush1.bf16.msra.mxu0 %v2595_v7  ;;  %2522 = vmatpush1.bf16.msra.mxu1 %v2595_v7  ;;  %v2655_v49 = vld [vmem:[%s2982_s26 + $0x170] ss:$8 sps:$4 sm:$0xff]   ;;  %v2658_v51 = vld [vmem:[%s2982_s26 + $0x184] ss:$8 sps:$4 sm:$0xff]   ;;  %v2660_v52 = vld [vmem:[%s2982_s26 + $0x80] ss:$8 sps:$4 sm:$0xff]  }
  0x78   : > { %1143 = vmatprep.subr.bf16.mxu0 %v2760_v1  ;;  %2507 = vmatprep.subr.bf16.mxu1 %v2760_v1  ;;  %v2661_v53 = vld [vmem:[%s2982_s26 + $0x180] ss:$8 sps:$4 sm:$0xff]   ;;  %v2662_v54 = vld [vmem:[%s2982_s26 + $0x94] ss:$8 sps:$4 sm:$0xff]   ;;  %v2666_v56 = vld [vmem:[%s2982_s26 + $0x90] ss:$8 sps:$4 sm:$0xff]  }
  0x79   : > { %v2664_v55 = vld [vmem:[%s2982_s26 + $0x194] ss:$8 sps:$4 sm:$0xff]   ;;  %v2667_v57 = vld [vmem:[%s2982_s26 + $0x190] ss:$8 sps:$4 sm:$0xff]   ;;  %v2668_v58 = vld [vmem:[%s2982_s26 + $0xa4] ss:$8 sps:$4 sm:$0xff]  }
  0x7a   : > { %v2670_v59 = vld [vmem:[%s2982_s26 + $0x1a4] ss:$8 sps:$4 sm:$0xff]   ;;  %v2672_v60 = vld [vmem:[%s2982_s26 + $0xa0] ss:$8 sps:$4 sm:$0xff]   ;;  %v2674_v62 = vld [vmem:[%s2982_s26 + $0xb4] ss:$8 sps:$4 sm:$0xff]  }
  0x7b   : > { %1144 = vmatpush1.bf16.msra.mxu0 %v2596_v8  ;;  %2523 = vmatpush1.bf16.msra.mxu1 %v2596_v8  ;;  %v2673_v61 = vld [vmem:[%s2982_s26 + $0x1a0] ss:$8 sps:$4 sm:$0xff]   ;;  %v2676_v63 = vld [vmem:[%s2982_s26 + $0x1b4] ss:$8 sps:$4 sm:$0xff]   ;;  %v2678_v0 = vld [vmem:[%s2982_s26 + $0xb0] ss:$8 sps:$4 sm:$0xff]  }
  0x7c   : > { %1145 = vmatprep.subr.bf16.mxu0 %v2760_v1  ;;  %2508 = vmatprep.subr.bf16.mxu1 %v2760_v1  ;;  %v2680_v2 = vld [vmem:[%s2982_s26 + $0xc4] ss:$8 sps:$4 sm:$0xff]   ;;  %v2684_v4 = vld [vmem:[%s2982_s26 + $0xc0] ss:$8 sps:$4 sm:$0xff]   ;;  %v2686_v6 = vld [vmem:[%s2982_s26 + $0xd4] ss:$8 sps:$4 sm:$0xff]  }
  0x7d   : > { %v2682_v3 = vld [vmem:[%s2982_s26 + $0x1c4] ss:$8 sps:$4 sm:$0xff]   ;;  %v2685_v5 = vld [vmem:[%s2982_s26 + $0x1c0] ss:$8 sps:$4 sm:$0xff]   ;;  %v2688_v7 = vld [vmem:[%s2982_s26 + $0x1d4] ss:$8 sps:$4 sm:$0xff]  }
  0x7e   : > { %v2690_v8 = vld [vmem:[%s2982_s26 + $0xd0] ss:$8 sps:$4 sm:$0xff]  }
  0x7f   : > { %1146 = vmatpush1.bf16.msra.mxu0 %v2597_v9  ;;  %2524 = vmatpush1.bf16.msra.mxu1 %v2597_v9  ;;  %v2691_v9 = vld [vmem:[%s2982_s26 + $0x1d0] ss:$8 sps:$4 sm:$0xff]  }
  0x80   : > { %1147 = vmatprep.subr.bf16.mxu0 %v2760_v1  ;;  %2509 = vmatprep.subr.bf16.mxu1 %v2760_v1 }
  0x83   : > { %1148 = vmatpush1.bf16.msra.mxu0 %v2598_v10  ;;  %2525 = vmatpush1.bf16.msra.mxu1 %v2598_v10  ;;  %v2692_v10 = vld [vmem:[%s2982_s26 + $0xe4] ss:$8 sps:$4 sm:$0xff]  }
  0x84   : > { %1149 = vmatprep.subr.bf16.mxu0 %v2760_v1  ;;  %2510 = vmatprep.subr.bf16.mxu1 %v2760_v1 }
  0x87   : > { %1150 = vmatpush1.bf16.msra.mxu0 %v2599_v11  ;;  %2526 = vmatpush1.bf16.msra.mxu1 %v2599_v11  ;;  %v2694_v11 = vld [vmem:[%s2982_s26 + $0x1e4] ss:$8 sps:$4 sm:$0xff]  }
  0x88   : > { %1151 = vmatprep.subr.bf16.mxu0 %v2760_v1  ;;  %2511 = vmatprep.subr.bf16.mxu1 %v2760_v1 }
  0x8b   : > { %1152 = vmatpush1.bf16.msra.mxu0 %v2600_v12  ;;  %2527 = vmatpush1.bf16.msra.mxu1 %v2600_v12  ;;  %v2696_v12 = vld [vmem:[%s2982_s26 + $0xe0] ss:$8 sps:$4 sm:$0xff]  }
  0x8c   : > { %1153 = vmatprep.subr.bf16.mxu0 %v2760_v1  ;;  %2512 = vmatprep.subr.bf16.mxu1 %v2760_v1 }
  0x8f   : > { %1154 = vmatpush1.bf16.msra.mxu0 %v2601_v13  ;;  %2528 = vmatpush1.bf16.msra.mxu1 %v2601_v13  ;;  %v2697_v13 = vld [vmem:[%s2982_s26 + $0x1e0] ss:$8 sps:$4 sm:$0xff]  }
  0x90   : > { %1155 = vmatprep.subr.bf16.mxu0 %v2760_v1  ;;  %2513 = vmatprep.subr.bf16.mxu1 %v2760_v1 }
  0x93   : > { %1156 = vmatpush1.bf16.msra.mxu0 %v2602_v14  ;;  %2529 = vmatpush1.bf16.msra.mxu1 %v2602_v14  ;;  %v2698_v14 = vld [vmem:[%s2982_s26 + $0xf4] ss:$8 sps:$4 sm:$0xff]  }
  0x94   : > { %1157 = vmatprep.subr.bf16.mxu0 %v2760_v1  ;;  %2514 = vmatprep.subr.bf16.mxu1 %v2760_v1 }
  0x97   : > { %1158 = vmatpush1.bf16.msra.mxu0 %v2603_v15  ;;  %2530 = vmatpush1.bf16.msra.mxu1 %v2603_v15  ;;  %v2700_v15 = vld [vmem:[%s2982_s26 + $0x1f4] ss:$8 sps:$4 sm:$0xff]  }
  0x98   : > { %1159 = vmatprep.subr.bf16.mxu0 %v2760_v1  ;;  %2515 = vmatprep.subr.bf16.mxu1 %v2760_v1 }
  0x9b   : > { %1160 = vmatpush1.bf16.msra.mxu0 %v2604_v16  ;;  %2531 = vmatpush1.bf16.msra.mxu1 %v2604_v16  ;;  %v2702_v16 = vld [vmem:[%s2982_s26 + $0xf0] ss:$8 sps:$4 sm:$0xff]  }
  0x9c   : > { %1161 = vmatprep.subr.bf16.mxu0 %v2760_v1  ;;  %2516 = vmatprep.subr.bf16.mxu1 %v2760_v1 }
  0x9f   : > { %1162 = vmatpush1.bf16.msra.mxu0 %v2605_v17  ;;  %2532 = vmatpush1.bf16.msra.mxu1 %v2605_v17  ;;  %v2703_v17 = vld [vmem:[%s2982_s26 + $0x1f0] ss:$8 sps:$4 sm:$0xff]  }
  0xa0   : > { %1163 = vmatprep.subr.bf16.mxu0 %v2760_v1  ;;  %2517 = vmatprep.subr.bf16.mxu1 %v2760_v1 }
  0xa3   : > { %1164 = vmatpush1.bf16.msra.mxu0 %v2606_v18  ;;  %2533 = vmatpush1.bf16.msra.mxu1 %v2606_v18  ;;  %v555_v18 = vld [vmem:[#allocation2] sm:$0xff] }
  0xa4   : > { %1165 = vmatprep.subr.bf16.mxu0 %v2760_v1  ;;  %2518 = vmatprep.subr.bf16.mxu1 %v2760_v1  ;;  %v2679_v1 = vld [vmem:[%s2982_s26 + $0x1b0] ss:$8 sps:$4 sm:$0xff]  }
  0xa7   : > { %1166 = vmatpush1.bf16.msra.mxu0 %v2607_v19  ;;  %2534 = vmatpush1.bf16.msra.mxu1 %v2607_v19  ;;  %v587_v19 = vld [vmem:[#allocation2 + $0x100] sm:$0xff] }
  0xaa   : > { %1168 = vmatmul.mubr.bf16.vlgmr.msra.gmra.mrb[0].mxu0 %v2608_v20  ;;  %1296 = vmatmul.mubr.bf16.vlgmr.msra.gmra.mrb[0].mxu1 %v2611_v21 }
  0xab   : > { %1175 = vmatprep.mubr.bf16.mxu0 %v2614_v22  ;;  %1303 = vmatprep.mubr.bf16.mxu1 %v2616_v23  ;;  %v556_v22 = vld [vmem:[#allocation2 + $0x8] sm:$0xff] }
  0xac   : > { %v588_v23 = vld [vmem:[#allocation2 + $0x108] sm:$0xff] }
  0xb2   : > { %1176 = vmatmul.mubr.bf16.gmra.mrb[4].mxu0 %v2618_v24  ;;  %1304 = vmatmul.mubr.bf16.gmra.mrb[4].mxu1 %v2619_v25 }
  0xb3   : > { %1183 = vmatprep.mubr.bf16.mxu0 %v2620_v26  ;;  %1311 = vmatprep.mubr.bf16.mxu1 %v2622_v27 }
  0xba   : > { %1184 = vmatmul.mubr.bf16.gmra.mrb[8].mxu0 %v2624_v28  ;;  %1312 = vmatmul.mubr.bf16.gmra.mrb[8].mxu1 %v2625_v29 }
  0xbb   : > { %1191 = vmatprep.mubr.bf16.mxu0 %v2626_v30  ;;  %1319 = vmatprep.mubr.bf16.mxu1 %v2628_v31 }
  0xc2   : > { %1192 = vmatmul.mubr.bf16.gmra.mrb[12].mxu0 %v2630_v32  ;;  %1320 = vmatmul.mubr.bf16.gmra.mrb[12].mxu1 %v2631_v33 }
  0xc3   : > { %1199 = vmatprep.mubr.bf16.mxu0 %v2632_v34  ;;  %1327 = vmatprep.mubr.bf16.mxu1 %v2634_v35  ;;  %v557_v34 = vld [vmem:[#allocation2 + $0x10] sm:$0xff] }
  0xc4   : > { %v589_v35 = vld [vmem:[#allocation2 + $0x110] sm:$0xff] }
  0xca   : > { %1200 = vmatmul.mubr.bf16.gmra.mrb[16].mxu0 %v2636_v36  ;;  %1328 = vmatmul.mubr.bf16.gmra.mrb[16].mxu1 %v2637_v37 }
  0xcb   : > { %1207 = vmatprep.mubr.bf16.mxu0 %v2638_v38  ;;  %1335 = vmatprep.mubr.bf16.mxu1 %v2640_v39  ;;  %v558_v38 = vld [vmem:[#allocation2 + $0x18] sm:$0xff] }
  0xcc   : > { %v590_v39 = vld [vmem:[#allocation2 + $0x118] sm:$0xff] }
  0xd2   : > { %1208 = vmatmul.mubr.bf16.gmra.mrb[20].mxu0 %v2642_v40  ;;  %1336 = vmatmul.mubr.bf16.gmra.mrb[20].mxu1 %v2643_v41 }
  0xd3   : > { %1215 = vmatprep.mubr.bf16.mxu0 %v2644_v42  ;;  %1343 = vmatprep.mubr.bf16.mxu1 %v2646_v43 }
  0xda   : > { %1216 = vmatmul.mubr.bf16.gmra.mrb[24].mxu0 %v2648_v44  ;;  %1344 = vmatmul.mubr.bf16.gmra.mrb[24].mxu1 %v2649_v45 }
  0xdb   : > { %1223 = vmatprep.mubr.bf16.mxu0 %v2650_v46  ;;  %1351 = vmatprep.mubr.bf16.mxu1 %v2652_v47 }
  0xe2   : > { %1224 = vmatmul.mubr.bf16.gmra.mrb[28].mxu0 %v2654_v48  ;;  %1352 = vmatmul.mubr.bf16.gmra.mrb[28].mxu1 %v2655_v49 }
  0xe3   : > { %1231 = vmatprep.mubr.bf16.mxu0 %v2656_v50  ;;  %1359 = vmatprep.mubr.bf16.mxu1 %v2658_v51  ;;  %v559_v50 = vld [vmem:[#allocation2 + $0x20] sm:$0xff] }
  0xe4   : > { %v591_v51 = vld [vmem:[#allocation2 + $0x120] sm:$0xff] }
  0xea   : > { %1232 = vmatmul.mubr.bf16.gmra.mrb[32].mxu0 %v2660_v52  ;;  %1360 = vmatmul.mubr.bf16.gmra.mrb[32].mxu1 %v2661_v53 }
  0xeb   : > { %1239 = vmatprep.mubr.bf16.mxu0 %v2662_v54  ;;  %1367 = vmatprep.mubr.bf16.mxu1 %v2664_v55  ;;  %v560_v54 = vld [vmem:[#allocation2 + $0x28] sm:$0xff] }
  0xec   : > { %v592_v55 = vld [vmem:[#allocation2 + $0x128] sm:$0xff] }
  0xf2   : > { %1240 = vmatmul.mubr.bf16.gmra.mrb[36].mxu0 %v2666_v56  ;;  %1368 = vmatmul.mubr.bf16.gmra.mrb[36].mxu1 %v2667_v57 }
  0xf3   : > { %1247 = vmatprep.mubr.bf16.mxu0 %v2668_v58  ;;  %1375 = vmatprep.mubr.bf16.mxu1 %v2670_v59 }
  0xfa   : > { %1248 = vmatmul.mubr.bf16.gmra.mrb[40].mxu0 %v2672_v60  ;;  %1376 = vmatmul.mubr.bf16.gmra.mrb[40].mxu1 %v2673_v61 }
  0xfb   : > { %1255 = vmatprep.mubr.bf16.mxu0 %v2674_v62  ;;  %1383 = vmatprep.mubr.bf16.mxu1 %v2676_v63 }
 0x102   : > { %1256 = vmatmul.mubr.bf16.gmra.mrb[44].mxu0 %v2678_v0  ;;  %1384 = vmatmul.mubr.bf16.gmra.mrb[44].mxu1 %v2679_v1 }
 0x103   : > { %1263 = vmatprep.mubr.bf16.mxu0 %v2680_v2  ;;  %1391 = vmatprep.mubr.bf16.mxu1 %v2682_v3  ;;  %v561_v2 = vld [vmem:[#allocation2 + $0x30] sm:$0xff] }
 0x104   : > { %v593_v3 = vld [vmem:[#allocation2 + $0x130] sm:$0xff] }
 0x10a   : > { %1264 = vmatmul.mubr.bf16.gmra.mrb[48].mxu0 %v2684_v4  ;;  %1392 = vmatmul.mubr.bf16.gmra.mrb[48].mxu1 %v2685_v5 }
 0x10b   : > { %1271 = vmatprep.mubr.bf16.mxu0 %v2686_v6  ;;  %1399 = vmatprep.mubr.bf16.mxu1 %v2688_v7  ;;  %v562_v6 = vld [vmem:[#allocation2 + $0x38] sm:$0xff] }
 0x10c   : > { %v594_v7 = vld [vmem:[#allocation2 + $0x138] sm:$0xff] }
 0x112   : > { %1272 = vmatmul.mubr.bf16.gmra.mrb[52].mxu0 %v2690_v8  ;;  %1400 = vmatmul.mubr.bf16.gmra.mrb[52].mxu1 %v2691_v9 }
 0x113   : > { %1279 = vmatprep.mubr.bf16.mxu0 %v2692_v10  ;;  %1407 = vmatprep.mubr.bf16.mxu1 %v2694_v11 }
 0x11a   : > { %1280 = vmatmul.mubr.bf16.gmra.mrb[56].mxu0 %v2696_v12  ;;  %1408 = vmatmul.mubr.bf16.gmra.mrb[56].mxu1 %v2697_v13 }
 0x11b   : > { %1287 = vmatprep.mubr.bf16.mxu0 %v2698_v14  ;;  %1415 = vmatprep.mubr.bf16.mxu1 %v2700_v15 }
 0x122   : > { %1288 = vmatmul.mubr.bf16.gmra.mrb[60].mxu0 %v2702_v16  ;;  %1416 = vmatmul.mubr.bf16.gmra.mrb[60].mxu1 %v2703_v17 }
 0x17d   : > { %v1169_v20 = vpop.f32.mrb[0].mxu0  ;;  %v1297_v21 = vpop.f32.mrb[0].mxu1 }
 0x17e   : > { %v1424_v24 = vadd.f32 %v1169_v20, %v555_v18  ;;  %v1456_v25 = vadd.f32 %v1297_v21, %v587_v19  ;;  %v1171_v26 = vpop.f32.mrb[1].mxu0  ;;  %v1299_v27 = vpop.f32.mrb[1].mxu1  ;;  %v563_v18 = vld [vmem:[#allocation2 + $0x40] sm:$0xff] }
 0x17f   : > { %v1172_v28 = vpop.f32.mrb[2].mxu0  ;;  %v1300_v29 = vpop.f32.mrb[2].mxu1  ;;  %v595_v19 = vld [vmem:[#allocation2 + $0x140] sm:$0xff] }
 0x180   : > { %1488 = vst [vmem:[#allocation2] sm:$0xff] %v1424_v24  ;;  %1520 = vst [vmem:[#allocation2 + $0x100] sm:$0xff] %v1456_v25  ;;  %v1425_v30 = vadd.f32 %v1172_v28, %v556_v22  ;;  %v1457_v31 = vadd.f32 %v1300_v29, %v588_v23  ;;  %v1174_v32 = vpop.f32.mrb[3].mxu0  ;;  %v1302_v33 = vpop.f32.mrb[3].mxu1  ;;  %v564_v22 = vld [vmem:[#allocation2 + $0x48] sm:$0xff] }
 0x181   : > { %v596_v23 = vld [vmem:[#allocation2 + $0x148] sm:$0xff] }
 0x182   : > { %1489 = vst [vmem:[#allocation2 + $0x8] sm:$0xff] %v1425_v30  ;;  %1521 = vst [vmem:[#allocation2 + $0x108] sm:$0xff] %v1457_v31 }
 0x185   : > { %v1177_v36 = vpop.f32.mrb[4].mxu0  ;;  %v1305_v37 = vpop.f32.mrb[4].mxu1 }
 0x186   : > { %v1426_v40 = vadd.f32 %v1177_v36, %v557_v34  ;;  %v1458_v41 = vadd.f32 %v1305_v37, %v589_v35  ;;  %v1179_v42 = vpop.f32.mrb[5].mxu0  ;;  %v1307_v43 = vpop.f32.mrb[5].mxu1  ;;  %v565_v34 = vld [vmem:[#allocation2 + $0x50] sm:$0xff] }
 0x187   : > { %v1180_v44 = vpop.f32.mrb[6].mxu0  ;;  %v1308_v45 = vpop.f32.mrb[6].mxu1  ;;  %v597_v35 = vld [vmem:[#allocation2 + $0x150] sm:$0xff] }
 0x188   : > { %1490 = vst [vmem:[#allocation2 + $0x10] sm:$0xff] %v1426_v40  ;;  %1522 = vst [vmem:[#allocation2 + $0x110] sm:$0xff] %v1458_v41  ;;  %v1427_v46 = vadd.f32 %v1180_v44, %v558_v38  ;;  %v1459_v47 = vadd.f32 %v1308_v45, %v590_v39  ;;  %v1182_v48 = vpop.f32.mrb[7].mxu0  ;;  %v1310_v49 = vpop.f32.mrb[7].mxu1  ;;  %v566_v38 = vld [vmem:[#allocation2 + $0x58] sm:$0xff] }
 0x189   : > { %v598_v39 = vld [vmem:[#allocation2 + $0x158] sm:$0xff] }
 0x18a   : > { %1491 = vst [vmem:[#allocation2 + $0x18] sm:$0xff] %v1427_v46  ;;  %1523 = vst [vmem:[#allocation2 + $0x118] sm:$0xff] %v1459_v47 }
 0x18d   : > { %v1185_v52 = vpop.f32.mrb[8].mxu0  ;;  %v1313_v53 = vpop.f32.mrb[8].mxu1 }
 0x18e   : > { %v1428_v56 = vadd.f32 %v1185_v52, %v559_v50  ;;  %v1460_v57 = vadd.f32 %v1313_v53, %v591_v51  ;;  %v1187_v58 = vpop.f32.mrb[9].mxu0  ;;  %v1315_v59 = vpop.f32.mrb[9].mxu1  ;;  %v567_v50 = vld [vmem:[#allocation2 + $0x60] sm:$0xff] }
 0x18f   : > { %v1188_v60 = vpop.f32.mrb[10].mxu0  ;;  %v1316_v61 = vpop.f32.mrb[10].mxu1  ;;  %v599_v51 = vld [vmem:[#allocation2 + $0x160] sm:$0xff] }
 0x190   : > { %1492 = vst [vmem:[#allocation2 + $0x20] sm:$0xff] %v1428_v56  ;;  %1524 = vst [vmem:[#allocation2 + $0x120] sm:$0xff] %v1460_v57  ;;  %v1429_v62 = vadd.f32 %v1188_v60, %v560_v54  ;;  %v1461_v63 = vadd.f32 %v1316_v61, %v592_v55  ;;  %v1190_v0 = vpop.f32.mrb[11].mxu0  ;;  %v1318_v1 = vpop.f32.mrb[11].mxu1  ;;  %v568_v54 = vld [vmem:[#allocation2 + $0x68] sm:$0xff] }
 0x191   : > { %v600_v55 = vld [vmem:[#allocation2 + $0x168] sm:$0xff] }
 0x192   : > { %1493 = vst [vmem:[#allocation2 + $0x28] sm:$0xff] %v1429_v62  ;;  %1525 = vst [vmem:[#allocation2 + $0x128] sm:$0xff] %v1461_v63 }
 0x195   : > { %v1193_v4 = vpop.f32.mrb[12].mxu0  ;;  %v1321_v5 = vpop.f32.mrb[12].mxu1 }
 0x196   : > { %v1430_v8 = vadd.f32 %v1193_v4, %v561_v2  ;;  %v1462_v9 = vadd.f32 %v1321_v5, %v593_v3  ;;  %v1195_v10 = vpop.f32.mrb[13].mxu0  ;;  %v1323_v11 = vpop.f32.mrb[13].mxu1  ;;  %v569_v2 = vld [vmem:[#allocation2 + $0x70] sm:$0xff] }
 0x197   : > { %v1196_v12 = vpop.f32.mrb[14].mxu0  ;;  %v1324_v13 = vpop.f32.mrb[14].mxu1  ;;  %v601_v3 = vld [vmem:[#allocation2 + $0x170] sm:$0xff] }
 0x198   : > { %1494 = vst [vmem:[#allocation2 + $0x30] sm:$0xff] %v1430_v8  ;;  %1526 = vst [vmem:[#allocation2 + $0x130] sm:$0xff] %v1462_v9  ;;  %v1431_v14 = vadd.f32 %v1196_v12, %v562_v6  ;;  %v1463_v15 = vadd.f32 %v1324_v13, %v594_v7  ;;  %v1198_v16 = vpop.f32.mrb[15].mxu0  ;;  %v1326_v17 = vpop.f32.mrb[15].mxu1  ;;  %v570_v6 = vld [vmem:[#allocation2 + $0x78] sm:$0xff] }
 0x199   : > { %v602_v7 = vld [vmem:[#allocation2 + $0x178] sm:$0xff] }
 0x19a   : > { %1495 = vst [vmem:[#allocation2 + $0x38] sm:$0xff] %v1431_v14  ;;  %1527 = vst [vmem:[#allocation2 + $0x138] sm:$0xff] %v1463_v15 }
 0x19d   : > { %v1201_v20 = vpop.f32.mrb[16].mxu0  ;;  %v1329_v21 = vpop.f32.mrb[16].mxu1 }
 0x19e   : > { %v1432_v24 = vadd.f32 %v1201_v20, %v563_v18  ;;  %v1464_v25 = vadd.f32 %v1329_v21, %v595_v19  ;;  %v1203_v26 = vpop.f32.mrb[17].mxu0  ;;  %v1331_v27 = vpop.f32.mrb[17].mxu1  ;;  %v571_v18 = vld [vmem:[#allocation2 + $0x80] sm:$0xff] }
 0x19f   : > { %v1204_v28 = vpop.f32.mrb[18].mxu0  ;;  %v1332_v29 = vpop.f32.mrb[18].mxu1  ;;  %v603_v19 = vld [vmem:[#allocation2 + $0x180] sm:$0xff] }
 0x1a0   : > { %1496 = vst [vmem:[#allocation2 + $0x40] sm:$0xff] %v1432_v24  ;;  %1528 = vst [vmem:[#allocation2 + $0x140] sm:$0xff] %v1464_v25  ;;  %v1433_v30 = vadd.f32 %v1204_v28, %v564_v22  ;;  %v1465_v31 = vadd.f32 %v1332_v29, %v596_v23  ;;  %v1206_v32 = vpop.f32.mrb[19].mxu0  ;;  %v1334_v33 = vpop.f32.mrb[19].mxu1  ;;  %v572_v22 = vld [vmem:[#allocation2 + $0x88] sm:$0xff] }
 0x1a1   : > { %v604_v23 = vld [vmem:[#allocation2 + $0x188] sm:$0xff] }
 0x1a2   : > { %1497 = vst [vmem:[#allocation2 + $0x48] sm:$0xff] %v1433_v30  ;;  %1529 = vst [vmem:[#allocation2 + $0x148] sm:$0xff] %v1465_v31 }
 0x1a5   : > { %v1209_v36 = vpop.f32.mrb[20].mxu0  ;;  %v1337_v37 = vpop.f32.mrb[20].mxu1 }
 0x1a6   : > { %v1434_v40 = vadd.f32 %v1209_v36, %v565_v34  ;;  %v1466_v41 = vadd.f32 %v1337_v37, %v597_v35  ;;  %v1211_v42 = vpop.f32.mrb[21].mxu0  ;;  %v1339_v43 = vpop.f32.mrb[21].mxu1  ;;  %v573_v34 = vld [vmem:[#allocation2 + $0x90] sm:$0xff] }
 0x1a7   : > { %v1212_v44 = vpop.f32.mrb[22].mxu0  ;;  %v1340_v45 = vpop.f32.mrb[22].mxu1  ;;  %v605_v35 = vld [vmem:[#allocation2 + $0x190] sm:$0xff] }
 0x1a8   : > { %1498 = vst [vmem:[#allocation2 + $0x50] sm:$0xff] %v1434_v40  ;;  %1530 = vst [vmem:[#allocation2 + $0x150] sm:$0xff] %v1466_v41  ;;  %v1435_v46 = vadd.f32 %v1212_v44, %v566_v38  ;;  %v1467_v47 = vadd.f32 %v1340_v45, %v598_v39  ;;  %v1214_v48 = vpop.f32.mrb[23].mxu0  ;;  %v1342_v49 = vpop.f32.mrb[23].mxu1  ;;  %v574_v38 = vld [vmem:[#allocation2 + $0x98] sm:$0xff] }
 0x1a9   : > { %v606_v39 = vld [vmem:[#allocation2 + $0x198] sm:$0xff] }
 0x1aa   : > { %1499 = vst [vmem:[#allocation2 + $0x58] sm:$0xff] %v1435_v46  ;;  %1531 = vst [vmem:[#allocation2 + $0x158] sm:$0xff] %v1467_v47 }
 0x1ad   : > { %v1217_v52 = vpop.f32.mrb[24].mxu0  ;;  %v1345_v53 = vpop.f32.mrb[24].mxu1 }
 0x1ae   : > { %v1436_v56 = vadd.f32 %v1217_v52, %v567_v50  ;;  %v1468_v57 = vadd.f32 %v1345_v53, %v599_v51  ;;  %v1219_v58 = vpop.f32.mrb[25].mxu0  ;;  %v1347_v59 = vpop.f32.mrb[25].mxu1  ;;  %v575_v50 = vld [vmem:[#allocation2 + $0xa0] sm:$0xff] }
 0x1af   : > { %v1220_v60 = vpop.f32.mrb[26].mxu0  ;;  %v1348_v61 = vpop.f32.mrb[26].mxu1  ;;  %v607_v51 = vld [vmem:[#allocation2 + $0x1a0] sm:$0xff] }
 0x1b0   : > { %1500 = vst [vmem:[#allocation2 + $0x60] sm:$0xff] %v1436_v56  ;;  %1532 = vst [vmem:[#allocation2 + $0x160] sm:$0xff] %v1468_v57  ;;  %v1437_v62 = vadd.f32 %v1220_v60, %v568_v54  ;;  %v1469_v63 = vadd.f32 %v1348_v61, %v600_v55  ;;  %v1222_v0 = vpop.f32.mrb[27].mxu0  ;;  %v1350_v1 = vpop.f32.mrb[27].mxu1  ;;  %v576_v54 = vld [vmem:[#allocation2 + $0xa8] sm:$0xff] }
 0x1b1   : > { %v608_v55 = vld [vmem:[#allocation2 + $0x1a8] sm:$0xff] }
 0x1b2   : > { %1501 = vst [vmem:[#allocation2 + $0x68] sm:$0xff] %v1437_v62  ;;  %1533 = vst [vmem:[#allocation2 + $0x168] sm:$0xff] %v1469_v63 }
 0x1b5   : > { %v1225_v4 = vpop.f32.mrb[28].mxu0  ;;  %v1353_v5 = vpop.f32.mrb[28].mxu1 }
 0x1b6   : > { %v1438_v8 = vadd.f32 %v1225_v4, %v569_v2  ;;  %v1470_v9 = vadd.f32 %v1353_v5, %v601_v3  ;;  %v1227_v10 = vpop.f32.mrb[29].mxu0  ;;  %v1355_v11 = vpop.f32.mrb[29].mxu1  ;;  %v577_v2 = vld [vmem:[#allocation2 + $0xb0] sm:$0xff] }
 0x1b7   : > { %v1228_v12 = vpop.f32.mrb[30].mxu0  ;;  %v1356_v13 = vpop.f32.mrb[30].mxu1  ;;  %v609_v3 = vld [vmem:[#allocation2 + $0x1b0] sm:$0xff] }
 0x1b8   : > { %1502 = vst [vmem:[#allocation2 + $0x70] sm:$0xff] %v1438_v8  ;;  %1534 = vst [vmem:[#allocation2 + $0x170] sm:$0xff] %v1470_v9  ;;  %v1439_v14 = vadd.f32 %v1228_v12, %v570_v6  ;;  %v1471_v15 = vadd.f32 %v1356_v13, %v602_v7  ;;  %v1230_v16 = vpop.f32.mrb[31].mxu0  ;;  %v1358_v17 = vpop.f32.mrb[31].mxu1  ;;  %v578_v6 = vld [vmem:[#allocation2 + $0xb8] sm:$0xff] }
 0x1b9   : > { %v610_v7 = vld [vmem:[#allocation2 + $0x1b8] sm:$0xff] }
 0x1ba   : > { %1503 = vst [vmem:[#allocation2 + $0x78] sm:$0xff] %v1439_v14  ;;  %1535 = vst [vmem:[#allocation2 + $0x178] sm:$0xff] %v1471_v15 }
 0x1bd   : > { %v1233_v20 = vpop.f32.mrb[32].mxu0  ;;  %v1361_v21 = vpop.f32.mrb[32].mxu1 }
 0x1be   : > { %v1440_v24 = vadd.f32 %v1233_v20, %v571_v18  ;;  %v1472_v25 = vadd.f32 %v1361_v21, %v603_v19  ;;  %v1235_v26 = vpop.f32.mrb[33].mxu0  ;;  %v1363_v27 = vpop.f32.mrb[33].mxu1  ;;  %v579_v18 = vld [vmem:[#allocation2 + $0xc0] sm:$0xff] }
 0x1bf   : > { %v1236_v28 = vpop.f32.mrb[34].mxu0  ;;  %v1364_v29 = vpop.f32.mrb[34].mxu1  ;;  %v611_v19 = vld [vmem:[#allocation2 + $0x1c0] sm:$0xff] }
 0x1c0   : > { %1504 = vst [vmem:[#allocation2 + $0x80] sm:$0xff] %v1440_v24  ;;  %1536 = vst [vmem:[#allocation2 + $0x180] sm:$0xff] %v1472_v25  ;;  %v1441_v30 = vadd.f32 %v1236_v28, %v572_v22  ;;  %v1473_v31 = vadd.f32 %v1364_v29, %v604_v23  ;;  %v1238_v32 = vpop.f32.mrb[35].mxu0  ;;  %v1366_v33 = vpop.f32.mrb[35].mxu1  ;;  %v580_v22 = vld [vmem:[#allocation2 + $0xc8] sm:$0xff] }
 0x1c1   : > { %v612_v23 = vld [vmem:[#allocation2 + $0x1c8] sm:$0xff] }
 0x1c2   : > { %1505 = vst [vmem:[#allocation2 + $0x88] sm:$0xff] %v1441_v30  ;;  %1537 = vst [vmem:[#allocation2 + $0x188] sm:$0xff] %v1473_v31 }
 0x1c5   : > { %v1241_v36 = vpop.f32.mrb[36].mxu0  ;;  %v1369_v37 = vpop.f32.mrb[36].mxu1 }
 0x1c6   : > { %v1442_v40 = vadd.f32 %v1241_v36, %v573_v34  ;;  %v1474_v41 = vadd.f32 %v1369_v37, %v605_v35  ;;  %v1243_v42 = vpop.f32.mrb[37].mxu0  ;;  %v1371_v43 = vpop.f32.mrb[37].mxu1  ;;  %v581_v34 = vld [vmem:[#allocation2 + $0xd0] sm:$0xff] }
 0x1c7   : > { %v1244_v44 = vpop.f32.mrb[38].mxu0  ;;  %v1372_v45 = vpop.f32.mrb[38].mxu1  ;;  %v613_v35 = vld [vmem:[#allocation2 + $0x1d0] sm:$0xff] }
 0x1c8   : > { %1506 = vst [vmem:[#allocation2 + $0x90] sm:$0xff] %v1442_v40  ;;  %1538 = vst [vmem:[#allocation2 + $0x190] sm:$0xff] %v1474_v41  ;;  %v1443_v46 = vadd.f32 %v1244_v44, %v574_v38  ;;  %v1475_v47 = vadd.f32 %v1372_v45, %v606_v39  ;;  %v1246_v48 = vpop.f32.mrb[39].mxu0  ;;  %v1374_v49 = vpop.f32.mrb[39].mxu1  ;;  %v582_v38 = vld [vmem:[#allocation2 + $0xd8] sm:$0xff] }
 0x1c9   : > { %v614_v39 = vld [vmem:[#allocation2 + $0x1d8] sm:$0xff] }
 0x1ca   : > { %1507 = vst [vmem:[#allocation2 + $0x98] sm:$0xff] %v1443_v46  ;;  %1539 = vst [vmem:[#allocation2 + $0x198] sm:$0xff] %v1475_v47 }
 0x1cd   : > { %v1249_v52 = vpop.f32.mrb[40].mxu0  ;;  %v1377_v53 = vpop.f32.mrb[40].mxu1 }
 0x1ce   : > { %v1444_v56 = vadd.f32 %v1249_v52, %v575_v50  ;;  %v1476_v57 = vadd.f32 %v1377_v53, %v607_v51  ;;  %v1251_v58 = vpop.f32.mrb[41].mxu0  ;;  %v1379_v59 = vpop.f32.mrb[41].mxu1  ;;  %v583_v50 = vld [vmem:[#allocation2 + $0xe0] sm:$0xff] }
 0x1cf   : > { %v1252_v60 = vpop.f32.mrb[42].mxu0  ;;  %v1380_v61 = vpop.f32.mrb[42].mxu1  ;;  %v615_v51 = vld [vmem:[#allocation2 + $0x1e0] sm:$0xff] }
 0x1d0   : > { %1508 = vst [vmem:[#allocation2 + $0xa0] sm:$0xff] %v1444_v56  ;;  %1540 = vst [vmem:[#allocation2 + $0x1a0] sm:$0xff] %v1476_v57  ;;  %v1445_v62 = vadd.f32 %v1252_v60, %v576_v54  ;;  %v1477_v63 = vadd.f32 %v1380_v61, %v608_v55  ;;  %v1254_v0 = vpop.f32.mrb[43].mxu0  ;;  %v1382_v1 = vpop.f32.mrb[43].mxu1  ;;  %v584_v54 = vld [vmem:[#allocation2 + $0xe8] sm:$0xff] }
 0x1d1   : > { %v616_v55 = vld [vmem:[#allocation2 + $0x1e8] sm:$0xff] }
 0x1d2   : > { %1509 = vst [vmem:[#allocation2 + $0xa8] sm:$0xff] %v1445_v62  ;;  %1541 = vst [vmem:[#allocation2 + $0x1a8] sm:$0xff] %v1477_v63 }
 0x1d5   : > { %v1257_v4 = vpop.f32.mrb[44].mxu0  ;;  %v1385_v5 = vpop.f32.mrb[44].mxu1 }
 0x1d6   : > { %v1446_v8 = vadd.f32 %v1257_v4, %v577_v2  ;;  %v1478_v9 = vadd.f32 %v1385_v5, %v609_v3  ;;  %v1259_v10 = vpop.f32.mrb[45].mxu0  ;;  %v1387_v11 = vpop.f32.mrb[45].mxu1  ;;  %v585_v2 = vld [vmem:[#allocation2 + $0xf0] sm:$0xff] }
 0x1d7   : > { %v1260_v12 = vpop.f32.mrb[46].mxu0  ;;  %v1388_v13 = vpop.f32.mrb[46].mxu1  ;;  %v617_v3 = vld [vmem:[#allocation2 + $0x1f0] sm:$0xff] }
 0x1d8   : > { %1510 = vst [vmem:[#allocation2 + $0xb0] sm:$0xff] %v1446_v8  ;;  %1542 = vst [vmem:[#allocation2 + $0x1b0] sm:$0xff] %v1478_v9  ;;  %v1447_v14 = vadd.f32 %v1260_v12, %v578_v6  ;;  %v1479_v15 = vadd.f32 %v1388_v13, %v610_v7  ;;  %v1262_v16 = vpop.f32.mrb[47].mxu0  ;;  %v1390_v17 = vpop.f32.mrb[47].mxu1  ;;  %v586_v6 = vld [vmem:[#allocation2 + $0xf8] sm:$0xff] }
 0x1d9   : > { %v618_v7 = vld [vmem:[#allocation2 + $0x1f8] sm:$0xff] }
 0x1da   : > { %1511 = vst [vmem:[#allocation2 + $0xb8] sm:$0xff] %v1447_v14  ;;  %1543 = vst [vmem:[#allocation2 + $0x1b8] sm:$0xff] %v1479_v15 }
 0x1dd   : > { %v1265_v20 = vpop.f32.mrb[48].mxu0  ;;  %v1393_v21 = vpop.f32.mrb[48].mxu1 }
 0x1de   : > { %v1448_v24 = vadd.f32 %v1265_v20, %v579_v18  ;;  %v1480_v25 = vadd.f32 %v1393_v21, %v611_v19  ;;  %v1267_v26 = vpop.f32.mrb[49].mxu0  ;;  %v1395_v27 = vpop.f32.mrb[49].mxu1  ;;  %v1556_v18 = vld [vmem:[#allocation2] sm:$0xff] (!%p2180_p12)  ;;  %v1557_v19 = vld [vmem:[#allocation2 + $0x8] sm:$0xff] (!%p2180_p12)  ;;  %v1558_v20 = vld [vmem:[#allocation2 + $0x10] sm:$0xff] (!%p2180_p12) }
 0x1df   : > { %v1268_v28 = vpop.f32.mrb[50].mxu0  ;;  %v1396_v29 = vpop.f32.mrb[50].mxu1  ;;  %v1620_v21 = vmax.f32 (!%p2180_p12), %v1556_v18, 0.0  ;;  %v1561_v26 = vld [vmem:[#allocation2 + $0x28] sm:$0xff] (!%p2180_p12) }
 0x1e0   : > { %1512 = vst [vmem:[#allocation2 + $0xc0] sm:$0xff] %v1448_v24  ;;  %1544 = vst [vmem:[#allocation2 + $0x1c0] sm:$0xff] %v1480_v25  ;;  %v1449_v30 = vadd.f32 %v1268_v28, %v580_v22  ;;  %v1481_v31 = vadd.f32 %v1396_v29, %v612_v23  ;;  %v1270_v32 = vpop.f32.mrb[51].mxu0  ;;  %v1398_v33 = vpop.f32.mrb[51].mxu1  ;;  %v1621_v22 = vmax.f32 (!%p2180_p12), %v1557_v19, 0.0  ;;  %v1559_v23 = vld [vmem:[#allocation2 + $0x18] sm:$0xff] (!%p2180_p12) }
 0x1e1   : > { %v1622_v24 = vmax.f32 (!%p2180_p12), %v1558_v20, 0.0  ;;  %v1560_v25 = vld [vmem:[#allocation2 + $0x20] sm:$0xff] (!%p2180_p12)  ;;  %v1623_v27 = vmax.f32 (!%p2180_p12), %v1559_v23, 0.0  ;;  %v1625_v29 = vmax.f32 (!%p2180_p12), %v1561_v26, 0.0 }
 0x1e2   : > { %1513 = vst [vmem:[#allocation2 + $0xc8] sm:$0xff] %v1449_v30  ;;  %1545 = vst [vmem:[#allocation2 + $0x1c8] sm:$0xff] %v1481_v31  ;;  %v1624_v28 = vmax.f32 (!%p2180_p12), %v1560_v25, 0.0  ;;  %v1562_v30 = vld [vmem:[#allocation2 + $0x30] sm:$0xff] (!%p2180_p12)  ;;  %v1563_v31 = vld [vmem:[#allocation2 + $0x38] sm:$0xff] (!%p2180_p12)  ;;  %v2315_v33 = vpack.c.bf16 (!%p2180_p12), %v1621_v22, %v1620_v21 }
 0x1e3   : > { %v1564_v32 = vld [vmem:[#allocation2 + $0x40] sm:$0xff] (!%p2180_p12) }
 0x1e4   : > { %2316 = vst [vmem:[%s2980_s24] sm:$0xff] (!%p2180_p12), %v2315_v33  }
 0x1e5   : > { %v1273_v36 = vpop.f32.mrb[52].mxu0  ;;  %v1401_v37 = vpop.f32.mrb[52].mxu1 }
 0x1e6   : > { %v1450_v40 = vadd.f32 %v1273_v36, %v581_v34  ;;  %v1482_v41 = vadd.f32 %v1401_v37, %v613_v35  ;;  %v1275_v42 = vpop.f32.mrb[53].mxu0  ;;  %v1403_v43 = vpop.f32.mrb[53].mxu1  ;;  %v1626_v34 = vmax.f32 (!%p2180_p12), %v1562_v30, 0.0  ;;  %v1627_v35 = vmax.f32 (!%p2180_p12), %v1563_v31, 0.0  ;;  %v1565_v36 = vld [vmem:[#allocation2 + $0x48] sm:$0xff] (!%p2180_p12)  ;;  %v1590_v30 = vld [vmem:[#allocation2 + $0x110] sm:$0xff] (!%p2180_p12) }
 0x1e7   : > { %v1276_v44 = vpop.f32.mrb[54].mxu0  ;;  %v1404_v45 = vpop.f32.mrb[54].mxu1  ;;  %v1628_v37 = vmax.f32 (!%p2180_p12), %v1564_v32, 0.0  ;;  %v1629_v42 = vmax.f32 (!%p2180_p12), %v1565_v36, 0.0  ;;  %v1591_v31 = vld [vmem:[#allocation2 + $0x118] sm:$0xff] (!%p2180_p12)  ;;  %v1592_v36 = vld [vmem:[#allocation2 + $0x120] sm:$0xff] (!%p2180_p12) }
 0x1e8   : > { %1514 = vst [vmem:[#allocation2 + $0xd0] sm:$0xff] %v1450_v40  ;;  %1546 = vst [vmem:[#allocation2 + $0x1d0] sm:$0xff] %v1482_v41  ;;  %v1451_v46 = vadd.f32 %v1276_v44, %v582_v38  ;;  %v1483_v47 = vadd.f32 %v1404_v45, %v614_v39  ;;  %v1278_v48 = vpop.f32.mrb[55].mxu0  ;;  %v1406_v49 = vpop.f32.mrb[55].mxu1  ;;  %v1566_v38 = vld [vmem:[#allocation2 + $0x50] sm:$0xff] (!%p2180_p12)  ;;  %v1567_v39 = vld [vmem:[#allocation2 + $0x58] sm:$0xff] (!%p2180_p12)  ;;  %v2320_v40 = vpack.c.bf16 (!%p2180_p12), %v1623_v27, %v1622_v24 }
 0x1e9   : > { %v2325_v41 = vpack.c.bf16 (!%p2180_p12), %v1625_v29, %v1624_v28  ;;  %v1630_v43 = vmax.f32 (!%p2180_p12), %v1566_v38, 0.0  ;;  %v1568_v44 = vld [vmem:[#allocation2 + $0x60] sm:$0xff] (!%p2180_p12)  ;;  %v1569_v45 = vld [vmem:[#allocation2 + $0x68] sm:$0xff] (!%p2180_p12)  ;;  %v1631_v48 = vmax.f32 (!%p2180_p12), %v1567_v39, 0.0  ;;  %v1594_v38 = vld [vmem:[#allocation2 + $0x130] sm:$0xff] (!%p2180_p12) }
 0x1ea   : > { %1515 = vst [vmem:[#allocation2 + $0xd8] sm:$0xff] %v1451_v46  ;;  %1547 = vst [vmem:[#allocation2 + $0x1d8] sm:$0xff] %v1483_v47  ;;  %v1570_v46 = vld [vmem:[#allocation2 + $0x70] sm:$0xff] (!%p2180_p12)  ;;  %v2330_v47 = vpack.c.bf16 (!%p2180_p12), %v1627_v35, %v1626_v34  ;;  %v1632_v49 = vmax.f32 (!%p2180_p12), %v1568_v44, 0.0  ;;  %v1588_v24 = vld [vmem:[#allocation2 + $0x100] sm:$0xff] (!%p2180_p12) }
 0x1eb   : > { %2472 = vst [vmem:[%s2980_s24 + $0x8] sm:$0xff] (!%p2180_p12), %v2320_v40   ;;  %2473 = vst [vmem:[%s2980_s24 + $0x10] sm:$0xff] (!%p2180_p12), %v2325_v41   ;;  %v1589_v29 = vld [vmem:[#allocation2 + $0x108] sm:$0xff] (!%p2180_p12)  ;;  %v1652_v35 = vmax.f32 (!%p2180_p12), %v1588_v24, 0.0  ;;  %v1596_v44 = vld [vmem:[#allocation2 + $0x140] sm:$0xff] (!%p2180_p12) }
 0x1ec   : > { %2474 = vst [vmem:[%s2980_s24 + $0x18] sm:$0xff] (!%p2180_p12), %v2330_v47   ;;  %v1653_v41 = vmax.f32 (!%p2180_p12), %v1589_v29, 0.0  ;;  %v1655_v47 = vmax.f32 (!%p2180_p12), %v1591_v31, 0.0 }
 0x1ed   : > { %v1281_v52 = vpop.f32.mrb[56].mxu0  ;;  %v1409_v53 = vpop.f32.mrb[56].mxu1 }
 0x1ee   : > { %v1452_v56 = vadd.f32 %v1281_v52, %v583_v50  ;;  %v1484_v57 = vadd.f32 %v1409_v53, %v615_v51  ;;  %v1283_v58 = vpop.f32.mrb[57].mxu0  ;;  %v1411_v59 = vpop.f32.mrb[57].mxu1  ;;  %v1633_v50 = vmax.f32 (!%p2180_p12), %v1569_v45, 0.0  ;;  %v1571_v51 = vld [vmem:[#allocation2 + $0x78] sm:$0xff] (!%p2180_p12)  ;;  %v1572_v52 = vld [vmem:[#allocation2 + $0x80] sm:$0xff] (!%p2180_p12)  ;;  %v1573_v53 = vld [vmem:[#allocation2 + $0x88] sm:$0xff] (!%p2180_p12) }
 0x1ef   : > { %v1284_v60 = vpop.f32.mrb[58].mxu0  ;;  %v1412_v61 = vpop.f32.mrb[58].mxu1  ;;  %v1574_v58 = vld [vmem:[#allocation2 + $0x90] sm:$0xff] (!%p2180_p12)  ;;  %v1575_v59 = vld [vmem:[#allocation2 + $0x98] sm:$0xff] (!%p2180_p12)  ;;  %v1597_v45 = vld [vmem:[#allocation2 + $0x148] sm:$0xff] (!%p2180_p12) }
 0x1f0   : > { %1516 = vst [vmem:[#allocation2 + $0xe0] sm:$0xff] %v1452_v56  ;;  %1548 = vst [vmem:[#allocation2 + $0x1e0] sm:$0xff] %v1484_v57  ;;  %v1453_v62 = vadd.f32 %v1284_v60, %v584_v54  ;;  %v1485_v63 = vadd.f32 %v1412_v61, %v616_v55  ;;  %v1286_v0 = vpop.f32.mrb[59].mxu0  ;;  %v1414_v1 = vpop.f32.mrb[59].mxu1  ;;  %v2335_v54 = vpack.c.bf16 (!%p2180_p12), %v1629_v42, %v1628_v37  ;;  %v1634_v55 = vmax.f32 (!%p2180_p12), %v1570_v46, 0.0  ;;  %v1576_v60 = vld [vmem:[#allocation2 + $0xa0] sm:$0xff] (!%p2180_p12) }
 0x1f1   : > { %v1635_v56 = vmax.f32 (!%p2180_p12), %v1571_v51, 0.0  ;;  %v1636_v57 = vmax.f32 (!%p2180_p12), %v1572_v52, 0.0  ;;  %v2340_v61 = vpack.c.bf16 (!%p2180_p12), %v1631_v48, %v1630_v43  ;;  %v1638_v0 = vmax.f32 (!%p2180_p12), %v1574_v58, 0.0  ;;  %v1577_v1 = vld [vmem:[#allocation2 + $0xa8] sm:$0xff] (!%p2180_p12)  ;;  %v1595_v43 = vld [vmem:[#allocation2 + $0x138] sm:$0xff] (!%p2180_p12)  ;;  %v1600_v52 = vld [vmem:[#allocation2 + $0x160] sm:$0xff] (!%p2180_p12) }
 0x1f2   : > { %1517 = vst [vmem:[#allocation2 + $0xe8] sm:$0xff] %v1453_v62  ;;  %1549 = vst [vmem:[#allocation2 + $0x1e8] sm:$0xff] %v1485_v63  ;;  %v2345_v62 = vpack.c.bf16 (!%p2180_p12), %v1633_v50, %v1632_v49  ;;  %v1637_v63 = vmax.f32 (!%p2180_p12), %v1573_v53, 0.0  ;;  %v1593_v37 = vld [vmem:[#allocation2 + $0x128] sm:$0xff] (!%p2180_p12)  ;;  %v1654_v42 = vmax.f32 (!%p2180_p12), %v1590_v30, 0.0  ;;  %v1656_v48 = vmax.f32 (!%p2180_p12), %v1592_v36, 0.0 }
 0x1f3   : > { %2475 = vst [vmem:[%s2980_s24 + $0x20] sm:$0xff] (!%p2180_p12), %v2335_v54   ;;  %2476 = vst [vmem:[%s2980_s24 + $0x28] sm:$0xff] (!%p2180_p12), %v2340_v61   ;;  %v1657_v49 = vmax.f32 (!%p2180_p12), %v1593_v37, 0.0  ;;  %v1598_v50 = vld [vmem:[#allocation2 + $0x150] sm:$0xff] (!%p2180_p12)  ;;  %v1599_v51 = vld [vmem:[#allocation2 + $0x158] sm:$0xff] (!%p2180_p12)  ;;  %v2395_v53 = vpack.c.bf16 (!%p2180_p12), %v1653_v41, %v1652_v35  ;;  %v1658_v54 = vmax.f32 (!%p2180_p12), %v1594_v38, 0.0 }
 0x1f4   : > { %1555 = sbr.rel (%p2180_p12) target bundleno = 523 (0x20b), region = 78  ;;  %2477 = vst [vmem:[%s2980_s24 + $0x30] sm:$0xff] (!%p2180_p12), %v2345_v62   ;;  %v1602_v58 = vld [vmem:[#allocation2 + $0x170] sm:$0xff] (!%p2180_p12)  ;;  %v1661_v62 = vmax.f32 (!%p2180_p12), %v1597_v45, 0.0 }
 0x1f5   : > { %v1289_v4 = vpop.f32.mrb[60].mxu0  ;;  %v1417_v5 = vpop.f32.mrb[60].mxu1  ;;  %v2405_v61 = vpack.c.bf16 (!%p2180_p12), %v1657_v49, %v1656_v48  ;;  %2487 = vst [vmem:[%s2980_s24 + $0x80] sm:$0xff] (!%p2180_p12), %v2395_v53  }
 0x1f6   : > { %v1454_v8 = vadd.f32 %v1289_v4, %v585_v2  ;;  %v1486_v9 = vadd.f32 %v1417_v5, %v617_v3  ;;  %v1291_v10 = vpop.f32.mrb[61].mxu0  ;;  %v1419_v11 = vpop.f32.mrb[61].mxu1  ;;  %v1578_v2 = vld [vmem:[#allocation2 + $0xb0] sm:$0xff] (!%p2180_p12)  ;;  %v1579_v3 = vld [vmem:[#allocation2 + $0xb8] sm:$0xff] (!%p2180_p12)  ;;  %v2350_v4 = vpack.c.bf16 (!%p2180_p12), %v1635_v56, %v1634_v55  ;;  %v1639_v5 = vmax.f32 (!%p2180_p12), %v1575_v59, 0.0 }
 0x1f7   : > { %v1292_v12 = vpop.f32.mrb[62].mxu0  ;;  %v1420_v13 = vpop.f32.mrb[62].mxu1  ;;  %v1582_v10 = vld [vmem:[#allocation2 + $0xd0] sm:$0xff] (!%p2180_p12)  ;;  %v2355_v11 = vpack.c.bf16 (!%p2180_p12), %v1637_v63, %v1636_v57  ;;  %v1659_v55 = vmax.f32 (!%p2180_p12), %v1595_v43, 0.0  ;;  %v1660_v56 = vmax.f32 (!%p2180_p12), %v1596_v44, 0.0  ;;  %v1601_v57 = vld [vmem:[#allocation2 + $0x168] sm:$0xff] (!%p2180_p12) }
 0x1f8   : > { %1518 = vst [vmem:[#allocation2 + $0xf0] sm:$0xff] %v1454_v8  ;;  %1550 = vst [vmem:[#allocation2 + $0x1f0] sm:$0xff] %v1486_v9  ;;  %v1455_v14 = vadd.f32 %v1292_v12, %v586_v6  ;;  %v1487_v15 = vadd.f32 %v1420_v13, %v618_v7  ;;  %v1294_v16 = vpop.f32.mrb[63].mxu0  ;;  %v1422_v17 = vpop.f32.mrb[63].mxu1  ;;  %v1640_v6 = vmax.f32 (!%p2180_p12), %v1576_v60, 0.0  ;;  %v1641_v7 = vmax.f32 (!%p2180_p12), %v1577_v1, 0.0 }
 0x1f9   : > { %v1580_v8 = vld [vmem:[#allocation2 + $0xc0] sm:$0xff] (!%p2180_p12)  ;;  %v1581_v9 = vld [vmem:[#allocation2 + $0xc8] sm:$0xff] (!%p2180_p12)  ;;  %v1642_v12 = vmax.f32 (!%p2180_p12), %v1578_v2, 0.0  ;;  %v1643_v13 = vmax.f32 (!%p2180_p12), %v1579_v3, 0.0  ;;  %2478 = vst [vmem:[%s2980_s24 + $0x38] sm:$0xff] (!%p2180_p12), %v2350_v4   ;;  %v2360_v18 = vpack.c.bf16 (!%p2180_p12), %v1639_v5, %v1638_v0  ;;  %v1646_v21 = vmax.f32 (!%p2180_p12), %v1582_v10, 0.0 }
 0x1fa   : > { %1519 = vst [vmem:[#allocation2 + $0xf8] sm:$0xff] %v1455_v14  ;;  %1551 = vst [vmem:[#allocation2 + $0x1f8] sm:$0xff] %v1487_v15  ;;  %v1644_v14 = vmax.f32 (!%p2180_p12), %v1580_v8, 0.0  ;;  %v1583_v15 = vld [vmem:[#allocation2 + $0xd8] sm:$0xff] (!%p2180_p12)  ;;  %v1584_v16 = vld [vmem:[#allocation2 + $0xe0] sm:$0xff] (!%p2180_p12)  ;;  %v2365_v19 = vpack.c.bf16 (!%p2180_p12), %v1641_v7, %v1640_v6  ;;  %v1645_v20 = vmax.f32 (!%p2180_p12), %v1581_v9, 0.0  ;;  %v2400_v60 = vpack.c.bf16 (!%p2180_p12), %v1655_v47, %v1654_v42 }
 0x1fb   : > { %v1585_v17 = vld [vmem:[#allocation2 + $0xe8] sm:$0xff]  ;;  %2479 = vst [vmem:[%s2980_s24 + $0x40] sm:$0xff] %v2355_v11   ;;  %v2370_v25 = vpack.c.bf16 %v1643_v13, %v1642_v12  ;;  %v1647_v26 = vmax.f32 %v1583_v15, 0.0  ;;  %v1648_v27 = vmax.f32 %v1584_v16, 0.0  ;;  %2480 = vst [vmem:[%s2980_s24 + $0x48] sm:$0xff] %v2360_v18   ;;  %v1603_v59 = vld [vmem:[#allocation2 + $0x178] sm:$0xff]  ;;  %v2410_v3 = vpack.c.bf16 %v1659_v55, %v1658_v54 }
 0x1fc   : > { %v1649_v28 = vmax.f32 %v1585_v17, 0.0  ;;  %2481 = vst [vmem:[%s2980_s24 + $0x50] sm:$0xff] %v2365_v19   ;;  %v2375_v32 = vpack.c.bf16 %v1645_v20, %v1644_v14  ;;  %v1662_v63 = vmax.f32 %v1598_v50, 0.0  ;;  %v1604_v0 = vld [vmem:[#allocation2 + $0x180] sm:$0xff]  ;;  %v1605_v1 = vld [vmem:[#allocation2 + $0x188] sm:$0xff]  ;;  %v1606_v2 = vld [vmem:[#allocation2 + $0x190] sm:$0xff]  ;;  %v2415_v10 = vpack.c.bf16 %v1661_v62, %v1660_v56 }
 0x1fd   : > { %2482 = vst [vmem:[%s2980_s24 + $0x58] sm:$0xff] %v2370_v25   ;;  %v2380_v39 = vpack.c.bf16 %v1647_v26, %v1646_v21  ;;  %v1663_v4 = vmax.f32 %v1599_v51, 0.0  ;;  %v1664_v5 = vmax.f32 %v1600_v52, 0.0  ;;  %v1665_v6 = vmax.f32 %v1601_v57, 0.0  ;;  %v1607_v7 = vld [vmem:[#allocation2 + $0x198] sm:$0xff]  ;;  %v1608_v8 = vld [vmem:[#allocation2 + $0x1a0] sm:$0xff] }
 0x1fe   : > { %v2385_v40 = vpack.c.bf16 %v1649_v28, %v1648_v27  ;;  %2483 = vst [vmem:[%s2980_s24 + $0x60] sm:$0xff] %v2375_v32   ;;  %v1609_v9 = vld [vmem:[#allocation2 + $0x1a8] sm:$0xff]  ;;  %2488 = vst [vmem:[%s2980_s24 + $0x88] sm:$0xff] %v2400_v60   ;;  %v1666_v11 = vmax.f32 %v1602_v58, 0.0  ;;  %v1667_v12 = vmax.f32 %v1603_v59, 0.0  ;;  %v1668_v13 = vmax.f32 %v1604_v0, 0.0 }
 0x1ff   : > { %v1586_v22 = vld [vmem:[#allocation2 + $0xf0] sm:$0xff]  ;;  %2484 = vst [vmem:[%s2980_s24 + $0x68] sm:$0xff] %v2380_v39   ;;  %2489 = vst [vmem:[%s2980_s24 + $0x90] sm:$0xff] %v2405_v61   ;;  %v1611_v15 = vld [vmem:[#allocation2 + $0x1b8] sm:$0xff]  ;;  %v2420_v17 = vpack.c.bf16 %v1663_v4, %v1662_v63  ;;  %v2425_v18 = vpack.c.bf16 %v1665_v6, %v1664_v5  ;;  %v1669_v19 = vmax.f32 %v1605_v1, 0.0  ;;  %v1670_v20 = vmax.f32 %v1606_v2, 0.0 }
 0x200   : > { %v1650_v33 = vmax.f32 %v1586_v22, 0.0  ;;  %2485 = vst [vmem:[%s2980_s24 + $0x70] sm:$0xff] %v2385_v40   ;;  %v1610_v14 = vld [vmem:[#allocation2 + $0x1b0] sm:$0xff]  ;;  %v1612_v16 = vld [vmem:[#allocation2 + $0x1c0] sm:$0xff]  ;;  %2490 = vst [vmem:[%s2980_s24 + $0x98] sm:$0xff] %v2410_v3   ;;  %v1671_v24 = vmax.f32 %v1607_v7, 0.0 }
 0x201   : > { %v1587_v23 = vld [vmem:[#allocation2 + $0xf8] sm:$0xff]  ;;  %v1613_v21 = vld [vmem:[#allocation2 + $0x1c8] sm:$0xff]  ;;  %v1614_v22 = vld [vmem:[#allocation2 + $0x1d0] sm:$0xff]  ;;  %2491 = vst [vmem:[%s2980_s24 + $0xa0] sm:$0xff] %v2415_v10   ;;  %v1672_v25 = vmax.f32 %v1608_v8, 0.0  ;;  %v1673_v26 = vmax.f32 %v1609_v9, 0.0  ;;  %v2435_v30 = vpack.c.bf16 %v1669_v19, %v1668_v13 }
 0x202   : > { %v1651_v34 = vmax.f32 %v1587_v23, 0.0  ;;  %v2430_v23 = vpack.c.bf16 %v1667_v12, %v1666_v11  ;;  %v1615_v27 = vld [vmem:[#allocation2 + $0x1d8] sm:$0xff]  ;;  %v1616_v28 = vld [vmem:[#allocation2 + $0x1e0] sm:$0xff]  ;;  %v1617_v29 = vld [vmem:[#allocation2 + $0x1e8] sm:$0xff]  ;;  %2492 = vst [vmem:[%s2980_s24 + $0xa8] sm:$0xff] %v2420_v17   ;;  %v1674_v31 = vmax.f32 %v1610_v14, 0.0  ;;  %v2440_v36 = vpack.c.bf16 %v1671_v24, %v1670_v20 }
 0x203   : > { %2493 = vst [vmem:[%s2980_s24 + $0xb0] sm:$0xff] %v2425_v18   ;;  %v1675_v32 = vmax.f32 %v1611_v15, 0.0  ;;  %v1619_v35 = vld [vmem:[#allocation2 + $0x1f8] sm:$0xff]  ;;  %v2445_v37 = vpack.c.bf16 %v1673_v26, %v1672_v25  ;;  %v1677_v38 = vmax.f32 %v1613_v21, 0.0  ;;  %v1678_v39 = vmax.f32 %v1614_v22, 0.0  ;;  %2495 = vst [vmem:[%s2980_s24 + $0xc0] sm:$0xff] %v2435_v30  }
 0x204   : > { %v2390_v46 = vpack.c.bf16 %v1651_v34, %v1650_v33  ;;  %v1676_v33 = vmax.f32 %v1612_v16, 0.0  ;;  %v1618_v34 = vld [vmem:[#allocation2 + $0x1f0] sm:$0xff]  ;;  %2494 = vst [vmem:[%s2980_s24 + $0xb8] sm:$0xff] %v2430_v23   ;;  %v1679_v41 = vmax.f32 %v1615_v27, 0.0  ;;  %v1680_v42 = vmax.f32 %v1616_v28, 0.0  ;;  %2496 = vst [vmem:[%s2980_s24 + $0xc8] sm:$0xff] %v2440_v36  }
 0x205   : > { %v2450_v40 = vpack.c.bf16 %v1675_v32, %v1674_v31  ;;  %v1681_v43 = vmax.f32 %v1617_v29, 0.0  ;;  %2497 = vst [vmem:[%s2980_s24 + $0xd0] sm:$0xff] %v2445_v37   ;;  %v1682_v45 = vmax.f32 %v1618_v34, 0.0 }
 0x206   : > { %2486 = vst [vmem:[%s2980_s24 + $0x78] sm:$0xff] %v2390_v46   ;;  %v2455_v44 = vpack.c.bf16 %v1677_v38, %v1676_v33  ;;  %v1683_v46 = vmax.f32 %v1619_v35, 0.0  ;;  %v2460_v47 = vpack.c.bf16 %v1679_v41, %v1678_v39 }
 0x207   : > { %2498 = vst [vmem:[%s2980_s24 + $0xd8] sm:$0xff] %v2450_v40   ;;  %v2465_v48 = vpack.c.bf16 %v1681_v43, %v1680_v42 }
 0x208   : > { %2499 = vst [vmem:[%s2980_s24 + $0xe0] sm:$0xff] %v2455_v44   ;;  %v2470_v49 = vpack.c.bf16 %v1683_v46, %v1682_v45  ;;  %2500 = vst [vmem:[%s2980_s24 + $0xe8] sm:$0xff] %v2460_v47  }
 0x209   : > { %2501 = vst [vmem:[%s2980_s24 + $0xf0] sm:$0xff] %v2465_v48  }
 0x20a   : > { %2502 = vst [vmem:[%s2980_s24 + $0xf8] sm:$0xff] %v2470_v49  }
 0x20b PF: > { %s13_s18 = sadd.s32 1, %s2758_s18   ;;  %s3230_s12 = smov %s2738_s13 }
 0x20c   : > { %p10_p13 = scmp.ge.s32.totalorder %s13_s18, 6   ;;  %s3231_s13 = smov %s2832_s25 }
 0x20d   : > { %s3232_s14 = smov %s2750_s16  ;;  %s3233_s15 = smov %s2754_s17 }
 0x20e   : > { %s3234_s16 = smov %s3237_s19  ;;  %s3235_s17 = smov %s3241_s20 }
 0x20f   :  { %12 = sbr.rel (!%p10_p13) target bundleno = 4 (0x4), region = 114 }

</bundles_post_ra>
